<compile_context>
chip_gen: v7x
topology: tpu7x:2x2x1
jax: 0.10.0
libtpu: 0.0.40
codegen_flags: <defaults>
</compile_context>

<pallas_src>
import functools
import math

import jax
import jax.numpy as jnp
from jax.experimental import pallas as pl
from jax.experimental.pallas import tpu as pltpu

NEG_SLOPE = 0.2                        # LeakyReLU(0.2)
VMEM_LIMIT = 64 * 1024 * 1024          # <= physical VMEM on v5e/v6e/v7x


def _leaky(y):
    return jnp.where(y >= 0, y, NEG_SLOPE * y)


def _cparams(*sems):
    return pltpu.CompilerParams(dimension_semantics=sems,
                                vmem_limit_bytes=VMEM_LIMIT)


def _pick_tile(n, cap=512):
    """Largest tile <= cap that is a multiple of 128 and divides n (or n itself)."""
    if n <= cap:
        return n
    t = (cap // 128) * 128
    while t >= 128:
        if n % t == 0:
            return t
        t -= 128
    return n


# --------------------------------------------------------------------------
# Front end: fused AWM/TCN stand-ins (attention + feature convs) + fusion conv
# --------------------------------------------------------------------------
def _frontend_kernel(dh, x_ref, vaw_ref, vab_ref, faw_ref, fab_ref,
                     fwv_ref, fwf_ref, fb_ref,
                     nfeat_ref, vfeat_ref, ffeat_ref, atn_ref):
    x = x_ref[0]                                   # (TT, C) f32
    rgb = x[:, :dh].astype(jnp.bfloat16)
    flow = x[:, dh:].astype(jnp.bfloat16)
    # [feat | att] columns packed into one weight so the Cout=1 attention head
    # rides the same MXU pass as the feature projection.
    yv = jnp.dot(rgb, vaw_ref[...], preferred_element_type=jnp.float32) + vab_ref[...]
    yf = jnp.dot(flow, faw_ref[...], preferred_element_type=jnp.float32) + fab_ref[...]
    vfeat = _leaky(yv[:, :dh])
    ffeat = _leaky(yf[:, :dh])
    v_atn = 1.0 / (1.0 + jnp.exp(-yv[:, dh:dh + 1]))
    f_atn = 1.0 / (1.0 + jnp.exp(-yf[:, dh:dh + 1]))
    x_atn = 0.5 * (f_atn + v_atn)
    # fusion Conv1d(C, C, 1) on cat(vfeat, ffeat) without materializing the concat.
    fus = (jnp.dot(vfeat.astype(jnp.bfloat16), fwv_ref[...],
                   preferred_element_type=jnp.float32)
           + jnp.dot(ffeat.astype(jnp.bfloat16), fwf_ref[...],
                     preferred_element_type=jnp.float32)
           + fb_ref[...])
    nfeat_ref[0] = _leaky(fus).astype(nfeat_ref.dtype)
    vfeat_ref[0] = vfeat.astype(vfeat_ref.dtype)
    ffeat_ref[0] = ffeat.astype(ffeat_ref.dtype)
    atn_ref[0] = jnp.concatenate([f_atn, v_atn, x_atn], axis=-1).astype(atn_ref.dtype)


def frontend(x, q, t_tile=256):
    B, T, C = x.shape
    dh = C // 2
    TT = t_tile if (T % t_tile == 0) else T
    wspec = lambda r, c: pl.BlockSpec((r, c), lambda b, t: (0, 0))
    aspec = lambda c: pl.BlockSpec((1, TT, c), lambda b, t: (b, t, 0))
    return pl.pallas_call(
        functools.partial(_frontend_kernel, dh),
        out_shape=(jax.ShapeDtypeStruct((B, T, C), jnp.float32),
                   jax.ShapeDtypeStruct((B, T, dh), jnp.float32),
                   jax.ShapeDtypeStruct((B, T, dh), jnp.float32),
                   jax.ShapeDtypeStruct((B, T, 3), jnp.float32)),
        grid=(B, T // TT),
        in_specs=[aspec(C),
                  wspec(dh, dh + 1), wspec(1, dh + 1),
                  wspec(dh, dh + 1), wspec(1, dh + 1),
                  wspec(dh, C), wspec(dh, C), wspec(1, C)],
        out_specs=(aspec(C), aspec(dh), aspec(dh), aspec(3)),
        compiler_params=_cparams("parallel", "parallel"),
    )(x, q['vA_w'], q['vA_b'], q['fA_w'], q['fA_b'],
      q['fus_wv'], q['fus_wf'], q['fus_b'])


# --------------------------------------------------------------------------
# Tiled streaming matmul + bias (used for the fused q/k/v projection)
# --------------------------------------------------------------------------
def _matmul_bias_kernel(x_ref, w_ref, b_ref, o_ref, acc_ref):
    @pl.when(pl.program_id(2) == 0)
    def _():
        acc_ref[...] = jnp.zeros_like(acc_ref)

    acc_ref[...] += jnp.dot(x_ref[0].astype(jnp.bfloat16), w_ref[...],
                            preferred_element_type=jnp.float32)

    @pl.when(pl.program_id(2) == pl.num_programs(2) - 1)
    def _():
        o_ref[0] = (acc_ref[...] + b_ref[...]).astype(o_ref.dtype)


def matmul_bias(x, w, b):
    B, T, K = x.shape
    N = w.shape[1]
    tk = _pick_tile(K)
    tn = _pick_tile(N)
    return pl.pallas_call(
        _matmul_bias_kernel,
        out_shape=jax.ShapeDtypeStruct((B, T, N), jnp.float32),
        grid=(B, N // tn, K // tk),
        in_specs=[pl.BlockSpec((1, T, tk), lambda b, n, k: (b, 0, k)),
                  pl.BlockSpec((tk, tn), lambda b, n, k: (k, n)),
                  pl.BlockSpec((1, tn), lambda b, n, k: (0, n))],
        out_specs=pl.BlockSpec((1, T, tn), lambda b, n, k: (b, 0, n)),
        scratch_shapes=[pltpu.VMEM((T, tn), jnp.float32)],
        compiler_params=_cparams("parallel", "parallel", "arbitrary"),
    )(x, w, b)


# --------------------------------------------------------------------------
# MHSA_Intra: streamed qkv projection + per-batch batched-head attention core
# --------------------------------------------------------------------------
def _attn_core_kernel(T, heads, dh, scale, bn_scale,
                      x_ref, qkv_ref, wo_ref, bo_ref, g_ref, bt_ref, o_ref):
    C = heads * dh
    x = x_ref[0]                                   # (T, C) residual
    qkv = qkv_ref[0]                               # (T, 3C)

    def split_heads(m):                            # (T, C) -> (H, T, dh) bf16
        return m.reshape(T, heads, dh).swapaxes(0, 1).astype(jnp.bfloat16)

    q = split_heads(qkv[:, :C] * scale)
    k = split_heads(qkv[:, C:2 * C])
    v = split_heads(qkv[:, 2 * C:])
    sim = jnp.einsum('hqd,hkd->hqk', q, k, preferred_element_type=jnp.float32)
    sim = sim - jnp.max(sim, axis=-1, keepdims=True)
    e = jnp.exp(sim)
    attn = e * pl.reciprocal(jnp.sum(e, axis=-1, keepdims=True), approx=True)
    # torch.nan_to_num is a no-op here: the softmax denominator is >= exp(0) = 1.
    out = jnp.einsum('hqk,hkd->hqd', attn.astype(jnp.bfloat16), v,
                     preferred_element_type=jnp.float32)
    out = out.swapaxes(0, 1).reshape(T, C)
    y = jnp.dot(out.astype(jnp.bfloat16), wo_ref[...],
                preferred_element_type=jnp.float32) + bo_ref[...]
    # eval-mode BatchNorm1d (running_mean=0, running_var=1); gamma=beta=0 per __init__.
    y = y * (g_ref[...] * bn_scale) + bt_ref[...]
    o_ref[0] = (x + y).astype(o_ref.dtype)


def mhsa(x, q, heads):
    B, T, C = x.shape
    dh = C // heads
    qkv = matmul_bias(x, q['w_qkv'], q['b_qkv'])   # streamed, K/N-tiled projection
    mat = pl.BlockSpec((C, C), lambda i: (0, 0))
    vec = pl.BlockSpec((1, C), lambda i: (0, 0))
    return pl.pallas_call(
        functools.partial(_attn_core_kernel, T, heads, dh,
                          dh ** (-0.5), 1.0 / math.sqrt(1.0 + 1e-5)),
        out_shape=jax.ShapeDtypeStruct((B, T, C), jnp.float32),
        grid=(B,),
        in_specs=[pl.BlockSpec((1, T, C), lambda i: (i, 0, 0)),
                  pl.BlockSpec((1, T, 3 * C), lambda i: (i, 0, 0)),
                  mat, vec, vec, vec],
        out_specs=pl.BlockSpec((1, T, C), lambda i: (i, 0, 0)),
        compiler_params=_cparams("parallel"),
    )(x, qkv, q['mh_wo'], q['mh_bo'], q['mh_gamma'], q['mh_beta'])


# --------------------------------------------------------------------------
# Fused EM iterations + random-walk preparation (A matrix and y2x)
# --------------------------------------------------------------------------
def _em_rw_kernel(em_iter, w, x_ref, mu0_ref, mu_ref, a_ref, y2x_ref):
    x = x_ref[0]                                              # (T, D) f32
    T = x.shape[0]
    norm_x = x / (jnp.sqrt(jnp.sum(x * x, axis=-1, keepdims=True)) + 1e-9)

    def latent_z(mu):
        norm_mu = mu / (jnp.sqrt(jnp.sum(mu * mu, axis=-1, keepdims=True)) + 1e-9)
        s = jnp.einsum('kd,td->kt', norm_mu, norm_x,
                       preferred_element_type=jnp.float32) * 5.0          # (K, T)
        s = s - jnp.max(s, axis=0, keepdims=True)                         # softmax over K
        e = jnp.exp(s)
        return e / jnp.sum(e, axis=0, keepdims=True)

    mu = mu0_ref[...]
    for _ in range(em_iter):                 # short static loop; unrolled at trace time
        z = latent_z(mu)
        nz = z / (jnp.sum(z, axis=-1, keepdims=True) + 1e-9)
        mu = jnp.dot(nz, x, preferred_element_type=jnp.float32)
    mu_ref[0] = mu.astype(mu_ref.dtype)

    # random_walk prep, reusing norm_x (kept in VMEM) and the final mu.
    z = latent_z(mu)                                                      # (K, T)
    nz = z / (jnp.sum(z, axis=-1, keepdims=True) + 1e-9)
    aff = jnp.einsum('kt,ks->ts', z, nz, preferred_element_type=jnp.float32)   # (T, T)
    rows = jax.lax.broadcasted_iota(jnp.int32, (T, T), 0)
    cols = jax.lax.broadcasted_iota(jnp.int32, (T, T), 1)
    eye = (rows == cols).astype(jnp.float32)
    a_ref[0] = (eye - (w * w) * aff).astype(a_ref.dtype)
    y2x_ref[0] = (w * jnp.einsum('kt,kd->td', z, mu,
                                 preferred_element_type=jnp.float32)
                  + x).astype(y2x_ref.dtype)


def em_random_walk(x, mu0, em_iter, w):
    B, T, D = x.shape
    K = mu0.shape[0]
    return pl.pallas_call(
        functools.partial(_em_rw_kernel, em_iter, w),
        out_shape=(jax.ShapeDtypeStruct((B, K, D), jnp.float32),
                   jax.ShapeDtypeStruct((B, T, T), jnp.float32),
                   jax.ShapeDtypeStruct((B, T, D), jnp.float32)),
        grid=(B,),
        in_specs=[pl.BlockSpec((1, T, D), lambda i: (i, 0, 0)),
                  pl.BlockSpec((K, D), lambda i: (0, 0))],
        out_specs=(pl.BlockSpec((1, K, D), lambda i: (i, 0, 0)),
                   pl.BlockSpec((1, T, T), lambda i: (i, 0, 0)),
                   pl.BlockSpec((1, T, D), lambda i: (i, 0, 0))),
        compiler_params=_cparams("parallel"),
    )(x, mu0)


# --------------------------------------------------------------------------
# Fused classifier: Conv1d(D, D, 3, pad=1) -> LeakyReLU -> Conv1d(D, ncls, 1)
# --------------------------------------------------------------------------
def _classifier_kernel(T, xp_ref, w0_ref, w1_ref, w2_ref, b1_ref, wc_ref, bc_ref, o_ref):
    xp = xp_ref[0].astype(jnp.bfloat16)                        # (T+2, D)
    # k=3 conv as three accumulating MXU dots (no (T, 3D) concat copy).
    y = jnp.dot(xp[0:T], w0_ref[...], preferred_element_type=jnp.float32)
    y = y + jnp.dot(xp[1:T + 1], w1_ref[...], preferred_element_type=jnp.float32)
    y = y + jnp.dot(xp[2:T + 2], w2_ref[...], preferred_element_type=jnp.float32)
    h = _leaky(y + b1_ref[...])
    out = jnp.dot(h.astype(jnp.bfloat16), wc_ref[...],
                  preferred_element_type=jnp.float32) + bc_ref[...]
    o_ref[0] = out.astype(o_ref.dtype)                         # lane-dense (T, 128)


def classifier(x, q):
    B, T, D = x.shape
    CP = q['cls_w2p'].shape[1]
    xp = jnp.pad(x, ((0, 0), (1, 1), (0, 0)))
    wspec = lambda r, c: pl.BlockSpec((r, c), lambda i: (0, 0))
    return pl.pallas_call(
        functools.partial(_classifier_kernel, T),
        out_shape=jax.ShapeDtypeStruct((B, T, CP), jnp.float32),
        grid=(B,),
        in_specs=[pl.BlockSpec((1, T + 2, D), lambda i: (i, 0, 0)),
                  wspec(D, D), wspec(D, D), wspec(D, D), wspec(1, D),
                  wspec(D, CP), wspec(1, CP)],
        out_specs=pl.BlockSpec((1, T, CP), lambda i: (i, 0, 0)),
        compiler_params=_cparams("parallel"),
    )(xp, q['cls_w3_0'], q['cls_w3_1'], q['cls_w3_2'],
      q['cls_b1'], q['cls_w2p'], q['cls_b2p'])


# --------------------------------------------------------------------------
# Parameters
# --------------------------------------------------------------------------
def _kaiming_uniform(key, shape, fan_in):
    bound = math.sqrt(6.0 / fan_in)
    return jax.random.uniform(key, shape, jnp.float32, -bound, bound)


def init_params(key, d_half, embed_dim, n_class, n_mu):
    ks = jax.random.split(key, 12)
    z = lambda *s: jnp.zeros(s, jnp.float32)        # biases filled with 0 (weights_init)
    p = {}
    # TODO(synk): stand-in params for external AWM (vAttn) / TCN (fAttn) modules.
    p['fA_w_att'] = _kaiming_uniform(ks[0], (d_half, 1), d_half);       p['fA_b_att'] = z(1, 1)
    p['fA_w_feat'] = _kaiming_uniform(ks[1], (d_half, d_half), d_half); p['fA_b_feat'] = z(1, d_half)
    p['vA_w_att'] = _kaiming_uniform(ks[2], (d_half, 1), d_half);       p['vA_b_att'] = z(1, 1)
    p['vA_w_feat'] = _kaiming_uniform(ks[3], (d_half, d_half), d_half); p['vA_b_feat'] = z(1, d_half)
    # fusion: Conv1d(n_feature, n_feature, 1)
    p['fus_w'] = _kaiming_uniform(ks[4], (embed_dim, embed_dim), embed_dim); p['fus_b'] = z(1, embed_dim)
    # MHSA_Intra projections (Conv1d k=1) + zero-init BN affine
    p['mh_wq'] = _kaiming_uniform(ks[5], (embed_dim, embed_dim), embed_dim); p['mh_bq'] = z(1, embed_dim)
    p['mh_wk'] = _kaiming_uniform(ks[6], (embed_dim, embed_dim), embed_dim); p['mh_bk'] = z(1, embed_dim)
    p['mh_wv'] = _kaiming_uniform(ks[7], (embed_dim, embed_dim), embed_dim); p['mh_bv'] = z(1, embed_dim)
    p['mh_wo'] = _kaiming_uniform(ks[8], (embed_dim, embed_dim), embed_dim); p['mh_bo'] = z(1, embed_dim)
    p['mh_gamma'] = z(1, embed_dim); p['mh_beta'] = z(1, embed_dim)
    # mu parameter (xavier uniform)
    xb = math.sqrt(6.0 / (n_mu + embed_dim))
    p['mu'] = jax.random.uniform(ks[9], (n_mu, embed_dim), jnp.float32, -xb, xb)
    # classifier: Conv1d(embed, embed, 3, pad=1) -> LeakyReLU -> Conv1d(embed, n_class+1, 1)
    p['cls_w1'] = _kaiming_uniform(ks[10], (3 * embed_dim, embed_dim), 3 * embed_dim)
    p['cls_b1'] = z(1, embed_dim)
    p['cls_w2'] = _kaiming_uniform(ks[11], (embed_dim, n_class + 1), embed_dim)
    p['cls_b2'] = z(1, n_class + 1)
    return p


def pack_params(p):
    """One-time (outside jit) repack into kernel-ready layout; matmul weights -> bf16."""
    bf = jnp.bfloat16
    dh = p['vA_w_feat'].shape[0]
    D = p['cls_w1'].shape[1]
    q = {}
    # [feature | attention] column-packed stand-in weights.
    q['vA_w'] = jnp.concatenate([p['vA_w_feat'], p['vA_w_att']], axis=1).astype(bf)
    q['vA_b'] = jnp.concatenate([p['vA_b_feat'], p['vA_b_att']], axis=1)
    q['fA_w'] = jnp.concatenate([p['fA_w_feat'], p['fA_w_att']], axis=1).astype(bf)
    q['fA_b'] = jnp.concatenate([p['fA_b_feat'], p['fA_b_att']], axis=1)
    # fusion weight split so cat(vfeat, ffeat) never materializes.
    q['fus_wv'] = p['fus_w'][:dh].astype(bf)
    q['fus_wf'] = p['fus_w'][dh:].astype(bf)
    q['fus_b'] = p['fus_b']
    # fused q/k/v projection weight for the streamed matmul.
    q['w_qkv'] = jnp.concatenate([p['mh_wq'], p['mh_wk'], p['mh_wv']], axis=1).astype(bf)
    q['b_qkv'] = jnp.concatenate([p['mh_bq'], p['mh_bk'], p['mh_bv']], axis=1)
    q['mh_wo'] = p['mh_wo'].astype(bf)
    q['mh_bo'] = p['mh_bo']
    q['mh_gamma'] = p['mh_gamma']
    q['mh_beta'] = p['mh_beta']
    q['mu'] = p['mu']
    # classifier k=3 taps as three (D, D) slabs.
    q['cls_w3_0'] = p['cls_w1'][0:D].astype(bf)
    q['cls_w3_1'] = p['cls_w1'][D:2 * D].astype(bf)
    q['cls_w3_2'] = p['cls_w1'][2 * D:3 * D].astype(bf)
    q['cls_b1'] = p['cls_b1']
    # pad logits head to a lane-dense 128-wide slab (sliced back in the wrapper).
    ncls = p['cls_w2'].shape[1]
    cp = max(128, ((ncls + 127) // 128) * 128)
    q['cls_w2p'] = jnp.zeros((D, cp), bf).at[:, :ncls].set(p['cls_w2'].astype(bf))
    q['cls_b2p'] = jnp.zeros((1, cp), jnp.float32).at[:, :ncls].set(p['cls_b2'])
    return q


# --------------------------------------------------------------------------
# Forward
# --------------------------------------------------------------------------
def tfedcn_forward(packed, inputs, heads, em_iter, n_class):
    B, T, C = inputs.shape

    # TODO(synk): real AWM/TCN attention modules unavailable; pointwise-conv stand-ins.
    nfeat, vfeat, ffeat, atn = frontend(inputs, packed)
    f_atn = atn[:, :, 0:1]
    v_atn = atn[:, :, 1:2]
    x_atn = atn[:, :, 2:3]
    n_rfeat = o_rfeat = vfeat
    n_ffeat = o_ffeat = ffeat

    nfeat = mhsa(nfeat, packed, heads)                         # MHSA_Intra

    w = 0.5
    mu, A, y2x = em_random_walk(nfeat, packed['mu'], em_iter, w)
    # TODO(synk): T x T inverse has no Pallas primitive; a batched LU solve in plain
    # JAX replaces the reference explicit torch.inverse (fewer FLOPs, more stable).
    reallocated_x = (1.0 - w) * jnp.linalg.solve(A, y2x)

    ncls = n_class + 1
    stacked = jnp.concatenate([nfeat, reallocated_x], axis=0)  # one classifier launch
    cls_s = classifier(stacked, packed)
    x_cls = cls_s[:B, :, :ncls]
    r_cls = cls_s[B:, :, :ncls]
    mu_cls = classifier(mu, packed)[:, :, :ncls]
    # Key (momentum) branch params are exact copies of the query branch (momentum
    # update is a no-op when equal) and dropout is identity -> xk_cls == x_cls.
    xk_cls = x_cls

    return {'feat': nfeat, 'cas': x_cls, 'attn': x_atn, 'v_atn': v_atn,
            'f_atn': f_atn, 'mu': mu, 'r_cas': r_cls, 'mu_cas': mu_cls,
            'cask': xk_cls, 'n_rfeat': n_rfeat, 'o_rfeat': o_rfeat,
            'n_ffeat': n_ffeat, 'o_ffeat': o_ffeat}


if __name__ == "__main__":
    B, T = 2, 16
    D_HALF = 64
    N_FEATURE = 2 * D_HALF          # == embed_dim (mirrors the 2048/2048 original)
    EMBED_DIM = N_FEATURE
    N_CLASS, N_MU, HEADS, EM_ITER = 4, 8, 8, 2

    key = jax.random.PRNGKey(0)
    k_in, k_p = jax.random.split(key)
    inputs = jax.random.normal(k_in, (B, T, N_FEATURE), dtype=jnp.float32)
    raw_params = init_params(k_p, D_HALF, EMBED_DIM, N_CLASS, N_MU)
    packed = pack_params(raw_params)

    fwd = jax.jit(functools.partial(tfedcn_forward, heads=HEADS,
                                    em_iter=EM_ITER, n_class=N_CLASS))
    out = fwd(packed, inputs)
    jax.block_until_ready(out)

    assert out['cas'].shape == (B, T, N_CLASS + 1)
    assert out['r_cas'].shape == (B, T, N_CLASS + 1)
    assert out['mu_cas'].shape == (B, N_MU, N_CLASS + 1)
    assert out['mu'].shape == (B, N_MU, EMBED_DIM)
    assert out['feat'].shape == (B, T, EMBED_DIM)
    assert out['attn'].shape == (B, T, 1)
    assert out['v_atn'].shape == (B, T, 1)
    print("KERNEL_OK")
</pallas_src>

<mosaic_0001>
module attributes {stable_mosaic.version = 11 : i64} {
  func.func @_frontend_kernel(%arg0: i32, %arg1: i32, %arg2: memref<1x16x128xf32, #tpu.memory_space<vmem>>, %arg3: memref<64x65xbf16, #tpu.memory_space<vmem>>, %arg4: memref<1x65xf32, #tpu.memory_space<vmem>>, %arg5: memref<64x65xbf16, #tpu.memory_space<vmem>>, %arg6: memref<1x65xf32, #tpu.memory_space<vmem>>, %arg7: memref<64x128xbf16, #tpu.memory_space<vmem>>, %arg8: memref<64x128xbf16, #tpu.memory_space<vmem>>, %arg9: memref<1x128xf32, #tpu.memory_space<vmem>>, %arg10: memref<1x16x128xf32, #tpu.memory_space<vmem>>, %arg11: memref<1x16x64xf32, #tpu.memory_space<vmem>>, %arg12: memref<1x16x64xf32, #tpu.memory_space<vmem>>, %arg13: memref<1x16x3xf32, #tpu.memory_space<vmem>>) attributes {dimension_semantics = [#tpu.dimension_semantics<parallel>, #tpu.dimension_semantics<parallel>], iteration_bounds = array<i64: 2, 1>, scalar_prefetch = 0 : i64, scratch_operands = 0 : i64, tpu.core_type = #tpu.core_type<tc>, window_params = [{transform_indices = @transform_0, window_bounds = array<i64: 1, 16, 128>}, {pipeline_mode = #tpu.pipeline_mode<synchronous>, transform_indices = @transform_1, window_bounds = array<i64: 64, 65>}, {pipeline_mode = #tpu.pipeline_mode<synchronous>, transform_indices = @transform_2, window_bounds = array<i64: 1, 65>}, {pipeline_mode = #tpu.pipeline_mode<synchronous>, transform_indices = @transform_3, window_bounds = array<i64: 64, 65>}, {pipeline_mode = #tpu.pipeline_mode<synchronous>, transform_indices = @transform_4, window_bounds = array<i64: 1, 65>}, {pipeline_mode = #tpu.pipeline_mode<synchronous>, transform_indices = @transform_5, window_bounds = array<i64: 64, 128>}, {pipeline_mode = #tpu.pipeline_mode<synchronous>, transform_indices = @transform_6, window_bounds = array<i64: 64, 128>}, {pipeline_mode = #tpu.pipeline_mode<synchronous>, transform_indices = @transform_7, window_bounds = array<i64: 1, 128>}, {transform_indices = @transform_8, window_bounds = array<i64: 1, 16, 128>}, {transform_indices = @transform_9, window_bounds = array<i64: 1, 16, 64>}, {transform_indices = @transform_10, window_bounds = array<i64: 1, 16, 64>}, {transform_indices = @transform_11, window_bounds = array<i64: 1, 16, 3>}]} {
    %c0 = arith.constant 0 : index
    %c0_0 = arith.constant 0 : index
    %c0_1 = arith.constant 0 : index
    %0 = vector.load %arg2[%c0, %c0_0, %c0_1] : memref<1x16x128xf32, #tpu.memory_space<vmem>>, vector<1x16x128xf32>
    %1 = vector.shape_cast %0 : vector<1x16x128xf32> to vector<16x128xf32>
    %2 = vector.extract_strided_slice %1 {offsets = [0, 0], sizes = [16, 64], strides = [1, 1]} : vector<16x128xf32> to vector<16x64xf32>
    %3 = arith.truncf %2 : vector<16x64xf32> to vector<16x64xbf16>
    %4 = vector.extract_strided_slice %1 {offsets = [0, 64], sizes = [16, 64], strides = [1, 1]} : vector<16x128xf32> to vector<16x64xf32>
    %5 = arith.truncf %4 : vector<16x64xf32> to vector<16x64xbf16>
    %c0_2 = arith.constant 0 : index
    %c0_3 = arith.constant 0 : index
    %6 = vector.load %arg3[%c0_2, %c0_3] : memref<64x65xbf16, #tpu.memory_space<vmem>>, vector<64x65xbf16>
    %cst = arith.constant dense<0.000000e+00> : vector<16x65xf32>
    %7 = tpu.matmul %3, %6, %cst {dimension_numbers = #tpu.dot_dimension_numbers<[1], [0], [0], [1], [0, 0, 1, 1], [], []>} : vector<16x64xbf16>, vector<64x65xbf16>, vector<16x65xf32> -> vector<16x65xf32>
    %c0_4 = arith.constant 0 : index
    %c0_5 = arith.constant 0 : index
    %8 = vector.load %arg4[%c0_4, %c0_5] : memref<1x65xf32, #tpu.memory_space<vmem>>, vector<1x65xf32>
    %9 = vector.broadcast %8 : vector<1x65xf32> to vector<16x65xf32>
    %10 = arith.addf %7, %9 : vector<16x65xf32>
    %c0_6 = arith.constant 0 : index
    %c0_7 = arith.constant 0 : index
    %11 = vector.load %arg5[%c0_6, %c0_7] : memref<64x65xbf16, #tpu.memory_space<vmem>>, vector<64x65xbf16>
    %cst_8 = arith.constant dense<0.000000e+00> : vector<16x65xf32>
    %12 = tpu.matmul %5, %11, %cst_8 {dimension_numbers = #tpu.dot_dimension_numbers<[1], [0], [0], [1], [0, 0, 1, 1], [], []>} : vector<16x64xbf16>, vector<64x65xbf16>, vector<16x65xf32> -> vector<16x65xf32>
    %c0_9 = arith.constant 0 : index
    %c0_10 = arith.constant 0 : index
    %13 = vector.load %arg6[%c0_9, %c0_10] : memref<1x65xf32, #tpu.memory_space<vmem>>, vector<1x65xf32>
    %14 = vector.broadcast %13 : vector<1x65xf32> to vector<16x65xf32>
    %15 = arith.addf %12, %14 : vector<16x65xf32>
    %16 = vector.extract_strided_slice %10 {offsets = [0, 0], sizes = [16, 64], strides = [1, 1]} : vector<16x65xf32> to vector<16x64xf32>
    %cst_11 = arith.constant 0.000000e+00 : f32
    %17 = vector.broadcast %cst_11 : f32 to vector<16x64xf32>
    %18 = arith.cmpf oge, %16, %17 : vector<16x64xf32>
    %cst_12 = arith.constant 2.000000e-01 : f32
    %19 = vector.broadcast %cst_12 : f32 to vector<16x64xf32>
    %20 = arith.mulf %19, %16 : vector<16x64xf32>
    %21 = arith.select %18, %16, %20 : vector<16x64xi1>, vector<16x64xf32>
    %22 = vector.extract_strided_slice %15 {offsets = [0, 0], sizes = [16, 64], strides = [1, 1]} : vector<16x65xf32> to vector<16x64xf32>
    %cst_13 = arith.constant 0.000000e+00 : f32
    %23 = vector.broadcast %cst_13 : f32 to vector<16x64xf32>
    %24 = arith.cmpf oge, %22, %23 : vector<16x64xf32>
    %cst_14 = arith.constant 2.000000e-01 : f32
    %25 = vector.broadcast %cst_14 : f32 to vector<16x64xf32>
    %26 = arith.mulf %25, %22 : vector<16x64xf32>
    %27 = arith.select %24, %22, %26 : vector<16x64xi1>, vector<16x64xf32>
    %28 = vector.extract_strided_slice %10 {offsets = [0, 64], sizes = [16, 1], strides = [1, 1]} : vector<16x65xf32> to vector<16x1xf32>
    %cst_15 = arith.constant 0.000000e+00 : f32
    %29 = vector.broadcast %cst_15 : f32 to vector<16x1xf32>
    %30 = arith.subf %29, %28 : vector<16x1xf32>
    %31 = math.exp %30 : vector<16x1xf32>
    %cst_16 = arith.constant 1.000000e+00 : f32
    %32 = vector.broadcast %cst_16 : f32 to vector<16x1xf32>
    %33 = arith.addf %32, %31 : vector<16x1xf32>
    %cst_17 = arith.constant 1.000000e+00 : f32
    %34 = vector.broadcast %cst_17 : f32 to vector<16x1xf32>
    %35 = arith.divf %34, %33 : vector<16x1xf32>
    %36 = vector.extract_strided_slice %15 {offsets = [0, 64], sizes = [16, 1], strides = [1, 1]} : vector<16x65xf32> to vector<16x1xf32>
    %cst_18 = arith.constant 0.000000e+00 : f32
    %37 = vector.broadcast %cst_18 : f32 to vector<16x1xf32>
    %38 = arith.subf %37, %36 : vector<16x1xf32>
    %39 = math.exp %38 : vector<16x1xf32>
    %cst_19 = arith.constant 1.000000e+00 : f32
    %40 = vector.broadcast %cst_19 : f32 to vector<16x1xf32>
    %41 = arith.addf %40, %39 : vector<16x1xf32>
    %cst_20 = arith.constant 1.000000e+00 : f32
    %42 = vector.broadcast %cst_20 : f32 to vector<16x1xf32>
    %43 = arith.divf %42, %41 : vector<16x1xf32>
    %44 = arith.addf %43, %35 : vector<16x1xf32>
    %cst_21 = arith.constant 5.000000e-01 : f32
    %45 = vector.broadcast %cst_21 : f32 to vector<16x1xf32>
    %46 = arith.mulf %45, %44 : vector<16x1xf32>
    %47 = arith.truncf %21 : vector<16x64xf32> to vector<16x64xbf16>
    %c0_22 = arith.constant 0 : index
    %c0_23 = arith.constant 0 : index
    %48 = vector.load %arg7[%c0_22, %c0_23] : memref<64x128xbf16, #tpu.memory_space<vmem>>, vector<64x128xbf16>
    %cst_24 = arith.constant dense<0.000000e+00> : vector<16x128xf32>
    %49 = tpu.matmul %47, %48, %cst_24 {dimension_numbers = #tpu.dot_dimension_numbers<[1], [0], [0], [1], [0, 0, 1, 1], [], []>} : vector<16x64xbf16>, vector<64x128xbf16>, vector<16x128xf32> -> vector<16x128xf32>
    %50 = arith.truncf %27 : vector<16x64xf32> to vector<16x64xbf16>
    %c0_25 = arith.constant 0 : index
    %c0_26 = arith.constant 0 : index
    %51 = vector.load %arg8[%c0_25, %c0_26] : memref<64x128xbf16, #tpu.memory_space<vmem>>, vector<64x128xbf16>
    %cst_27 = arith.constant dense<0.000000e+00> : vector<16x128xf32>
    %52 = tpu.matmul %50, %51, %cst_27 {dimension_numbers = #tpu.dot_dimension_numbers<[1], [0], [0], [1], [0, 0, 1, 1], [], []>} : vector<16x64xbf16>, vector<64x128xbf16>, vector<16x128xf32> -> vector<16x128xf32>
    %53 = arith.addf %49, %52 : vector<16x128xf32>
    %c0_28 = arith.constant 0 : index
    %c0_29 = arith.constant 0 : index
    %54 = vector.load %arg9[%c0_28, %c0_29] : memref<1x128xf32, #tpu.memory_space<vmem>>, vector<1x128xf32>
    %55 = vector.broadcast %54 : vector<1x128xf32> to vector<16x128xf32>
    %56 = arith.addf %53, %55 : vector<16x128xf32>
    %cst_30 = arith.constant 0.000000e+00 : f32
    %57 = vector.broadcast %cst_30 : f32 to vector<16x128xf32>
    %58 = arith.cmpf oge, %56, %57 : vector<16x128xf32>
    %cst_31 = arith.constant 2.000000e-01 : f32
    %59 = vector.broadcast %cst_31 : f32 to vector<16x128xf32>
    %60 = arith.mulf %59, %56 : vector<16x128xf32>
    %61 = arith.select %58, %56, %60 : vector<16x128xi1>, vector<16x128xf32>
    %c0_32 = arith.constant 0 : index
    %c0_33 = arith.constant 0 : index
    %c0_34 = arith.constant 0 : index
    %62 = vector.load %arg10[%c0_32, %c0_33, %c0_34] : memref<1x16x128xf32, #tpu.memory_space<vmem>>, vector<1x16x128xf32>
    %63 = vector.shape_cast %62 : vector<1x16x128xf32> to vector<16x128xf32>
    %64 = vector.shape_cast %61 : vector<16x128xf32> to vector<1x16x128xf32>
    tpu.vector_store %arg10[%c0_32, %c0_33, %c0_34], %64 {strides = array<i32>} : memref<1x16x128xf32, #tpu.memory_space<vmem>>, vector<1x16x128xf32>,
    %c0_35 = arith.constant 0 : index
    %c0_36 = arith.constant 0 : index
    %c0_37 = arith.constant 0 : index
    %65 = vector.load %arg11[%c0_35, %c0_36, %c0_37] : memref<1x16x64xf32, #tpu.memory_space<vmem>>, vector<1x16x64xf32>
    %66 = vector.shape_cast %65 : vector<1x16x64xf32> to vector<16x64xf32>
    %67 = vector.shape_cast %21 : vector<16x64xf32> to vector<1x16x64xf32>
    tpu.vector_store %arg11[%c0_35, %c0_36, %c0_37], %67 {strides = array<i32>} : memref<1x16x64xf32, #tpu.memory_space<vmem>>, vector<1x16x64xf32>,
    %c0_38 = arith.constant 0 : index
    %c0_39 = arith.constant 0 : index
    %c0_40 = arith.constant 0 : index
    %68 = vector.load %arg12[%c0_38, %c0_39, %c0_40] : memref<1x16x64xf32, #tpu.memory_space<vmem>>, vector<1x16x64xf32>
    %69 = vector.shape_cast %68 : vector<1x16x64xf32> to vector<16x64xf32>
    %70 = vector.shape_cast %27 : vector<16x64xf32> to vector<1x16x64xf32>
    tpu.vector_store %arg12[%c0_38, %c0_39, %c0_40], %70 {strides = array<i32>} : memref<1x16x64xf32, #tpu.memory_space<vmem>>, vector<1x16x64xf32>,
    %71 = tpu.concatenate %43, %35, %46 in 1 : vector<16x1xf32>, vector<16x1xf32>, vector<16x1xf32> -> vector<16x3xf32>
    %c0_41 = arith.constant 0 : index
    %c0_42 = arith.constant 0 : index
    %c0_43 = arith.constant 0 : index
    %72 = vector.load %arg13[%c0_41, %c0_42, %c0_43] : memref<1x16x3xf32, #tpu.memory_space<vmem>>, vector<1x16x3xf32>
    %73 = vector.shape_cast %72 : vector<1x16x3xf32> to vector<16x3xf32>
    %74 = vector.shape_cast %71 : vector<16x3xf32> to vector<1x16x3xf32>
    tpu.vector_store %arg13[%c0_41, %c0_42, %c0_43], %74 {strides = array<i32>} : memref<1x16x3xf32, #tpu.memory_space<vmem>>, vector<1x16x3xf32>,
    return
  }
  func.func @transform_0(%arg0: i32, %arg1: i32) -> (i32, i32, i32) {
    %c0_i32 = arith.constant 0 : i32
    %c0_i32_0 = arith.constant 0 : i32
    return %arg0, %arg1, %c0_i32 : i32, i32, i32
  }
  func.func @transform_1(%arg0: i32, %arg1: i32) -> (i32, i32) {
    %c0_i32 = arith.constant 0 : i32
    %c0_i32_0 = arith.constant 0 : i32
    %c0_i32_1 = arith.constant 0 : i32
    return %c0_i32, %c0_i32_0 : i32, i32
  }
  func.func @transform_2(%arg0: i32, %arg1: i32) -> (i32, i32) {
    %c0_i32 = arith.constant 0 : i32
    %c0_i32_0 = arith.constant 0 : i32
    %c0_i32_1 = arith.constant 0 : i32
    return %c0_i32, %c0_i32_0 : i32, i32
  }
  func.func @transform_3(%arg0: i32, %arg1: i32) -> (i32, i32) {
    %c0_i32 = arith.constant 0 : i32
    %c0_i32_0 = arith.constant 0 : i32
    %c0_i32_1 = arith.constant 0 : i32
    return %c0_i32, %c0_i32_0 : i32, i32
  }
  func.func @transform_4(%arg0: i32, %arg1: i32) -> (i32, i32) {
    %c0_i32 = arith.constant 0 : i32
    %c0_i32_0 = arith.constant 0 : i32
    %c0_i32_1 = arith.constant 0 : i32
    return %c0_i32, %c0_i32_0 : i32, i32
  }
  func.func @transform_5(%arg0: i32, %arg1: i32) -> (i32, i32) {
    %c0_i32 = arith.constant 0 : i32
    %c0_i32_0 = arith.constant 0 : i32
    %c0_i32_1 = arith.constant 0 : i32
    return %c0_i32, %c0_i32_0 : i32, i32
  }
  func.func @transform_6(%arg0: i32, %arg1: i32) -> (i32, i32) {
    %c0_i32 = arith.constant 0 : i32
    %c0_i32_0 = arith.constant 0 : i32
    %c0_i32_1 = arith.constant 0 : i32
    return %c0_i32, %c0_i32_0 : i32, i32
  }
  func.func @transform_7(%arg0: i32, %arg1: i32) -> (i32, i32) {
    %c0_i32 = arith.constant 0 : i32
    %c0_i32_0 = arith.constant 0 : i32
    %c0_i32_1 = arith.constant 0 : i32
    return %c0_i32, %c0_i32_0 : i32, i32
  }
  func.func @transform_8(%arg0: i32, %arg1: i32) -> (i32, i32, i32) {
    %c0_i32 = arith.constant 0 : i32
    %c0_i32_0 = arith.constant 0 : i32
    return %arg0, %arg1, %c0_i32 : i32, i32, i32
  }
  func.func @transform_9(%arg0: i32, %arg1: i32) -> (i32, i32, i32) {
    %c0_i32 = arith.constant 0 : i32
    %c0_i32_0 = arith.constant 0 : i32
    return %arg0, %arg1, %c0_i32 : i32, i32, i32
  }
  func.func @transform_10(%arg0: i32, %arg1: i32) -> (i32, i32, i32) {
    %c0_i32 = arith.constant 0 : i32
    %c0_i32_0 = arith.constant 0 : i32
    return %arg0, %arg1, %c0_i32 : i32, i32, i32
  }
  func.func @transform_11(%arg0: i32, %arg1: i32) -> (i32, i32, i32) {
    %c0_i32 = arith.constant 0 : i32
    %c0_i32_0 = arith.constant 0 : i32
    return %arg0, %arg1, %c0_i32 : i32, i32, i32
  }
}

module attributes {stable_mosaic.version = 11 : i64} {
  func.func @_em_rw_kernel(%arg0: i32, %arg1: memref<1x16x128xf32, #tpu.memory_space<vmem>>, %arg2: memref<8x128xf32, #tpu.memory_space<vmem>>, %arg3: memref<1x8x128xf32, #tpu.memory_space<vmem>>, %arg4: memref<1x16x16xf32, #tpu.memory_space<vmem>>, %arg5: memref<1x16x128xf32, #tpu.memory_space<vmem>>) attributes {dimension_semantics = [#tpu.dimension_semantics<parallel>], iteration_bounds = array<i64: 2>, scalar_prefetch = 0 : i64, scratch_operands = 0 : i64, tpu.core_type = #tpu.core_type<tc>, window_params = [{transform_indices = @transform_0, window_bounds = array<i64: 1, 16, 128>}, {pipeline_mode = #tpu.pipeline_mode<synchronous>, transform_indices = @transform_1, window_bounds = array<i64: 8, 128>}, {transform_indices = @transform_2, window_bounds = array<i64: 1, 8, 128>}, {transform_indices = @transform_3, window_bounds = array<i64: 1, 16, 16>}, {transform_indices = @transform_4, window_bounds = array<i64: 1, 16, 128>}]} {
    %c0 = arith.constant 0 : index
    %c0_0 = arith.constant 0 : index
    %c0_1 = arith.constant 0 : index
    %0 = vector.load %arg1[%c0, %c0_0, %c0_1] : memref<1x16x128xf32, #tpu.memory_space<vmem>>, vector<1x16x128xf32>
    %1 = vector.shape_cast %0 : vector<1x16x128xf32> to vector<16x128xf32>
    %2 = arith.mulf %1, %1 : vector<16x128xf32>
    %cst = arith.constant dense<0.000000e+00> : vector<16xf32>
    %3 = vector.multi_reduction <add>, %2, %cst [1] : vector<16x128xf32> to vector<16xf32>
    %4 = vector.shape_cast %3 : vector<16xf32> to vector<16x1xf32>
    %5 = math.sqrt %4 : vector<16x1xf32>
    %cst_2 = arith.constant 9.99999971E-10 : f32
    %6 = vector.broadcast %cst_2 : f32 to vector<16x1xf32>
    %7 = arith.addf %5, %6 : vector<16x1xf32>
    %8 = vector.broadcast %7 : vector<16x1xf32> to vector<16x128xf32>
    %9 = arith.divf %1, %8 : vector<16x128xf32>
    %c0_3 = arith.constant 0 : index
    %c0_4 = arith.constant 0 : index
    %10 = vector.load %arg2[%c0_3, %c0_4] : memref<8x128xf32, #tpu.memory_space<vmem>>, vector<8x128xf32>
    %11 = arith.mulf %10, %10 : vector<8x128xf32>
    %cst_5 = arith.constant dense<0.000000e+00> : vector<8xf32>
    %12 = vector.multi_reduction <add>, %11, %cst_5 [1] : vector<8x128xf32> to vector<8xf32>
    %13 = vector.shape_cast %12 : vector<8xf32> to vector<8x1xf32>
    %14 = math.sqrt %13 : vector<8x1xf32>
    %cst_6 = arith.constant 9.99999971E-10 : f32
    %15 = vector.broadcast %cst_6 : f32 to vector<8x1xf32>
    %16 = arith.addf %14, %15 : vector<8x1xf32>
    %17 = vector.broadcast %16 : vector<8x1xf32> to vector<8x128xf32>
    %18 = arith.divf %10, %17 : vector<8x128xf32>
    "tpu.trace_start"() <{level = 10 : i32, message = "kd,td->kt"}> : () -> ()
    %cst_7 = arith.constant dense<0.000000e+00> : vector<8x16xf32>
    %19 = tpu.matmul %18, %9, %cst_7 {dimension_numbers = #tpu.dot_dimension_numbers<[1], [1], [0], [0], [0, 0, 1, 0], [], []>} : vector<8x128xf32>, vector<16x128xf32>, vector<8x16xf32> -> vector<8x16xf32>
    "tpu.trace_stop"() : () -> ()
    %cst_8 = arith.constant 5.000000e+00 : f32
    %20 = vector.broadcast %cst_8 : f32 to vector<8x16xf32>
    %21 = arith.mulf %19, %20 : vector<8x16xf32>
    %cst_9 = arith.constant dense<0xFF800000> : vector<16xf32>
    %22 = vector.multi_reduction <maximumf>, %21, %cst_9 [0] : vector<8x16xf32> to vector<16xf32>
    %23 = vector.shape_cast %22 : vector<16xf32> to vector<1x16xf32>
    %24 = vector.broadcast %23 : vector<1x16xf32> to vector<8x16xf32>
    %25 = arith.subf %21, %24 : vector<8x16xf32>
    %26 = math.exp %25 : vector<8x16xf32>
    %cst_10 = arith.constant dense<0.000000e+00> : vector<16xf32>
    %27 = vector.multi_reduction <add>, %26, %cst_10 [0] : vector<8x16xf32> to vector<16xf32>
    %28 = vector.shape_cast %27 : vector<16xf32> to vector<1x16xf32>
    %29 = vector.broadcast %28 : vector<1x16xf32> to vector<8x16xf32>
    %30 = arith.divf %26, %29 : vector<8x16xf32>
    %cst_11 = arith.constant dense<0.000000e+00> : vector<8xf32>
    %31 = vector.multi_reduction <add>, %30, %cst_11 [1] : vector<8x16xf32> to vector<8xf32>
    %32 = vector.shape_cast %31 : vector<8xf32> to vector<8x1xf32>
    %cst_12 = arith.constant 9.99999971E-10 : f32
    %33 = vector.broadcast %cst_12 : f32 to vector<8x1xf32>
    %34 = arith.addf %32, %33 : vector<8x1xf32>
    %35 = vector.broadcast %34 : vector<8x1xf32> to vector<8x16xf32>
    %36 = arith.divf %30, %35 : vector<8x16xf32>
    %cst_13 = arith.constant dense<0.000000e+00> : vector<8x128xf32>
    %37 = tpu.matmul %36, %1, %cst_13 {dimension_numbers = #tpu.dot_dimension_numbers<[1], [0], [0], [1], [0, 0, 1, 1], [], []>} : vector<8x16xf32>, vector<16x128xf32>, vector<8x128xf32> -> vector<8x128xf32>
    %38 = arith.mulf %37, %37 : vector<8x128xf32>
    %cst_14 = arith.constant dense<0.000000e+00> : vector<8xf32>
    %39 = vector.multi_reduction <add>, %38, %cst_14 [1] : vector<8x128xf32> to vector<8xf32>
    %40 = vector.shape_cast %39 : vector<8xf32> to vector<8x1xf32>
    %41 = math.sqrt %40 : vector<8x1xf32>
    %cst_15 = arith.constant 9.99999971E-10 : f32
    %42 = vector.broadcast %cst_15 : f32 to vector<8x1xf32>
    %43 = arith.addf %41, %42 : vector<8x1xf32>
    %44 = vector.broadcast %43 : vector<8x1xf32> to vector<8x128xf32>
    %45 = arith.divf %37, %44 : vector<8x128xf32>
    "tpu.trace_start"() <{level = 10 : i32, message = "kd,td->kt"}> : () -> ()
    %cst_16 = arith.constant dense<0.000000e+00> : vector<8x16xf32>
    %46 = tpu.matmul %45, %9, %cst_16 {dimension_numbers = #tpu.dot_dimension_numbers<[1], [1], [0], [0], [0, 0, 1, 0], [], []>} : vector<8x128xf32>, vector<16x128xf32>, vector<8x16xf32> -> vector<8x16xf32>
    "tpu.trace_stop"() : () -> ()
    %cst_17 = arith.constant 5.000000e+00 : f32
    %47 = vector.broadcast %cst_17 : f32 to vector<8x16xf32>
    %48 = arith.mulf %46, %47 : vector<8x16xf32>
    %cst_18 = arith.constant dense<0xFF800000> : vector<16xf32>
    %49 = vector.multi_reduction <maximumf>, %48, %cst_18 [0] : vector<8x16xf32> to vector<16xf32>
    %50 = vector.shape_cast %49 : vector<16xf32> to vector<1x16xf32>
    %51 = vector.broadcast %50 : vector<1x16xf32> to vector<8x16xf32>
    %52 = arith.subf %48, %51 : vector<8x16xf32>
    %53 = math.exp %52 : vector<8x16xf32>
    %cst_19 = arith.constant dense<0.000000e+00> : vector<16xf32>
    %54 = vector.multi_reduction <add>, %53, %cst_19 [0] : vector<8x16xf32> to vector<16xf32>
    %55 = vector.shape_cast %54 : vector<16xf32> to vector<1x16xf32>
    %56 = vector.broadcast %55 : vector<1x16xf32> to vector<8x16xf32>
    %57 = arith.divf %53, %56 : vector<8x16xf32>
    %cst_20 = arith.constant dense<0.000000e+00> : vector<8xf32>
    %58 = vector.multi_reduction <add>, %57, %cst_20 [1] : vector<8x16xf32> to vector<8xf32>
    %59 = vector.shape_cast %58 : vector<8xf32> to vector<8x1xf32>
    %cst_21 = arith.constant 9.99999971E-10 : f32
    %60 = vector.broadcast %cst_21 : f32 to vector<8x1xf32>
    %61 = arith.addf %59, %60 : vector<8x1xf32>
    %62 = vector.broadcast %61 : vector<8x1xf32> to vector<8x16xf32>
    %63 = arith.divf %57, %62 : vector<8x16xf32>
    %cst_22 = arith.constant dense<0.000000e+00> : vector<8x128xf32>
    %64 = tpu.matmul %63, %1, %cst_22 {dimension_numbers = #tpu.dot_dimension_numbers<[1], [0], [0], [1], [0, 0, 1, 1], [], []>} : vector<8x16xf32>, vector<16x128xf32>, vector<8x128xf32> -> vector<8x128xf32>
    %c0_23 = arith.constant 0 : index
    %c0_24 = arith.constant 0 : index
    %c0_25 = arith.constant 0 : index
    %65 = vector.load %arg3[%c0_23, %c0_24, %c0_25] : memref<1x8x128xf32, #tpu.memory_space<vmem>>, vector<1x8x128xf32>
    %66 = vector.shape_cast %65 : vector<1x8x128xf32> to vector<8x128xf32>
    %67 = vector.shape_cast %64 : vector<8x128xf32> to vector<1x8x128xf32>
    tpu.vector_store %arg3[%c0_23, %c0_24, %c0_25], %67 {strides = array<i32>} : memref<1x8x128xf32, #tpu.memory_space<vmem>>, vector<1x8x128xf32>,
    %68 = arith.mulf %64, %64 : vector<8x128xf32>
    %cst_26 = arith.constant dense<0.000000e+00> : vector<8xf32>
    %69 = vector.multi_reduction <add>, %68, %cst_26 [1] : vector<8x128xf32> to vector<8xf32>
    %70 = vector.shape_cast %69 : vector<8xf32> to vector<8x1xf32>
    %71 = math.sqrt %70 : vector<8x1xf32>
    %cst_27 = arith.constant 9.99999971E-10 : f32
    %72 = vector.broadcast %cst_27 : f32 to vector<8x1xf32>
    %73 = arith.addf %71, %72 : vector<8x1xf32>
    %74 = vector.broadcast %73 : vector<8x1xf32> to vector<8x128xf32>
    %75 = arith.divf %64, %74 : vector<8x128xf32>
    "tpu.trace_start"() <{level = 10 : i32, message = "kd,td->kt"}> : () -> ()
    %cst_28 = arith.constant dense<0.000000e+00> : vector<8x16xf32>
    %76 = tpu.matmul %75, %9, %cst_28 {dimension_numbers = #tpu.dot_dimension_numbers<[1], [1], [0], [0], [0, 0, 1, 0], [], []>} : vector<8x128xf32>, vector<16x128xf32>, vector<8x16xf32> -> vector<8x16xf32>
    "tpu.trace_stop"() : () -> ()
    %cst_29 = arith.constant 5.000000e+00 : f32
    %77 = vector.broadcast %cst_29 : f32 to vector<8x16xf32>
    %78 = arith.mulf %76, %77 : vector<8x16xf32>
    %cst_30 = arith.constant dense<0xFF800000> : vector<16xf32>
    %79 = vector.multi_reduction <maximumf>, %78, %cst_30 [0] : vector<8x16xf32> to vector<16xf32>
    %80 = vector.shape_cast %79 : vector<16xf32> to vector<1x16xf32>
    %81 = vector.broadcast %80 : vector<1x16xf32> to vector<8x16xf32>
    %82 = arith.subf %78, %81 : vector<8x16xf32>
    %83 = math.exp %82 : vector<8x16xf32>
    %cst_31 = arith.constant dense<0.000000e+00> : vector<16xf32>
    %84 = vector.multi_reduction <add>, %83, %cst_31 [0] : vector<8x16xf32> to vector<16xf32>
    %85 = vector.shape_cast %84 : vector<16xf32> to vector<1x16xf32>
    %86 = vector.broadcast %85 : vector<1x16xf32> to vector<8x16xf32>
    %87 = arith.divf %83, %86 : vector<8x16xf32>
    %cst_32 = arith.constant dense<0.000000e+00> : vector<8xf32>
    %88 = vector.multi_reduction <add>, %87, %cst_32 [1] : vector<8x16xf32> to vector<8xf32>
    %89 = vector.shape_cast %88 : vector<8xf32> to vector<8x1xf32>
    %cst_33 = arith.constant 9.99999971E-10 : f32
    %90 = vector.broadcast %cst_33 : f32 to vector<8x1xf32>
    %91 = arith.addf %89, %90 : vector<8x1xf32>
    %92 = vector.broadcast %91 : vector<8x1xf32> to vector<8x16xf32>
    %93 = arith.divf %87, %92 : vector<8x16xf32>
    "tpu.trace_start"() <{level = 10 : i32, message = "kt,ks->ts"}> : () -> ()
    %cst_34 = arith.constant dense<0.000000e+00> : vector<16x16xf32>
    %94 = tpu.matmul %87, %93, %cst_34 {dimension_numbers = #tpu.dot_dimension_numbers<[0], [0], [1], [1], [0, 1, 1, 1], [], []>} : vector<8x16xf32>, vector<8x16xf32>, vector<16x16xf32> -> vector<16x16xf32>
    "tpu.trace_stop"() : () -> ()
    %95 = tpu.iota {dimensions = array<i32: 0>} : vector<16x16xi32>
    %96 = tpu.iota {dimensions = array<i32: 1>} : vector<16x16xi32>
    %97 = arith.cmpi eq, %95, %96 : vector<16x16xi32>
    %98 = arith.extui %97 : vector<16x16xi1> to vector<16x16xi32>
    %99 = arith.sitofp %98 : vector<16x16xi32> to vector<16x16xf32>
    %cst_35 = arith.constant 2.500000e-01 : f32
    %100 = vector.broadcast %cst_35 : f32 to vector<16x16xf32>
    %101 = arith.mulf %100, %94 : vector<16x16xf32>
    %102 = arith.subf %99, %101 : vector<16x16xf32>
    %c0_36 = arith.constant 0 : index
    %c0_37 = arith.constant 0 : index
    %c0_38 = arith.constant 0 : index
    %103 = vector.load %arg4[%c0_36, %c0_37, %c0_38] : memref<1x16x16xf32, #tpu.memory_space<vmem>>, vector<1x16x16xf32>
    %104 = vector.shape_cast %103 : vector<1x16x16xf32> to vector<16x16xf32>
    %105 = vector.shape_cast %102 : vector<16x16xf32> to vector<1x16x16xf32>
    tpu.vector_store %arg4[%c0_36, %c0_37, %c0_38], %105 {strides = array<i32>} : memref<1x16x16xf32, #tpu.memory_space<vmem>>, vector<1x16x16xf32>,
    "tpu.trace_start"() <{level = 10 : i32, message = "kt,kd->td"}> : () -> ()
    %cst_39 = arith.constant dense<0.000000e+00> : vector<16x128xf32>
    %106 = tpu.matmul %87, %64, %cst_39 {dimension_numbers = #tpu.dot_dimension_numbers<[0], [0], [1], [1], [0, 1, 1, 1], [], []>} : vector<8x16xf32>, vector<8x128xf32>, vector<16x128xf32> -> vector<16x128xf32>
    "tpu.trace_stop"() : () -> ()
    %cst_40 = arith.constant 5.000000e-01 : f32
    %107 = vector.broadcast %cst_40 : f32 to vector<16x128xf32>
    %108 = arith.mulf %107, %106 : vector<16x128xf32>
    %109 = arith.addf %108, %1 : vector<16x128xf32>
    %c0_41 = arith.constant 0 : index
    %c0_42 = arith.constant 0 : index
    %c0_43 = arith.constant 0 : index
    %110 = vector.load %arg5[%c0_41, %c0_42, %c0_43] : memref<1x16x128xf32, #tpu.memory_space<vmem>>, vector<1x16x128xf32>
    %111 = vector.shape_cast %110 : vector<1x16x128xf32> to vector<16x128xf32>
    %112 = vector.shape_cast %109 : vector<16x128xf32> to vector<1x16x128xf32>
    tpu.vector_store %arg5[%c0_41, %c0_42, %c0_43], %112 {strides = array<i32>} : memref<1x16x128xf32, #tpu.memory_space<vmem>>, vector<1x16x128xf32>,
    return
  }
  func.func @transform_0(%arg0: i32) -> (i32, i32, i32) {
    %c0_i32 = arith.constant 0 : i32
    %c0_i32_0 = arith.constant 0 : i32
    %c0_i32_1 = arith.constant 0 : i32
    return %arg0, %c0_i32, %c0_i32_0 : i32, i32, i32
  }
  func.func @transform_1(%arg0: i32) -> (i32, i32) {
    %c0_i32 = arith.constant 0 : i32
    %c0_i32_0 = arith.constant 0 : i32
    %c0_i32_1 = arith.constant 0 : i32
    return %c0_i32, %c0_i32_0 : i32, i32
  }
  func.func @transform_2(%arg0: i32) -> (i32, i32, i32) {
    %c0_i32 = arith.constant 0 : i32
    %c0_i32_0 = arith.constant 0 : i32
    %c0_i32_1 = arith.constant 0 : i32
    return %arg0, %c0_i32, %c0_i32_0 : i32, i32, i32
  }
  func.func @transform_3(%arg0: i32) -> (i32, i32, i32) {
    %c0_i32 = arith.constant 0 : i32
    %c0_i32_0 = arith.constant 0 : i32
    %c0_i32_1 = arith.constant 0 : i32
    return %arg0, %c0_i32, %c0_i32_0 : i32, i32, i32
  }
  func.func @transform_4(%arg0: i32) -> (i32, i32, i32) {
    %c0_i32 = arith.constant 0 : i32
    %c0_i32_0 = arith.constant 0 : i32
    %c0_i32_1 = arith.constant 0 : i32
    return %arg0, %c0_i32, %c0_i32_0 : i32, i32, i32
  }
}

module attributes {stable_mosaic.version = 11 : i64} {
  func.func @_matmul_bias_kernel(%arg0: i32, %arg1: i32, %arg2: i32, %arg3: memref<1x16x128xf32, #tpu.memory_space<vmem>>, %arg4: memref<128x384xbf16, #tpu.memory_space<vmem>>, %arg5: memref<1x384xf32, #tpu.memory_space<vmem>>, %arg6: memref<1x16x384xf32, #tpu.memory_space<vmem>>, %arg7: memref<16x384xf32, #tpu.memory_space<vmem>>) attributes {dimension_semantics = [#tpu.dimension_semantics<parallel>, #tpu.dimension_semantics<parallel>, #tpu.dimension_semantics<arbitrary>], iteration_bounds = array<i64: 2, 1, 1>, scalar_prefetch = 0 : i64, scratch_operands = 1 : i64, tpu.core_type = #tpu.core_type<tc>, window_params = [{transform_indices = @transform_0, window_bounds = array<i64: 1, 16, 128>}, {transform_indices = @transform_1, window_bounds = array<i64: 128, 384>}, {transform_indices = @transform_2, window_bounds = array<i64: 1, 384>}, {transform_indices = @transform_3, window_bounds = array<i64: 1, 16, 384>}]} {
    %c0_i32 = arith.constant 0 : i32
    %0 = arith.cmpi eq, %arg2, %c0_i32 : i32
    %1 = arith.extui %0 : i1 to i32
    %c0_i32_0 = arith.constant 0 : i32
    %2 = arith.cmpi ne, %1, %c0_i32_0 : i32
    scf.if %2 {
      %cst_11 = arith.constant 0.000000e+00 : f32
      %14 = vector.broadcast %cst_11 : f32 to vector<16x384xf32>
      %c0_12 = arith.constant 0 : index
      %c0_13 = arith.constant 0 : index
      %15 = vector.load %arg7[%c0_12, %c0_13] : memref<16x384xf32, #tpu.memory_space<vmem>>, vector<16x384xf32>
      tpu.vector_store %arg7[%c0_12, %c0_13], %14 {strides = array<i32>} : memref<16x384xf32, #tpu.memory_space<vmem>>, vector<16x384xf32>,
    } else {
    }
    %c0 = arith.constant 0 : index
    %c0_1 = arith.constant 0 : index
    %3 = vector.load %arg7[%c0, %c0_1] : memref<16x384xf32, #tpu.memory_space<vmem>>, vector<16x384xf32>
    %c0_2 = arith.constant 0 : index
    %c0_3 = arith.constant 0 : index
    %c0_4 = arith.constant 0 : index
    %4 = vector.load %arg3[%c0_2, %c0_3, %c0_4] : memref<1x16x128xf32, #tpu.memory_space<vmem>>, vector<1x16x128xf32>
    %5 = vector.shape_cast %4 : vector<1x16x128xf32> to vector<16x128xf32>
    %6 = arith.truncf %5 : vector<16x128xf32> to vector<16x128xbf16>
    %c0_5 = arith.constant 0 : index
    %c0_6 = arith.constant 0 : index
    %7 = vector.load %arg4[%c0_5, %c0_6] : memref<128x384xbf16, #tpu.memory_space<vmem>>, vector<128x384xbf16>
    %cst = arith.constant dense<0.000000e+00> : vector<16x384xf32>
    %8 = tpu.matmul %6, %7, %cst {dimension_numbers = #tpu.dot_dimension_numbers<[1], [0], [0], [1], [0, 0, 1, 1], [], []>} : vector<16x128xbf16>, vector<128x384xbf16>, vector<16x384xf32> -> vector<16x384xf32>
    %9 = arith.addf %3, %8 : vector<16x384xf32>
    %c0_7 = arith.constant 0 : index
    %c0_8 = arith.constant 0 : index
    %10 = vector.load %arg7[%c0_7, %c0_8] : memref<16x384xf32, #tpu.memory_space<vmem>>, vector<16x384xf32>
    tpu.vector_store %arg7[%c0_7, %c0_8], %9 {strides = array<i32>} : memref<16x384xf32, #tpu.memory_space<vmem>>, vector<16x384xf32>,
    %c0_i32_9 = arith.constant 0 : i32
    %11 = arith.cmpi eq, %arg2, %c0_i32_9 : i32
    %12 = arith.extui %11 : i1 to i32
    %c0_i32_10 = arith.constant 0 : i32
    %13 = arith.cmpi ne, %12, %c0_i32_10 : i32
    scf.if %13 {
      %c0_11 = arith.constant 0 : index
      %c0_12 = arith.constant 0 : index
      %14 = vector.load %arg7[%c0_11, %c0_12] : memref<16x384xf32, #tpu.memory_space<vmem>>, vector<16x384xf32>
      %c0_13 = arith.constant 0 : index
      %c0_14 = arith.constant 0 : index
      %15 = vector.load %arg5[%c0_13, %c0_14] : memref<1x384xf32, #tpu.memory_space<vmem>>, vector<1x384xf32>
      %16 = vector.broadcast %15 : vector<1x384xf32> to vector<16x384xf32>
      %17 = arith.addf %14, %16 : vector<16x384xf32>
      %c0_15 = arith.constant 0 : index
      %c0_16 = arith.constant 0 : index
      %c0_17 = arith.constant 0 : index
      %18 = vector.load %arg6[%c0_15, %c0_16, %c0_17] : memref<1x16x384xf32, #tpu.memory_space<vmem>>, vector<1x16x384xf32>
      %19 = vector.shape_cast %18 : vector<1x16x384xf32> to vector<16x384xf32>
      %20 = vector.shape_cast %17 : vector<16x384xf32> to vector<1x16x384xf32>
      tpu.vector_store %arg6[%c0_15, %c0_16, %c0_17], %20 {strides = array<i32>} : memref<1x16x384xf32, #tpu.memory_space<vmem>>, vector<1x16x384xf32>,
    } else {
    }
    return
  }
  func.func @transform_0(%arg0: i32, %arg1: i32, %arg2: i32) -> (i32, i32, i32) {
    %c0_i32 = arith.constant 0 : i32
    %c0_i32_0 = arith.constant 0 : i32
    return %arg0, %c0_i32, %arg2 : i32, i32, i32
  }
  func.func @transform_1(%arg0: i32, %arg1: i32, %arg2: i32) -> (i32, i32) {
    %c0_i32 = arith.constant 0 : i32
    return %arg2, %arg1 : i32, i32
  }
  func.func @transform_2(%arg0: i32, %arg1: i32, %arg2: i32) -> (i32, i32) {
    %c0_i32 = arith.constant 0 : i32
    %c0_i32_0 = arith.constant 0 : i32
    return %c0_i32, %arg1 : i32, i32
  }
  func.func @transform_3(%arg0: i32, %arg1: i32, %arg2: i32) -> (i32, i32, i32) {
    %c0_i32 = arith.constant 0 : i32
    %c0_i32_0 = arith.constant 0 : i32
    return %arg0, %c0_i32, %arg1 : i32, i32, i32
  }
}

module attributes {stable_mosaic.version = 11 : i64} {
  func.func @_attn_core_kernel(%arg0: i32, %arg1: memref<1x16x128xf32, #tpu.memory_space<vmem>>, %arg2: memref<1x16x384xf32, #tpu.memory_space<vmem>>, %arg3: memref<128x128xbf16, #tpu.memory_space<vmem>>, %arg4: memref<1x128xf32, #tpu.memory_space<vmem>>, %arg5: memref<1x128xf32, #tpu.memory_space<vmem>>, %arg6: memref<1x128xf32, #tpu.memory_space<vmem>>, %arg7: memref<1x16x128xf32, #tpu.memory_space<vmem>>) attributes {dimension_semantics = [#tpu.dimension_semantics<parallel>], iteration_bounds = array<i64: 2>, scalar_prefetch = 0 : i64, scratch_operands = 0 : i64, tpu.core_type = #tpu.core_type<tc>, window_params = [{transform_indices = @transform_0, window_bounds = array<i64: 1, 16, 128>}, {transform_indices = @transform_1, window_bounds = array<i64: 1, 16, 384>}, {pipeline_mode = #tpu.pipeline_mode<synchronous>, transform_indices = @transform_2, window_bounds = array<i64: 128, 128>}, {pipeline_mode = #tpu.pipeline_mode<synchronous>, transform_indices = @transform_3, window_bounds = array<i64: 1, 128>}, {pipeline_mode = #tpu.pipeline_mode<synchronous>, transform_indices = @transform_4, window_bounds = array<i64: 1, 128>}, {pipeline_mode = #tpu.pipeline_mode<synchronous>, transform_indices = @transform_5, window_bounds = array<i64: 1, 128>}, {transform_indices = @transform_6, window_bounds = array<i64: 1, 16, 128>}]} {
    %c0 = arith.constant 0 : index
    %c0_0 = arith.constant 0 : index
    %c0_1 = arith.constant 0 : index
    %0 = vector.load %arg1[%c0, %c0_0, %c0_1] : memref<1x16x128xf32, #tpu.memory_space<vmem>>, vector<1x16x128xf32>
    %1 = vector.shape_cast %0 : vector<1x16x128xf32> to vector<16x128xf32>
    %c0_2 = arith.constant 0 : index
    %c0_3 = arith.constant 0 : index
    %c0_4 = arith.constant 0 : index
    %2 = vector.load %arg2[%c0_2, %c0_3, %c0_4] : memref<1x16x384xf32, #tpu.memory_space<vmem>>, vector<1x16x384xf32>
    %3 = vector.shape_cast %2 : vector<1x16x384xf32> to vector<16x384xf32>
    %4 = vector.extract_strided_slice %3 {offsets = [0, 0], sizes = [16, 128], strides = [1, 1]} : vector<16x384xf32> to vector<16x128xf32>
    %cst = arith.constant 2.500000e-01 : f32
    %5 = vector.broadcast %cst : f32 to vector<16x128xf32>
    %6 = arith.mulf %4, %5 : vector<16x128xf32>
    %7 = vector.shape_cast %6 : vector<16x128xf32> to vector<16x8x16xf32>
    %8 = tpu.transpose %7, [1, 0, 2] : vector<16x8x16xf32> -> vector<8x16x16xf32>
    %9 = arith.truncf %8 : vector<8x16x16xf32> to vector<8x16x16xbf16>
    %10 = vector.extract_strided_slice %3 {offsets = [0, 128], sizes = [16, 128], strides = [1, 1]} : vector<16x384xf32> to vector<16x128xf32>
    %11 = vector.shape_cast %10 : vector<16x128xf32> to vector<16x8x16xf32>
    %12 = tpu.transpose %11, [1, 0, 2] : vector<16x8x16xf32> -> vector<8x16x16xf32>
    %13 = arith.truncf %12 : vector<8x16x16xf32> to vector<8x16x16xbf16>
    %14 = vector.extract_strided_slice %3 {offsets = [0, 256], sizes = [16, 128], strides = [1, 1]} : vector<16x384xf32> to vector<16x128xf32>
    %15 = vector.shape_cast %14 : vector<16x128xf32> to vector<16x8x16xf32>
    %16 = tpu.transpose %15, [1, 0, 2] : vector<16x8x16xf32> -> vector<8x16x16xf32>
    %17 = arith.truncf %16 : vector<8x16x16xf32> to vector<8x16x16xbf16>
    "tpu.trace_start"() <{level = 10 : i32, message = "hqd,hkd->hqk"}> : () -> ()
    %cst_5 = arith.constant dense<0.000000e+00> : vector<8x16x16xf32>
    %18 = tpu.matmul %9, %13, %cst_5 {dimension_numbers = #tpu.dot_dimension_numbers<[2], [2], [1], [1], [0, 0, 0, 1, 1, 1], [0], [0]>} : vector<8x16x16xbf16>, vector<8x16x16xbf16>, vector<8x16x16xf32> -> vector<8x16x16xf32>
    "tpu.trace_stop"() : () -> ()
    %cst_6 = arith.constant dense<0xFF800000> : vector<8x16xf32>
    %19 = vector.multi_reduction <maximumf>, %18, %cst_6 [2] : vector<8x16x16xf32> to vector<8x16xf32>
    %20 = vector.shape_cast %19 : vector<8x16xf32> to vector<8x16x1xf32>
    %21 = vector.broadcast %20 : vector<8x16x1xf32> to vector<8x16x16xf32>
    %22 = arith.subf %18, %21 : vector<8x16x16xf32>
    %23 = math.exp %22 : vector<8x16x16xf32>
    %cst_7 = arith.constant dense<0.000000e+00> : vector<8x16xf32>
    %24 = vector.multi_reduction <add>, %23, %cst_7 [2] : vector<8x16x16xf32> to vector<8x16xf32>
    %25 = vector.shape_cast %24 : vector<8x16xf32> to vector<8x16x1xf32>
    %26 = tpu.reciprocal %25 {approx = true} : vector<8x16x1xf32> -> vector<8x16x1xf32>
    %27 = vector.broadcast %26 : vector<8x16x1xf32> to vector<8x16x16xf32>
    %28 = arith.mulf %23, %27 : vector<8x16x16xf32>
    %29 = arith.truncf %28 : vector<8x16x16xf32> to vector<8x16x16xbf16>
    "tpu.trace_start"() <{level = 10 : i32, message = "hqk,hkd->hqd"}> : () -> ()
    %cst_8 = arith.constant dense<0.000000e+00> : vector<8x16x16xf32>
    %30 = tpu.matmul %29, %17, %cst_8 {dimension_numbers = #tpu.dot_dimension_numbers<[2], [1], [1], [2], [0, 0, 0, 1, 1, 2], [0], [0]>} : vector<8x16x16xbf16>, vector<8x16x16xbf16>, vector<8x16x16xf32> -> vector<8x16x16xf32>
    "tpu.trace_stop"() : () -> ()
    %31 = tpu.transpose %30, [1, 0, 2] : vector<8x16x16xf32> -> vector<16x8x16xf32>
    %32 = vector.shape_cast %31 : vector<16x8x16xf32> to vector<16x128xf32>
    %33 = arith.truncf %32 : vector<16x128xf32> to vector<16x128xbf16>
    %c0_9 = arith.constant 0 : index
    %c0_10 = arith.constant 0 : index
    %34 = vector.load %arg3[%c0_9, %c0_10] : memref<128x128xbf16, #tpu.memory_space<vmem>>, vector<128x128xbf16>
    %cst_11 = arith.constant dense<0.000000e+00> : vector<16x128xf32>
    %35 = tpu.matmul %33, %34, %cst_11 {dimension_numbers = #tpu.dot_dimension_numbers<[1], [0], [0], [1], [0, 0, 1, 1], [], []>} : vector<16x128xbf16>, vector<128x128xbf16>, vector<16x128xf32> -> vector<16x128xf32>
    %c0_12 = arith.constant 0 : index
    %c0_13 = arith.constant 0 : index
    %36 = vector.load %arg4[%c0_12, %c0_13] : memref<1x128xf32, #tpu.memory_space<vmem>>, vector<1x128xf32>
    %37 = vector.broadcast %36 : vector<1x128xf32> to vector<16x128xf32>
    %38 = arith.addf %35, %37 : vector<16x128xf32>
    %c0_14 = arith.constant 0 : index
    %c0_15 = arith.constant 0 : index
    %39 = vector.load %arg5[%c0_14, %c0_15] : memref<1x128xf32, #tpu.memory_space<vmem>>, vector<1x128xf32>
    %cst_16 = arith.constant 0.999994993 : f32
    %40 = vector.broadcast %cst_16 : f32 to vector<1x128xf32>
    %41 = arith.mulf %39, %40 : vector<1x128xf32>
    %42 = vector.broadcast %41 : vector<1x128xf32> to vector<16x128xf32>
    %43 = arith.mulf %38, %42 : vector<16x128xf32>
    %c0_17 = arith.constant 0 : index
    %c0_18 = arith.constant 0 : index
    %44 = vector.load %arg6[%c0_17, %c0_18] : memref<1x128xf32, #tpu.memory_space<vmem>>, vector<1x128xf32>
    %45 = vector.broadcast %44 : vector<1x128xf32> to vector<16x128xf32>
    %46 = arith.addf %43, %45 : vector<16x128xf32>
    %47 = arith.addf %1, %46 : vector<16x128xf32>
    %c0_19 = arith.constant 0 : index
    %c0_20 = arith.constant 0 : index
    %c0_21 = arith.constant 0 : index
    %48 = vector.load %arg7[%c0_19, %c0_20, %c0_21] : memref<1x16x128xf32, #tpu.memory_space<vmem>>, vector<1x16x128xf32>
    %49 = vector.shape_cast %48 : vector<1x16x128xf32> to vector<16x128xf32>
    %50 = vector.shape_cast %47 : vector<16x128xf32> to vector<1x16x128xf32>
    tpu.vector_store %arg7[%c0_19, %c0_20, %c0_21], %50 {strides = array<i32>} : memref<1x16x128xf32, #tpu.memory_space<vmem>>, vector<1x16x128xf32>,
    return
  }
  func.func @transform_0(%arg0: i32) -> (i32, i32, i32) {
    %c0_i32 = arith.constant 0 : i32
    %c0_i32_0 = arith.constant 0 : i32
    %c0_i32_1 = arith.constant 0 : i32
    return %arg0, %c0_i32, %c0_i32_0 : i32, i32, i32
  }
  func.func @transform_1(%arg0: i32) -> (i32, i32, i32) {
    %c0_i32 = arith.constant 0 : i32
    %c0_i32_0 = arith.constant 0 : i32
    %c0_i32_1 = arith.constant 0 : i32
    return %arg0, %c0_i32, %c0_i32_0 : i32, i32, i32
  }
  func.func @transform_2(%arg0: i32) -> (i32, i32) {
    %c0_i32 = arith.constant 0 : i32
    %c0_i32_0 = arith.constant 0 : i32
    %c0_i32_1 = arith.constant 0 : i32
    return %c0_i32, %c0_i32_0 : i32, i32
  }
  func.func @transform_3(%arg0: i32) -> (i32, i32) {
    %c0_i32 = arith.constant 0 : i32
    %c0_i32_0 = arith.constant 0 : i32
    %c0_i32_1 = arith.constant 0 : i32
    return %c0_i32, %c0_i32_0 : i32, i32
  }
  func.func @transform_4(%arg0: i32) -> (i32, i32) {
    %c0_i32 = arith.constant 0 : i32
    %c0_i32_0 = arith.constant 0 : i32
    %c0_i32_1 = arith.constant 0 : i32
    return %c0_i32, %c0_i32_0 : i32, i32
  }
  func.func @transform_5(%arg0: i32) -> (i32, i32) {
    %c0_i32 = arith.constant 0 : i32
    %c0_i32_0 = arith.constant 0 : i32
    %c0_i32_1 = arith.constant 0 : i32
    return %c0_i32, %c0_i32_0 : i32, i32
  }
  func.func @transform_6(%arg0: i32) -> (i32, i32, i32) {
    %c0_i32 = arith.constant 0 : i32
    %c0_i32_0 = arith.constant 0 : i32
    %c0_i32_1 = arith.constant 0 : i32
    return %arg0, %c0_i32, %c0_i32_0 : i32, i32, i32
  }
}

module attributes {stable_mosaic.version = 11 : i64} {
  func.func @_classifier_kernel(%arg0: i32, %arg1: memref<1x18x128xf32, #tpu.memory_space<vmem>>, %arg2: memref<128x128xbf16, #tpu.memory_space<vmem>>, %arg3: memref<128x128xbf16, #tpu.memory_space<vmem>>, %arg4: memref<128x128xbf16, #tpu.memory_space<vmem>>, %arg5: memref<1x128xf32, #tpu.memory_space<vmem>>, %arg6: memref<128x128xbf16, #tpu.memory_space<vmem>>, %arg7: memref<1x128xf32, #tpu.memory_space<vmem>>, %arg8: memref<1x16x128xf32, #tpu.memory_space<vmem>>) attributes {dimension_semantics = [#tpu.dimension_semantics<parallel>], iteration_bounds = array<i64: 4>, scalar_prefetch = 0 : i64, scratch_operands = 0 : i64, tpu.core_type = #tpu.core_type<tc>, window_params = [{transform_indices = @transform_0, window_bounds = array<i64: 1, 18, 128>}, {pipeline_mode = #tpu.pipeline_mode<synchronous>, transform_indices = @transform_1, window_bounds = array<i64: 128, 128>}, {pipeline_mode = #tpu.pipeline_mode<synchronous>, transform_indices = @transform_2, window_bounds = array<i64: 128, 128>}, {pipeline_mode = #tpu.pipeline_mode<synchronous>, transform_indices = @transform_3, window_bounds = array<i64: 128, 128>}, {pipeline_mode = #tpu.pipeline_mode<synchronous>, transform_indices = @transform_4, window_bounds = array<i64: 1, 128>}, {pipeline_mode = #tpu.pipeline_mode<synchronous>, transform_indices = @transform_5, window_bounds = array<i64: 128, 128>}, {pipeline_mode = #tpu.pipeline_mode<synchronous>, transform_indices = @transform_6, window_bounds = array<i64: 1, 128>}, {transform_indices = @transform_7, window_bounds = array<i64: 1, 16, 128>}]} {
    %c0 = arith.constant 0 : index
    %c0_0 = arith.constant 0 : index
    %c0_1 = arith.constant 0 : index
    %0 = vector.load %arg1[%c0, %c0_0, %c0_1] : memref<1x18x128xf32, #tpu.memory_space<vmem>>, vector<1x18x128xf32>
    %1 = vector.shape_cast %0 : vector<1x18x128xf32> to vector<18x128xf32>
    %2 = arith.truncf %1 : vector<18x128xf32> to vector<18x128xbf16>
    %3 = vector.extract_strided_slice %2 {offsets = [0, 0], sizes = [16, 128], strides = [1, 1]} : vector<18x128xbf16> to vector<16x128xbf16>
    %c0_2 = arith.constant 0 : index
    %c0_3 = arith.constant 0 : index
    %4 = vector.load %arg2[%c0_2, %c0_3] : memref<128x128xbf16, #tpu.memory_space<vmem>>, vector<128x128xbf16>
    %cst = arith.constant dense<0.000000e+00> : vector<16x128xf32>
    %5 = tpu.matmul %3, %4, %cst {dimension_numbers = #tpu.dot_dimension_numbers<[1], [0], [0], [1], [0, 0, 1, 1], [], []>} : vector<16x128xbf16>, vector<128x128xbf16>, vector<16x128xf32> -> vector<16x128xf32>
    %6 = vector.extract_strided_slice %2 {offsets = [1, 0], sizes = [16, 128], strides = [1, 1]} : vector<18x128xbf16> to vector<16x128xbf16>
    %c0_4 = arith.constant 0 : index
    %c0_5 = arith.constant 0 : index
    %7 = vector.load %arg3[%c0_4, %c0_5] : memref<128x128xbf16, #tpu.memory_space<vmem>>, vector<128x128xbf16>
    %cst_6 = arith.constant dense<0.000000e+00> : vector<16x128xf32>
    %8 = tpu.matmul %6, %7, %cst_6 {dimension_numbers = #tpu.dot_dimension_numbers<[1], [0], [0], [1], [0, 0, 1, 1], [], []>} : vector<16x128xbf16>, vector<128x128xbf16>, vector<16x128xf32> -> vector<16x128xf32>
    %9 = arith.addf %5, %8 : vector<16x128xf32>
    %10 = vector.extract_strided_slice %2 {offsets = [2, 0], sizes = [16, 128], strides = [1, 1]} : vector<18x128xbf16> to vector<16x128xbf16>
    %c0_7 = arith.constant 0 : index
    %c0_8 = arith.constant 0 : index
    %11 = vector.load %arg4[%c0_7, %c0_8] : memref<128x128xbf16, #tpu.memory_space<vmem>>, vector<128x128xbf16>
    %cst_9 = arith.constant dense<0.000000e+00> : vector<16x128xf32>
    %12 = tpu.matmul %10, %11, %cst_9 {dimension_numbers = #tpu.dot_dimension_numbers<[1], [0], [0], [1], [0, 0, 1, 1], [], []>} : vector<16x128xbf16>, vector<128x128xbf16>, vector<16x128xf32> -> vector<16x128xf32>
    %13 = arith.addf %9, %12 : vector<16x128xf32>
    %c0_10 = arith.constant 0 : index
    %c0_11 = arith.constant 0 : index
    %14 = vector.load %arg5[%c0_10, %c0_11] : memref<1x128xf32, #tpu.memory_space<vmem>>, vector<1x128xf32>
    %15 = vector.broadcast %14 : vector<1x128xf32> to vector<16x128xf32>
    %16 = arith.addf %13, %15 : vector<16x128xf32>
    %cst_12 = arith.constant 0.000000e+00 : f32
    %17 = vector.broadcast %cst_12 : f32 to vector<16x128xf32>
    %18 = arith.cmpf oge, %16, %17 : vector<16x128xf32>
    %cst_13 = arith.constant 2.000000e-01 : f32
    %19 = vector.broadcast %cst_13 : f32 to vector<16x128xf32>
    %20 = arith.mulf %19, %16 : vector<16x128xf32>
    %21 = arith.select %18, %16, %20 : vector<16x128xi1>, vector<16x128xf32>
    %22 = arith.truncf %21 : vector<16x128xf32> to vector<16x128xbf16>
    %c0_14 = arith.constant 0 : index
    %c0_15 = arith.constant 0 : index
    %23 = vector.load %arg6[%c0_14, %c0_15] : memref<128x128xbf16, #tpu.memory_space<vmem>>, vector<128x128xbf16>
    %cst_16 = arith.constant dense<0.000000e+00> : vector<16x128xf32>
    %24 = tpu.matmul %22, %23, %cst_16 {dimension_numbers = #tpu.dot_dimension_numbers<[1], [0], [0], [1], [0, 0, 1, 1], [], []>} : vector<16x128xbf16>, vector<128x128xbf16>, vector<16x128xf32> -> vector<16x128xf32>
    %c0_17 = arith.constant 0 : index
    %c0_18 = arith.constant 0 : index
    %25 = vector.load %arg7[%c0_17, %c0_18] : memref<1x128xf32, #tpu.memory_space<vmem>>, vector<1x128xf32>
    %26 = vector.broadcast %25 : vector<1x128xf32> to vector<16x128xf32>
    %27 = arith.addf %24, %26 : vector<16x128xf32>
    %c0_19 = arith.constant 0 : index
    %c0_20 = arith.constant 0 : index
    %c0_21 = arith.constant 0 : index
    %28 = vector.load %arg8[%c0_19, %c0_20, %c0_21] : memref<1x16x128xf32, #tpu.memory_space<vmem>>, vector<1x16x128xf32>
    %29 = vector.shape_cast %28 : vector<1x16x128xf32> to vector<16x128xf32>
    %30 = vector.shape_cast %27 : vector<16x128xf32> to vector<1x16x128xf32>
    tpu.vector_store %arg8[%c0_19, %c0_20, %c0_21], %30 {strides = array<i32>} : memref<1x16x128xf32, #tpu.memory_space<vmem>>, vector<1x16x128xf32>,
    return
  }
  func.func @transform_0(%arg0: i32) -> (i32, i32, i32) {
    %c0_i32 = arith.constant 0 : i32
    %c0_i32_0 = arith.constant 0 : i32
    %c0_i32_1 = arith.constant 0 : i32
    return %arg0, %c0_i32, %c0_i32_0 : i32, i32, i32
  }
  func.func @transform_1(%arg0: i32) -> (i32, i32) {
    %c0_i32 = arith.constant 0 : i32
    %c0_i32_0 = arith.constant 0 : i32
    %c0_i32_1 = arith.constant 0 : i32
    return %c0_i32, %c0_i32_0 : i32, i32
  }
  func.func @transform_2(%arg0: i32) -> (i32, i32) {
    %c0_i32 = arith.constant 0 : i32
    %c0_i32_0 = arith.constant 0 : i32
    %c0_i32_1 = arith.constant 0 : i32
    return %c0_i32, %c0_i32_0 : i32, i32
  }
  func.func @transform_3(%arg0: i32) -> (i32, i32) {
    %c0_i32 = arith.constant 0 : i32
    %c0_i32_0 = arith.constant 0 : i32
    %c0_i32_1 = arith.constant 0 : i32
    return %c0_i32, %c0_i32_0 : i32, i32
  }
  func.func @transform_4(%arg0: i32) -> (i32, i32) {
    %c0_i32 = arith.constant 0 : i32
    %c0_i32_0 = arith.constant 0 : i32
    %c0_i32_1 = arith.constant 0 : i32
    return %c0_i32, %c0_i32_0 : i32, i32
  }
  func.func @transform_5(%arg0: i32) -> (i32, i32) {
    %c0_i32 = arith.constant 0 : i32
    %c0_i32_0 = arith.constant 0 : i32
    %c0_i32_1 = arith.constant 0 : i32
    return %c0_i32, %c0_i32_0 : i32, i32
  }
  func.func @transform_6(%arg0: i32) -> (i32, i32) {
    %c0_i32 = arith.constant 0 : i32
    %c0_i32_0 = arith.constant 0 : i32
    %c0_i32_1 = arith.constant 0 : i32
    return %c0_i32, %c0_i32_0 : i32, i32
  }
  func.func @transform_7(%arg0: i32) -> (i32, i32, i32) {
    %c0_i32 = arith.constant 0 : i32
    %c0_i32_0 = arith.constant 0 : i32
    %c0_i32_1 = arith.constant 0 : i32
    return %arg0, %c0_i32, %c0_i32_0 : i32, i32, i32
  }
}

module attributes {stable_mosaic.version = 11 : i64} {
  func.func @_classifier_kernel(%arg0: i32, %arg1: memref<1x10x128xf32, #tpu.memory_space<vmem>>, %arg2: memref<128x128xbf16, #tpu.memory_space<vmem>>, %arg3: memref<128x128xbf16, #tpu.memory_space<vmem>>, %arg4: memref<128x128xbf16, #tpu.memory_space<vmem>>, %arg5: memref<1x128xf32, #tpu.memory_space<vmem>>, %arg6: memref<128x128xbf16, #tpu.memory_space<vmem>>, %arg7: memref<1x128xf32, #tpu.memory_space<vmem>>, %arg8: memref<1x8x128xf32, #tpu.memory_space<vmem>>) attributes {dimension_semantics = [#tpu.dimension_semantics<parallel>], iteration_bounds = array<i64: 2>, scalar_prefetch = 0 : i64, scratch_operands = 0 : i64, tpu.core_type = #tpu.core_type<tc>, window_params = [{transform_indices = @transform_0, window_bounds = array<i64: 1, 10, 128>}, {pipeline_mode = #tpu.pipeline_mode<synchronous>, transform_indices = @transform_1, window_bounds = array<i64: 128, 128>}, {pipeline_mode = #tpu.pipeline_mode<synchronous>, transform_indices = @transform_2, window_bounds = array<i64: 128, 128>}, {pipeline_mode = #tpu.pipeline_mode<synchronous>, transform_indices = @transform_3, window_bounds = array<i64: 128, 128>}, {pipeline_mode = #tpu.pipeline_mode<synchronous>, transform_indices = @transform_4, window_bounds = array<i64: 1, 128>}, {pipeline_mode = #tpu.pipeline_mode<synchronous>, transform_indices = @transform_5, window_bounds = array<i64: 128, 128>}, {pipeline_mode = #tpu.pipeline_mode<synchronous>, transform_indices = @transform_6, window_bounds = array<i64: 1, 128>}, {transform_indices = @transform_7, window_bounds = array<i64: 1, 8, 128>}]} {
    %c0 = arith.constant 0 : index
    %c0_0 = arith.constant 0 : index
    %c0_1 = arith.constant 0 : index
    %0 = vector.load %arg1[%c0, %c0_0, %c0_1] : memref<1x10x128xf32, #tpu.memory_space<vmem>>, vector<1x10x128xf32>
    %1 = vector.shape_cast %0 : vector<1x10x128xf32> to vector<10x128xf32>
    %2 = arith.truncf %1 : vector<10x128xf32> to vector<10x128xbf16>
    %3 = vector.extract_strided_slice %2 {offsets = [0, 0], sizes = [8, 128], strides = [1, 1]} : vector<10x128xbf16> to vector<8x128xbf16>
    %c0_2 = arith.constant 0 : index
    %c0_3 = arith.constant 0 : index
    %4 = vector.load %arg2[%c0_2, %c0_3] : memref<128x128xbf16, #tpu.memory_space<vmem>>, vector<128x128xbf16>
    %cst = arith.constant dense<0.000000e+00> : vector<8x128xf32>
    %5 = tpu.matmul %3, %4, %cst {dimension_numbers = #tpu.dot_dimension_numbers<[1], [0], [0], [1], [0, 0, 1, 1], [], []>} : vector<8x128xbf16>, vector<128x128xbf16>, vector<8x128xf32> -> vector<8x128xf32>
    %6 = vector.extract_strided_slice %2 {offsets = [1, 0], sizes = [8, 128], strides = [1, 1]} : vector<10x128xbf16> to vector<8x128xbf16>
    %c0_4 = arith.constant 0 : index
    %c0_5 = arith.constant 0 : index
    %7 = vector.load %arg3[%c0_4, %c0_5] : memref<128x128xbf16, #tpu.memory_space<vmem>>, vector<128x128xbf16>
    %cst_6 = arith.constant dense<0.000000e+00> : vector<8x128xf32>
    %8 = tpu.matmul %6, %7, %cst_6 {dimension_numbers = #tpu.dot_dimension_numbers<[1], [0], [0], [1], [0, 0, 1, 1], [], []>} : vector<8x128xbf16>, vector<128x128xbf16>, vector<8x128xf32> -> vector<8x128xf32>
    %9 = arith.addf %5, %8 : vector<8x128xf32>
    %10 = vector.extract_strided_slice %2 {offsets = [2, 0], sizes = [8, 128], strides = [1, 1]} : vector<10x128xbf16> to vector<8x128xbf16>
    %c0_7 = arith.constant 0 : index
    %c0_8 = arith.constant 0 : index
    %11 = vector.load %arg4[%c0_7, %c0_8] : memref<128x128xbf16, #tpu.memory_space<vmem>>, vector<128x128xbf16>
    %cst_9 = arith.constant dense<0.000000e+00> : vector<8x128xf32>
    %12 = tpu.matmul %10, %11, %cst_9 {dimension_numbers = #tpu.dot_dimension_numbers<[1], [0], [0], [1], [0, 0, 1, 1], [], []>} : vector<8x128xbf16>, vector<128x128xbf16>, vector<8x128xf32> -> vector<8x128xf32>
    %13 = arith.addf %9, %12 : vector<8x128xf32>
    %c0_10 = arith.constant 0 : index
    %c0_11 = arith.constant 0 : index
    %14 = vector.load %arg5[%c0_10, %c0_11] : memref<1x128xf32, #tpu.memory_space<vmem>>, vector<1x128xf32>
    %15 = vector.broadcast %14 : vector<1x128xf32> to vector<8x128xf32>
    %16 = arith.addf %13, %15 : vector<8x128xf32>
    %cst_12 = arith.constant 0.000000e+00 : f32
    %17 = vector.broadcast %cst_12 : f32 to vector<8x128xf32>
    %18 = arith.cmpf oge, %16, %17 : vector<8x128xf32>
    %cst_13 = arith.constant 2.000000e-01 : f32
    %19 = vector.broadcast %cst_13 : f32 to vector<8x128xf32>
    %20 = arith.mulf %19, %16 : vector<8x128xf32>
    %21 = arith.select %18, %16, %20 : vector<8x128xi1>, vector<8x128xf32>
    %22 = arith.truncf %21 : vector<8x128xf32> to vector<8x128xbf16>
    %c0_14 = arith.constant 0 : index
    %c0_15 = arith.constant 0 : index
    %23 = vector.load %arg6[%c0_14, %c0_15] : memref<128x128xbf16, #tpu.memory_space<vmem>>, vector<128x128xbf16>
    %cst_16 = arith.constant dense<0.000000e+00> : vector<8x128xf32>
    %24 = tpu.matmul %22, %23, %cst_16 {dimension_numbers = #tpu.dot_dimension_numbers<[1], [0], [0], [1], [0, 0, 1, 1], [], []>} : vector<8x128xbf16>, vector<128x128xbf16>, vector<8x128xf32> -> vector<8x128xf32>
    %c0_17 = arith.constant 0 : index
    %c0_18 = arith.constant 0 : index
    %25 = vector.load %arg7[%c0_17, %c0_18] : memref<1x128xf32, #tpu.memory_space<vmem>>, vector<1x128xf32>
    %26 = vector.broadcast %25 : vector<1x128xf32> to vector<8x128xf32>
    %27 = arith.addf %24, %26 : vector<8x128xf32>
    %c0_19 = arith.constant 0 : index
    %c0_20 = arith.constant 0 : index
    %c0_21 = arith.constant 0 : index
    %28 = vector.load %arg8[%c0_19, %c0_20, %c0_21] : memref<1x8x128xf32, #tpu.memory_space<vmem>>, vector<1x8x128xf32>
    %29 = vector.shape_cast %28 : vector<1x8x128xf32> to vector<8x128xf32>
    %30 = vector.shape_cast %27 : vector<8x128xf32> to vector<1x8x128xf32>
    tpu.vector_store %arg8[%c0_19, %c0_20, %c0_21], %30 {strides = array<i32>} : memref<1x8x128xf32, #tpu.memory_space<vmem>>, vector<1x8x128xf32>,
    return
  }
  func.func @transform_0(%arg0: i32) -> (i32, i32, i32) {
    %c0_i32 = arith.constant 0 : i32
    %c0_i32_0 = arith.constant 0 : i32
    %c0_i32_1 = arith.constant 0 : i32
    return %arg0, %c0_i32, %c0_i32_0 : i32, i32, i32
  }
  func.func @transform_1(%arg0: i32) -> (i32, i32) {
    %c0_i32 = arith.constant 0 : i32
    %c0_i32_0 = arith.constant 0 : i32
    %c0_i32_1 = arith.constant 0 : i32
    return %c0_i32, %c0_i32_0 : i32, i32
  }
  func.func @transform_2(%arg0: i32) -> (i32, i32) {
    %c0_i32 = arith.constant 0 : i32
    %c0_i32_0 = arith.constant 0 : i32
    %c0_i32_1 = arith.constant 0 : i32
    return %c0_i32, %c0_i32_0 : i32, i32
  }
  func.func @transform_3(%arg0: i32) -> (i32, i32) {
    %c0_i32 = arith.constant 0 : i32
    %c0_i32_0 = arith.constant 0 : i32
    %c0_i32_1 = arith.constant 0 : i32
    return %c0_i32, %c0_i32_0 : i32, i32
  }
  func.func @transform_4(%arg0: i32) -> (i32, i32) {
    %c0_i32 = arith.constant 0 : i32
    %c0_i32_0 = arith.constant 0 : i32
    %c0_i32_1 = arith.constant 0 : i32
    return %c0_i32, %c0_i32_0 : i32, i32
  }
  func.func @transform_5(%arg0: i32) -> (i32, i32) {
    %c0_i32 = arith.constant 0 : i32
    %c0_i32_0 = arith.constant 0 : i32
    %c0_i32_1 = arith.constant 0 : i32
    return %c0_i32, %c0_i32_0 : i32, i32
  }
  func.func @transform_6(%arg0: i32) -> (i32, i32) {
    %c0_i32 = arith.constant 0 : i32
    %c0_i32_0 = arith.constant 0 : i32
    %c0_i32_1 = arith.constant 0 : i32
    return %c0_i32, %c0_i32_0 : i32, i32
  }
  func.func @transform_7(%arg0: i32) -> (i32, i32, i32) {
    %c0_i32 = arith.constant 0 : i32
    %c0_i32_0 = arith.constant 0 : i32
    %c0_i32_1 = arith.constant 0 : i32
    return %arg0, %c0_i32, %c0_i32_0 : i32, i32, i32
  }
}

</mosaic_0001>

<bundles_post_ra>
// kernel: tfedcn_forward.7
= control target key start
LH: loop header
LB: loop body
LE: loop exit
PB: predicated region body
PF: predicated region fallthrough
CT: control target
= control target key end

     0   :  { %8 = vsyncpa [#allocation4], 0  ;;  %s1374_s0 = inlined_call_operand.hbm [shape: f32[2,16,128], index: 0, kind: input, shape index: {}]   ;;  %s1375_s1 = inlined_call_operand.hbm [shape: bf16[128,384], index: 1, kind: input, shape index: {}]   ;;  %s1376_s2 = inlined_call_operand.hbm [shape: f32[1,384], index: 2, kind: input, shape index: {}]   ;;  %s1377_s3 = inlined_call_operand.hbm [shape: f32[2,16,384], index: 3, kind: output, shape index: {}]  }
   0x1   :  { %10 = vsyncpa [#allocation4 + $0x1], 0 }
   0x2   :  { %11 = vsyncpa [#allocation7], 0 }
   0x3   :  { %12 = vsyncpa [#allocation5], 0 }
   0x4   :  { %14 = vsyncpa [#allocation5 + $0x1], 0  ;;  %s1113_s12 = smov 0   ;;  %s1115_s13 = smov 0  }
   0x5   :  { %s1117_s14 = smov 0   ;;  %s1119_s15 = smov 0  }
   0x6   :  { %s1121_s16 = smov 0   ;;  %s1123_s17 = smov 0  }
   0x7 LB: > { %s710_s18 = sadd.s32 4294967295, %s1078_s17   ;;  %s711_s19 = sadd.s32 4294967294, %s1078_s17   ;;  %s1078_s17 = sphi %s1123_s17, %s20_s17   ;;  %s1074_s16 = sphi %s1121_s16, %s1399_s16   ;;  %s1070_s15 = sphi %s1119_s15, %s1398_s15   ;;  %s1066_s14 = sphi %s1117_s14, %s1397_s14   ;;  %s1062_s13 = sphi %s1115_s13, %s1396_s13   ;;  %s1058_s12 = sphi %s1113_s12, %s1395_s12  }
   0x8   : > { %p61_p0 = scmp.ne.s32.totalorder %s1062_s13, %s1058_s12  ;;  %p1147_p1 = scmp.eq.s32.totalorder %s710_s18, 0 }
   0x9   : > { %p1151_p2 = scmp.eq.s32.totalorder %s710_s18, 1  ;;  %p147_p3 = scmp.eq.s32.totalorder %s711_s19, 1 }
   0xa   : > { %s1382_s20 = scalar_select %p1147_p1, 1, 0 }
   0xb   : > { %p1157_p4 = por %p1147_p1, %p61_p0  ;;  %p712_p5 = scmp.ge.s32.totalorder %s1078_s17, 1 }
   0xc   : > { %p1162_p6 = por %p147_p3, %p61_p0  ;;  %p154_p7 = scmp.lt.s32.totalorder %s1078_s17, 3 }
   0xd   : > { %s1384_s22 = scalar_select %p1157_p4, 1, 0 }
   0xe   : > { %s1385_s23 = scalar_select %p1162_p6, 1, 0 }
   0xf   : > { %p1167_p8 = pnand %p712_p5, %p154_p7  ;;  %s1080_s25 = smov [#allocation6]  }
  0x10   : > { %s172_s26 = sshll.u32 %s1080_s25, 4  ;;  %s1081_s28 = smov [#allocation8]   ;;  %s1171_s26 = int_to_ptr.vmem [resolvable:$true] %s172_s26 }
  0x11   : > { %p794_p9 = pneg %p1167_p8  ;;  %s189_s29 = sshll.u32 %s1081_s28, 4  ;;  %s1182_s29 = int_to_ptr.vmem [resolvable:$true] %s189_s29 }
  0x12   : > { %s906_s5 = scalar_lea.hbm %s1375_s1, 3072 }
  0x13   : > { %p1178_p11 = pnand %p794_p9, %p1147_p1  ;;  %p907_p12 = scmp.ne.s32.totalorder %s1375_s1, %s906_s5 }
  0x14   : > { %p913_p5 = scmp.lt.u32.totalorder %s906_s5, %s1375_s1 }
  0x15   : > { %p908_p13 = pneg %p1178_p11 }
  0x17   : > { %p909_p0 = pnand %p908_p13, %p907_p12 }
  0x19   : > { %p910_p3 = pneg %p909_p0 }
  0x1b   : > { %p915_p7 = pnand %p913_p5, %p910_p3 }
  0x1d   : > { %918 = shalt.err (!%p915_p7)
}
  0x1e   : > { %s919_s10 = scalar_lea.vmem %s1171_s26, 3072  ;;  %p927_p1 = scmp.lt.s32.totalorder %s1171_s26, %s1171_s26 }
  0x1f   : > { %p920_p9 = scmp.ne.s32.totalorder %s1171_s26, %s919_s10  ;;  %p928_p12 = scmp.lt.s32.totalorder %s919_s10, %s919_s10 }
  0x21   : > { %p922_p10 = pnand %p920_p9, %p908_p13  ;;  %p929_p0 = por %p928_p12, %p927_p1 }
  0x23   : > { %p923_p6 = pneg %p922_p10 }
  0x25   : > { %p930_p4 = pnand %p929_p0, %p923_p6 }
  0x27   : > { %933 = shalt.err (!%p930_p4)
}
  0x28   : > { %s1082_s11 = smov 192   ;;  %s1083_s18 = smov 12  }
  0x29   : > { %797 = dma.hbm_to_vmem [thread:$0]  (!%p1178_p11), %s1375_s1, 3072, %s1171_s26, [#allocation7], %s1082_s11, %s1082_s11, %s1083_s18  }
  0x2a   : > { %s934_s4 = scalar_lea.hbm %s1376_s2, 48 }
  0x2b   : > { %p935_p1 = scmp.ne.s32.totalorder %s1376_s2, %s934_s4  ;;  %p941_p10 = scmp.lt.u32.totalorder %s934_s4, %s1376_s2 }
  0x2d   : > { %p937_p4 = pnand %p935_p1, %p908_p13 }
  0x2f   : > { %p938_p6 = pneg %p937_p4 }
  0x31   : > { %p943_p3 = pnand %p941_p10, %p938_p6 }
  0x33   : > { %946 = shalt.err (!%p943_p3)
}
  0x34   : > { %s947_s26 = scalar_lea.vmem %s1182_s29, 48  ;;  %s954_s9 = scalar_lea.vmem %s1182_s29, 64 }
  0x35   : > { %p948_p5 = scmp.ne.s32.totalorder %s1182_s29, %s947_s26  ;;  %p955_p12 = scmp.lt.s32.totalorder %s1182_s29, %s1182_s29 }
  0x36   : > { %p956_p0 = scmp.lt.s32.totalorder %s954_s9, %s947_s26 }
  0x37   : > { %p950_p7 = pnand %p948_p5, %p908_p13 }
  0x38   : > { %p957_p1 = por %p956_p0, %p955_p12 }
  0x39   : > { %p951_p9 = pneg %p950_p7 }
  0x3b   : > { %p958_p4 = pnand %p957_p1, %p951_p9 }
  0x3d   : > { %961 = shalt.err (!%p958_p4)
}
  0x3e   : > { %800 = dma.hbm_to_vmem [thread:$0]  (!%p1178_p11), %s1376_s2, 48, %s1182_s29, [#allocation7]  }
  0x3f   : > { %s39_s18 = sadd.s32 1, %s1074_s16  ;;  %s48_s19 = sadd.s32 1, %s1066_s14 }
  0x40   : > { %p41_p13 = scmp.ge.s32.totalorder %s39_s18, 2  ;;  %p55_p6 = scmp.ne.s32.totalorder %s1066_s14, %s1062_s13 }
  0x41   : > { %p56_p10 = scmp.eq.s32.totalorder %s1078_s17, 0  ;;  %p811_p3 = scmp.lt.s32.totalorder %s1078_s17, 2 }
  0x42   : > { %s1401_s18 = smov (%p41_p13, %s39_s18), 0  ;;  %p1247_p7 = por %p1151_p2, %p55_p6 }
  0x43   : > { %p57_p5 = por %p56_p10, %p55_p6  ;;  %s43_s25 = ssub.s32 %s1074_s16, %s1401_s18 }
  0x44   : > { %s1388_s27 = scalar_select %p1247_p7, 1, 0 }
  0x45   : > { %s200_s28 = sand.u32 1, %s1066_s14   ;;  %p46_p9 = scmp.eq.s32.totalorder %s43_s25, 0 }
  0x46   : > { %s716_s29 = sshll.u32 %s200_s28, 4  ;;  %s750_s30 = sshll.u32 %s1074_s16, 8 }
  0x47   : > { %s1256_s4 = scalar_select %p46_p9, %s1066_s14, %s48_s19  }
  0x48   : > { %s1261_s7 = scalar_lea.hbm %s1374_s0, %s750_s30  ;;  %s204_s21 = scalar_lea.vmem [#allocation3], %s716_s29 }
  0x49   : > { %s212_s8 = sshll.u32 %s204_s21, 4  ;;  %p1265_p2 = pnand %p811_p3, %p57_p5  ;;  %s1269_s8 = int_to_ptr.vmem [resolvable:$true] %s212_s8 }
  0x4a   : > { %s1271_s9 = scalar_lea.sflag [#allocation4], %s200_s28  ;;  %s962_s10 = scalar_lea.hbm %s1261_s7, 256 }
  0x4b   : > { %p963_p11 = scmp.ne.s32.totalorder %s1261_s7, %s962_s10  ;;  %p964_p12 = pneg %p1265_p2 }
  0x4c   : > { %s967_s25 = scalar_lea.hbm %s1374_s0, 512  ;;  %p968_p4 = scmp.lt.u32.totalorder %s1261_s7, %s1374_s0 }
  0x4d   : > { %p965_p0 = pnand %p964_p12, %p963_p11  ;;  %p969_p13 = scmp.lt.u32.totalorder %s967_s25, %s962_s10 }
  0x4e   : > { %p971_p10 = scmp.lt.u32.totalorder %s962_s10, %s1261_s7 }
  0x4f   : > { %p966_p1 = pneg %p965_p0  ;;  %p970_p6 = por %p969_p13, %p968_p4 }
  0x51   : > { %p972_p3 = por %p971_p10, %p970_p6 }
  0x53   : > { %p973_p5 = pnand %p972_p3, %p966_p1 }
  0x55   : > { %976 = shalt.err (!%p973_p5)
}
  0x56   : > { %s977_s28 = scalar_lea.vmem %s1269_s8, 256  ;;  %s1084_s5 = smov [#allocation3]  }
  0x57   : > { %p978_p9 = scmp.ne.s32.totalorder %s1269_s8, %s977_s28  ;;  %s982_s6 = sshll.u32 %s1084_s5, 4  ;;  %s983_s6 = int_to_ptr.vmem [resolvable:$false] %s982_s6 }
  0x58   : > { %s984_s21 = scalar_lea.vmem %s983_s6, 512  ;;  %p985_p7 = scmp.lt.s32.totalorder %s1269_s8, %s983_s6 }
  0x59   : > { %p980_p11 = pnand %p978_p9, %p964_p12  ;;  %p986_p4 = scmp.lt.s32.totalorder %s984_s21, %s977_s28 }
  0x5b   : > { %p981_p0 = pneg %p980_p11  ;;  %p987_p13 = por %p986_p4, %p985_p7 }
  0x5d   : > { %p988_p6 = pnand %p987_p13, %p981_p0 }
  0x5f   : > { %991 = shalt.err (!%p988_p6)
}
  0x60   : > { %s1085_s10 = smov 128   ;;  %s1086_s11 = smov 8  }
  0x61   : > { %804 = dma.hbm_to_vmem [thread:$0]  (!%p1265_p2), %s1261_s7, 256, %s1269_s8, %s1271_s9, %s1085_s10, %s1085_s10, %s1086_s11  }
  0x62   : > { %224 = sbr.rel (%p1167_p8) target bundleno = 375 (0x177), region = 32  ;;  %s1302_s19 = sand.u32 (!%p1167_p8), 1, %s1062_s13  }
  0x63   : > { %s720_s25 = sshll.u32 (!%p1167_p8), %s1302_s19, 4  ;;  %s227_s29 = scalar_lea.sflag (!%p1167_p8), [#allocation4], %s1302_s19 }
  0x64   : > { %s1306_s30 = scalar_lea.vmem (!%p1167_p8), [#allocation3], %s720_s25  ;;  %p1390_p7 = scmp.ne.s32.totalorder (!%p1167_p8), %s1384_s22, 0 }
  0x69   : > { %1045 = dma.done.wait (%p1390_p7), %s227_s29, 256  }
  0x6a   : > { %1047 = vsyncadd (%p1390_p7), %s227_s29, 4294967040  ;;  %p1391_p2 = scmp.ne.s32.totalorder %s1382_s20, 0 }
  0x6c   : > { %1049 = dma.done.wait (%p1391_p2), [#allocation7], 3120  }
  0x6d   : > { %1051 = vsyncadd (%p1391_p2), [#allocation7], 4294964176  ;;  %v1087_v0 = vmov 0.0   ;;  %vm1088_vm0 = vmmov 0   ;;  %v1089_v1 = vmov 0   ;;  %v282_v25 = vld [vmem:[%s1306_s30] sm:$0xff]  ;;  %v552_v29 = vlaneseq }
  0x6e   : > { %760 = vmatprep.subr.bf16.mxu1 %v1087_v0  ;;  %776 = vmatprep.mubr.msk.bf16.mxu1 %vm1088_vm0, %v1087_v0  ;;  %v874_v2 = vld [vmem:[#allocation6 + $0x4] ss:$12 sps:$4 sm:$0xff]   ;;  %v876_v3 = vld [vmem:[#allocation6 + $0x8] ss:$12 sps:$4 sm:$0xff]   ;;  %v877_v4 = vld [vmem:[#allocation6] ss:$12 sps:$4 sm:$0xff]  }
  0x6f   : > { %477 = vmatprep.mubr.bf16.mxu0 %v1089_v1  ;;  %445 = vmatprep.subr.bf16.mxu0 %v874_v2  ;;  %v878_v5 = vld [vmem:[#allocation6 + $0x1c] ss:$12 sps:$4 sm:$0xff]   ;;  %v880_v6 = vld [vmem:[#allocation6 + $0x20] ss:$12 sps:$4 sm:$0xff]   ;;  %v881_v7 = vld [vmem:[#allocation6 + $0x18] ss:$12 sps:$4 sm:$0xff]  }
  0x70   : > { %761 = vmatpush3.bf16.msra.mxu1 %v876_v3  ;;  %446 = vmatpush1.bf16.msra.mxu0 %v877_v4  ;;  %v882_v8 = vld [vmem:[#allocation6 + $0x34] ss:$12 sps:$4 sm:$0xff]   ;;  %v884_v9 = vld [vmem:[#allocation6 + $0x38] ss:$12 sps:$4 sm:$0xff]   ;;  %v885_v10 = vld [vmem:[#allocation6 + $0x30] ss:$12 sps:$4 sm:$0xff]  }
  0x71   : > { %762 = vmatprep.subr.bf16.mxu1 %v1087_v0  ;;  %447 = vmatprep.subr.bf16.mxu0 %v878_v5  ;;  %v886_v11 = vld [vmem:[#allocation6 + $0x4c] ss:$12 sps:$4 sm:$0xff]   ;;  %v888_v12 = vld [vmem:[#allocation6 + $0x50] ss:$12 sps:$4 sm:$0xff]   ;;  %v889_v13 = vld [vmem:[#allocation6 + $0x48] ss:$12 sps:$4 sm:$0xff]  }
  0x72   : > { %v890_v14 = vld [vmem:[#allocation6 + $0x64] ss:$12 sps:$4 sm:$0xff]   ;;  %v892_v15 = vld [vmem:[#allocation6 + $0x68] ss:$12 sps:$4 sm:$0xff]   ;;  %v893_v16 = vld [vmem:[#allocation6 + $0x60] ss:$12 sps:$4 sm:$0xff]  }
  0x73   : > { %v894_v17 = vld [vmem:[#allocation6 + $0x7c] ss:$12 sps:$4 sm:$0xff]   ;;  %v896_v18 = vld [vmem:[#allocation6 + $0x80] ss:$12 sps:$4 sm:$0xff]   ;;  %v897_v19 = vld [vmem:[#allocation6 + $0x78] ss:$12 sps:$4 sm:$0xff]  }
  0x74   : > { %763 = vmatpush3.bf16.msra.mxu1 %v880_v6  ;;  %448 = vmatpush1.bf16.msra.mxu0 %v881_v7  ;;  %v898_v20 = vld [vmem:[#allocation6 + $0x94] ss:$12 sps:$4 sm:$0xff]   ;;  %v900_v21 = vld [vmem:[#allocation6 + $0x98] ss:$12 sps:$4 sm:$0xff]   ;;  %v901_v22 = vld [vmem:[#allocation6 + $0x90] ss:$12 sps:$4 sm:$0xff]  }
  0x75   : > { %764 = vmatprep.subr.bf16.mxu1 %v1087_v0  ;;  %449 = vmatprep.subr.bf16.mxu0 %v882_v8  ;;  %v902_v23 = vld [vmem:[#allocation6 + $0xac] ss:$12 sps:$4 sm:$0xff]   ;;  %v904_v24 = vld [vmem:[#allocation6 + $0xb0] ss:$12 sps:$4 sm:$0xff]   ;;  %v905_v27 = vld [vmem:[#allocation6 + $0xa8] ss:$12 sps:$4 sm:$0xff]  }
  0x76   : > { %v283_v26 = vld [vmem:[%s1306_s30 + $0x8] sm:$0xff]  ;;  %v553_v30 = vshrl.u32 %v552_v29, 7  ;;  %v550_v32 = vld [vmem:[#allocation8] sm:$0x7]  ;;  %s780_s20 = smul.u32 48, %s1302_s19  ;;  %s580_s9 = scalar_lea.sflag [#allocation5], %s1302_s19 }
  0x77   : > { %v284_v28 = vpack.c.bf16 %v283_v26, %v282_v25  ;;  %s781_s7 = smul.u32 768, %s1070_s15  ;;  %p1392_p12 = scmp.ne.s32.totalorder %s1388_s27, 0 }
  0x78   : > { %765 = vmatpush3.bf16.msra.mxu1 %v884_v9  ;;  %450 = vmatpush1.bf16.msra.mxu0 %v885_v10  ;;  %v562_v31 = vsub.s32 2, %v553_v30  ;;  %v554_v33 = vsub.s32 0, %v553_v30  ;;  %v558_v34 = vsub.s32 1, %v553_v30  ;;  %s260_s22 = scalar_lea.vmem [#allocation9], %s780_s20  ;;  %s1090_s5 = smov [#allocation9]  }
  0x79   : > { %766 = vmatprep.subr.bf16.mxu1 %v1087_v0  ;;  %451 = vmatprep.subr.bf16.mxu0 %v886_v11  ;;  %s595_s24 = sshll.u32 %s260_s22, 4  ;;  %s1325_s26 = scalar_lea.hbm %s1377_s3, %s781_s7  ;;  %s1320_s24 = int_to_ptr.vmem [resolvable:$true] %s595_s24 }
  0x7a   : > { %v563_v35 = vrot.slane %v550_v32, %v562_v31  ;;  %v555_v36 = vrot.slane %v550_v32, %v554_v33  ;;  %v559_v37 = vrot.slane %v550_v32, %v558_v34  ;;  %s992_s28 = scalar_lea.vmem %s1320_s24, 768  ;;  %s996_s6 = sshll.u32 %s1090_s5, 4  ;;  %s997_s6 = int_to_ptr.vmem [resolvable:$false] %s996_s6 }
  0x7b   : > { %p993_p8 = scmp.ne.s32.totalorder %s1320_s24, %s992_s28  ;;  %s998_s21 = scalar_lea.vmem %s997_s6, 1536 }
  0x7c   : > { %767 = vmatpush3.bf16.msra.mxu1 %v888_v12  ;;  %452 = vmatpush1.bf16.msra.mxu0 %v889_v13  ;;  %p999_p3 = scmp.lt.s32.totalorder %s1320_s24, %s997_s6  ;;  %p1000_p5 = scmp.lt.s32.totalorder %s998_s21, %s992_s28 }
  0x7d   : > { %768 = vmatprep.subr.bf16.mxu1 %v1087_v0  ;;  %453 = vmatprep.subr.bf16.mxu0 %v890_v14  ;;  %p994_p1 = pnand %p993_p8, %p1392_p12 }
  0x7e   : > { %p1001_p9 = por %p1000_p5, %p999_p3 }
  0x7f   : > { %p995_p10 = pneg %p994_p1 }
  0x80   : > { %769 = vmatpush3.bf16.msra.mxu1 %v892_v15  ;;  %454 = vmatpush1.bf16.msra.mxu0 %v893_v16 }
  0x81   : > { %770 = vmatprep.subr.bf16.mxu1 %v1087_v0  ;;  %455 = vmatprep.subr.bf16.mxu0 %v894_v17  ;;  %p1002_p11 = pnand %p1001_p9, %p995_p10 }
  0x84   : > { %771 = vmatpush3.bf16.msra.mxu1 %v896_v18  ;;  %456 = vmatpush1.bf16.msra.mxu0 %v897_v19 }
  0x85   : > { %772 = vmatprep.subr.bf16.mxu1 %v1087_v0  ;;  %457 = vmatprep.subr.bf16.mxu0 %v898_v20 }
  0x88   : > { %773 = vmatpush3.bf16.msra.mxu1 %v900_v21  ;;  %458 = vmatpush1.bf16.msra.mxu0 %v901_v22 }
  0x89   : > { %774 = vmatprep.subr.bf16.mxu1 %v1087_v0  ;;  %459 = vmatprep.subr.bf16.mxu0 %v902_v23 }
  0x8c   : > { %775 = vmatpush3.bf16.msra.mxu1 %v904_v24  ;;  %460 = vmatpush1.bf16.msra.mxu0 %v905_v27 }
  0x8f   : > { %777 = vmatmul.mubr.bf16.vlgmr.msra.gmra.mrb[0].mxu1 %v284_v28  ;;  %478 = vmatmul.mubr.bf16.vlgmr.msra.gmra.mrb[0].mxu0 %v284_v28 }
 0x162   : > { %v522_v38 = vpop.f32.mrb[0].mxu1  ;;  %v479_v40 = vpop.f32.mrb[0].mxu0 }
 0x163   : > { %v569_v39 = vadd.f32 %v563_v35, %v522_v38  ;;  %v778_v41 = vpop.f32.mrb[1].mxu1  ;;  %v567_v42 = vadd.f32 %v555_v36, %v479_v40  ;;  %v481_v43 = vpop.f32.mrb[1].mxu0 }
 0x164   : > { %v525_v44 = vpop.f32.mrb[2].mxu1  ;;  %v568_v45 = vadd.f32 %v559_v37, %v481_v43  ;;  %v483_v47 = vpop.f32.mrb[2].mxu0 }
 0x165   : > { %575 = vst [vmem:[%s260_s22 + $0x10] sm:$0xff] %v569_v39  ;;  %v572_v46 = vadd.f32 %v563_v35, %v525_v44  ;;  %v779_v48 = vpop.f32.mrb[3].mxu1  ;;  %573 = vst [vmem:[%s260_s22] sm:$0xff] %v567_v42  ;;  %v570_v49 = vadd.f32 %v555_v36, %v483_v47  ;;  %v485_v50 = vpop.f32.mrb[3].mxu0 }
 0x166   : > { %574 = vst [vmem:[%s260_s22 + $0x8] sm:$0xff] %v568_v45  ;;  %v571_v51 = vadd.f32 %v559_v37, %v485_v50 }
 0x167   : > { %578 = vst [vmem:[%s260_s22 + $0x28] sm:$0xff] %v572_v46  ;;  %576 = vst [vmem:[%s260_s22 + $0x18] sm:$0xff] %v570_v49 }
 0x168   : > { %577 = vst [vmem:[%s260_s22 + $0x20] sm:$0xff] %v571_v51 }
 0x169   : > { %1005 = shalt.err (!%p1002_p11)
}
 0x16a   : > { %s1006_s10 = scalar_lea.hbm %s1325_s26, 768  ;;  %s1010_s29 = scalar_lea.hbm %s1377_s3, 1536 }
 0x16b   : > { %p1007_p0 = scmp.ne.s32.totalorder %s1325_s26, %s1006_s10  ;;  %p1011_p6 = scmp.lt.u32.totalorder %s1325_s26, %s1377_s3 }
 0x16c   : > { %p1012_p7 = scmp.lt.u32.totalorder %s1010_s29, %s1006_s10  ;;  %p1014_p8 = scmp.lt.u32.totalorder %s1006_s10, %s1325_s26 }
 0x16d   : > { %p1008_p4 = pnand %p1007_p0, %p1392_p12 }
 0x16e   : > { %p1013_p2 = por %p1012_p7, %p1011_p6 }
 0x16f   : > { %p1009_p13 = pneg %p1008_p4 }
 0x170   : > { %p1015_p1 = por %p1014_p8, %p1013_p2 }
 0x172   : > { %p1016_p10 = pnand %p1015_p1, %p1009_p13 }
 0x174   : > { %1019 = shalt.err (!%p1016_p10)
}
 0x175   : > { %s1091_s22 = smov 384   ;;  %s1092_s7 = smov 24  }
 0x176   : > { %792 = dma.vmem_to_hbm [thread:$0]  (%p1392_p12), %s1320_s24, 768, %s1325_s26, %s580_s9, %s1091_s22, %s1091_s22, %s1092_s7  }
 0x177 PF: > { %s610_s15 = sand.u32 1, %s1058_s12   ;;  %p1393_p3 = scmp.ne.s32.totalorder %s1385_s23, 0 }
 0x178   : > { %p1394_p5 = scmp.ge.s32.totalorder %s1078_s17, 2  ;;  %s611_s8 = scalar_lea.sflag [#allocation5], %s610_s15 }
 0x17a   : > { %p806_p9 = pnand %p1394_p5, %p1393_p3 }
 0x17c   : > { %1053 = dma.done.wait (!%p806_p9), %s611_s8, 768  }
 0x17d   : > { %1055 = vsyncadd (!%p806_p9), %s611_s8, 4294966528  ;;  %s20_s17 = sadd.s32 1, %s1078_s17   ;;  %s1395_s12 = smov %s1062_s13 }
 0x17e   : > { %p17_p11 = scmp.ge.s32.totalorder %s20_s17, 4   ;;  %s1396_s13 = smov %s1066_s14 }
 0x17f   : > { %s1397_s14 = smov %s1256_s4  ;;  %s1398_s15 = smov %s1074_s16 }
 0x180   : > { %s1399_s16 = smov %s1401_s18  ;;  %19 = sbr.rel (!%p17_p11) target bundleno = 7 (0x7), region = 95 }
 0x187   :  { %616 = vsyncpa [#allocation4], 1 }
 0x188   :  { %618 = vsyncpa [#allocation4 + $0x1], 1 }
 0x189   :  { %619 = vsyncpa [#allocation7], 1 }
 0x18a   :  { %620 = vsyncpa [#allocation5], 1 }
 0x18b   :  { %622 = vsyncpa [#allocation5 + $0x1], 1 }

// kernel: tfedcn_forward.9
= control target key start
LH: loop header
LB: loop body
LE: loop exit
PB: predicated region body
PF: predicated region fallthrough
CT: control target
= control target key end

     0   :  { %10 = vsyncpa [#allocation3], 0  ;;  %s1946_s0 = inlined_call_operand.hbm [shape: f32[2,16,128], index: 0, kind: input, shape index: {}]   ;;  %s1947_s1 = inlined_call_operand.hbm [shape: f32[8,128], index: 1, kind: input, shape index: {}]   ;;  %s1948_s2 = inlined_call_operand.hbm [shape: f32[2,8,128], index: 2, kind: output, shape index: {0}]   ;;  %s1949_s3 = inlined_call_operand.hbm [shape: f32[2,16,16], index: 3, kind: output, shape index: {1}]   ;;  %s1950_s4 = inlined_call_operand.hbm [shape: f32[2,16,128], index: 4, kind: output, shape index: {2}]  }
   0x1   :  { %12 = vsyncpa [#allocation3 + $0x1], 0 }
   0x2   :  { %13 = vsyncpa [#allocation6], 0 }
   0x3   :  { %14 = vsyncpa [#allocation4], 0 }
   0x4   :  { %16 = vsyncpa [#allocation4 + $0x1], 0 }
   0x5   :  { %17 = vsyncpa [#allocation9], 0 }
   0x6   :  { %19 = vsyncpa [#allocation9 + $0x1], 0  ;;  %s1614_s15 = smov 0   ;;  %s1616_s16 = smov 0  }
   0x7   :  { %s1618_s17 = smov 0   ;;  %s1620_s18 = smov 0  }
   0x8 LB: > { %s1635_s19 = sadd.s32 4294967295, %s1575_s18   ;;  %s1160_s20 = sadd.s32 4294967294, %s1575_s18   ;;  %s1575_s18 = sphi %s1620_s18, %s1975_s18   ;;  %s1571_s17 = sphi %s1618_s17, %s1974_s17   ;;  %s1567_s16 = sphi %s1616_s16, %s1973_s16   ;;  %s1563_s15 = sphi %s1614_s15, %s1972_s15  }
   0x9   : > { %s1639_s21 = sadd.s32 1, %s1575_s18   ;;  %s32_s22 = sadd.s32 1, %s1571_s17 }
   0xa   : > { %s29_s23 = ssub.s32 %s1575_s18, %s1639_s21  ;;  %p39_p0 = scmp.ne.s32.totalorder %s1571_s17, %s1567_s16 }
   0xb   : > { %p30_p1 = scmp.eq.s32.totalorder %s29_s23, 0  ;;  %p40_p2 = scmp.eq.s32.totalorder %s1575_s18, 0 }
   0xc   : > { %p45_p3 = scmp.ne.s32.totalorder %s1567_s16, %s1563_s15  ;;  %p1951_p4 = scmp.eq.s32.totalorder %s1635_s19, 0 }
   0xd   : > { %s1651_s24 = scalar_select %p30_p1, %s1571_s17, %s32_s22  }
   0xe   : > { %p1653_p5 = por %p40_p2, %p39_p0  ;;  %p1659_p6 = por %p1951_p4, %p45_p3 }
   0xf   : > { %p90_p7 = scmp.eq.s32.totalorder %s1635_s19, 1  ;;  %p96_p8 = scmp.eq.s32.totalorder %s1160_s20, 1 }
  0x10   : > { %s1957_s26 = scalar_select %p1659_p6, 1, 0 }
  0x11   : > { %p1161_p9 = scmp.ge.s32.totalorder %s1575_s18, 1  ;;  %p155_p10 = scmp.lt.s32.totalorder %s1575_s18, 3 }
  0x12   : > { %p1668_p11 = por %p90_p7, %p39_p0  ;;  %p1672_p12 = por %p96_p8, %p45_p3 }
  0x13   : > { %p1676_p13 = pnand %p1161_p9, %p155_p10  ;;  %s1577_s30 = smov [#allocation5]  }
  0x14   : > { %s1958_s27 = scalar_select %p1668_p11, 1, 0 }
  0x15   : > { %s1959_s28 = scalar_select %p1672_p12, 1, 0 }
  0x16   : > { %s1960_s29 = scalar_select %p1676_p13, 1, 0 }
  0x17   : > { %p1287_p2 = pneg %p1676_p13  ;;  %s168_s5 = sshll.u32 %s1577_s30, 4  ;;  %s169_s5 = int_to_ptr.vmem [resolvable:$true] %s168_s5 }
  0x18   : > { %p1306_p4 = scmp.lt.s32.totalorder %s1575_s18, 2  ;;  %p1961_p0 = scmp.eq.s32.totalorder %s1635_s19, 0 }
  0x19   : > { %s179_s7 = sand.u32 1, %s1571_s17   ;;  %s1387_s12 = scalar_lea.hbm %s1947_s1, 128 }
  0x1a   : > { %p1686_p7 = pnand %p1287_p2, %p1961_p0  ;;  %p1693_p3 = pnand %p1306_p4, %p1653_p5 }
  0x1b   : > { %s1164_s9 = sshll.u32 %s179_s7, 4  ;;  %p1388_p8 = scmp.ne.s32.totalorder %s1947_s1, %s1387_s12 }
  0x1c   : > { %s1963_s8 = scalar_select %p1693_p3, 1, 0 }
  0x1d   : > { %p1389_p9 = pneg %p1686_p7  ;;  %p1394_p4 = scmp.lt.u32.totalorder %s1387_s12, %s1947_s1 }
  0x1f   : > { %p1390_p10 = pnand %p1389_p9, %p1388_p8 }
  0x21   : > { %p1391_p2 = pneg %p1390_p10 }
  0x23   : > { %p1396_p5 = pnand %p1394_p4, %p1391_p2 }
  0x25   : > { %1399 = shalt.err (!%p1396_p5)
}
  0x26   : > { %s1400_s25 = scalar_lea.vmem %s169_s5, 128  ;;  %p1408_p11 = scmp.lt.s32.totalorder %s169_s5, %s169_s5 }
  0x27   : > { %p1401_p0 = scmp.ne.s32.totalorder %s169_s5, %s1400_s25  ;;  %p1409_p6 = scmp.lt.s32.totalorder %s1400_s25, %s1400_s25 }
  0x29   : > { %p1403_p1 = pnand %p1401_p0, %p1389_p9  ;;  %p1410_p13 = por %p1409_p6, %p1408_p11 }
  0x2b   : > { %p1404_p12 = pneg %p1403_p1 }
  0x2d   : > { %p1411_p3 = pnand %p1410_p13, %p1404_p12 }
  0x2f   : > { %1414 = shalt.err (!%p1411_p3)
}
  0x30   : > { %1290 = dma.hbm_to_vmem [thread:$0]  (!%p1686_p7), %s1947_s1, 128, %s169_s5, [#allocation6]  }
  0x31   : > { %s1191_s11 = sshll.u32 %s1575_s18, 8  ;;  %s183_s12 = scalar_lea.vmem [#allocation2], %s1164_s9 }
  0x32   : > { %s190_s13 = sshll.u32 %s183_s12, 4  ;;  %s1717_s23 = scalar_lea.hbm %s1946_s0, %s1191_s11  ;;  %s1719_s13 = int_to_ptr.vmem [resolvable:$true] %s190_s13 }
  0x33   : > { %s1721_s6 = scalar_lea.sflag [#allocation3], %s179_s7  ;;  %s1415_s25 = scalar_lea.hbm %s1717_s23, 256 }
  0x34   : > { %p1416_p6 = scmp.ne.s32.totalorder %s1717_s23, %s1415_s25  ;;  %p1964_p11 = scmp.ne.s32.totalorder %s1963_s8, 0 }
  0x35   : > { %s1420_s30 = scalar_lea.hbm %s1946_s0, 512  ;;  %p1421_p7 = scmp.lt.u32.totalorder %s1717_s23, %s1946_s0 }
  0x36   : > { %p1417_p12 = pneg %p1964_p11  ;;  %p1422_p3 = scmp.lt.u32.totalorder %s1420_s30, %s1415_s25 }
  0x37   : > { %p1424_p9 = scmp.lt.u32.totalorder %s1415_s25, %s1717_s23 }
  0x38   : > { %p1418_p13 = pnand %p1417_p12, %p1416_p6  ;;  %p1423_p8 = por %p1422_p3, %p1421_p7 }
  0x3a   : > { %p1419_p1 = pneg %p1418_p13  ;;  %p1425_p10 = por %p1424_p9, %p1423_p8 }
  0x3c   : > { %p1426_p2 = pnand %p1425_p10, %p1419_p1 }
  0x3e   : > { %1429 = shalt.err (!%p1426_p2)
}
  0x3f   : > { %s1430_s7 = scalar_lea.vmem %s1719_s13, 256  ;;  %s1578_s12 = smov [#allocation2]  }
  0x40   : > { %p1431_p4 = scmp.ne.s32.totalorder %s1719_s13, %s1430_s7  ;;  %s1435_s14 = sshll.u32 %s1578_s12, 4  ;;  %s1436_s14 = int_to_ptr.vmem [resolvable:$false] %s1435_s14 }
  0x41   : > { %s1437_s22 = scalar_lea.vmem %s1436_s14, 512  ;;  %p1438_p6 = scmp.lt.s32.totalorder %s1719_s13, %s1436_s14 }
  0x42   : > { %p1433_p5 = pnand %p1431_p4, %p1417_p12  ;;  %p1439_p13 = scmp.lt.s32.totalorder %s1437_s22, %s1430_s7 }
  0x44   : > { %p1434_p0 = pneg %p1433_p5  ;;  %p1440_p7 = por %p1439_p13, %p1438_p6 }
  0x46   : > { %p1441_p3 = pnand %p1440_p7, %p1434_p0 }
  0x48   : > { %1444 = shalt.err (!%p1441_p3)
}
  0x49   : > { %s1579_s25 = smov 128   ;;  %s1580_s5 = smov 8  }
  0x4a   : > { %1294 = dma.hbm_to_vmem [thread:$0]  (!%p1964_p11), %s1717_s23, 256, %s1719_s13, %s1721_s6, %s1579_s25, %s1579_s25, %s1580_s5  }
  0x4b   : > { %p1965_p12 = scmp.ne.s32.totalorder %s1960_s29, 0 }
  0x4c   : > { %s1752_s9 = sand.u32 (!%p1965_p12), 1, %s1567_s16   ;;  %p1966_p1 = scmp.ne.s32.totalorder (!%p1965_p12), %s1957_s26, 0 }
  0x4d   : > { %202 = sbr.rel (%p1965_p12) target bundleno = 2585 (0xa19), region = 28  ;;  %s1755_s30 = sshll.u32 (!%p1965_p12), %s1752_s9, 4 }
  0x4e   : > { %s205_s10 = scalar_lea.sflag (!%p1965_p12), [#allocation3], %s1752_s9  ;;  %s208_s11 = scalar_lea.vmem (!%p1965_p12), [#allocation2], %s1755_s30 }
  0x54   : > { %1546 = dma.done.wait (%p1966_p1), %s205_s10, 256  }
  0x55   : > { %1548 = vsyncadd (%p1966_p1), %s205_s10, 4294967040  ;;  %p1967_p11 = scmp.eq.s32.totalorder %s1635_s19, 0 }
  0x57   : > { %1550 = dma.done.wait (%p1967_p11), [#allocation6], 128   ;;  %p1968_p8 = pmov %p1967_p11 }
  0x58   : > { %v275_v0 = vld [vmem:[#allocation5] sm:$0xff]  ;;  %v1769_v2 = vld [vmem:[%s208_s11 + $0x8] sm:$0xff]  ;;  %v1581_v6 = vmov 0.0|0.0   ;;  %vm1582_vm0 = vmmov 0   ;;  %v1583_v7 = vmov 0.0   ;;  %vm360_vm7 = vcmask 130048  }
  0x59   : > { %1552 = vsyncadd (%p1968_p8), [#allocation6], 4294967168  ;;  %v1767_v1 = vld [vmem:[%s208_s11] sm:$0xff]  ;;  %v276_v3 = vmul.f32 %v275_v0, %v275_v0  ;;  %v250_v5 = vmul.f32 %v1769_v2, %v1769_v2  ;;  %1260 = vmatprep.subr.bf16.mxu0 %v1581_v6  ;;  %1263 = vmatprep.subr.bf16.mxu1 %v1581_v6  ;;  %s1170_s26 = sshll.u32 %s1752_s9, 3  ;;  %vm783_vm12 = vcmask 64512   ;;  %s1184_s8 = sshll.u32 %s1635_s19, 7 }
  0x5a   : > { %v249_v4 = vmul.f32 %v1767_v1, %v1767_v1  ;;  %1219 = vmatprep.mubr.msk.f32.mxu0 %vm1582_vm0, %v1583_v7  ;;  %1226 = vmatprep.mubr.msk.f32.mxu1 %vm1582_vm0, %v1583_v7  ;;  %v1264_v59 = vpack.c.bf16 %v1769_v2, %v1767_v1  ;;  %s1808_s29 = scalar_lea.vmem [#allocation7], %s1170_s26  ;;  %s1819_s7 = scalar_lea.hbm %s1948_s2, %s1184_s8 }
  0x5b   : > { %277 = vadd.xlane.f32.xlu1 %v276_v3  ;;  %s987_s13 = sshll.u32 %s1808_s29, 4  ;;  %s964_s12 = scalar_lea.sflag [#allocation4], %s1752_s9  ;;  %s988_s13 = int_to_ptr.vmem [resolvable:$true] %s987_s13 }
  0x5c   : > { %251 = vadd.xlane.f32.xlu0 %v249_v4  ;;  %1265 = vmatpush3.bf16.msra.mxu1 %v1264_v59  ;;  %s1445_s14 = scalar_lea.vmem %s988_s13, 128  ;;  %p1969_p10 = scmp.ne.s32.totalorder %s1958_s27, 0 }
  0x5d   : > { %1266 = vmatprep.subr.bf16.mxu1 %v1581_v6  ;;  %p1446_p9 = scmp.ne.s32.totalorder %s988_s13, %s1445_s14  ;;  %s1584_s22 = smov [#allocation7]  }
  0x5e   : > { %s1449_s25 = sshll.u32 %s1584_s22, 4  ;;  %s1450_s25 = int_to_ptr.vmem [resolvable:$false] %s1449_s25 }
  0x5f   : > { %p1447_p2 = pnand %p1446_p9, %p1969_p10  ;;  %s1451_s5 = scalar_lea.vmem %s1450_s25, 256 }
  0x60   : > { %253 = vadd.xlane.f32.xlu0 %v250_v5  ;;  %p1452_p5 = scmp.lt.s32.totalorder %s988_s13, %s1450_s25  ;;  %p1453_p0 = scmp.lt.s32.totalorder %s1451_s5, %s1445_s14 }
  0x61   : > { %p1448_p4 = pneg %p1447_p2 }
  0x62   : > { %p1454_p6 = por %p1453_p0, %p1452_p5 }
  0x64   : > { %p1455_p13 = pnand %p1454_p6, %p1448_p4 }
  0xe8   : > { %v278_v8 = vpop.xlane.xlu1 %277 }
  0xe9   : > { %v252_v9 = vpop.xlane.xlu0 %251  ;;  %1349 = vrsqrt.f32 %v278_v8  ;;  %vm281_vm3 = vcmp.eq.f32.partialorder %v278_v8, inf  ;;  %v284_v22 = vand.u32 2147483648, %v278_v8  ;;  %vm283_vm6 = vcmp.eq.f32.partialorder %v278_v8, 0.0 }
  0xea   : > { %1351 = vrsqrt.f32 %v252_v9  ;;  %vm257_vm1 = vcmp.eq.f32.partialorder %v252_v9, inf  ;;  %v260_v14 = vand.u32 2147483648, %v252_v9  ;;  %vm259_vm2 = vcmp.eq.f32.partialorder %v252_v9, 0.0 }
  0xed   : > { %v254_v10 = vpop.xlane.xlu0 %253 }
  0xee   : > { %1353 = vrsqrt.f32 %v254_v10  ;;  %vm264_vm4 = vcmp.eq.f32.partialorder %v254_v10, inf  ;;  %v267_v21 = vand.u32 2147483648, %v254_v10  ;;  %vm266_vm5 = vcmp.eq.f32.partialorder %v254_v10, 0.0 }
  0xf3   : > { %v1350_v11 = vpop.eup %1349 }
  0xf4   : > { %v1352_v12 = vpop.eup %1351  ;;  %v280_v16 = vmul.f32 %v1350_v11, %v278_v8 }
  0xf5   : > { %v256_v13 = vmul.f32 %v1352_v12, %v252_v9 }
  0xf6   : > { %v282_v24 = vsel %vm281_vm3, %v278_v8, %v280_v16 }
  0xf7   : > { %v258_v17 = vsel %vm257_vm1, %v252_v9, %v256_v13  ;;  %v285_v27 = vsel %vm283_vm6, %v284_v22, %v282_v24 }
  0xf8   : > { %v1354_v15 = vpop.eup %1353  ;;  %v261_v18 = vsel %vm259_vm2, %v260_v14, %v258_v17  ;;  %v286_v28 = vadd.f32 1e-09, %v285_v27 }
  0xf9   : > { %v263_v19 = vmul.f32 %v1354_v15, %v254_v10  ;;  %v269_v20 = vadd.f32 1e-09, %v261_v18 }
  0xfb   : > { %v265_v23 = vsel %vm264_vm4, %v254_v10, %v263_v19  ;;  %1355 = vrcp.f32 %v269_v20 }
  0xfc   : > { %v268_v25 = vsel %vm266_vm5, %v267_v21, %v265_v23 }
  0xfd   : > { %v270_v26 = vadd.f32 1e-09, %v268_v25 }
  0xff   : > { %1357 = vrcp.f32 %v270_v26 }
 0x100   : > { %1359 = vrcp.f32 %v286_v28 }
 0x105   : > { %v1356_v29 = vpop.eup %1355 }
 0x106   : > { %v272_v31 = vmul.f32 %v1356_v29, %v1767_v1 }
 0x109   : > { %v1358_v30 = vpop.eup %1357 }
 0x10a   : > { %v274_v32 = vmul.f32 %v1358_v30, %v1769_v2  ;;  %v1360_v34 = vpop.eup %1359 }
 0x10b   : > { %v288_v35 = vmul.f32 %v1360_v34, %v275_v0 }
 0x10c   : > { %v1783_v33 = vpack.c.bf16 %v274_v32, %v272_v31 }
 0x10e   : > { %1262 = vmatpush3.bf16.xpose.msra.mxu0 %v1783_v33 }
 0x10f   : > { %1269 = vmatprep.subr.bf16.mxu0 %v1581_v6 }
 0x115   : > { %1220 = vmatmul.mubr.f32.vlgmr.msra.gmra.mrb[0].mxu0 %v288_v35 }
 0x116   : > { %1240 = vmatprep.mubr.msk.f32.mxu0 %vm1582_vm0, %v1583_v7  ;;  %1271 = vmatpush3.bf16.msra.mxu0 %v1264_v59 }
 0x117   : > { %1272 = vmatprep.subr.bf16.mxu0 %v1581_v6 }
 0x1e8   : > { %v355_v36 = vpop.f32.mrb[0].mxu0 }
 0x1e9   : > { %v359_v37 = vmul.f32 5.0, %v355_v36  ;;  %v1221_v38 = vpop.f32.mrb[1].mxu0 }
 0x1eb   : > { %v361_v39 = vsel %vm360_vm7, %v359_v37, -inf }
 0x1ec   : > { %v362_v40 = vrot.slane %v361_v39, 4 }
 0x1ee   : > { %v363_v41 = vmax.f32 %v361_v39, %v362_v40 }
 0x1f0   : > { %v364_v42 = vrot.slane %v363_v41, 2 }
 0x1f2   : > { %v365_v43 = vmax.f32 %v363_v41, %v364_v42 }
 0x1f4   : > { %v366_v44 = vrot.slane %v365_v43, 1 }
 0x1f6   : > { %v367_v45 = vmax.f32 %v365_v43, %v366_v44 }
 0x1f8   : > { %v368_v46 = vsub.f32 %v359_v37, %v367_v45 }
 0x1fa   : > { %v369_v47 = vmul.f32 1.442695, %v368_v46 }
 0x1fc   : > { %1361 = vpow2.f32 %v369_v47 }
 0x206   : > { %v1362_v48 = vpop.eup %1361 }
 0x207   : > { %v371_v49 = vsel %vm360_vm7, %v1362_v48, 0.0 }
 0x208   : > { %v372_v50 = vrot.slane %v371_v49, 4 }
 0x20a   : > { %v373_v51 = vadd.f32 %v372_v50, %v371_v49 }
 0x20c   : > { %v374_v52 = vrot.slane %v373_v51, 2 }
 0x20e   : > { %v375_v53 = vadd.f32 %v374_v52, %v373_v51 }
 0x210   : > { %v376_v54 = vrot.slane %v375_v53, 1 }
 0x212   : > { %v377_v55 = vadd.f32 %v376_v54, %v375_v53 }
 0x214   : > { %1363 = vrcp.f32 %v377_v55 }
 0x21e   : > { %v1364_v56 = vpop.eup %1363 }
 0x21f   : > { %v379_v57 = vmul.f32 %v1364_v56, %v1362_v48 }
 0x221   : > { %v380_v58 = vsel %vm360_vm7, %v379_v57, 0.0 }
 0x222   : > { %381 = vadd.xlane.f32.xlu1 %v380_v58 }
 0x2af   : > { %v382_v60 = vpop.xlane.xlu1 %381 }
 0x2b0   : > { %v383_v61 = vadd.f32 1e-09, %v382_v60 }
 0x2b2   : > { %1365 = vrcp.f32 %v383_v61 }
 0x2bc   : > { %v1366_v62 = vpop.eup %1365 }
 0x2bd   : > { %v385_v63 = vmul.f32 %v1366_v62, %v379_v57 }
 0x2bf   : > { %1227 = vmatmul.mubr.msk.f32.vlgmr.msra.gmra.mrb[0].mxu1 %vm360_vm7, %v385_v63 }
 0x2c0   : > { %1268 = vmatpush3.bf16.xpose.msra.mxu1 %v1783_v33  ;;  %1233 = vmatprep.mubr.msk.f32.mxu1 %vm1582_vm0, %v1583_v7 }
 0x392   : > { %v455_v0 = vpop.f32.mrb[0].mxu1 }
 0x393   : > { %v1228_v3 = vpop.f32.mrb[1].mxu1  ;;  %v459_v4 = vmul.f32 %v455_v0, %v455_v0 }
 0x395   : > { %460 = vadd.xlane.f32.xlu0 %v459_v4 }
 0x422   : > { %v461_v5 = vpop.xlane.xlu0 %460 }
 0x423   : > { %1367 = vrsqrt.f32 %v461_v5  ;;  %vm464_vm8 = vcmp.eq.f32.partialorder %v461_v5, inf  ;;  %v467_v9 = vand.u32 2147483648, %v461_v5  ;;  %vm466_vm9 = vcmp.eq.f32.partialorder %v461_v5, 0.0 }
 0x42d   : > { %v1368_v8 = vpop.eup %1367 }
 0x42e   : > { %v463_v6 = vmul.f32 %v1368_v8, %v461_v5 }
 0x430   : > { %v465_v10 = vsel %vm464_vm8, %v461_v5, %v463_v6 }
 0x431   : > { %v468_v11 = vsel %vm466_vm9, %v467_v9, %v465_v10 }
 0x432   : > { %v469_v12 = vadd.f32 1e-09, %v468_v11 }
 0x434   : > { %1369 = vrcp.f32 %v469_v12 }
 0x43e   : > { %v1370_v13 = vpop.eup %1369 }
 0x43f   : > { %v471_v14 = vmul.f32 %v1370_v13, %v455_v0 }
 0x441   : > { %1234 = vmatmul.mubr.f32.vlgmr.msra.gmra.mrb[2].mxu1 %v471_v14 }
 0x514   : > { %v538_v15 = vpop.f32.mrb[2].mxu1 }
 0x515   : > { %v542_v16 = vmul.f32 5.0, %v538_v15  ;;  %v1235_v17 = vpop.f32.mrb[3].mxu1 }
 0x517   : > { %v543_v18 = vsel %vm360_vm7, %v542_v16, -inf }
 0x518   : > { %v544_v19 = vrot.slane %v543_v18, 4 }
 0x51a   : > { %v545_v20 = vmax.f32 %v543_v18, %v544_v19 }
 0x51c   : > { %v546_v21 = vrot.slane %v545_v20, 2 }
 0x51e   : > { %v547_v22 = vmax.f32 %v545_v20, %v546_v21 }
 0x520   : > { %v548_v23 = vrot.slane %v547_v22, 1 }
 0x522   : > { %v549_v24 = vmax.f32 %v547_v22, %v548_v23 }
 0x524   : > { %v550_v25 = vsub.f32 %v542_v16, %v549_v24 }
 0x526   : > { %v551_v26 = vmul.f32 1.442695, %v550_v25 }
 0x528   : > { %1371 = vpow2.f32 %v551_v26 }
 0x532   : > { %v1372_v27 = vpop.eup %1371 }
 0x533   : > { %v553_v28 = vsel %vm360_vm7, %v1372_v27, 0.0 }
 0x534   : > { %v554_v29 = vrot.slane %v553_v28, 4 }
 0x536   : > { %v555_v30 = vadd.f32 %v554_v29, %v553_v28 }
 0x538   : > { %v556_v31 = vrot.slane %v555_v30, 2 }
 0x53a   : > { %v557_v32 = vadd.f32 %v556_v31, %v555_v30 }
 0x53c   : > { %v558_v34 = vrot.slane %v557_v32, 1 }
 0x53e   : > { %v559_v35 = vadd.f32 %v558_v34, %v557_v32 }
 0x540   : > { %1373 = vrcp.f32 %v559_v35 }
 0x54a   : > { %v1374_v36 = vpop.eup %1373 }
 0x54b   : > { %v561_v37 = vmul.f32 %v1374_v36, %v1372_v27 }
 0x54d   : > { %v562_v38 = vsel %vm360_vm7, %v561_v37, 0.0 }
 0x54e   : > { %563 = vadd.xlane.f32.xlu1 %v562_v38 }
 0x5db   : > { %v564_v39 = vpop.xlane.xlu1 %563 }
 0x5dc   : > { %v565_v40 = vadd.f32 1e-09, %v564_v39 }
 0x5de   : > { %1375 = vrcp.f32 %v565_v40 }
 0x5e8   : > { %v1376_v41 = vpop.eup %1375 }
 0x5e9   : > { %v567_v42 = vmul.f32 %v1376_v41, %v561_v37 }
 0x5eb   : > { %1241 = vmatmul.mubr.msk.f32.vlgmr.msra.gmra.mrb[2].mxu0 %vm360_vm7, %v567_v42 }
 0x5ec   : > { %1274 = vmatpush3.bf16.xpose.msra.mxu0 %v1783_v33  ;;  %1247 = vmatprep.mubr.msk.f32.mxu0 %vm1582_vm0, %v1583_v7 }
 0x6be   : > { %v637_v43 = vpop.f32.mrb[2].mxu0 }
 0x6bf   : > { %v1242_v44 = vpop.f32.mrb[3].mxu0  ;;  %v642_v45 = vmul.f32 %v637_v43, %v637_v43  ;;  %641 = vst [vmem:[%s1808_s29] sm:$0xff] %v637_v43 }
 0x6c1   : > { %643 = vadd.xlane.f32.xlu0 %v642_v45 }
 0x74e   : > { %v644_v46 = vpop.xlane.xlu0 %643 }
 0x74f   : > { %1377 = vrsqrt.f32 %v644_v46  ;;  %vm647_vm10 = vcmp.eq.f32.partialorder %v644_v46, inf  ;;  %v650_v49 = vand.u32 2147483648, %v644_v46  ;;  %vm649_vm11 = vcmp.eq.f32.partialorder %v644_v46, 0.0 }
 0x759   : > { %v1378_v47 = vpop.eup %1377 }
 0x75a   : > { %v646_v48 = vmul.f32 %v1378_v47, %v644_v46 }
 0x75c   : > { %v648_v50 = vsel %vm647_vm10, %v644_v46, %v646_v48 }
 0x75d   : > { %v651_v33 = vsel %vm649_vm11, %v650_v49, %v648_v50 }
 0x75e   : > { %v652_v51 = vadd.f32 1e-09, %v651_v33 }
 0x760   : > { %1379 = vrcp.f32 %v652_v51 }
 0x76a   : > { %v1380_v52 = vpop.eup %1379 }
 0x76b   : > { %v654_v53 = vmul.f32 %v1380_v52, %v637_v43 }
 0x76d   : > { %1248 = vmatmul.mubr.f32.vlgmr.msra.gmra.mrb[4].mxu0 %v654_v53 }
 0x840   : > { %v721_v54 = vpop.f32.mrb[4].mxu0 }
 0x841   : > { %v725_v55 = vmul.f32 5.0, %v721_v54  ;;  %v1249_v56 = vpop.f32.mrb[5].mxu0 }
 0x843   : > { %v726_v57 = vsel %vm360_vm7, %v725_v55, -inf }
 0x844   : > { %v727_v58 = vrot.slane %v726_v57, 4 }
 0x846   : > { %v728_v59 = vmax.f32 %v726_v57, %v727_v58 }
 0x848   : > { %v729_v60 = vrot.slane %v728_v59, 2 }
 0x84a   : > { %v730_v61 = vmax.f32 %v728_v59, %v729_v60 }
 0x84c   : > { %v731_v62 = vrot.slane %v730_v61, 1 }
 0x84e   : > { %v732_v63 = vmax.f32 %v730_v61, %v731_v62 }
 0x850   : > { %v733_v0 = vsub.f32 %v725_v55, %v732_v63 }
 0x852   : > { %v734_v3 = vmul.f32 1.442695, %v733_v0 }
 0x854   : > { %1381 = vpow2.f32 %v734_v3 }
 0x85e   : > { %v1382_v4 = vpop.eup %1381 }
 0x85f   : > { %v736_v5 = vsel %vm360_vm7, %v1382_v4, 0.0 }
 0x860   : > { %v737_v8 = vrot.slane %v736_v5, 4 }
 0x862   : > { %v738_v6 = vadd.f32 %v737_v8, %v736_v5 }
 0x864   : > { %v739_v9 = vrot.slane %v738_v6, 2 }
 0x866   : > { %v740_v10 = vadd.f32 %v739_v9, %v738_v6 }
 0x868   : > { %v741_v11 = vrot.slane %v740_v10, 1 }
 0x86a   : > { %v742_v12 = vadd.f32 %v741_v11, %v740_v10 }
 0x86c   : > { %1383 = vrcp.f32 %v742_v12 }
 0x876   : > { %v1384_v13 = vpop.eup %1383 }
 0x877   : > { %v744_v14 = vmul.f32 %v1384_v13, %v1382_v4 }
 0x879   : > { %751 = vxpose.xlu0.b32.start.end [1/1] (short) (narrow) %v744_v14, 16  ;;  %v745_v15 = vsel %vm360_vm7, %v744_v14, 0.0 }
 0x87a   : > { %746 = vadd.xlane.f32.xlu1 %v745_v15 }
 0x8f9   : > { %v767_v16 = vpop.trf.xlu0 }
 0x8fa   : > { %1252 = vmatprep.mubr.msk.f32.mxu1 %vm783_vm12, %v767_v16 }
 0x8fd   : > { %v768_v21 = vpop.trf.xlu0 }
 0x907   : > { %v747_v17 = vpop.xlane.xlu1 %746 }
 0x908   : > { %v748_v18 = vadd.f32 1e-09, %v747_v17 }
 0x90a   : > { %1385 = vrcp.f32 %v748_v18 }
 0x914   : > { %v1386_v19 = vpop.eup %1385 }
 0x915   : > { %v750_v20 = vmul.f32 %v1386_v19, %v744_v14 }
 0x917   : > { %1250 = vmatprep.subr.mxu1 %v750_v20 }
 0x918   : > { %1251 = vmatpush3.msra.mxu1 %v750_v20 }
 0x919   : > { %1253 = vmatmul.mubr.msk.f32.vlgmr.msra.gmra.mrb[4].mxu1 %vm783_vm12, %v768_v21  ;;  %1255 = vmatprep.subr.mxu1 %v637_v43 }
 0x91a   : > { %1256 = vmatpush3.msra.mxu1 %v637_v43  ;;  %1257 = vmatprep.mubr.msk.f32.mxu1 %vm783_vm12, %v767_v16 }
 0x91d   : > { %1258 = vmatmul.mubr.msk.f32.vlgmr.msra.gmra.mrb[6].mxu1 %vm783_vm12, %v768_v21 }
 0x91e   : > { %1458 = shalt.err (!%p1455_p13)
}
 0x91f   : > { %s1459_s9 = scalar_lea.hbm %s1819_s7, 128  ;;  %s1463_s26 = scalar_lea.hbm %s1948_s2, 256 }
 0x920   : > { %p1460_p7 = scmp.ne.s32.totalorder %s1819_s7, %s1459_s9  ;;  %p1464_p1 = scmp.lt.u32.totalorder %s1819_s7, %s1948_s2 }
 0x921   : > { %p1465_p11 = scmp.lt.u32.totalorder %s1463_s26, %s1459_s9  ;;  %p1467_p9 = scmp.lt.u32.totalorder %s1459_s9, %s1819_s7 }
 0x922   : > { %p1461_p3 = pnand %p1460_p7, %p1969_p10 }
 0x923   : > { %p1466_p8 = por %p1465_p11, %p1464_p1 }
 0x924   : > { %p1462_p12 = pneg %p1461_p3 }
 0x925   : > { %p1468_p2 = por %p1467_p9, %p1466_p8 }
 0x927   : > { %p1469_p4 = pnand %p1468_p2, %p1462_p12 }
 0x929   : > { %1472 = shalt.err (!%p1469_p4)
}
 0x92a   : > { %1281 = dma.vmem_to_hbm [thread:$0]  (%p1969_p10), %s988_s13, 128, %s1819_s7, %s964_s12   ;;  %v865_v22 = vlaneseq }
 0x92b   : > { %s968_s23 = sand.u32 1, %s1635_s19   ;;  %s1192_s6 = sshll.u32 %s1635_s19, 8 }
 0x92c   : > { %v866_v23 = vshrl.u32 %v865_v22, 7  ;;  %v869_v25 = vand.u32 127, %v865_v22  ;;  %s239_s14 = scalar_lea.vmem [#allocation8], %s1755_s30  ;;  %s1849_s12 = scalar_lea.hbm %s1949_s3, %s1192_s6 }
 0x92d   : > { %s1000_s22 = sshll.u32 %s239_s14, 4  ;;  %s1855_s25 = scalar_lea.vmem [#allocation10], %s1755_s30  ;;  %s1851_s22 = int_to_ptr.vmem [resolvable:$true] %s1000_s22 }
 0x92e   : > { %v867_v24 = vadd.s32 8, %v866_v23  ;;  %vm870_vm14 = vcmp.eq.s32.totalorder %v866_v23, %v869_v25  ;;  %s1016_s5 = sshll.u32 %s1855_s25, 4  ;;  %s1860_s9 = scalar_lea.sflag [#allocation9], %s968_s23  ;;  %s1889_s5 = int_to_ptr.vmem [resolvable:$true] %s1016_s5 }
 0x92f   : > { %v1177_v30 = vsel %vm870_vm14, 1.0, %v1583_v7  ;;  %s1473_s10 = scalar_lea.vmem %s1851_s22, 256  ;;  %s1585_s11 = smov [#allocation8]  }
 0x930   : > { %vm871_vm13 = vcmp.eq.s32.totalorder %v867_v24, %v869_v25  ;;  %p1474_p5 = scmp.ne.s32.totalorder %s1851_s22, %s1473_s10  ;;  %s1477_s26 = sshll.u32 %s1585_s11, 4  ;;  %s1478_s26 = int_to_ptr.vmem [resolvable:$false] %s1477_s26 }
 0x931   : > { %v1178_v27 = vsel %vm871_vm13, 1.0, %v1583_v7  ;;  %s1479_s30 = scalar_lea.vmem %s1478_s26, 512  ;;  %p1480_p13 = scmp.lt.s32.totalorder %s1851_s22, %s1478_s26 }
 0x932   : > { %p1475_p0 = pnand %p1474_p5, %p1969_p10  ;;  %p1481_p7 = scmp.lt.s32.totalorder %s1479_s30, %s1473_s10 }
 0x934   : > { %p1476_p6 = pneg %p1475_p0  ;;  %p1482_p3 = por %p1481_p7, %p1480_p13 }
 0x936   : > { %p1483_p12 = pnand %p1482_p3, %p1476_p6 }
 0x9ec   : > { %v1254_v26 = vpop.f32.mrb[4].mxu1 }
 0x9ed   : > { %v877_v28 = vmul.f32 0.25, %v1254_v26  ;;  %v856_v29 = vpop.f32.mrb[5].mxu1 }
 0x9ee   : > { %v876_v31 = vmul.f32 0.25, %v856_v29 }
 0x9ef   : > { %v879_v32 = vsub.f32 %v1178_v27, %v877_v28 }
 0x9f0   : > { %v878_v34 = vsub.f32 %v1177_v30, %v876_v31  ;;  %v1259_v35 = vpop.f32.mrb[6].mxu1 }
 0x9f1   : > { %881 = vst.msk [vmem:[%s239_s14 + $0x8] sm:$0xff] %vm360_vm7, %v879_v32  ;;  %v958_v36 = vmul.f32 0.5, %v1259_v35  ;;  %v948_v7 = vpop.f32.mrb[7].mxu1 }
 0x9f2   : > { %880 = vst.msk [vmem:[%s239_s14] sm:$0xff] %vm360_vm7, %v878_v34  ;;  %v957_v37 = vmul.f32 0.5, %v948_v7 }
 0x9f3   : > { %v960_v38 = vadd.f32 %v958_v36, %v1769_v2 }
 0x9f4   : > { %1486 = shalt.err (!%p1483_p12)
}
 0x9f5   : > { %s1487_s29 = scalar_lea.hbm %s1849_s12, 256  ;;  %s1491_s14 = scalar_lea.hbm %s1949_s3, 512 }
 0x9f6   : > { %p1488_p1 = scmp.ne.s32.totalorder %s1849_s12, %s1487_s29  ;;  %p1492_p9 = scmp.lt.u32.totalorder %s1849_s12, %s1949_s3 }
 0x9f7   : > { %p1493_p2 = scmp.lt.u32.totalorder %s1491_s14, %s1487_s29  ;;  %p1495_p5 = scmp.lt.u32.totalorder %s1487_s29, %s1849_s12 }
 0x9f8   : > { %p1489_p11 = pnand %p1488_p1, %p1969_p10 }
 0x9f9   : > { %p1494_p4 = por %p1493_p2, %p1492_p9 }
 0x9fa   : > { %p1490_p8 = pneg %p1489_p11 }
 0x9fb   : > { %p1496_p0 = por %p1495_p5, %p1494_p4 }
 0x9fd   : > { %p1497_p6 = pnand %p1496_p0, %p1490_p8 }
 0x9ff   : > { %1500 = shalt.err (!%p1497_p6)
}
 0xa00   : > { %s1586_s10 = smov 128   ;;  %s1587_s11 = smov 8   ;;  %v959_v2 = vadd.f32 %v957_v37, %v1767_v1  ;;  %962 = vst [vmem:[%s1855_s25 + $0x8] sm:$0xff] %v960_v38 }
 0xa01   : > { %1282 = dma.vmem_to_hbm [thread:$0]  (%p1969_p10), %s1851_s22, 256, %s1849_s12, %s1860_s9, %s1586_s10, %s1586_s10, %s1587_s11  }
 0xa02   : > { %s1897_s29 = scalar_lea.hbm %s1950_s4, %s1192_s6  ;;  %961 = vst [vmem:[%s1855_s25] sm:$0xff] %v959_v2  ;;  %s1501_s8 = scalar_lea.vmem %s1889_s5, 256 }
 0xa03   : > { %p1502_p13 = scmp.ne.s32.totalorder %s1889_s5, %s1501_s8  ;;  %s1588_s22 = smov [#allocation10]  }
 0xa04   : > { %s1505_s12 = sshll.u32 %s1588_s22, 4  ;;  %s1506_s12 = int_to_ptr.vmem [resolvable:$false] %s1505_s12 }
 0xa05   : > { %p1503_p7 = pnand %p1502_p13, %p1969_p10  ;;  %s1507_s23 = scalar_lea.vmem %s1506_s12, 512 }
 0xa06   : > { %p1508_p12 = scmp.lt.s32.totalorder %s1889_s5, %s1506_s12  ;;  %p1509_p1 = scmp.lt.s32.totalorder %s1507_s23, %s1501_s8 }
 0xa07   : > { %p1504_p3 = pneg %p1503_p7 }
 0xa08   : > { %p1510_p11 = por %p1509_p1, %p1508_p12 }
 0xa0a   : > { %p1511_p8 = pnand %p1510_p11, %p1504_p3 }
 0xa0c   : > { %1514 = shalt.err (!%p1511_p8)
}
 0xa0d   : > { %s1515_s19 = scalar_lea.hbm %s1897_s29, 256  ;;  %s1519_s14 = scalar_lea.hbm %s1950_s4, 512 }
 0xa0e   : > { %p1516_p9 = scmp.ne.s32.totalorder %s1897_s29, %s1515_s19  ;;  %p1520_p5 = scmp.lt.u32.totalorder %s1897_s29, %s1950_s4 }
 0xa0f   : > { %p1521_p0 = scmp.lt.u32.totalorder %s1519_s14, %s1515_s19  ;;  %p1523_p13 = scmp.lt.u32.totalorder %s1515_s19, %s1897_s29 }
 0xa10   : > { %p1517_p2 = pnand %p1516_p9, %p1969_p10 }
 0xa11   : > { %p1522_p6 = por %p1521_p0, %p1520_p5 }
 0xa12   : > { %p1518_p4 = pneg %p1517_p2 }
 0xa13   : > { %p1524_p7 = por %p1523_p13, %p1522_p6 }
 0xa15   : > { %p1525_p3 = pnand %p1524_p7, %p1518_p4 }
 0xa17   : > { %1528 = shalt.err (!%p1525_p3)
}
 0xa18   : > { %1283 = dma.vmem_to_hbm [thread:$0]  (%p1969_p10), %s1889_s5, 256, %s1897_s29, %s1860_s9, %s1586_s10, %s1586_s10, %s1587_s11  }
 0xa19 PF: > { %s1031_s26 = sand.u32 1, %s1563_s15   ;;  %p1970_p12 = scmp.ne.s32.totalorder %s1959_s28, 0 }
 0xa1a   : > { %p1971_p1 = scmp.ge.s32.totalorder %s1575_s18, 2  ;;  %s1032_s30 = scalar_lea.sflag [#allocation4], %s1031_s26 }
 0xa1c   : > { %p1296_p11 = pnand %p1971_p1, %p1970_p12 }
 0xa1e   : > { %1554 = dma.done.wait (!%p1296_p11), %s1032_s30, 128  }
 0xa1f   : > { %1556 = vsyncadd (!%p1296_p11), %s1032_s30, 4294967168  ;;  %s1040_s27 = sand.u32 1, %s1160_s20  }
 0xa20   : > { %s1041_s8 = scalar_lea.sflag [#allocation9], %s1040_s27 }
 0xa21   : > { %1558 = dma.done.wait (!%p1296_p11), %s1041_s8, 512  }
 0xa22   : > { %1560 = vsyncadd (!%p1296_p11), %s1041_s8, 4294966784  ;;  %p22_p10 = scmp.ge.s32.totalorder %s1639_s21, 4   ;;  %s1972_s15 = smov %s1567_s16 }
 0xa23   : > { %s1973_s16 = smov %s1571_s17  ;;  %s1974_s17 = smov %s1651_s24 }
 0xa24   : > { %s1975_s18 = smov %s1639_s21  ;;  %24 = sbr.rel (!%p22_p10) target bundleno = 8 (0x8), region = 109 }
 0xa2b   :  { %1055 = vsyncpa [#allocation3], 1 }
 0xa2c   :  { %1057 = vsyncpa [#allocation3 + $0x1], 1 }
 0xa2d   :  { %1058 = vsyncpa [#allocation6], 1 }
 0xa2e   :  { %1059 = vsyncpa [#allocation4], 1 }
 0xa2f   :  { %1061 = vsyncpa [#allocation4 + $0x1], 1 }
 0xa30   :  { %1062 = vsyncpa [#allocation9], 1 }
 0xa31   :  { %1064 = vsyncpa [#allocation9 + $0x1], 1 }

// kernel: tfedcn_forward.6
= control target key start
LH: loop header
LB: loop body
LE: loop exit
PB: predicated region body
PF: predicated region fallthrough
CT: control target
= control target key end

     0   :  { %s2666_s0 = inlined_call_operand.hbm [shape: f32[2,16,128], index: 0, kind: input, shape index: {}]   ;;  %s2667_s1 = inlined_call_operand.hbm [shape: bf16[64,65], index: 1, kind: input, shape index: {}]   ;;  %s2668_s2 = inlined_call_operand.hbm [shape: f32[1,65], index: 2, kind: input, shape index: {}]   ;;  %s2669_s3 = inlined_call_operand.hbm [shape: bf16[64,65], index: 3, kind: input, shape index: {}]   ;;  %s2670_s4 = inlined_call_operand.hbm [shape: f32[1,65], index: 4, kind: input, shape index: {}]   ;;  %s2671_s5 = inlined_call_operand.hbm [shape: bf16[64,128], index: 5, kind: input, shape index: {}]   ;;  %s2672_s6 = inlined_call_operand.hbm [shape: bf16[64,128], index: 6, kind: input, shape index: {}]   ;;  %s2673_s7 = inlined_call_operand.hbm [shape: f32[1,128], index: 7, kind: input, shape index: {}]   ;;  %s2674_s8 = inlined_call_operand.hbm [shape: f32[2,16,128], index: 8, kind: output, shape index: {0}]   ;;  %s2675_s9 = inlined_call_operand.hbm [shape: f32[2,16,64], index: 9, kind: output, shape index: {1}]   ;;  %s2676_s10 = inlined_call_operand.hbm [shape: f32[2,16,64], index: 10, kind: output, shape index: {2}]   ;;  %s2677_s11 = inlined_call_operand.hbm [shape: f32[2,16,3], index: 11, kind: output, shape index: {3}]  }
   0x1   :  { %2686 = sst [smem:[#allocation31_spill]] %s2666_s0 }
   0x2   :  { %2687 = sst [smem:[#allocation32_spill]] %s2667_s1 }
   0x3   :  { %2688 = sst [smem:[#allocation33_spill]] %s2668_s2 }
   0x4   :  { %2689 = sst [smem:[#allocation34_spill]] %s2669_s3 }
   0x5   :  { %2690 = sst [smem:[#allocation35_spill]] %s2674_s8 }
   0x6   :  { %2691 = sst [smem:[#allocation36_spill]] %s2675_s9 }
   0x7   :  { %2692 = sst [smem:[#allocation37_spill]] %s2676_s10 }
   0x8   :  { %2693 = sst [smem:[#allocation38_spill]] %s2677_s11 }
   0x9   :  { %17 = vsyncpa [#allocation3], 0 }
   0xa   :  { %19 = vsyncpa [#allocation3 + $0x1], 0 }
   0xb   :  { %20 = vsyncpa [#allocation6], 0 }
   0xc   :  { %21 = vsyncpa [#allocation9], 0 }
   0xd   :  { %22 = vsyncpa [#allocation12], 0 }
   0xe   :  { %23 = vsyncpa [#allocation15], 0 }
   0xf   :  { %24 = vsyncpa [#allocation4], 0 }
  0x10   :  { %26 = vsyncpa [#allocation4 + $0x1], 0 }
  0x11   :  { %27 = vsyncpa [#allocation18], 0 }
  0x12   :  { %29 = vsyncpa [#allocation18 + $0x1], 0 }
  0x13   :  { %30 = vsyncpa [#allocation21], 0 }
  0x14   :  { %32 = vsyncpa [#allocation21 + $0x1], 0  ;;  %s2150_s17 = smov 0   ;;  %s2152_s18 = smov 0  }
  0x15   :  { %s2154_s19 = smov 0   ;;  %s2156_s20 = smov 0  }
  0x16   :  { %s2158_s21 = smov 0   ;;  %s2160_s22 = smov 0  }
  0x17 LB: > { %2694 = sst [smem:[#allocation30_spill]] %s2057_s20  ;;  %s2181_s23 = sadd.s32 4294967295, %s2065_s22   ;;  %s2065_s22 = sphi %s2160_s22, %s38_s22   ;;  %s2061_s21 = sphi %s2158_s21, %s2731_s21   ;;  %s2057_s20 = sphi %s2156_s20, %s2730_s20   ;;  %s2053_s19 = sphi %s2154_s19, %s2729_s19   ;;  %s2049_s18 = sphi %s2152_s18, %s2728_s18   ;;  %s2045_s17 = sphi %s2150_s17, %s2727_s17  }
  0x18   : > { %p1323_p0 = scmp.ge.s32.totalorder %s2065_s22, 1  ;;  %p2682_p1 = scmp.eq.s32.totalorder %s2181_s23, 0 }
  0x19   : > { %p342_p2 = scmp.lt.s32.totalorder %s2065_s22, 3  ;;  %s2067_s25 = smov [#allocation5]  }
  0x1a   : > { %s354_s26 = sshll.u32 %s2067_s25, 4  ;;  %s2068_s28 = smov [#allocation8]   ;;  %s2190_s26 = int_to_ptr.vmem [resolvable:$true] %s354_s26 }
  0x1b   : > { %p2186_p3 = pnand %p1323_p0, %p342_p2  ;;  %s378_s29 = sshll.u32 %s2068_s28, 4  ;;  %s2201_s29 = int_to_ptr.vmem [resolvable:$true] %s378_s29 }
  0x1c   : > { %s2069_s30 = smov [#allocation11]   ;;  %s2697_s1 = sld [smem:[#allocation32_spill]] }
  0x1d   : > { %s2695_s24 = scalar_select %p2186_p3, 1, 0 }
  0x1e   : > { %p1496_p4 = pneg %p2186_p3  ;;  %s2203_s12 = sshll.u32 %s2069_s30, 4  ;;  %s403_s12 = int_to_ptr.vmem [resolvable:$true] %s2203_s12 }
  0x20   : > { %p2197_p6 = pnand %p1496_p4, %p2682_p1 }
  0x22   : > { %s1649_s15 = scalar_lea.hbm %s2697_s1, 512  ;;  %p2213_p8 = pneg %p2197_p6 }
  0x23   : > { %p1650_p7 = scmp.ne.s32.totalorder %s2697_s1, %s1649_s15  ;;  %p1656_p11 = scmp.lt.u32.totalorder %s1649_s15, %s2697_s1 }
  0x25   : > { %p1652_p9 = pnand %p2213_p8, %p1650_p7 }
  0x27   : > { %p1653_p10 = pneg %p1652_p9 }
  0x29   : > { %p1658_p12 = pnand %p1656_p11, %p1653_p10 }
  0x2b   : > { %1661 = shalt.err (!%p1658_p12)
}
  0x2c   : > { %s1662_s13 = scalar_lea.vmem %s2190_s26, 512  ;;  %p1670_p4 = scmp.lt.s32.totalorder %s2190_s26, %s2190_s26 }
  0x2d   : > { %p1663_p13 = scmp.ne.s32.totalorder %s2190_s26, %s1662_s13  ;;  %p1671_p5 = scmp.lt.s32.totalorder %s1662_s13, %s1662_s13 }
  0x2f   : > { %p1665_p0 = pnand %p1663_p13, %p2213_p8  ;;  %p1672_p7 = por %p1671_p5, %p1670_p4 }
  0x31   : > { %p1666_p2 = pneg %p1665_p0 }
  0x33   : > { %p1673_p9 = pnand %p1672_p7, %p1666_p2 }
  0x35   : > { %1676 = shalt.err (!%p1673_p9)
}
  0x36   : > { %s2070_s14 = smov 64   ;;  %s2071_s15 = smov 4  }
  0x37   : > { %1499 = dma.hbm_to_vmem [thread:$0]  (!%p2197_p6), %s2697_s1, 512, %s2190_s26, [#allocation6], %s2070_s14, %s2070_s14, %s2071_s15  }
  0x38   : > { %s2699_s3 = sld [smem:[#allocation34_spill]] }
  0x3e   : > { %s1677_s13 = scalar_lea.hbm %s2699_s3, 512 }
  0x3f   : > { %p1678_p5 = scmp.ne.s32.totalorder %s2699_s3, %s1677_s13  ;;  %p1684_p12 = scmp.lt.u32.totalorder %s1677_s13, %s2699_s3 }
  0x41   : > { %p1680_p10 = pnand %p1678_p5, %p2213_p8 }
  0x43   : > { %p1681_p11 = pneg %p1680_p10 }
  0x45   : > { %p1686_p13 = pnand %p1684_p12, %p1681_p11 }
  0x47   : > { %1689 = shalt.err (!%p1686_p13)
}
  0x48   : > { %s1690_s26 = scalar_lea.vmem %s2201_s29, 512  ;;  %p1698_p7 = scmp.lt.s32.totalorder %s2201_s29, %s2201_s29 }
  0x49   : > { %p1691_p0 = scmp.ne.s32.totalorder %s2201_s29, %s1690_s26  ;;  %p1699_p9 = scmp.lt.s32.totalorder %s1690_s26, %s1690_s26 }
  0x4b   : > { %p1693_p2 = pnand %p1691_p0, %p2213_p8  ;;  %p1700_p5 = por %p1699_p9, %p1698_p7 }
  0x4d   : > { %p1694_p4 = pneg %p1693_p2 }
  0x4f   : > { %p1701_p10 = pnand %p1700_p5, %p1694_p4 }
  0x51   : > { %1704 = shalt.err (!%p1701_p10)
}
  0x52   : > { %1505 = dma.hbm_to_vmem [thread:$0]  (!%p2197_p6), %s2699_s3, 512, %s2201_s29, [#allocation9], %s2070_s14, %s2070_s14, %s2071_s15  }
  0x53   : > { %s1705_s16 = scalar_lea.hbm %s2671_s5, 512 }
  0x54   : > { %p1706_p11 = scmp.ne.s32.totalorder %s2671_s5, %s1705_s16  ;;  %p1712_p0 = scmp.lt.u32.totalorder %s1705_s16, %s2671_s5 }
  0x56   : > { %p1708_p12 = pnand %p1706_p11, %p2213_p8 }
  0x58   : > { %p1709_p13 = pneg %p1708_p12 }
  0x5a   : > { %p1714_p2 = pnand %p1712_p0, %p1709_p13 }
  0x5c   : > { %1717 = shalt.err (!%p1714_p2)
}
  0x5d   : > { %s1718_s26 = scalar_lea.vmem %s403_s12, 512  ;;  %p1726_p5 = scmp.lt.s32.totalorder %s403_s12, %s403_s12 }
  0x5e   : > { %p1719_p4 = scmp.ne.s32.totalorder %s403_s12, %s1718_s26  ;;  %p1727_p10 = scmp.lt.s32.totalorder %s1718_s26, %s1718_s26 }
  0x60   : > { %p1721_p7 = pnand %p1719_p4, %p2213_p8  ;;  %p1728_p1 = por %p1727_p10, %p1726_p5 }
  0x62   : > { %p1722_p9 = pneg %p1721_p7 }
  0x64   : > { %p1729_p3 = pnand %p1728_p1, %p1722_p9 }
  0x66   : > { %1732 = shalt.err (!%p1729_p3)
}
  0x67   : > { %1511 = dma.hbm_to_vmem [thread:$0]  (!%p2197_p6), %s2671_s5, 512, %s403_s12, [#allocation12], %s2070_s14, %s2070_s14, %s2071_s15  }
  0x68   : > { %s2072_s10 = smov [#allocation7]   ;;  %s2073_s20 = smov [#allocation10]  }
  0x69   : > { %s368_s11 = sshll.u32 %s2072_s10, 4  ;;  %s392_s16 = sshll.u32 %s2073_s20, 4  ;;  %s369_s11 = int_to_ptr.vmem [resolvable:$true] %s368_s11  ;;  %s393_s16 = int_to_ptr.vmem [resolvable:$true] %s392_s16 }
  0x6a   : > { %s2700_s2 = sld [smem:[#allocation33_spill]] }
  0x70   : > { %s1733_s30 = scalar_lea.hbm %s2700_s2, 16 }
  0x71   : > { %p1734_p1 = scmp.ne.s32.totalorder %s2700_s2, %s1733_s30  ;;  %p1740_p12 = scmp.lt.u32.totalorder %s1733_s30, %s2700_s2 }
  0x73   : > { %p1736_p3 = pnand %p1734_p1, %p2213_p8 }
  0x75   : > { %p1737_p11 = pneg %p1736_p3 }
  0x77   : > { %p1742_p13 = pnand %p1740_p12, %p1737_p11 }
  0x79   : > { %1745 = shalt.err (!%p1742_p13)
}
  0x7a   : > { %s1746_s12 = scalar_lea.vmem %s369_s11, 16  ;;  %s1753_s9 = scalar_lea.vmem %s369_s11, 32 }
  0x7b   : > { %p1747_p0 = scmp.ne.s32.totalorder %s369_s11, %s1746_s12  ;;  %p1754_p7 = scmp.lt.s32.totalorder %s369_s11, %s369_s11 }
  0x7c   : > { %p1755_p9 = scmp.lt.s32.totalorder %s1753_s9, %s1746_s12 }
  0x7d   : > { %p1749_p2 = pnand %p1747_p0, %p2213_p8 }
  0x7e   : > { %p1756_p5 = por %p1755_p9, %p1754_p7 }
  0x7f   : > { %p1750_p4 = pneg %p1749_p2 }
  0x81   : > { %p1757_p10 = pnand %p1756_p5, %p1750_p4 }
  0x83   : > { %1760 = shalt.err (!%p1757_p10)
}
  0x84   : > { %1502 = dma.hbm_to_vmem [thread:$0]  (!%p2197_p6), %s2700_s2, 16, %s369_s11, [#allocation6]  }
  0x85   : > { %s1761_s28 = scalar_lea.hbm %s2670_s4, 16 }
  0x86   : > { %p1762_p1 = scmp.ne.s32.totalorder %s2670_s4, %s1761_s28  ;;  %p1768_p12 = scmp.lt.u32.totalorder %s1761_s28, %s2670_s4 }
  0x88   : > { %p1764_p3 = pnand %p1762_p1, %p2213_p8 }
  0x8a   : > { %p1765_p11 = pneg %p1764_p3 }
  0x8c   : > { %p1770_p13 = pnand %p1768_p12, %p1765_p11 }
  0x8e   : > { %1773 = shalt.err (!%p1770_p13)
}
  0x8f   : > { %s1774_s12 = scalar_lea.vmem %s393_s16, 16  ;;  %s1781_s11 = scalar_lea.vmem %s393_s16, 32 }
  0x90   : > { %p1775_p0 = scmp.ne.s32.totalorder %s393_s16, %s1774_s12  ;;  %p1782_p7 = scmp.lt.s32.totalorder %s393_s16, %s393_s16 }
  0x91   : > { %p1783_p9 = scmp.lt.s32.totalorder %s1781_s11, %s1774_s12 }
  0x92   : > { %p1777_p2 = pnand %p1775_p0, %p2213_p8 }
  0x93   : > { %p1784_p5 = por %p1783_p9, %p1782_p7 }
  0x94   : > { %p1778_p4 = pneg %p1777_p2 }
  0x96   : > { %p1785_p10 = pnand %p1784_p5, %p1778_p4 }
  0x98   : > { %1788 = shalt.err (!%p1785_p10)
}
  0x99   : > { %1508 = dma.hbm_to_vmem [thread:$0]  (!%p2197_p6), %s2670_s4, 16, %s393_s16, [#allocation9]  }
  0x9a   : > { %s2074_s20 = smov [#allocation13]   ;;  %s2075_s25 = smov [#allocation14]  }
  0x9b   : > { %s415_s1 = sshll.u32 %s2074_s20, 4  ;;  %s429_s28 = sshll.u32 %s2075_s25, 4  ;;  %s416_s1 = int_to_ptr.vmem [resolvable:$true] %s415_s1  ;;  %s430_s28 = int_to_ptr.vmem [resolvable:$true] %s429_s28 }
  0x9c   : > { %s1789_s26 = scalar_lea.hbm %s2672_s6, 512 }
  0x9d   : > { %p1790_p1 = scmp.ne.s32.totalorder %s2672_s6, %s1789_s26  ;;  %p1796_p12 = scmp.lt.u32.totalorder %s1789_s26, %s2672_s6 }
  0x9f   : > { %p1792_p3 = pnand %p1790_p1, %p2213_p8 }
  0xa1   : > { %p1793_p11 = pneg %p1792_p3 }
  0xa3   : > { %p1798_p13 = pnand %p1796_p12, %p1793_p11 }
  0xa5   : > { %1801 = shalt.err (!%p1798_p13)
}
  0xa6   : > { %s1802_s16 = scalar_lea.vmem %s416_s1, 512  ;;  %p1810_p7 = scmp.lt.s32.totalorder %s416_s1, %s416_s1 }
  0xa7   : > { %p1803_p0 = scmp.ne.s32.totalorder %s416_s1, %s1802_s16  ;;  %p1811_p9 = scmp.lt.s32.totalorder %s1802_s16, %s1802_s16 }
  0xa9   : > { %p1805_p2 = pnand %p1803_p0, %p2213_p8  ;;  %p1812_p5 = por %p1811_p9, %p1810_p7 }
  0xab   : > { %p1806_p4 = pneg %p1805_p2 }
  0xad   : > { %p1813_p10 = pnand %p1812_p5, %p1806_p4 }
  0xaf   : > { %1816 = shalt.err (!%p1813_p10)
}
  0xb0   : > { %1514 = dma.hbm_to_vmem [thread:$0]  (!%p2197_p6), %s2672_s6, 512, %s416_s1, [#allocation12], %s2070_s14, %s2070_s14, %s2071_s15  }
  0xb1   : > { %s1817_s13 = scalar_lea.hbm %s2673_s7, 16 }
  0xb2   : > { %p1818_p1 = scmp.ne.s32.totalorder %s2673_s7, %s1817_s13  ;;  %p1824_p12 = scmp.lt.u32.totalorder %s1817_s13, %s2673_s7 }
  0xb4   : > { %p1820_p3 = pnand %p1818_p1, %p2213_p8 }
  0xb6   : > { %p1821_p11 = pneg %p1820_p3 }
  0xb8   : > { %p1826_p13 = pnand %p1824_p12, %p1821_p11 }
  0xba   : > { %1829 = shalt.err (!%p1826_p13)
}
  0xbb   : > { %s1830_s9 = scalar_lea.vmem %s430_s28, 16  ;;  %s1837_s14 = scalar_lea.vmem %s430_s28, 32 }
  0xbc   : > { %p1831_p0 = scmp.ne.s32.totalorder %s430_s28, %s1830_s9  ;;  %p1838_p7 = scmp.lt.s32.totalorder %s430_s28, %s430_s28 }
  0xbd   : > { %p1839_p9 = scmp.lt.s32.totalorder %s1837_s14, %s1830_s9 }
  0xbe   : > { %p1833_p2 = pnand %p1831_p0, %p2213_p8 }
  0xbf   : > { %p1840_p5 = por %p1839_p9, %p1838_p7 }
  0xc0   : > { %p1834_p4 = pneg %p1833_p2 }
  0xc2   : > { %p1841_p10 = pnand %p1840_p5, %p1834_p4 }
  0xc4   : > { %1844 = shalt.err (!%p1841_p10)
}
  0xc5   : > { %1517 = dma.hbm_to_vmem [thread:$0]  (!%p2197_p6), %s2673_s7, 16, %s430_s28, [#allocation15]  }
  0xc6   : > { %s2685_s8 = sadd.s32 4294967294, %s2065_s22   ;;  %s50_s27 = sadd.s32 1, %s2061_s21 }
  0xc7   : > { %s59_s16 = sadd.s32 1, %s2053_s19  ;;  %p52_p8 = scmp.ge.s32.totalorder %s50_s27, 2 }
  0xc8   : > { %p66_p1 = scmp.ne.s32.totalorder %s2053_s19, %s2049_s18  ;;  %p67_p3 = scmp.eq.s32.totalorder %s2065_s22, 0 }
  0xc9   : > { %p72_p11 = scmp.ne.s32.totalorder %s2049_s18, %s2045_s17  ;;  %s2733_s27 = smov (%p52_p8, %s50_s27), 0 }
  0xca   : > { %p2370_p12 = por %p67_p3, %p66_p1  ;;  %p2702_p13 = scmp.eq.s32.totalorder %s2181_s23, 0 }
  0xcb   : > { %s54_s20 = ssub.s32 %s2061_s21, %s2733_s27  ;;  %p245_p0 = scmp.eq.s32.totalorder %s2181_s23, 1 }
  0xcc   : > { %p2376_p6 = por %p2702_p13, %p72_p11  ;;  %p57_p2 = scmp.eq.s32.totalorder %s54_s20, 0 }
  0xcd   : > { %p251_p4 = scmp.eq.s32.totalorder %s2685_s8, 1  ;;  %p2385_p7 = por %p245_p0, %p66_p1 }
  0xce   : > { %p1542_p9 = scmp.lt.s32.totalorder %s2065_s22, 2  ;;  %s440_s26 = sand.u32 1, %s2053_s19  }
  0xcf   : > { %s2704_s25 = scalar_select %p2385_p7, 1, 0 }
  0xd0   : > { %s2391_s30 = scalar_select %p57_p2, %s2053_s19, %s59_s16  }
  0xd1   : > { %p2393_p5 = por %p251_p4, %p72_p11  ;;  %s1332_s29 = sshll.u32 %s440_s26, 4 }
  0xd2   : > { %s1385_s12 = sshll.u32 %s2061_s21, 8  ;;  %s2706_s0 = sld [smem:[#allocation31_spill]] }
  0xd3   : > { %s2705_s13 = scalar_select %p2393_p5, 1, 0 }
  0xd4   : > { %s444_s15 = scalar_lea.vmem [#allocation2], %s1332_s29  ;;  %p2408_p10 = pnand %p1542_p9, %p2370_p12 }
  0xd5   : > { %s453_s1 = sshll.u32 %s444_s15, 4  ;;  %s2412_s20 = scalar_lea.sflag [#allocation3], %s440_s26  ;;  %s2404_s1 = int_to_ptr.vmem [resolvable:$true] %s453_s1 }
  0xd6   : > { %p1847_p1 = pneg %p2408_p10 }
  0xd8   : > { %s2402_s14 = scalar_lea.hbm %s2706_s0, %s1385_s12  ;;  %s1850_s10 = scalar_lea.hbm %s2706_s0, 512 }
  0xd9   : > { %s1845_s11 = scalar_lea.hbm %s2402_s14, 256  ;;  %p1851_p12 = scmp.lt.u32.totalorder %s2402_s14, %s2706_s0 }
  0xda   : > { %p1846_p8 = scmp.ne.s32.totalorder %s2402_s14, %s1845_s11  ;;  %p1852_p13 = scmp.lt.u32.totalorder %s1850_s10, %s1845_s11 }
  0xdb   : > { %p1854_p2 = scmp.lt.u32.totalorder %s1845_s11, %s2402_s14 }
  0xdc   : > { %p1848_p3 = pnand %p1847_p1, %p1846_p8  ;;  %p1853_p0 = por %p1852_p13, %p1851_p12 }
  0xde   : > { %p1849_p11 = pneg %p1848_p3  ;;  %p1855_p4 = por %p1854_p2, %p1853_p0 }
  0xe0   : > { %p1856_p9 = pnand %p1855_p4, %p1849_p11 }
  0xe2   : > { %1859 = shalt.err (!%p1856_p9)
}
  0xe3   : > { %s1860_s26 = scalar_lea.vmem %s2404_s1, 256  ;;  %s2076_s29 = smov [#allocation2]  }
  0xe4   : > { %p1861_p8 = scmp.ne.s32.totalorder %s2404_s1, %s1860_s26  ;;  %s1865_s12 = sshll.u32 %s2076_s29, 4  ;;  %s1866_s12 = int_to_ptr.vmem [resolvable:$false] %s1865_s12 }
  0xe5   : > { %s1867_s9 = scalar_lea.vmem %s1866_s12, 512  ;;  %p1868_p7 = scmp.lt.s32.totalorder %s2404_s1, %s1866_s12 }
  0xe6   : > { %p1863_p3 = pnand %p1861_p8, %p1847_p1  ;;  %p1869_p12 = scmp.lt.s32.totalorder %s1867_s9, %s1860_s26 }
  0xe8   : > { %p1864_p5 = pneg %p1863_p3  ;;  %p1870_p13 = por %p1869_p12, %p1868_p7 }
  0xea   : > { %p1871_p0 = pnand %p1870_p13, %p1864_p5 }
  0xec   : > { %1874 = shalt.err (!%p1871_p0)
}
  0xed   : > { %s2077_s11 = smov 128   ;;  %s2078_s10 = smov 8  }
  0xee   : > { %1521 = dma.hbm_to_vmem [thread:$0]  (!%p2408_p10), %s2402_s14, 256, %s2404_s1, %s2412_s20, %s2077_s11, %s2077_s11, %s2078_s10  }
  0xef   : > { %p2708_p1 = scmp.ne.s32.totalorder %s2695_s24, 0 }
  0xf0   : > { %s2443_s15 = sand.u32 (!%p2708_p1), 1, %s2049_s18  }
  0xf1   : > { %465 = sbr.rel (%p2708_p1) target bundleno = 836 (0x344), region = 52  ;;  %s2446_s26 = sshll.u32 (!%p2708_p1), %s2443_s15, 4 }
  0xf2   : > { %s468_s29 = scalar_lea.sflag (!%p2708_p1), [#allocation3], %s2443_s15  ;;  %s471_s12 = scalar_lea.vmem (!%p2708_p1), [#allocation2], %s2446_s26 }
  0xf8   : > { %2012 = dma.done.wait (%p2376_p6), %s468_s29, 256  }
  0xf9   : > { %2014 = vsyncadd (%p2376_p6), %s468_s29, 4294967040  ;;  %p2709_p7 = scmp.eq.s32.totalorder %s2181_s23, 0 }
  0xfb   : > { %2016 = dma.done.wait (%p2709_p7), [#allocation6], 528   ;;  %p2710_p5 = pmov %p2709_p7 }
  0xfd   : > { %2018 = vsyncadd (%p2710_p5), [#allocation6], 4294966768  ;;  %p2711_p10 = pmov %p2710_p5 }
  0xfe   : > { %p2712_p11 = pmov %p2710_p5 }
  0xff   : > { %2020 = dma.done.wait (%p2711_p10), [#allocation9], 528  }
 0x100   : > { %2022 = vsyncadd (%p2712_p11), [#allocation9], 4294966768  ;;  %p2713_p2 = pmov %p2710_p5 }
 0x102   : > { %2024 = dma.done.wait (%p2713_p2), [#allocation12], 1024   ;;  %p2714_p4 = pmov %p2713_p2 }
 0x103   : > { %p2715_p6 = pmov %p2713_p2 }
 0x104   : > { %2026 = vsyncadd (%p2714_p4), [#allocation12], 4294966272 }
 0x105   : > { %2028 = dma.done.wait (%p2715_p6), [#allocation15], 16   ;;  %p2716_p9 = pmov %p2713_p2 }
 0x106   : > { %v2079_v0 = vmov 0.0   ;;  %vm2080_vm0 = vmmov 0   ;;  %v559_v1 = vld [vmem:[%s471_s12] sm:$0xff]  ;;  %v560_v2 = vld [vmem:[%s471_s12 + $0x8] sm:$0xff]  ;;  %s2081_s24 = smov 64   ;;  %vm601_vm1 = vcmask 523264  }
 0x107   : > { %2030 = vsyncadd (%p2716_p9), [#allocation15], 4294967280  ;;  %1410 = vmatprep.subr.bf16.mxu0 %v2079_v0  ;;  %1422 = vmatprep.subr.bf16.mxu1 %v2079_v0  ;;  %v561_v3 = vpack.c.bf16 %v560_v2, %v559_v1  ;;  %v1617_v4 = vld [vmem:[#allocation5] sm:$0xff]   ;;  %v1618_v5 = vld [vmem:[#allocation5 + $0x8] sm:$0xff]   ;;  %s2478_s28 = scalar_lea.vmem [#allocation17], %s2446_s26  ;;  %s2082_s14 = smov 65  }
 0x108   : > { %1418 = vmatprep.mubr.msk.bf16.mxu0 %vm2080_vm0, %v2079_v0  ;;  %1430 = vmatprep.mubr.msk.bf16.mxu1 %vm2080_vm0, %v2079_v0  ;;  %v1619_v6 = vld [vmem:[#allocation8] sm:$0xff]   ;;  %v1621_v7 = vld [vmem:[#allocation8 + $0x8] sm:$0xff]   ;;  %v1623_v9 = vld [vmem:[#allocation8 + $0x10] sm:$0xff]   ;;  %s2486_s1 = scalar_lea.vmem [#allocation19], %s2446_s26  ;;  %s2717_s16 = sld [smem:[#allocation30_spill]] }
 0x109   : > { %662 = vrot.lane.b32.xlu0 %v561_v3, %s2081_s24  ;;  %1411 = vmatpush3.bf16.msra.mxu0 %v1617_v4  ;;  %v1620_v8 = vld [vmem:[#allocation5 + $0x10] sm:$0xff]   ;;  %v1622_v10 = vld [vmem:[#allocation5 + $0x18] sm:$0xff]   ;;  %v1625_v12 = vld [vmem:[#allocation11] sm:$0xff]   ;;  %s2083_s20 = smov 66   ;;  %s1047_s9 = sshll.u32 %s2486_s1, 4  ;;  %s2507_s9 = int_to_ptr.vmem [resolvable:$true] %s1047_s9 }
 0x10a   : > { %1412 = vmatprep.subr.bf16.mxu0 %v2079_v0  ;;  %1423 = vmatpush3.bf16.msra.mxu1 %v1619_v6  ;;  %v1624_v11 = vld [vmem:[#allocation8 + $0x18] sm:$0xff]   ;;  %v1626_v14 = vld [vmem:[#allocation11 + $0x8] sm:$0xff]   ;;  %v1627_v15 = vld [vmem:[#allocation13] sm:$0xff]   ;;  %s985_s11 = sand.u32 1, %s2181_s23   ;;  %s1029_s0 = sshll.u32 %s2478_s28, 4  ;;  %s2509_s0 = int_to_ptr.vmem [resolvable:$true] %s1029_s0 }
 0x10b   : > { %1424 = vmatprep.subr.bf16.mxu1 %v2079_v0  ;;  %v1628_v16 = vld [vmem:[#allocation11 + $0x10] sm:$0xff]   ;;  %v1629_v17 = vld [vmem:[#allocation13 + $0x8] sm:$0xff]   ;;  %v1630_v18 = vld [vmem:[#allocation11 + $0x18] sm:$0xff]   ;;  %p2719_p3 = scmp.ne.s32.totalorder %s2704_s25, 0  ;;  %s2084_s23 = smov [#allocation17]  }
 0x10c   : > { %v1631_v19 = vld [vmem:[#allocation13 + $0x10] sm:$0xff]   ;;  %v1632_v20 = vld [vmem:[#allocation13 + $0x18] sm:$0xff]  }
 0x10d   : > { %1413 = vmatpush3.bf16.msra.mxu0 %v1618_v5  ;;  %v1348_v21 = vld [vmem:[#allocation7] ss:$0 sm:$0xff]  ;;  %v1354_v43 = vld [vmem:[#allocation10] ss:$0 sm:$0xff] }
 0x10e   : > { %1414 = vmatprep.subr.bf16.mxu0 %v2079_v0  ;;  %1425 = vmatpush3.bf16.msra.mxu1 %v1621_v7  ;;  %s2498_s10 = sshll.u32 %s2717_s16, 8  ;;  %s1879_s16 = sshll.u32 %s2084_s23, 4  ;;  %s1880_s16 = int_to_ptr.vmem [resolvable:$false] %s1879_s16 }
 0x10f   : > { %1426 = vmatprep.subr.bf16.mxu1 %v2079_v0  ;;  %p1882_p0 = scmp.lt.s32.totalorder %s2509_s0, %s1880_s16 }
 0x111   : > { %1415 = vmatpush3.bf16.msra.mxu0 %v1620_v8 }
 0x112   : > { %1416 = vmatprep.subr.bf16.mxu0 %v2079_v0  ;;  %1427 = vmatpush3.bf16.msra.mxu1 %v1623_v9 }
 0x113   : > { %1428 = vmatprep.subr.bf16.mxu1 %v2079_v0 }
 0x115   : > { %1417 = vmatpush3.bf16.msra.mxu0 %v1622_v10 }
 0x116   : > { %1434 = vmatprep.subr.bf16.mxu0 %v2079_v0  ;;  %1429 = vmatpush3.bf16.msra.mxu1 %v1624_v11 }
 0x117   : > { %1446 = vmatprep.subr.bf16.mxu1 %v2079_v0 }
 0x118   : > { %1419 = vmatmul.mubr.msk.bf16.vlgmr.msra.gmra.mrb[0].mxu0 %vm601_vm1, %v561_v3 }
 0x119   : > { %1442 = vmatprep.mubr.msk.bf16.mxu0 %vm2080_vm0, %v2079_v0  ;;  %1435 = vmatpush3.bf16.msra.mxu0 %v1627_v15 }
 0x11a   : > { %1436 = vmatprep.subr.bf16.mxu0 %v2079_v0 }
 0x11d   : > { %1437 = vmatpush3.bf16.msra.mxu0 %v1629_v17 }
 0x11e   : > { %1438 = vmatprep.subr.bf16.mxu0 %v2079_v0 }
 0x121   : > { %1439 = vmatpush3.bf16.msra.mxu0 %v1631_v19 }
 0x122   : > { %1440 = vmatprep.subr.bf16.mxu0 %v2079_v0 }
 0x125   : > { %1441 = vmatpush3.bf16.msra.mxu0 %v1632_v20 }
 0x17b   : > { %v663_v13 = vpop.permute.xlu0 %662 }
 0x17c   : > { %1431 = vmatmul.mubr.msk.bf16.vlgmr.msra.gmra.mrb[0].mxu1 %vm601_vm1, %v663_v13 }
 0x17d   : > { %1447 = vmatpush3.bf16.msra.mxu1 %v1625_v12  ;;  %1454 = vmatprep.mubr.msk.bf16.mxu1 %vm2080_vm0, %v2079_v0 }
 0x17e   : > { %1448 = vmatprep.subr.bf16.mxu1 %v2079_v0 }
 0x181   : > { %1449 = vmatpush3.bf16.msra.mxu1 %v1626_v14 }
 0x182   : > { %1450 = vmatprep.subr.bf16.mxu1 %v2079_v0 }
 0x185   : > { %1451 = vmatpush3.bf16.msra.mxu1 %v1628_v16 }
 0x186   : > { %1452 = vmatprep.subr.bf16.mxu1 %v2079_v0 }
 0x189   : > { %1453 = vmatpush3.bf16.msra.mxu1 %v1630_v18 }
 0x1eb   : > { %v639_v22 = vpop.f32.mrb[0].mxu0 }
 0x1ec   : > { %v640_v23 = vadd.f32 %v1348_v21, %v639_v22  ;;  %v1420_v24 = vpop.f32.mrb[1].mxu0 }
 0x1ed   : > { %v642_v25 = vpop.f32.mrb[2].mxu0 }
 0x1ee   : > { %vm732_vm2 = vcmp.ge.f32.partialorder %v640_v23, 0.0  ;;  %v734_v26 = vmul.f32 0.2, %v640_v23  ;;  %v744_v27 = vsub.f32 0.0, %v640_v23  ;;  %v643_v28 = vadd.f32 %v1348_v21, %v642_v25  ;;  %v1421_v29 = vpop.f32.mrb[3].mxu0 }
 0x1f0   : > { %v736_v30 = vsel %vm732_vm2, %v640_v23, %v734_v26  ;;  %v746_v31 = vmul.f32 1.442695, %v744_v27  ;;  %vm733_vm3 = vcmp.ge.f32.partialorder %v643_v28, 0.0  ;;  %v735_v32 = vmul.f32 0.2, %v643_v28 }
 0x1f1   : > { %943 = vst.msk [vmem:[%s2478_s28] sm:$0xff] %vm601_vm1, %v736_v30  ;;  %v745_v33 = vsub.f32 0.0, %v643_v28 }
 0x1f2   : > { %1633 = vpow2.f32 %v746_v31  ;;  %v737_v34 = vsel %vm733_vm3, %v643_v28, %v735_v32 }
 0x1f3   : > { %v748_v35 = vmul.f32 1.442695, %v745_v33  ;;  %v772_v36 = vpack.c.bf16 %v737_v34, %v736_v30  ;;  %944 = vst.msk [vmem:[%s2478_s28 + $0x8] sm:$0xff] %vm601_vm1, %v737_v34 }
 0x1f5   : > { %1635 = vpow2.f32 %v748_v35  ;;  %1455 = vmatmul.mubr.msk.bf16.vlgmr.msra.gmra.mrb[4].mxu1 %vm601_vm1, %v772_v36 }
 0x1fc   : > { %v1634_v37 = vpop.eup %1633 }
 0x1fd   : > { %v750_v38 = vadd.f32 1.0, %v1634_v37 }
 0x1ff   : > { %v1636_v39 = vpop.eup %1635  ;;  %1637 = vrcp.f32 %v750_v38 }
 0x200   : > { %v751_v40 = vadd.f32 1.0, %v1636_v39 }
 0x202   : > { %1639 = vrcp.f32 %v751_v40 }
 0x209   : > { %v1638_v41 = vpop.eup %1637 }
 0x20a   : > { %957 = vrot.lane.b32.xlu1 %v1638_v41, %s2082_s14 }
 0x20c   : > { %v1640_v42 = vpop.eup %1639 }
 0x20d   : > { %959 = vrot.lane.b32.xlu0 %v1640_v42, %s2082_s14  ;;  %s2718_s14 = sld [smem:[#allocation36_spill]] }
 0x213   : > { %s2504_s8 = scalar_lea.hbm %s2718_s14, %s2498_s10 }
 0x24f   : > { %v725_v44 = vpop.f32.mrb[0].mxu1 }
 0x250   : > { %v726_v45 = vadd.f32 %v1354_v43, %v725_v44  ;;  %v1432_v46 = vpop.f32.mrb[1].mxu1 }
 0x251   : > { %v728_v47 = vpop.f32.mrb[2].mxu1 }
 0x252   : > { %vm738_vm4 = vcmp.ge.f32.partialorder %v726_v45, 0.0  ;;  %v740_v48 = vmul.f32 0.2, %v726_v45  ;;  %v756_v49 = vsub.f32 0.0, %v726_v45  ;;  %v729_v50 = vadd.f32 %v1354_v43, %v728_v47  ;;  %v1433_v51 = vpop.f32.mrb[3].mxu1 }
 0x254   : > { %v742_v52 = vsel %vm738_vm4, %v726_v45, %v740_v48  ;;  %v758_v53 = vmul.f32 1.442695, %v756_v49  ;;  %vm739_vm5 = vcmp.ge.f32.partialorder %v729_v50, 0.0  ;;  %v741_v54 = vmul.f32 0.2, %v729_v50 }
 0x255   : > { %945 = vst.msk [vmem:[%s2486_s1] sm:$0xff] %vm601_vm1, %v742_v52  ;;  %v757_v55 = vsub.f32 0.0, %v729_v50 }
 0x256   : > { %1641 = vpow2.f32 %v758_v53  ;;  %v743_v56 = vsel %vm739_vm5, %v729_v50, %v741_v54 }
 0x257   : > { %v760_v57 = vmul.f32 1.442695, %v757_v55  ;;  %v781_v58 = vpack.c.bf16 %v743_v56, %v742_v52  ;;  %946 = vst.msk [vmem:[%s2486_s1 + $0x8] sm:$0xff] %vm601_vm1, %v743_v56  ;;  %s1875_s1 = scalar_lea.vmem %s2509_s0, 256 }
 0x258   : > { %p1876_p8 = scmp.ne.s32.totalorder %s2509_s0, %s1875_s1 }
 0x259   : > { %1643 = vpow2.f32 %v760_v57  ;;  %1443 = vmatmul.mubr.msk.bf16.vlgmr.msra.gmra.mrb[4].mxu0 %vm601_vm1, %v781_v58 }
 0x25a   : > { %p1877_p12 = pnand %p1876_p8, %p2719_p3 }
 0x25c   : > { %p1878_p13 = pneg %p1877_p12 }
 0x260   : > { %v1642_v59 = vpop.eup %1641 }
 0x261   : > { %v762_v60 = vadd.f32 1.0, %v1642_v59 }
 0x263   : > { %v1644_v61 = vpop.eup %1643  ;;  %1645 = vrcp.f32 %v762_v60 }
 0x264   : > { %v763_v62 = vadd.f32 1.0, %v1644_v61 }
 0x266   : > { %1647 = vrcp.f32 %v763_v62 }
 0x26d   : > { %v1646_v63 = vpop.eup %1645 }
 0x26e   : > { %949 = vrot.lane.b32.xlu0 %v1646_v63, %s2081_s24  ;;  %v768_v0 = vadd.f32 %v1646_v63, %v1638_v41 }
 0x270   : > { %v1648_v1 = vpop.eup %1647  ;;  %v770_v3 = vmul.f32 0.5, %v768_v0 }
 0x271   : > { %951 = vrot.lane.b32.xlu1 %v1648_v1, %s2081_s24  ;;  %v769_v2 = vadd.f32 %v1648_v1, %v1640_v42  ;;  %s2511_s24 = scalar_lea.sflag [#allocation18], %s985_s11 }
 0x273   : > { %v771_v4 = vmul.f32 0.5, %v769_v2 }
 0x275   : > { %965 = vrot.lane.b32.xlu1 %v770_v3, %s2083_s20  ;;  %967 = vrot.lane.b32.xlu0 %v771_v4, %s2083_s20  ;;  %s1881_s20 = scalar_lea.vmem %s1880_s16, 512 }
 0x276   : > { %p1883_p1 = scmp.lt.s32.totalorder %s1881_s20, %s1875_s1 }
 0x278   : > { %p1884_p7 = por %p1883_p1, %p1882_p0 }
 0x27a   : > { %p1885_p5 = pnand %p1884_p7, %p1878_p13 }
 0x27c   : > { %1888 = shalt.err (!%p1885_p5)
}
 0x27d   : > { %s1889_s28 = scalar_lea.hbm %s2504_s8, 256  ;;  %s1893_s12 = scalar_lea.hbm %s2718_s14, 512 }
 0x27e   : > { %p1890_p10 = scmp.ne.s32.totalorder %s2504_s8, %s1889_s28  ;;  %p1894_p4 = scmp.lt.u32.totalorder %s2504_s8, %s2718_s14 }
 0x27f   : > { %p1895_p6 = scmp.lt.u32.totalorder %s1893_s12, %s1889_s28  ;;  %p1897_p8 = scmp.lt.u32.totalorder %s1889_s28, %s2504_s8 }
 0x280   : > { %p1891_p11 = pnand %p1890_p10, %p2719_p3 }
 0x281   : > { %p1896_p9 = por %p1895_p6, %p1894_p4 }
 0x282   : > { %p1892_p2 = pneg %p1891_p11 }
 0x283   : > { %p1898_p12 = por %p1897_p8, %p1896_p9 }
 0x285   : > { %p1899_p13 = pnand %p1898_p12, %p1892_p2 }
 0x287   : > { %1902 = shalt.err (!%p1899_p13)
}
 0x288   : > { %s2085_s1 = smov 128   ;;  %s2086_s20 = smov 8  }
 0x289   : > { %1489 = dma.vmem_to_hbm [thread:$0]  (%p2719_p3), %s2509_s0, 256, %s2504_s8, %s2511_s24, %s2085_s1, %s2085_s1, %s2086_s20  }
 0x28a   : > { %s2720_s29 = sld [smem:[#allocation37_spill]]  ;;  %s1903_s23 = scalar_lea.vmem %s2507_s9, 256 }
 0x28b   : > { %p1904_p0 = scmp.ne.s32.totalorder %s2507_s9, %s1903_s23  ;;  %s2087_s16 = smov [#allocation19]  }
 0x28c   : > { %s1907_s2 = sshll.u32 %s2087_s16, 4  ;;  %s1908_s2 = int_to_ptr.vmem [resolvable:$false] %s1907_s2 }
 0x28d   : > { %p1905_p1 = pnand %p1904_p0, %p2719_p3  ;;  %s1909_s3 = scalar_lea.vmem %s1908_s2, 512 }
 0x28e   : > { %p1910_p5 = scmp.lt.s32.totalorder %s2507_s9, %s1908_s2  ;;  %p1911_p10 = scmp.lt.s32.totalorder %s1909_s3, %s1903_s23 }
 0x28f   : > { %p1906_p7 = pneg %p1905_p1 }
 0x290   : > { %s2542_s12 = scalar_lea.hbm %s2720_s29, %s2498_s10  ;;  %p1912_p11 = por %p1911_p10, %p1910_p5 }
 0x292   : > { %p1913_p2 = pnand %p1912_p11, %p1906_p7 }
 0x294   : > { %1916 = shalt.err (!%p1913_p2)
}
 0x295   : > { %s1917_s0 = scalar_lea.hbm %s2542_s12, 256  ;;  %s1921_s11 = scalar_lea.hbm %s2720_s29, 512 }
 0x296   : > { %p1918_p4 = scmp.ne.s32.totalorder %s2542_s12, %s1917_s0  ;;  %p1922_p8 = scmp.lt.u32.totalorder %s2542_s12, %s2720_s29 }
 0x297   : > { %p1923_p12 = scmp.lt.u32.totalorder %s1921_s11, %s1917_s0  ;;  %p1925_p0 = scmp.lt.u32.totalorder %s1917_s0, %s2542_s12 }
 0x298   : > { %p1919_p6 = pnand %p1918_p4, %p2719_p3 }
 0x299   : > { %p1924_p13 = por %p1923_p12, %p1922_p8 }
 0x29a   : > { %p1920_p9 = pneg %p1919_p6 }
 0x29b   : > { %p1926_p1 = por %p1925_p0, %p1924_p13 }
 0x29d   : > { %p1927_p7 = pnand %p1926_p1, %p1920_p9 }
 0x29f   : > { %1930 = shalt.err (!%p1927_p7)
}
 0x2a0   : > { %1490 = dma.vmem_to_hbm [thread:$0]  (%p2719_p3), %s2507_s9, 256, %s2542_s12, %s2511_s24, %s2085_s1, %s2085_s1, %s2086_s20   ;;  %v960_v9 = vpop.permute.xlu0 %959  ;;  %v958_v10 = vpop.permute.xlu1 %957  ;;  %vm971_vm6 = vcmask 7168   ;;  %vm974_vm7 = vcmask 15360   ;;  %vm977_vm8 = vcmask 23552  }
 0x2a1   : > { %s552_s3 = scalar_lea.vmem [#allocation20], %s2446_s26  ;;  %s2721_s12 = sld [smem:[#allocation38_spill]] }
 0x2a2   : > { %s1065_s23 = sshll.u32 %s552_s3, 4  ;;  %s2088_s11 = smov [#allocation20]   ;;  %s2570_s23 = int_to_ptr.vmem [resolvable:$true] %s1065_s23 }
 0x2a3   : > { %s1931_s28 = scalar_lea.vmem %s2570_s23, 256  ;;  %s1935_s16 = sshll.u32 %s2088_s11, 4  ;;  %s1936_s16 = int_to_ptr.vmem [resolvable:$false] %s1935_s16 }
 0x2a4   : > { %p1932_p5 = scmp.ne.s32.totalorder %s2570_s23, %s1931_s28  ;;  %s1937_s2 = scalar_lea.vmem %s1936_s16, 512 }
 0x2a5   : > { %p1938_p2 = scmp.lt.s32.totalorder %s2570_s23, %s1936_s16  ;;  %p1939_p4 = scmp.lt.s32.totalorder %s1937_s2, %s1931_s28 }
 0x2a6   : > { %p1933_p10 = pnand %p1932_p5, %p2719_p3 }
 0x2a7   : > { %s2576_s0 = scalar_lea.hbm %s2721_s12, %s2498_s10  ;;  %p1940_p6 = por %p1939_p4, %p1938_p2 }
 0x2a8   : > { %p1934_p11 = pneg %p1933_p10 }
 0x2aa   : > { %p1941_p9 = pnand %p1940_p6, %p1934_p11 }
 0x2c8   : > { %v919_v5 = vpop.f32.mrb[4].mxu1 }
 0x2c9   : > { %v1456_v6 = vpop.f32.mrb[5].mxu1 }
 0x2ca   : > { %v922_v7 = vpop.f32.mrb[6].mxu1 }
 0x2cb   : > { %v1457_v8 = vpop.f32.mrb[7].mxu1 }
 0x2e0   : > { %v950_v11 = vpop.permute.xlu0 %949 }
 0x2e1   : > { %v972_v13 = vsel %vm971_vm6, %v950_v11, %v958_v10 }
 0x2e3   : > { %v952_v12 = vpop.permute.xlu1 %951 }
 0x2e4   : > { %v973_v14 = vsel %vm971_vm6, %v952_v12, %v960_v9 }
 0x2e7   : > { %v966_v15 = vpop.permute.xlu1 %965  ;;  %v968_v16 = vpop.permute.xlu0 %967 }
 0x2e8   : > { %v975_v17 = vsel %vm974_vm7, %v972_v13, %v966_v15  ;;  %v976_v18 = vsel %vm974_vm7, %v973_v14, %v968_v16 }
 0x2e9   : > { %978 = vst.msk [vmem:[%s552_s3] sm:$0xff] %vm977_vm8, %v975_v17  ;;  %979 = vst.msk [vmem:[%s552_s3 + $0x8] sm:$0xff] %vm977_vm8, %v976_v18 }
 0x2ea   : > { %1944 = shalt.err (!%p1941_p9)
}
 0x2eb   : > { %s1945_s3 = scalar_lea.hbm %s2576_s0, 256  ;;  %s1949_s11 = scalar_lea.hbm %s2721_s12, 512 }
 0x2ec   : > { %p1946_p8 = scmp.ne.s32.totalorder %s2576_s0, %s1945_s3  ;;  %p1950_p0 = scmp.lt.u32.totalorder %s2576_s0, %s2721_s12 }
 0x2ed   : > { %p1951_p1 = scmp.lt.u32.totalorder %s1949_s11, %s1945_s3  ;;  %p1953_p5 = scmp.lt.u32.totalorder %s1945_s3, %s2576_s0 }
 0x2ee   : > { %p1947_p12 = pnand %p1946_p8, %p2719_p3 }
 0x2ef   : > { %p1952_p7 = por %p1951_p1, %p1950_p0 }
 0x2f0   : > { %p1948_p13 = pneg %p1947_p12 }
 0x2f1   : > { %p1954_p10 = por %p1953_p5, %p1952_p7 }
 0x2f3   : > { %p1955_p11 = pnand %p1954_p10, %p1948_p13 }
 0x2f5   : > { %1958 = shalt.err (!%p1955_p11)
}
 0x2f6   : > { %s2722_s28 = scalar_lea.sflag [#allocation21], %s2443_s15  ;;  %v1370_v20 = vld [vmem:[#allocation14] ss:$0 sm:$0xff]  ;;  %s531_s8 = scalar_lea.vmem [#allocation16], %s2446_s26 }
 0x2f7   : > { %1491 = dma.vmem_to_hbm [thread:$0]  (%p2719_p3), %s2570_s23, 256, %s2576_s0, %s2722_s28, %s2085_s1, %s2085_s1, %s2086_s20  }
 0x2f8   : > { %s1011_s2 = sshll.u32 %s531_s8, 4  ;;  %s2723_s3 = sld [smem:[#allocation35_spill]]  ;;  %s2606_s2 = int_to_ptr.vmem [resolvable:$true] %s1011_s2 }
 0x2f9   : > { %s981_s26 = scalar_lea.sflag [#allocation4], %s2443_s15  ;;  %s1959_s24 = scalar_lea.vmem %s2606_s2, 256 }
 0x2fa   : > { %p1960_p2 = scmp.ne.s32.totalorder %s2606_s2, %s1959_s24  ;;  %s2089_s11 = smov [#allocation16]  }
 0x2fb   : > { %s1963_s16 = sshll.u32 %s2089_s11, 4  ;;  %s1964_s16 = int_to_ptr.vmem [resolvable:$false] %s1963_s16 }
 0x2fc   : > { %p1961_p4 = pnand %p1960_p2, %p2719_p3  ;;  %s1965_s28 = scalar_lea.vmem %s1964_s16, 512 }
 0x2fd   : > { %p1966_p9 = scmp.lt.s32.totalorder %s2606_s2, %s1964_s16  ;;  %p1967_p8 = scmp.lt.s32.totalorder %s1965_s28, %s1959_s24 }
 0x2fe   : > { %s2612_s9 = scalar_lea.hbm %s2723_s3, %s2498_s10  ;;  %p1962_p6 = pneg %p1961_p4 }
 0x2ff   : > { %p1968_p12 = por %p1967_p8, %p1966_p9 }
 0x301   : > { %p1969_p13 = pnand %p1968_p12, %p1962_p6 }
 0x32c   : > { %v851_v19 = vpop.f32.mrb[4].mxu0 }
 0x32d   : > { %v920_v21 = vadd.f32 %v919_v5, %v851_v19  ;;  %v1444_v22 = vpop.f32.mrb[5].mxu0 }
 0x32e   : > { %v854_v23 = vpop.f32.mrb[6].mxu0 }
 0x32f   : > { %v933_v24 = vadd.f32 %v1370_v20, %v920_v21  ;;  %v923_v25 = vadd.f32 %v922_v7, %v854_v23  ;;  %v1445_v26 = vpop.f32.mrb[7].mxu0 }
 0x331   : > { %vm935_vm9 = vcmp.ge.f32.partialorder %v933_v24, 0.0  ;;  %v937_v27 = vmul.f32 0.2, %v933_v24  ;;  %v934_v28 = vadd.f32 %v1370_v20, %v923_v25 }
 0x333   : > { %v939_v29 = vsel %vm935_vm9, %v933_v24, %v937_v27  ;;  %vm936_vm10 = vcmp.ge.f32.partialorder %v934_v28, 0.0  ;;  %v938_v30 = vmul.f32 0.2, %v934_v28 }
 0x334   : > { %941 = vst [vmem:[%s531_s8] sm:$0xff] %v939_v29 }
 0x335   : > { %v940_v31 = vsel %vm936_vm10, %v934_v28, %v938_v30 }
 0x336   : > { %942 = vst [vmem:[%s531_s8 + $0x8] sm:$0xff] %v940_v31 }
 0x337   : > { %1972 = shalt.err (!%p1969_p13)
}
 0x338   : > { %s1973_s10 = scalar_lea.hbm %s2612_s9, 256  ;;  %s1977_s0 = scalar_lea.hbm %s2723_s3, 512 }
 0x339   : > { %p1974_p0 = scmp.ne.s32.totalorder %s2612_s9, %s1973_s10  ;;  %p1978_p5 = scmp.lt.u32.totalorder %s2612_s9, %s2723_s3 }
 0x33a   : > { %p1979_p10 = scmp.lt.u32.totalorder %s1977_s0, %s1973_s10  ;;  %p1981_p2 = scmp.lt.u32.totalorder %s1973_s10, %s2612_s9 }
 0x33b   : > { %p1975_p1 = pnand %p1974_p0, %p2719_p3 }
 0x33c   : > { %p1980_p11 = por %p1979_p10, %p1978_p5 }
 0x33d   : > { %p1976_p7 = pneg %p1975_p1 }
 0x33e   : > { %p1982_p4 = por %p1981_p2, %p1980_p11 }
 0x340   : > { %p1983_p6 = pnand %p1982_p4, %p1976_p7 }
 0x342   : > { %1986 = shalt.err (!%p1983_p6)
}
 0x343   : > { %1488 = dma.vmem_to_hbm [thread:$0]  (%p2719_p3), %s2606_s2, 256, %s2612_s9, %s981_s26, %s2085_s1, %s2085_s1, %s2086_s20  }
 0x344 PF: > { %s1080_s24 = sand.u32 1, %s2045_s17   ;;  %p2724_p9 = scmp.ne.s32.totalorder %s2705_s13, 0 }
 0x345   : > { %p2725_p8 = scmp.ge.s32.totalorder %s2065_s22, 2  ;;  %s1081_s28 = scalar_lea.sflag [#allocation4], %s1080_s24 }
 0x347   : > { %p1523_p12 = pnand %p2725_p8, %p2724_p9 }
 0x349   : > { %2032 = dma.done.wait (!%p1523_p12), %s1081_s28, 256  }
 0x34a   : > { %2034 = vsyncadd (!%p1523_p12), %s1081_s28, 4294967040  ;;  %s2726_s25 = sadd.s32 4294967294, %s2065_s22  }
 0x34b   : > { %s1089_s10 = sand.u32 1, %s2726_s25  }
 0x34c   : > { %s1090_s8 = scalar_lea.sflag [#allocation18], %s1089_s10 }
 0x34d   : > { %2036 = dma.done.wait (!%p1523_p12), %s1090_s8, 512  }
 0x34e   : > { %2038 = vsyncadd (!%p1523_p12), %s1090_s8, 4294966784  ;;  %s1108_s15 = scalar_lea.sflag [#allocation21], %s1080_s24 }
 0x34f   : > { %2040 = dma.done.wait (!%p1523_p12), %s1108_s15, 256  }
 0x350   : > { %2042 = vsyncadd (!%p1523_p12), %s1108_s15, 4294967040  ;;  %s38_s22 = sadd.s32 1, %s2065_s22   ;;  %s2727_s17 = smov %s2049_s18 }
 0x351   : > { %p35_p3 = scmp.ge.s32.totalorder %s38_s22, 4   ;;  %s2728_s18 = smov %s2053_s19 }
 0x352   : > { %s2729_s19 = smov %s2391_s30  ;;  %s2730_s20 = smov %s2061_s21 }
 0x353   : > { %s2731_s21 = smov %s2733_s27  ;;  %37 = sbr.rel (!%p35_p3) target bundleno = 23 (0x17), region = 174 }
 0x35a   :  { %1113 = vsyncpa [#allocation3], 1 }
 0x35b   :  { %1115 = vsyncpa [#allocation3 + $0x1], 1 }
 0x35c   :  { %1116 = vsyncpa [#allocation6], 1 }
 0x35d   :  { %1117 = vsyncpa [#allocation9], 1 }
 0x35e   :  { %1118 = vsyncpa [#allocation12], 1 }
 0x35f   :  { %1119 = vsyncpa [#allocation15], 1 }
 0x360   :  { %1120 = vsyncpa [#allocation4], 1 }
 0x361   :  { %1122 = vsyncpa [#allocation4 + $0x1], 1 }
 0x362   :  { %1123 = vsyncpa [#allocation18], 1 }
 0x363   :  { %1125 = vsyncpa [#allocation18 + $0x1], 1 }
 0x364   :  { %1126 = vsyncpa [#allocation21], 1 }
 0x365   :  { %1128 = vsyncpa [#allocation21 + $0x1], 1 }

// kernel: custom-call.8
= control target key start
LH: loop header
LB: loop body
LE: loop exit
PB: predicated region body
PF: predicated region fallthrough
CT: control target
= control target key end

     0   :  { %5 = vsyncpa [#allocation1], 0  ;;  %s1023_s0 = inlined_call_operand.hbm [shape: f32[2,16,16], index: 0, kind: input, shape index: {}]   ;;  %s1024_s1 = inlined_call_operand.vmem [shape: f32[2,16,16], index: 1, kind: output, shape index: {0}]   ;;  %s1025_s2 = inlined_call_operand.hbm [shape: s32[2,16], index: 2, kind: output, shape index: {1}]   ;;  %s1026_s3 = inlined_call_operand.vmem [shape: s32[2,16], index: 3, kind: output, shape index: {2}]  }
   0x1   :  { %7 = vsyncpa [#allocation1 + $0x1], 0 }
   0x2   :  { %8 = vsyncpa [#allocation2], 0 }
   0x3   :  { %10 = vsyncpa [#allocation2 + $0x1], 0  ;;  %s787_s12 = smov 0   ;;  %s789_s13 = smov 0  }
   0x4   :  { %s791_s14 = smov 0   ;;  %s793_s15 = smov 0  }
   0x5 LB: > { %s808_s16 = sadd.s32 4294967295, %s754_s15   ;;  %s563_s17 = sadd.s32 4294967294, %s754_s15   ;;  %s754_s15 = sphi %s793_s15, %s1038_s15   ;;  %s750_s14 = sphi %s791_s14, %s1037_s14   ;;  %s746_s13 = sphi %s789_s13, %s1036_s13   ;;  %s742_s12 = sphi %s787_s12, %s1035_s12  }
   0x6   : > { %s812_s18 = sadd.s32 1, %s754_s15   ;;  %s20_s19 = sshrl.u32 %s754_s15, 3 }
   0x7   : > { %s21_s20 = sshrl.u32 %s812_s18, 3  ;;  %s25_s21 = sadd.s32 1, %s750_s14 }
   0x8   : > { %s22_s22 = ssub.s32 %s20_s19, %s21_s20  ;;  %p35_p0 = scmp.ne.s32.totalorder %s750_s14, %s746_s13 }
   0x9   : > { %p23_p1 = scmp.eq.s32.totalorder %s22_s22, 0  ;;  %p36_p2 = scmp.eq.s32.totalorder %s808_s16, 1 }
   0xa   : > { %p41_p3 = scmp.ne.s32.totalorder %s746_s13, %s742_s12  ;;  %p42_p4 = scmp.eq.s32.totalorder %s563_s17, 1 }
   0xb   : > { %s823_s23 = scalar_select %p23_p1, %s750_s14, %s25_s21  }
   0xc   : > { %p825_p5 = por %p36_p2, %p35_p0  ;;  %p829_p6 = por %p42_p4, %p41_p3 }
   0xd   : > { %p599_p8 = scmp.lt.s32.totalorder %s754_s15, 2  ;;  %s87_s26 = sand.u32 1, %s754_s15  }
   0xe   : > { %s1028_s25 = scalar_select %p829_p6, 1, 0 }
   0xf   : > { %s567_s27 = sshll.u32 %s754_s15, 8  ;;  %s566_s28 = sshll.u32 %s87_s26, 4 }
  0x10   : > { %s840_s4 = scalar_lea.hbm %s1023_s0, %s567_s27  ;;  %s91_s5 = scalar_lea.vmem [#allocation0], %s566_s28 }
  0x11   : > { %s98_s6 = sshll.u32 %s91_s5, 4  ;;  %s88_s7 = scalar_lea.sflag [#allocation1], %s87_s26  ;;  %s843_s6 = int_to_ptr.vmem [resolvable:$true] %s98_s6 }
  0x12   : > { %s654_s8 = scalar_lea.hbm %s840_s4, 256  ;;  %s658_s11 = scalar_lea.hbm %s1023_s0, 512 }
  0x13   : > { %p655_p11 = scmp.ne.s32.totalorder %s840_s4, %s654_s8  ;;  %p659_p0 = scmp.lt.u32.totalorder %s840_s4, %s1023_s0 }
  0x14   : > { %p660_p1 = scmp.lt.u32.totalorder %s658_s11, %s654_s8  ;;  %p662_p3 = scmp.lt.u32.totalorder %s654_s8, %s840_s4 }
  0x15   : > { %p656_p12 = pnand %p655_p11, %p599_p8 }
  0x16   : > { %p661_p2 = por %p660_p1, %p659_p0 }
  0x17   : > { %p657_p13 = pneg %p656_p12 }
  0x18   : > { %p663_p4 = por %p662_p3, %p661_p2 }
  0x1a   : > { %p664_p7 = pnand %p663_p4, %p657_p13 }
  0x1c   : > { %667 = shalt.err (!%p664_p7)
}
  0x1d   : > { %s668_s20 = scalar_lea.vmem %s843_s6, 256  ;;  %s764_s21 = smov [#allocation0]  }
  0x1e   : > { %p669_p11 = scmp.ne.s32.totalorder %s843_s6, %s668_s20  ;;  %s672_s22 = sshll.u32 %s764_s21, 4  ;;  %s673_s22 = int_to_ptr.vmem [resolvable:$false] %s672_s22 }
  0x1f   : > { %s674_s26 = scalar_lea.vmem %s673_s22, 512  ;;  %p675_p10 = scmp.lt.s32.totalorder %s843_s6, %s673_s22 }
  0x20   : > { %p670_p12 = pnand %p669_p11, %p599_p8  ;;  %p676_p6 = scmp.lt.s32.totalorder %s674_s26, %s668_s20 }
  0x22   : > { %p671_p9 = pneg %p670_p12  ;;  %p677_p0 = por %p676_p6, %p675_p10 }
  0x24   : > { %p678_p1 = pnand %p677_p0, %p671_p9 }
  0x26   : > { %681 = shalt.err (!%p678_p1)
}
  0x27   : > { %592 = dma.hbm_to_vmem [thread:$0]  (%p599_p8), %s840_s4, 256, %s843_s6, %s88_s7  }
  0x28   : > { %p1029_p7 = scmp.lt.s32.totalorder %s754_s15, 3  ;;  %p1030_p13 = scmp.ge.s32.totalorder %s754_s15, 1 }
  0x2a   : > { %p104_p2 = pnand %p1030_p13, %p1029_p7 }
  0x2c   : > { %107 = sbr.rel (%p104_p2) target bundleno = 473 (0x1d9), region = 20 }
  0x33   : > { %s109_s27 = sand.u32 1, %s808_s16  }
  0x34   : > { %s569_s28 = sshll.u32 %s109_s27, 4  ;;  %s110_s29 = scalar_lea.sflag [#allocation1], %s109_s27 }
  0x35   : > { %s113_s30 = scalar_lea.vmem [#allocation0], %s569_s28 }
  0x36   : > { %734 = dma.done.wait %s110_s29, 256  }
  0x37   : > { %735 = vsyncadd %s110_s29, 4294967040  ;;  %s145_s5 = sand.u32 7, %s808_s16   ;;  %v150_v0 = vlaneseq  ;;  %v765_v1 = vmov 0   ;;  %s128_s4 = sand.u32 1, %s746_s13   ;;  %v139_v3 = vld [vmem:[%s113_s30] sm:$0xff]  ;;  %v573_v4 = vld [vmem:[%s113_s30 + $0x8] sm:$0xff] }
  0x38   : > { %s873_s8 = scalar_lea.vmem [#allocation4], %s145_s5  ;;  %s882_s6 = sshll.u32 %s128_s4, 1 }
  0x39   : > { %149 = vst [vmem:[%s873_s8] sm:$0x1] %v765_v1  ;;  %v878_v2 = vshrl.u32 %v150_v0, 7  ;;  %s884_s7 = scalar_lea.vmem [#allocation3], %s569_s28  ;;  %s130_s9 = scalar_lea.vmem [#allocation5], %s882_s6 }
  0x3a   : > { %140 = vst [vmem:[%s884_s7] sm:$0xff] %v139_v3  ;;  %574 = vst [vmem:[%s884_s7 + $0x8] sm:$0xff] %v573_v4  ;;  %s136_s10 = scalar_lea.vmem [#allocation7], %s882_s6  ;;  %s890_s11 = scalar_lea.vmem [#allocation6], %s145_s5 }
  0x3b   : > { %s756_s17 = smov 0  }
  0x3c LB: >> { %s575_s19 = sshll.u32 %s758_s17, 3  ;;  %s158_s17 = sadd.s32 1, %s758_s17   ;;  %s758_s17 = sphi %s756_s17, %s158_s17  }
  0x3d   : >> { %v162_v5 = vstv %s575_s19  ;;  %s160_s20 = scalar_lea.vmem [#allocation8], %s575_s19  ;;  %p155_p6 = scmp.ge.s32.totalorder %s158_s17, 2  }
  0x3e   : >> { %v163_v6 = vadd.s32 %v162_v5, %v878_v2  ;;  %s893_s21 = smov (%p155_p6), 0  }
  0x3f   : > { %157 = sbr.rel (!%p155_p6) target bundleno = 60 (0x3c), region = 173 }
  0x40   : >> { %164 = vst [vmem:[%s160_s20] sm:$0xff] %v163_v6 }
  0x46 LB: >> { %v175_v7 = vld [vmem:[%s884_s7] sm:$0xff]  ;;  %v578_v8 = vld [vmem:[%s884_s7 + $0x8] sm:$0xff]  ;;  %v901_v9 = vadd.s32 8, %v878_v2  ;;  %v904_v11 = vstv %s762_s21  ;;  %s233_s22 = ssub.s32 128, %s762_s21  ;;  %v239_v44 = vand.u32 127, %v150_v0  ;;  %s245_s26 = scalar_lea.vmem %s884_s7, %s762_s21 [#allocation3]  ;;  %s762_s21 = sphi %s893_s21, %s170_s21  }
  0x47   : >> { %v176_v10 = vand.u32 2147483647, %v175_v7  ;;  %v188_v12 = vand.u32 2147483647, %v578_v8  ;;  %vm179_vm0 = vcmp.ge.s32.totalorder %v878_v2, %v904_v11  ;;  %v242_v47 = vld [vmem:[%s873_s8] ss:$0 sm:$0xff] }
  0x48   : >> { %vm191_vm3 = vcmp.ge.s32.totalorder %v901_v9, %v904_v11  ;;  %vm263_vm13 = vcmp.gt.s32.totalorder %v239_v44, %v904_v11  ;;  %vm286_vm14 = vcmp.gt.s32.totalorder %v901_v9, %v904_v11  ;;  %vm240_vm15 = vcmp.eq.s32.totalorder %v239_v44, %v904_v11  ;;  %v247_v48 = vld [vmem:[%s245_s26] ss:$0 sm:$0xff]  ;;  %s251_s28 = scalar_lea.vmem [#allocation8], %s762_s21  ;;  %s170_s21 = sadd.s32 1, %s762_s21  }
  0x49   : >> { %vm577_vm1 = vcmp.gt.f32.partialorder %v176_v10, -inf  ;;  %v253_v49 = vld [vmem:[%s251_s28] ss:$0 sm:$0xff]  ;;  %p167_p8 = scmp.ge.s32.totalorder %s170_s21, 16  }
  0x4a   : >> { %vm183_vm2 = vmand %vm179_vm0, %vm577_vm1  ;;  %s396_s5 = sshrl.u32 (%p167_p8), %s808_s16, 3  ;;  %s584_s17 = sshll.u32 (%p167_p8), %s808_s16, 4 }
  0x4b   : >> { %v184_v13 = vsel %vm183_vm2, %v878_v2, %v904_v11  ;;  %v185_v14 = vsel %vm183_vm2, %v176_v10, -inf  ;;  %vm924_vm0 = vmand %vm286_vm14, %vm240_vm15  ;;  %vm271_vm2 = vcmp.gt.s32.totalorder %v878_v2, %v904_v11  ;;  %s585_s19 = sshll.u32 (%p167_p8), %s396_s5, 5  ;;  %s373_s21 = scalar_lea.vmem (%p167_p8), %s1024_s1, %s584_s17 }
  0x4c   : >> { %vm194_vm4 = vcmp.lt.f32.partialorder %v185_v14, %v188_v12  ;;  %s766_s17 = smov (%p167_p8), [#allocation5]  }
  0x4d   : >> { %vm195_vm5 = vmand %vm191_vm3, %vm194_vm4 }
  0x4e   : >> { %v196_v15 = vsel %vm195_vm5, %v901_v9, %v184_v13  ;;  %v197_v16 = vsel %vm195_vm5, %v188_v12, %v185_v14  ;;  %vm275_vm4 = vmand %vm271_vm2, %vm240_vm15 }
  0x4f   : >> { %v198_v17 = vrot.slane %v197_v16, 1  ;;  %v199_v18 = vrot.slane %v196_v15, 1 }
  0x51   : >> { %vm200_vm6 = vcmp.ge.f32.partialorder %v198_v17, %v197_v16  ;;  %v203_v19 = vrot.slane %v198_v17, 1  ;;  %v204_v20 = vrot.slane %v199_v18, 1 }
  0x52   : >> { %v201_v21 = vsel %vm200_vm6, %v198_v17, %v197_v16  ;;  %v202_v22 = vsel %vm200_vm6, %v199_v18, %v196_v15 }
  0x53   : >> { %vm205_vm7 = vcmp.ge.f32.partialorder %v203_v19, %v201_v21  ;;  %v208_v23 = vrot.slane %v203_v19, 1  ;;  %v209_v24 = vrot.slane %v204_v20, 1 }
  0x54   : >> { %v206_v25 = vsel %vm205_vm7, %v203_v19, %v201_v21  ;;  %v207_v26 = vsel %vm205_vm7, %v204_v20, %v202_v22 }
  0x55   : >> { %vm210_vm8 = vcmp.ge.f32.partialorder %v208_v23, %v206_v25  ;;  %v213_v27 = vrot.slane %v208_v23, 1  ;;  %v214_v28 = vrot.slane %v209_v24, 1 }
  0x56   : >> { %v211_v29 = vsel %vm210_vm8, %v208_v23, %v206_v25  ;;  %v212_v30 = vsel %vm210_vm8, %v209_v24, %v207_v26 }
  0x57   : >> { %vm215_vm9 = vcmp.ge.f32.partialorder %v213_v27, %v211_v29  ;;  %v218_v31 = vrot.slane %v213_v27, 1  ;;  %v219_v32 = vrot.slane %v214_v28, 1 }
  0x58   : >> { %v216_v33 = vsel %vm215_vm9, %v213_v27, %v211_v29  ;;  %v217_v34 = vsel %vm215_vm9, %v214_v28, %v212_v30 }
  0x59   : >> { %vm220_vm10 = vcmp.ge.f32.partialorder %v218_v31, %v216_v33  ;;  %v223_v35 = vrot.slane %v218_v31, 1  ;;  %v224_v36 = vrot.slane %v219_v32, 1 }
  0x5a   : >> { %v221_v37 = vsel %vm220_vm10, %v218_v31, %v216_v33  ;;  %v222_v38 = vsel %vm220_vm10, %v219_v32, %v217_v34 }
  0x5b   : >> { %vm225_vm11 = vcmp.ge.f32.partialorder %v223_v35, %v221_v37  ;;  %v228_v39 = vrot.slane %v223_v35, 1  ;;  %v229_v40 = vrot.slane %v224_v36, 1 }
  0x5c   : >> { %v226_v41 = vsel %vm225_vm11, %v223_v35, %v221_v37  ;;  %v227_v42 = vsel %vm225_vm11, %v224_v36, %v222_v38 }
  0x5d   : >> { %vm230_vm12 = vcmp.ge.f32.partialorder %v228_v39, %v226_v41 }
  0x5e   : >> { %v232_v43 = vsel %vm230_vm12, %v229_v40, %v227_v42 }
  0x5f   : >> { %234 = vrot.lane.b32.xlu0 %v232_v43, %s233_s22 }
  0xd1   : >> { %v235_v46 = vpop.permute.xlu0 %234 }
  0xd2   : >> { %589 = vpush %v235_v46 }
 0x103   : >> { %s590_s27 = spop %589 }
 0x104   : >> { %v241_v50 = vstv %s590_s27  ;;  %s246_s29 = scalar_lea.vmem %s884_s7, %s590_s27 [#allocation3]  ;;  %s252_s30 = scalar_lea.vmem [#allocation8], %s590_s27 }
 0x105   : >> { %v243_v51 = vsel %vm240_vm15, %v241_v50, %v242_v47  ;;  %v248_v52 = vld [vmem:[%s246_s29] ss:$0 sm:$0xff]  ;;  %s970_s27 = scalar_lea.hbm (%p167_p8), %s1025_s2, %s585_s19 }
 0x106   : >> { %v254_v53 = vld [vmem:[%s252_s30] ss:$0 sm:$0xff]  ;;  %244 = vst [vmem:[%s873_s8] sm:$0x1] %v243_v51  ;;  %249 = vst [vmem:[%s246_s29] sm:$0x1] %v247_v48  ;;  %vm257_vm1 = vcmp.ne.f32.partialorder %v248_v52, 0.0  ;;  %v264_v3 = vsel %vm263_vm13, %v248_v52, 0.0 }
 0x107   : >> { %255 = vst [vmem:[%s252_s30] sm:$0x1] %v253_v49  ;;  %250 = vst [vmem:[%s245_s26] sm:$0x1] %v248_v52  ;;  %s364_s29 = scalar_lea.sflag (%p167_p8), [#allocation2], %s128_s4  ;;  %s686_s8 = sshll.u32 (%p167_p8), %s766_s17, 4  ;;  %s687_s8 = int_to_ptr.vmem [resolvable:$false] %s686_s8 }
 0x108   : >> { %256 = vst [vmem:[%s251_s28] sm:$0x1] %v254_v53  ;;  %vm258_vm3 = vmand %vm240_vm15, %vm257_vm1  ;;  %s403_s28 = sshll.u32 (%p167_p8), %s130_s9, 4  ;;  %s404_s28 = int_to_ptr.vmem [resolvable:$true] %s403_s28 }
 0x109   : >> { %v259_v54 = vsel %vm258_vm3, %v248_v52, 1.0  ;;  %s682_s30 = scalar_lea.vmem (%p167_p8), %s404_s28, 32  ;;  %p689_p4 = scmp.lt.s32.totalorder (%p167_p8), %s404_s28, %s687_s8 }
 0x10a   : >> { %v287_v55 = vsel %vm286_vm14, %v259_v54, 1.0  ;;  %v272_v56 = vsel %vm271_vm2, %v259_v54, 1.0  ;;  %p683_p9 = scmp.ne.s32.totalorder (%p167_p8), %s404_s28, %s682_s30 }
 0x10b   : >> { %650 = vrcp.f32 %v287_v55 }
 0x10c   : >> { %652 = vrcp.f32 %v272_v56  ;;  %p684_p10 = pnand (%p167_p8), %p683_p9, %p825_p5 }
 0x10d   : > { %v350_v12 = vld [vmem:[#allocation4] sm:$0x3] (%p167_p8) }
 0x10e   : >> { %v579_v58 = vld [vmem:[%s884_s7 + $0x8] sm:$0xff]  ;;  %v268_v61 = vld [vmem:[%s884_s7] sm:$0xff]  ;;  %352 = vst [vmem:[%s130_s9] sm:$0x3] (%p167_p8), %v350_v12  ;;  %p685_p3 = pneg (%p167_p8), %p684_p10 }
 0x10f   : > { %v297_v10 = vld [vmem:[#allocation8] sm:$0xff] (%p167_p8)  ;;  %v299_v11 = vld [vmem:[#allocation8 + $0x8] sm:$0xff] (%p167_p8) }
 0x115   : >> { %v651_v57 = vpop.eup %650 }
 0x116   : >> { %v653_v59 = vpop.eup %652  ;;  %v289_v60 = vmul.f32 %v651_v57, %v579_v58 }
 0x117   : >> { %v274_v62 = vmul.f32 %v653_v59, %v268_v61 }
 0x118   : >> { %v291_v63 = vsel %vm924_vm0, %v289_v60, 0.0 }
 0x119   : >> { %292 = vadd.xlane.f32.xlu1 %v291_v63  ;;  %v276_v1 = vsel %vm275_vm4, %v274_v62, 0.0 }
 0x11a   : >> { %277 = vadd.xlane.f32.xlu0 %v276_v1 }
 0x147   : > { %314 = vxpose.xlu0.b32.start [1/2] (short) (narrow) (%p167_p8), %v297_v10, 8 }
 0x14b   : > { %315 = vxpose.xlu0.b32.end [2/2] (short) (narrow) (%p167_p8), %v299_v11, 8 }
 0x1a6   : >> { %v293_v4 = vpop.xlane.xlu1 %292  ;;  %169 = sbr.rel (!%p167_p8) target bundleno = 70 (0x46), region = 184 }
 0x1a7   : >> { %v294_v5 = vmul.f32 %v293_v4, %v264_v3  ;;  %v278_v6 = vpop.xlane.xlu0 %277 }
 0x1a8   : >> { %v279_v7 = vmul.f32 %v278_v6, %v264_v3 }
 0x1a9   : >> { %v295_v8 = vsub.f32 %v289_v60, %v294_v5 }
 0x1aa   : >> { %v280_v9 = vsub.f32 %v274_v62, %v279_v7 }
 0x1ab   : >> { %580 = vst [vmem:[%s884_s7 + $0x8] sm:$0xff] %v295_v8 }
 0x1ac   : >> { %281 = vst [vmem:[%s884_s7] sm:$0xff] %v280_v9 }
 0x1b2   : > { %v388_v2 = vld [vmem:[%s884_s7 + $0x8] sm:$0xff] }
 0x1b3   : > { %v386_v0 = vld [vmem:[%s884_s7] sm:$0xff]  ;;  %389 = vst [vmem:[%s373_s21 + $0x8] sm:$0xff] %v388_v2  ;;  %s688_s7 = scalar_lea.vmem %s687_s8, 64 }
 0x1b4   : > { %387 = vst [vmem:[%s373_s21] sm:$0xff] %v386_v0  ;;  %p690_p11 = scmp.lt.s32.totalorder %s688_s7, %s682_s30 }
 0x1b6   : > { %p691_p12 = por %p690_p11, %p689_p4 }
 0x1b8   : > { %p692_p0 = pnand %p691_p12, %p685_p3 }
 0x1ba   : > { %695 = shalt.err (!%p692_p0)
}
 0x1bb   : > { %s696_s4 = scalar_lea.hbm %s970_s27, 32  ;;  %s700_s20 = scalar_lea.hbm %s1025_s2, 32 }
 0x1bc   : > { %p697_p1 = scmp.ne.s32.totalorder %s970_s27, %s696_s4  ;;  %p701_p2 = scmp.lt.u32.totalorder %s970_s27, %s1025_s2 }
 0x1bd   : > { %p702_p6 = scmp.lt.u32.totalorder %s700_s20, %s696_s4  ;;  %p704_p9 = scmp.lt.u32.totalorder %s696_s4, %s970_s27 }
 0x1be   : > { %p698_p7 = pnand %p697_p1, %p825_p5 }
 0x1bf   : > { %p703_p8 = por %p702_p6, %p701_p2 }
 0x1c0   : > { %p699_p13 = pneg %p698_p7 }
 0x1c1   : > { %p705_p10 = por %p704_p9, %p703_p8 }
 0x1c3   : > { %p706_p3 = pnand %p705_p10, %p699_p13 }
 0x1c5   : > { %709 = shalt.err (!%p706_p3)
}
 0x1c6   : > { %593 = dma.vmem_to_hbm [thread:$0]  (%p825_p5), %s404_s28, 32, %s970_s27, %s364_s29  }
 0x1c7   : > { %v330_v13 = vpop.trf.xlu0  ;;  %s586_s26 = sshll.u32 (%p825_p5), %s396_s5, 1 }
 0x1c8   : > { %346 = vst [vmem:[%s890_s11] sm:$0x1] %v330_v13  ;;  %s412_s8 = scalar_lea.vmem (%p825_p5), %s1026_s3, %s586_s26 }
 0x1ca   : > { %409 = sbr.rel (!%p825_p5) target bundleno = 473 (0x1d9), region = 61 }
 0x1cf   : > { %v356_v14 = vld [vmem:[#allocation6] sm:$0x3] }
 0x1d0   : > { %358 = vst [vmem:[%s136_s10] sm:$0x3] %v356_v14 }
 0x1d7   : > { %v428_v15 = vld [vmem:[%s136_s10] sm:$0x3] }
 0x1d8   : > { %429 = vst [vmem:[%s412_s8] sm:$0x3] %v428_v15 }
 0x1d9 PF: > { %s456_s11 = sand.u32 1, %s742_s12   ;;  %p1033_p4 = scmp.ne.s32.totalorder %s1028_s25, 0 }
 0x1da   : > { %p1034_p11 = scmp.ge.s32.totalorder %s754_s15, 2  ;;  %s457_s24 = scalar_lea.sflag [#allocation2], %s456_s11 }
 0x1dc   : > { %p596_p5 = pnand %p1034_p11, %p1033_p4 }
 0x1de   : > { %737 = dma.done.wait (!%p596_p5), %s457_s24, 32  }
 0x1df   : > { %739 = vsyncadd (!%p596_p5), %s457_s24, 4294967264  ;;  %p13_p12 = scmp.ge.s32.totalorder %s812_s18, 4   ;;  %s1035_s12 = smov %s746_s13 }
 0x1e0   : > { %s1036_s13 = smov %s750_s14  ;;  %s1037_s14 = smov %s823_s23 }
 0x1e1   : > { %s1038_s15 = smov %s812_s18  ;;  %15 = sbr.rel (!%p13_p12) target bundleno = 5 (0x5), region = 195 }
 0x1e8   :  { %469 = vsyncpa [#allocation1], 1 }
 0x1e9   :  { %471 = vsyncpa [#allocation1 + $0x1], 1 }
 0x1ea   :  { %472 = vsyncpa [#allocation2], 1 }
 0x1eb   :  { %474 = vsyncpa [#allocation2 + $0x1], 1 }

// kernel: tfedcn_forward.8
= control target key start
LH: loop header
LB: loop body
LE: loop exit
PB: predicated region body
PF: predicated region fallthrough
CT: control target
= control target key end

     0   :  { %s6021_s0 = inlined_call_operand.hbm [shape: f32[2,16,128], index: 0, kind: input, shape index: {}]   ;;  %s6022_s1 = inlined_call_operand.hbm [shape: f32[2,16,384], index: 1, kind: input, shape index: {}]   ;;  %s6023_s2 = inlined_call_operand.hbm [shape: bf16[128,128], index: 2, kind: input, shape index: {}]   ;;  %s6024_s3 = inlined_call_operand.hbm [shape: f32[1,128], index: 3, kind: input, shape index: {}]   ;;  %s6025_s4 = inlined_call_operand.hbm [shape: f32[1,128], index: 4, kind: input, shape index: {}]   ;;  %s6026_s5 = inlined_call_operand.hbm [shape: f32[1,128], index: 5, kind: input, shape index: {}]   ;;  %s6027_s6 = inlined_call_operand.hbm [shape: f32[2,16,128], index: 6, kind: output, shape index: {}]  }
   0x1   :  { %6031 = sst [smem:[#allocation20_spill]] %s6021_s0 }
   0x2   :  { %6032 = sst [smem:[#allocation21_spill]] %s6023_s2 }
   0x3   :  { %6033 = sst [smem:[#allocation22_spill]] %s6024_s3 }
   0x4   :  { %6034 = sst [smem:[#allocation23_spill]] %s6025_s4 }
   0x5   :  { %11 = vsyncpa [#allocation3], 0 }
   0x6   :  { %13 = vsyncpa [#allocation3 + $0x1], 0 }
   0x7   :  { %14 = vsyncpa [#allocation6], 0 }
   0x8   :  { %16 = vsyncpa [#allocation6 + $0x1], 0 }
   0x9   :  { %17 = vsyncpa [#allocation9], 0 }
   0xa   :  { %18 = vsyncpa [#allocation12], 0 }
   0xb   :  { %19 = vsyncpa [#allocation4], 0 }
   0xc   :  { %21 = vsyncpa [#allocation4 + $0x1], 0  ;;  %s4790_s21 = smov 0   ;;  %s4792_s22 = smov 0  }
   0xd   :  { %s4794_s23 = smov 0   ;;  %s4796_s24 = smov 0  }
   0xe LB: > { %s4811_s25 = sadd.s32 4294967295, %s4727_s24   ;;  %s3978_s26 = sadd.s32 4294967294, %s4727_s24   ;;  %s4727_s24 = sphi %s4796_s24, %s6061_s24   ;;  %s4723_s23 = sphi %s4794_s23, %s6060_s23   ;;  %s4719_s22 = sphi %s4792_s22, %s6059_s22   ;;  %s4715_s21 = sphi %s4790_s21, %s6058_s21  }
   0xf   : > { %p47_p0 = scmp.ne.s32.totalorder %s4719_s22, %s4715_s21  ;;  %p6028_p1 = scmp.eq.s32.totalorder %s4811_s25, 0 }
  0x10   : > { %p187_p3 = scmp.eq.s32.totalorder %s3978_s26, 1  ;;  %p3979_p5 = scmp.ge.s32.totalorder %s4727_s24, 1 }
  0x11   : > { %p4820_p4 = por %p6028_p1, %p47_p0  ;;  %p194_p7 = scmp.lt.s32.totalorder %s4727_s24, 3 }
  0x12   : > { %p4825_p6 = por %p187_p3, %p47_p0  ;;  %s4729_s30 = smov [#allocation7]  }
  0x13   : > { %s6035_s27 = scalar_select %p4820_p4, 1, 0 }
  0x14   : > { %s6036_s28 = scalar_select %p4825_p6, 1, 0 }
  0x15   : > { %p4830_p8 = pnand %p3979_p5, %p194_p7  ;;  %s206_s7 = sshll.u32 %s4729_s30, 4  ;;  %s4834_s7 = int_to_ptr.vmem [resolvable:$true] %s206_s7 }
  0x16   : > { %s4730_s9 = smov [#allocation8]   ;;  %s4731_s11 = smov [#allocation10]  }
  0x17   : > { %s6037_s29 = scalar_select %p4830_p8, 1, 0 }
  0x18   : > { %p4275_p9 = pneg %p4830_p8  ;;  %s220_s10 = sshll.u32 %s4730_s9, 4  ;;  %s4845_s10 = int_to_ptr.vmem [resolvable:$true] %s220_s10 }
  0x19   : > { %s4847_s12 = sshll.u32 %s4731_s11, 4  ;;  %s6039_s2 = sld [smem:[#allocation21_spill]]  ;;  %s232_s12 = int_to_ptr.vmem [resolvable:$true] %s4847_s12 }
  0x1a   : > { %p4841_p11 = pnand %p4275_p9, %p6028_p1 }
  0x1c   : > { %p4857_p13 = pneg %p4841_p11 }
  0x1f   : > { %s4473_s15 = scalar_lea.hbm %s6039_s2, 1024 }
  0x20   : > { %p4474_p12 = scmp.ne.s32.totalorder %s6039_s2, %s4473_s15  ;;  %p4480_p5 = scmp.lt.u32.totalorder %s4473_s15, %s6039_s2 }
  0x22   : > { %p4476_p0 = pnand %p4857_p13, %p4474_p12 }
  0x24   : > { %p4477_p3 = pneg %p4476_p0 }
  0x26   : > { %p4482_p7 = pnand %p4480_p5, %p4477_p3 }
  0x28   : > { %4485 = shalt.err (!%p4482_p7)
}
  0x29   : > { %s4486_s26 = scalar_lea.vmem %s4834_s7, 1024  ;;  %p4494_p2 = scmp.lt.s32.totalorder %s4834_s7, %s4834_s7 }
  0x2a   : > { %p4487_p9 = scmp.ne.s32.totalorder %s4834_s7, %s4486_s26  ;;  %p4495_p6 = scmp.lt.s32.totalorder %s4486_s26, %s4486_s26 }
  0x2c   : > { %p4489_p10 = pnand %p4487_p9, %p4857_p13  ;;  %p4496_p12 = por %p4495_p6, %p4494_p2 }
  0x2e   : > { %p4490_p1 = pneg %p4489_p10 }
  0x30   : > { %p4497_p0 = pnand %p4496_p12, %p4490_p1 }
  0x32   : > { %4500 = shalt.err (!%p4497_p0)
}
  0x33   : > { %s4732_s30 = smov 64   ;;  %s4733_s9 = smov 4  }
  0x34   : > { %4278 = dma.hbm_to_vmem [thread:$0]  (!%p4841_p11), %s6039_s2, 1024, %s4834_s7, [#allocation6], %s4732_s30, %s4732_s30, %s4733_s9  }
  0x35   : > { %s6041_s3 = sld [smem:[#allocation22_spill]] }
  0x3b   : > { %s4501_s16 = scalar_lea.hbm %s6041_s3, 16 }
  0x3c   : > { %p4502_p2 = scmp.ne.s32.totalorder %s6041_s3, %s4501_s16  ;;  %p4508_p10 = scmp.lt.u32.totalorder %s4501_s16, %s6041_s3 }
  0x3e   : > { %p4504_p1 = pnand %p4502_p2, %p4857_p13 }
  0x40   : > { %p4505_p6 = pneg %p4504_p1 }
  0x42   : > { %p4510_p3 = pnand %p4508_p10, %p4505_p6 }
  0x44   : > { %4513 = shalt.err (!%p4510_p3)
}
  0x45   : > { %s4514_s7 = scalar_lea.vmem %s4845_s10, 16  ;;  %s4521_s30 = scalar_lea.vmem %s4845_s10, 32 }
  0x46   : > { %p4515_p5 = scmp.ne.s32.totalorder %s4845_s10, %s4514_s7  ;;  %p4522_p12 = scmp.lt.s32.totalorder %s4845_s10, %s4845_s10 }
  0x47   : > { %p4523_p0 = scmp.lt.s32.totalorder %s4521_s30, %s4514_s7 }
  0x48   : > { %p4517_p7 = pnand %p4515_p5, %p4857_p13 }
  0x49   : > { %p4524_p2 = por %p4523_p0, %p4522_p12 }
  0x4a   : > { %p4518_p9 = pneg %p4517_p7 }
  0x4c   : > { %p4525_p1 = pnand %p4524_p2, %p4518_p9 }
  0x4e   : > { %4528 = shalt.err (!%p4525_p1)
}
  0x4f   : > { %4281 = dma.hbm_to_vmem [thread:$0]  (!%p4841_p11), %s6041_s3, 16, %s4845_s10, [#allocation9]  }
  0x50   : > { %s6042_s4 = sld [smem:[#allocation23_spill]] }
  0x56   : > { %s4529_s15 = scalar_lea.hbm %s6042_s4, 16 }
  0x57   : > { %p4530_p6 = scmp.ne.s32.totalorder %s6042_s4, %s4529_s15  ;;  %p4536_p5 = scmp.lt.u32.totalorder %s4529_s15, %s6042_s4 }
  0x59   : > { %p4532_p10 = pnand %p4530_p6, %p4857_p13 }
  0x5b   : > { %p4533_p3 = pneg %p4532_p10 }
  0x5d   : > { %p4538_p7 = pnand %p4536_p5, %p4533_p3 }
  0x5f   : > { %4541 = shalt.err (!%p4538_p7)
}
  0x60   : > { %s4542_s26 = scalar_lea.vmem %s232_s12, 16  ;;  %s4549_s10 = scalar_lea.vmem %s232_s12, 32 }
  0x61   : > { %p4543_p9 = scmp.ne.s32.totalorder %s232_s12, %s4542_s26  ;;  %p4550_p2 = scmp.lt.s32.totalorder %s232_s12, %s232_s12 }
  0x62   : > { %p4551_p1 = scmp.lt.s32.totalorder %s4549_s10, %s4542_s26 }
  0x63   : > { %p4545_p12 = pnand %p4543_p9, %p4857_p13 }
  0x64   : > { %p4552_p4 = por %p4551_p1, %p4550_p2 }
  0x65   : > { %p4546_p0 = pneg %p4545_p12 }
  0x67   : > { %p4553_p8 = pnand %p4552_p4, %p4546_p0 }
  0x69   : > { %4556 = shalt.err (!%p4553_p8)
}
  0x6a   : > { %4284 = dma.hbm_to_vmem [thread:$0]  (!%p4841_p11), %s6042_s4, 16, %s232_s12, [#allocation9]  }
  0x6b   : > { %s4734_s9 = smov [#allocation11]   ;;  %s4557_s15 = scalar_lea.hbm %s6026_s5, 16 }
  0x6c   : > { %s242_s11 = sshll.u32 %s4734_s9, 4  ;;  %p4558_p6 = scmp.ne.s32.totalorder %s6026_s5, %s4557_s15  ;;  %s243_s11 = int_to_ptr.vmem [resolvable:$true] %s242_s11 }
  0x6d   : > { %p4564_p10 = scmp.lt.u32.totalorder %s4557_s15, %s6026_s5 }
  0x6e   : > { %p4560_p4 = pnand %p4558_p6, %p4857_p13 }
  0x70   : > { %p4561_p8 = pneg %p4560_p4 }
  0x72   : > { %p4566_p3 = pnand %p4564_p10, %p4561_p8 }
  0x74   : > { %4569 = shalt.err (!%p4566_p3)
}
  0x75   : > { %s4570_s12 = scalar_lea.vmem %s243_s11, 16  ;;  %s4577_s26 = scalar_lea.vmem %s243_s11, 32 }
  0x76   : > { %p4571_p5 = scmp.ne.s32.totalorder %s243_s11, %s4570_s12  ;;  %p4578_p12 = scmp.lt.s32.totalorder %s243_s11, %s243_s11 }
  0x77   : > { %p4579_p0 = scmp.lt.s32.totalorder %s4577_s26, %s4570_s12 }
  0x78   : > { %p4573_p7 = pnand %p4571_p5, %p4857_p13 }
  0x79   : > { %p4580_p2 = por %p4579_p0, %p4578_p12 }
  0x7a   : > { %p4574_p9 = pneg %p4573_p7 }
  0x7c   : > { %p4581_p1 = pnand %p4580_p2, %p4574_p9 }
  0x7e   : > { %4584 = shalt.err (!%p4581_p1)
}
  0x7f   : > { %4287 = dma.hbm_to_vmem [thread:$0]  (!%p4841_p11), %s6026_s5, 16, %s243_s11, [#allocation12]  }
  0x80   : > { %s4940_s18 = sadd.s32 1, %s4727_s24   ;;  %s34_s30 = sadd.s32 1, %s4723_s23 }
  0x81   : > { %s31_s8 = ssub.s32 %s4727_s24, %s4940_s18  ;;  %p41_p13 = scmp.ne.s32.totalorder %s4723_s23, %s4719_s22 }
  0x82   : > { %p32_p6 = scmp.eq.s32.totalorder %s31_s8, 0  ;;  %p42_p4 = scmp.eq.s32.totalorder %s4727_s24, 0 }
  0x83   : > { %p6043_p8 = scmp.eq.s32.totalorder %s4811_s25, 1  ;;  %p4303_p3 = scmp.lt.s32.totalorder %s4727_s24, 2 }
  0x84   : > { %s4956_s13 = scalar_select %p32_p6, %s4723_s23, %s34_s30  }
  0x85   : > { %p4950_p10 = por %p6043_p8, %p41_p13  ;;  %p43_p5 = por %p42_p4, %p41_p13 }
  0x86   : > { %s4959_s14 = sand.u32 1, %s4723_s23   ;;  %s4091_s15 = sshll.u32 %s4727_s24, 8 }
  0x87   : > { %s3985_s11 = sshll.u32 %s4959_s14, 4  ;;  %s6045_s0 = sld [smem:[#allocation20_spill]] }
  0x88   : > { %s257_s20 = scalar_lea.vmem [#allocation2], %s3985_s11  ;;  %p4970_p11 = pnand %p4303_p3, %p43_p5 }
  0x89   : > { %s264_s12 = sshll.u32 %s257_s20, 4  ;;  %s254_s7 = scalar_lea.sflag [#allocation3], %s4959_s14  ;;  %s4968_s12 = int_to_ptr.vmem [resolvable:$true] %s264_s12 }
  0x8a   : > { %p4587_p9 = pneg %p4970_p11 }
  0x8d   : > { %s4966_s19 = scalar_lea.hbm %s6045_s0, %s4091_s15  ;;  %s4590_s15 = scalar_lea.hbm %s6045_s0, 512 }
  0x8e   : > { %s4585_s30 = scalar_lea.hbm %s4966_s19, 256  ;;  %p4591_p2 = scmp.lt.u32.totalorder %s4966_s19, %s6045_s0 }
  0x8f   : > { %p4586_p7 = scmp.ne.s32.totalorder %s4966_s19, %s4585_s30  ;;  %p4592_p1 = scmp.lt.u32.totalorder %s4590_s15, %s4585_s30 }
  0x90   : > { %p4594_p6 = scmp.lt.u32.totalorder %s4585_s30, %s4966_s19 }
  0x91   : > { %p4588_p12 = pnand %p4587_p9, %p4586_p7  ;;  %p4593_p13 = por %p4592_p1, %p4591_p2 }
  0x93   : > { %p4589_p0 = pneg %p4588_p12  ;;  %p4595_p4 = por %p4594_p6, %p4593_p13 }
  0x95   : > { %p4596_p8 = pnand %p4595_p4, %p4589_p0 }
  0x97   : > { %4599 = shalt.err (!%p4596_p8)
}
  0x98   : > { %s4600_s20 = scalar_lea.vmem %s4968_s12, 256  ;;  %s4735_s8 = smov [#allocation2]  }
  0x99   : > { %p4601_p3 = scmp.ne.s32.totalorder %s4968_s12, %s4600_s20  ;;  %s4605_s11 = sshll.u32 %s4735_s8, 4  ;;  %s4606_s11 = int_to_ptr.vmem [resolvable:$false] %s4605_s11 }
  0x9a   : > { %s4607_s16 = scalar_lea.vmem %s4606_s11, 512  ;;  %p4608_p12 = scmp.lt.s32.totalorder %s4968_s12, %s4606_s11 }
  0x9b   : > { %p4603_p5 = pnand %p4601_p3, %p4587_p9  ;;  %p4609_p2 = scmp.lt.s32.totalorder %s4607_s16, %s4600_s20 }
  0x9d   : > { %p4604_p7 = pneg %p4603_p5  ;;  %p4610_p1 = por %p4609_p2, %p4608_p12 }
  0x9f   : > { %p4611_p13 = pnand %p4610_p1, %p4604_p7 }
  0xa1   : > { %4614 = shalt.err (!%p4611_p13)
}
  0xa2   : > { %s4736_s30 = smov 128   ;;  %s4737_s15 = smov 8  }
  0xa3   : > { %4291 = dma.hbm_to_vmem [thread:$0]  (!%p4970_p11), %s4966_s19, 256, %s4968_s12, %s254_s7, %s4736_s30, %s4736_s30, %s4737_s15  }
  0xa4   : > { %s4250_s17 = smul.u32 48, %s4959_s14  ;;  %s6047_s2 = sand.u32 1, %s4727_s24  }
  0xa5   : > { %s4251_s8 = smul.u32 768, %s4727_s24  ;;  %s5014_s3 = scalar_lea.sflag [#allocation6], %s6047_s2 }
  0xa6   : > { %s278_s10 = scalar_lea.vmem [#allocation5], %s4250_s17  ;;  %s4620_s12 = scalar_lea.hbm %s6022_s1, 1536 }
  0xa7   : > { %s5008_s16 = scalar_lea.hbm %s6022_s1, %s4251_s8  ;;  %s285_s0 = sshll.u32 %s278_s10, 4  ;;  %s5010_s0 = int_to_ptr.vmem [resolvable:$true] %s285_s0 }
  0xa8   : > { %s4615_s4 = scalar_lea.hbm %s5008_s16, 768  ;;  %p4621_p8 = scmp.lt.u32.totalorder %s5008_s16, %s6022_s1 }
  0xa9   : > { %p4616_p0 = scmp.ne.s32.totalorder %s5008_s16, %s4615_s4  ;;  %p4622_p3 = scmp.lt.u32.totalorder %s4620_s12, %s4615_s4 }
  0xaa   : > { %p4624_p7 = scmp.lt.u32.totalorder %s4615_s4, %s5008_s16 }
  0xab   : > { %p4618_p6 = pnand %p4616_p0, %p4587_p9  ;;  %p4623_p5 = por %p4622_p3, %p4621_p8 }
  0xad   : > { %p4619_p4 = pneg %p4618_p6  ;;  %p4625_p12 = por %p4624_p7, %p4623_p5 }
  0xaf   : > { %p4626_p2 = pnand %p4625_p12, %p4619_p4 }
  0xb1   : > { %4629 = shalt.err (!%p4626_p2)
}
  0xb2   : > { %s4630_s2 = scalar_lea.vmem %s5010_s0, 768  ;;  %s4738_s10 = smov [#allocation5]  }
  0xb3   : > { %p4631_p1 = scmp.ne.s32.totalorder %s5010_s0, %s4630_s2  ;;  %s4635_s15 = sshll.u32 %s4738_s10, 4  ;;  %s4636_s15 = int_to_ptr.vmem [resolvable:$false] %s4635_s15 }
  0xb4   : > { %s4637_s17 = scalar_lea.vmem %s4636_s15, 1536  ;;  %p4638_p6 = scmp.lt.s32.totalorder %s5010_s0, %s4636_s15 }
  0xb5   : > { %p4633_p13 = pnand %p4631_p1, %p4587_p9  ;;  %p4639_p8 = scmp.lt.s32.totalorder %s4637_s17, %s4630_s2 }
  0xb7   : > { %p4634_p0 = pneg %p4633_p13  ;;  %p4640_p3 = por %p4639_p8, %p4638_p6 }
  0xb9   : > { %p4641_p5 = pnand %p4640_p3, %p4634_p0 }
  0xbb   : > { %4644 = shalt.err (!%p4641_p5)
}
  0xbc   : > { %s4739_s4 = smov 384   ;;  %s4740_s8 = smov 24  }
  0xbd   : > { %4294 = dma.hbm_to_vmem [thread:$0]  (!%p4970_p11), %s5008_s16, 768, %s5010_s0, %s5014_s3, %s4739_s4, %s4739_s4, %s4740_s8  }
  0xbe   : > { %p6048_p9 = scmp.ne.s32.totalorder %s6037_s29, 0 }
  0xbf   : > { %s5043_s11 = sand.u32 (!%p6048_p9), 1, %s4719_s22   ;;  %p6049_p4 = scmp.ne.s32.totalorder (!%p6048_p9), %s6035_s27, 0 }
  0xc0   : > { %297 = sbr.rel (%p6048_p9) target bundleno = 1622 (0x656), region = 44  ;;  %s3990_s20 = sshll.u32 (!%p6048_p9), %s5043_s11, 4 }
  0xc1   : > { %s300_s14 = scalar_lea.sflag (!%p6048_p9), [#allocation3], %s5043_s11  ;;  %s5049_s19 = scalar_lea.vmem (!%p6048_p9), [#allocation2], %s3990_s20 }
  0xc7   : > { %4690 = dma.done.wait (%p6049_p4), %s300_s14, 256  }
  0xc8   : > { %4692 = vsyncadd (%p6049_p4), %s300_s14, 4294967040  ;;  %s308_s0 = sand.u32 1, %s4811_s25   ;;  %s4252_s3 = smul.u32 48, %s5043_s11 }
  0xc9   : > { %s309_s29 = scalar_lea.sflag [#allocation6], %s308_s0 }
  0xca   : > { %s5057_s26 = scalar_lea.vmem [#allocation5], %s4252_s3 }
  0xcb   : > { %4694 = dma.done.wait (%p6049_p4), %s309_s29, 768  }
  0xcc   : > { %4696 = vsyncadd (%p6049_p4), %s309_s29, 4294966528  ;;  %p6050_p11 = scmp.eq.s32.totalorder %s4811_s25, 0 }
  0xce   : > { %4698 = dma.done.wait (%p6050_p11), [#allocation6], 1024   ;;  %p6051_p7 = pmov %p6050_p11 }
  0xd0   : > { %4700 = vsyncadd (%p6051_p7), [#allocation6], 4294966272  ;;  %p6052_p12 = pmov %p6051_p7 }
  0xd1   : > { %p6053_p2 = pmov %p6051_p7 }
  0xd2   : > { %4702 = dma.done.wait (%p6052_p12), [#allocation9], 32  }
  0xd3   : > { %4704 = vsyncadd (%p6053_p2), [#allocation9], 4294967264  ;;  %p6054_p1 = pmov %p6053_p2 }
  0xd5   : > { %4706 = dma.done.wait (%p6054_p1), [#allocation12], 16   ;;  %p6055_p13 = pmov %p6054_p1 }
  0xd6   : > { %v5076_v0 = vld [vmem:[%s5057_s26 + $0x8] sm:$0xff]  ;;  %s4741_s27 = smov 96   ;;  %s4742_s16 = smov 112   ;;  %v5083_v1 = vld [vmem:[%s5057_s26 + $0x20] sm:$0xff]  ;;  %v368_v2 = vld [vmem:[%s5057_s26 + $0x18] sm:$0xff]  ;;  %v4744_v6 = vmov 0.0   ;;  %v422_v11 = vlaneseq }
  0xd7   : > { %4708 = vsyncadd (%p6055_p13), [#allocation12], 4294967280  ;;  %977 = vrot.lane.b32.xlu1 %v5076_v0, %s4741_s27  ;;  %971 = vrot.lane.b32.xlu0 %v5076_v0, %s4742_s16  ;;  %v365_v3 = vld [vmem:[%s5057_s26] sm:$0xff]  ;;  %s4743_s12 = smov 80   ;;  %v5095_v4 = vmul.f32 0.25, %v368_v2  ;;  %s4745_s7 = smov 64  }
  0xd8   : > { %v5097_v5 = vmul.f32 0.25, %v365_v3  ;;  %4134 = vmatprep.subr.bf16.mxu1 %v4744_v6  ;;  %4158 = vmatprep.subr.bf16.mxu0 %v4744_v6  ;;  %s4746_s30 = smov 48   ;;  %s4747_s2 = smov 32   ;;  %vm4749_vm0 = vmmov 0   ;;  %v5150_v7 = vld [vmem:[%s5057_s26 + $0x28] sm:$0xff]  ;;  %v5153_v8 = vld [vmem:[%s5057_s26 + $0x10] sm:$0xff] }
  0xd9   : > { %s4748_s10 = smov 16   ;;  %4136 = vmatprep.mubr.msk.bf16.mxu1 %vm4749_vm0, %v4744_v6  ;;  %4160 = vmatprep.mubr.msk.bf16.mxu0 %vm4749_vm0, %v4744_v6  ;;  %v4750_v9 = vmov 1983009808   ;;  %v4751_v14 = vmov 1934713408   ;;  %v5175_v17 = vshrl.u32 %v422_v11, 7 }
  0xda   : > { %v420_v10 = vunpack.c.l.s4 %v4750_v9  ;;  %v484_v15 = vunpack.c.l.s4 %v4751_v14  ;;  %vm2161_vm1 = vcmask 130048   ;;  %vm3676_vm2 = vcmask 261120   ;;  %s361_s15 = scalar_lea.vmem [#allocation13], %s3990_s20  ;;  %s4092_s4 = sshll.u32 %s4811_s25, 8 }
  0xdb   : > { %979 = vrot.lane.b32.xlu1 %v5083_v1, %s4741_s27  ;;  %973 = vrot.lane.b32.xlu0 %v5083_v1, %s4742_s16  ;;  %vm3679_vm3 = vcmask 392192   ;;  %vm3682_vm4 = vcmask 523264   ;;  %vm3685_vm5 = vcmask 654336   ;;  %vm3688_vm6 = vcmask 785408   ;;  %s3844_s17 = sshll.u32 %s361_s15, 4  ;;  %s5975_s0 = scalar_lea.hbm %s6027_s6, %s4092_s4  ;;  %s5977_s17 = int_to_ptr.vmem [resolvable:$true] %s3844_s17 }
  0xdc   : > { %v421_v16 = vunpack.c.0.s8 %v420_v10  ;;  %v485_v22 = vunpack.c.0.s8 %v484_v15  ;;  %vm3691_vm7 = vcmask 916480   ;;  %s3831_s20 = scalar_lea.sflag [#allocation4], %s5043_s11  ;;  %s4645_s3 = scalar_lea.vmem %s5977_s17, 256 }
  0xdd   : > { %p4646_p0 = scmp.ne.s32.totalorder %s5977_s17, %s4645_s3  ;;  %s4752_s25 = smov [#allocation13]  }
  0xde   : > { %v5180_v23 = vsub.s32 %v421_v16, %v5175_v17  ;;  %v5187_v34 = vsub.s32 %v485_v22, %v5175_v17 }
  0xdf   : > { %985 = vrot.lane.b32.xlu1 %v5083_v1, %s4743_s12  ;;  %983 = vrot.lane.b32.xlu0 %v5076_v0, %s4743_s12  ;;  %p4647_p6 = pnand %p4646_p0, %p4950_p10 }
  0xe1   : > { %p4648_p8 = pneg %p4647_p6 }
  0xe3   : > { %377 = vrot.lane.b32.xlu1 %v5095_v4, %s4742_s16  ;;  %375 = vrot.lane.b32.xlu0 %v5097_v5, %s4742_s16 }
  0xe7   : > { %383 = vrot.lane.b32.xlu1 %v5095_v4, %s4741_s27  ;;  %381 = vrot.lane.b32.xlu0 %v5097_v5, %s4741_s27 }
  0xeb   : > { %389 = vrot.lane.b32.xlu1 %v5095_v4, %s4743_s12  ;;  %387 = vrot.lane.b32.xlu0 %v5097_v5, %s4743_s12 }
  0xef   : > { %991 = vrot.lane.b32.xlu1 %v5083_v1, %s4745_s7  ;;  %989 = vrot.lane.b32.xlu0 %v5076_v0, %s4745_s7 }
  0xf3   : > { %997 = vrot.lane.b32.xlu1 %v5083_v1, %s4746_s30  ;;  %995 = vrot.lane.b32.xlu0 %v5076_v0, %s4746_s30 }
  0xf7   : > { %1003 = vrot.lane.b32.xlu1 %v5083_v1, %s4747_s2  ;;  %1001 = vrot.lane.b32.xlu0 %v5076_v0, %s4747_s2 }
  0xfb   : > { %1009 = vrot.lane.b32.xlu1 %v5083_v1, %s4748_s10  ;;  %1007 = vrot.lane.b32.xlu0 %v5076_v0, %s4748_s10 }
  0xff   : > { %395 = vrot.lane.b32.xlu1 %v5095_v4, %s4745_s7  ;;  %393 = vrot.lane.b32.xlu0 %v5097_v5, %s4745_s7 }
 0x103   : > { %401 = vrot.lane.b32.xlu1 %v5095_v4, %s4746_s30  ;;  %399 = vrot.lane.b32.xlu0 %v5097_v5, %s4746_s30 }
 0x107   : > { %407 = vrot.lane.b32.xlu1 %v5095_v4, %s4747_s2  ;;  %405 = vrot.lane.b32.xlu0 %v5097_v5, %s4747_s2 }
 0x10b   : > { %413 = vrot.lane.b32.xlu1 %v5095_v4, %s4748_s10  ;;  %411 = vrot.lane.b32.xlu0 %v5097_v5, %s4748_s10 }
 0x10f   : > { %1569 = vrot.lane.b32.xlu0 %v5150_v7, %s4742_s16  ;;  %1567 = vrot.lane.b32.xlu1 %v5153_v8, %s4742_s16 }
 0x113   : > { %1579 = vrot.lane.b32.xlu0 %v5153_v8, %s4743_s12  ;;  %1573 = vrot.lane.b32.xlu1 %v5153_v8, %s4741_s27 }
 0x117   : > { %1587 = vrot.lane.b32.xlu0 %v5150_v7, %s4745_s7  ;;  %1575 = vrot.lane.b32.xlu1 %v5150_v7, %s4741_s27 }
 0x11b   : > { %1581 = vrot.lane.b32.xlu1 %v5150_v7, %s4743_s12 }
 0x11f   : > { %1585 = vrot.lane.b32.xlu1 %v5153_v8, %s4745_s7 }
 0x123   : > { %1591 = vrot.lane.b32.xlu1 %v5153_v8, %s4746_s30 }
 0x127   : > { %1593 = vrot.lane.b32.xlu1 %v5150_v7, %s4746_s30 }
 0x149   : > { %v978_v12 = vpop.permute.xlu1 %977  ;;  %v972_v13 = vpop.permute.xlu0 %971 }
 0x14a   : > { %v1013_v24 = vcombine.low %v5076_v0, %v978_v12  ;;  %v1014_v25 = vcombine.high %v5076_v0, %v978_v12 }
 0x14c   : > { %v1021_v39 = vrot.slane %v1013_v24, %v5180_v23  ;;  %v1028_v40 = vrot.slane %v1014_v25, %v5180_v23 }
 0x14d   : > { %v980_v18 = vpop.permute.xlu1 %979  ;;  %v974_v19 = vpop.permute.xlu0 %973 }
 0x14e   : > { %v1149_v20 = vcombine.low %v5083_v1, %v980_v18  ;;  %v1150_v21 = vcombine.high %v5083_v1, %v980_v18 }
 0x150   : > { %v1157_v32 = vrot.slane %v1149_v20, %v5180_v23  ;;  %v1164_v33 = vrot.slane %v1150_v21, %v5180_v23 }
 0x151   : > { %v986_v26 = vpop.permute.xlu1 %985  ;;  %v984_v27 = vpop.permute.xlu0 %983 }
 0x152   : > { %v1165_v28 = vcombine.low %v974_v19, %v986_v26  ;;  %v1166_v29 = vcombine.high %v974_v19, %v986_v26  ;;  %v1029_v30 = vcombine.low %v972_v13, %v984_v27  ;;  %v1030_v31 = vcombine.high %v972_v13, %v984_v27 }
 0x154   : > { %v1173_v35 = vrot.slane %v1165_v28, %v5180_v23  ;;  %v1180_v36 = vrot.slane %v1166_v29, %v5180_v23  ;;  %v1037_v37 = vrot.slane %v1029_v30, %v5180_v23  ;;  %v1044_v38 = vrot.slane %v1030_v31, %v5180_v23 }
 0x155   : > { %v378_v41 = vpop.permute.xlu1 %377  ;;  %v376_v42 = vpop.permute.xlu0 %375 }
 0x156   : > { %v1213_v43 = vcombine.low %v1157_v32, %v1173_v35  ;;  %v1214_v44 = vcombine.high %v1157_v32, %v1173_v35  ;;  %v1229_v45 = vcombine.low %v1164_v33, %v1180_v36  ;;  %v1230_v46 = vcombine.high %v1164_v33, %v1180_v36 }
 0x157   : > { %v1077_v47 = vcombine.low %v1021_v39, %v1037_v37  ;;  %v1078_v48 = vcombine.high %v1021_v39, %v1037_v37  ;;  %v1093_v49 = vcombine.low %v1028_v40, %v1044_v38  ;;  %v1094_v50 = vcombine.high %v1028_v40, %v1044_v38 }
 0x158   : > { %v1221_v51 = vrot.slane %v1213_v43, %v5187_v34  ;;  %v1228_v52 = vrot.slane %v1214_v44, %v5187_v34  ;;  %v1237_v53 = vrot.slane %v1229_v45, %v5187_v34  ;;  %v1244_v54 = vrot.slane %v1230_v46, %v5187_v34 }
 0x159   : > { %v1085_v55 = vrot.slane %v1077_v47, %v5187_v34  ;;  %v1092_v56 = vrot.slane %v1078_v48, %v5187_v34  ;;  %v1101_v57 = vrot.slane %v1093_v49, %v5187_v34  ;;  %v1108_v58 = vrot.slane %v1094_v50, %v5187_v34  ;;  %v384_v59 = vpop.permute.xlu1 %383  ;;  %v382_v60 = vpop.permute.xlu0 %381 }
 0x15a   : > { %v4020_v61 = vcombine.low %v1221_v51, %v1228_v52  ;;  %v4022_v62 = vcombine.high %v1221_v51, %v1228_v52  ;;  %v4024_v63 = vcombine.low %v1237_v53, %v1244_v54  ;;  %v4026_v0 = vcombine.high %v1237_v53, %v1244_v54 }
 0x15b   : > { %v4012_v1 = vcombine.low %v1085_v55, %v1092_v56  ;;  %v4014_v2 = vcombine.high %v1085_v55, %v1092_v56  ;;  %v4016_v3 = vcombine.low %v1101_v57, %v1108_v58  ;;  %v4018_v9 = vcombine.high %v1101_v57, %v1108_v58 }
 0x15c   : > { %v553_v10 = vcombine.low %v5095_v4, %v384_v59  ;;  %v554_v11 = vcombine.high %v5095_v4, %v384_v59  ;;  %v417_v12 = vcombine.low %v5097_v5, %v382_v60  ;;  %v418_v13 = vcombine.high %v5097_v5, %v382_v60 }
 0x15d   : > { %v390_v14 = vpop.permute.xlu1 %389  ;;  %v388_v15 = vpop.permute.xlu0 %387  ;;  %v5208_v16 = vrot.slane %v4012_v1, %v5180_v23  ;;  %v5211_v18 = vrot.slane %v4014_v2, %v5180_v23  ;;  %v5214_v19 = vrot.slane %v4016_v3, %v5180_v23  ;;  %v5217_v20 = vrot.slane %v4018_v9, %v5180_v23 }
 0x15e   : > { %v561_v4 = vrot.slane %v553_v10, %v5180_v23  ;;  %v568_v21 = vrot.slane %v554_v11, %v5180_v23  ;;  %v425_v5 = vrot.slane %v417_v12, %v5180_v23  ;;  %v432_v22 = vrot.slane %v418_v13, %v5180_v23 }
 0x15f   : > { %v569_v24 = vcombine.low %v378_v41, %v390_v14  ;;  %v570_v25 = vcombine.high %v378_v41, %v390_v14  ;;  %v433_v26 = vcombine.low %v376_v42, %v388_v15  ;;  %v434_v27 = vcombine.high %v376_v42, %v388_v15 }
 0x160   : > { %v1349_v28 = vcombine.low %v5208_v16, %v5211_v18  ;;  %v1381_v29 = vcombine.low %v5214_v19, %v5217_v20  ;;  %v5228_v30 = vrot.slane %v4020_v61, %v5180_v23  ;;  %v5231_v31 = vrot.slane %v4022_v62, %v5180_v23 }
 0x161   : > { %v577_v32 = vrot.slane %v569_v24, %v5180_v23  ;;  %v584_v33 = vrot.slane %v570_v25, %v5180_v23  ;;  %v441_v35 = vrot.slane %v433_v26, %v5180_v23  ;;  %v448_v36 = vrot.slane %v434_v27, %v5180_v23  ;;  %v5237_v37 = vpop.permute.xlu1 %991  ;;  %v5239_v38 = vpop.permute.xlu0 %989 }
 0x162   : > { %v5242_v39 = vrot.slane %v1349_v28, %v5187_v34  ;;  %v5245_v40 = vrot.slane %v1381_v29, %v5187_v34  ;;  %v5248_v41 = vrot.slane %v4024_v63, %v5180_v23  ;;  %v5251_v42 = vrot.slane %v4026_v0, %v5180_v23 }
 0x163   : > { %v617_v43 = vcombine.low %v561_v4, %v577_v32  ;;  %v618_v44 = vcombine.high %v561_v4, %v577_v32  ;;  %v633_v45 = vcombine.low %v568_v21, %v584_v33  ;;  %v634_v46 = vcombine.high %v568_v21, %v584_v33 }
 0x164   : > { %v481_v47 = vcombine.low %v425_v5, %v441_v35  ;;  %v482_v48 = vcombine.high %v425_v5, %v441_v35  ;;  %v497_v49 = vcombine.low %v432_v22, %v448_v36  ;;  %v498_v50 = vcombine.high %v432_v22, %v448_v36 }
 0x165   : > { %v625_v51 = vrot.slane %v617_v43, %v5187_v34  ;;  %v632_v52 = vrot.slane %v618_v44, %v5187_v34  ;;  %v641_v53 = vrot.slane %v633_v45, %v5187_v34  ;;  %v648_v54 = vrot.slane %v634_v46, %v5187_v34  ;;  %v998_v55 = vpop.permute.xlu1 %997  ;;  %v996_v56 = vpop.permute.xlu0 %995 }
 0x166   : > { %v489_v57 = vrot.slane %v481_v47, %v5187_v34  ;;  %v496_v58 = vrot.slane %v482_v48, %v5187_v34  ;;  %v505_v59 = vrot.slane %v497_v49, %v5187_v34  ;;  %v512_v60 = vrot.slane %v498_v50, %v5187_v34 }
 0x167   : > { %v4004_v61 = vcombine.low %v625_v51, %v632_v52  ;;  %v4006_v62 = vcombine.high %v625_v51, %v632_v52  ;;  %v4008_v63 = vcombine.low %v641_v53, %v648_v54  ;;  %v4010_v0 = vcombine.high %v641_v53, %v648_v54 }
 0x168   : > { %v3996_v1 = vcombine.low %v489_v57, %v496_v58  ;;  %v3998_v2 = vcombine.high %v489_v57, %v496_v58  ;;  %v4000_v3 = vcombine.low %v505_v59, %v512_v60  ;;  %v4002_v9 = vcombine.high %v505_v59, %v512_v60 }
 0x169   : > { %v5262_v10 = vrot.slane %v4004_v61, %v5180_v23  ;;  %v5265_v11 = vrot.slane %v4006_v62, %v5180_v23  ;;  %v5268_v12 = vrot.slane %v4008_v63, %v5180_v23  ;;  %v5271_v13 = vrot.slane %v4010_v0, %v5180_v23  ;;  %v1004_v14 = vpop.permute.xlu1 %1003  ;;  %v1002_v15 = vpop.permute.xlu0 %1001 }
 0x16a   : > { %v697_v4 = vrot.slane %v3996_v1, %v5180_v23  ;;  %v713_v21 = vrot.slane %v3998_v2, %v5180_v23  ;;  %v729_v5 = vrot.slane %v4000_v3, %v5180_v23  ;;  %v745_v22 = vrot.slane %v4002_v9, %v5180_v23 }
 0x16b   : > { %v1485_v24 = vcombine.low %v5228_v30, %v5231_v31  ;;  %v1517_v25 = vcombine.low %v5248_v41, %v5251_v42  ;;  %v1181_v26 = vcombine.low %v5237_v37, %v1004_v14  ;;  %v890_v27 = vcombine.high %v5262_v10, %v5265_v11 }
 0x16c   : > { %v922_v28 = vcombine.high %v5268_v12, %v5271_v13  ;;  %v1182_v32 = vcombine.high %v5237_v37, %v1004_v14  ;;  %v754_v36 = vcombine.high %v697_v4, %v713_v21  ;;  %v786_v43 = vcombine.high %v729_v5, %v745_v22 }
 0x16d   : > { %v5287_v29 = vrot.slane %v1485_v24, %v5187_v34  ;;  %v1010_v33 = vpop.permute.xlu1 %1009  ;;  %v1008_v35 = vpop.permute.xlu0 %1007  ;;  %v1413_v44 = vcombine.low %v5242_v39, %v5245_v40  ;;  %v5293_v45 = vrot.slane %v1517_v25, %v5187_v34  ;;  %v1189_v46 = vrot.slane %v1181_v26, %v5180_v23 }
 0x16e   : > { %v1045_v47 = vcombine.low %v5239_v38, %v1002_v15  ;;  %v1046_v48 = vcombine.high %v5239_v38, %v1002_v15  ;;  %v1197_v49 = vcombine.low %v998_v55, %v1010_v33  ;;  %v1198_v50 = vcombine.high %v998_v55, %v1010_v33 }
 0x16f   : > { %v1549_v37 = vcombine.low %v5287_v29, %v5293_v45  ;;  %v1061_v51 = vcombine.low %v996_v56, %v1008_v35  ;;  %v1062_v52 = vcombine.high %v996_v56, %v1008_v35  ;;  %v1196_v53 = vrot.slane %v1182_v32, %v5180_v23 }
 0x170   : > { %v1053_v54 = vrot.slane %v1045_v47, %v5180_v23  ;;  %v1205_v57 = vrot.slane %v1197_v49, %v5180_v23  ;;  %v753_v60 = vcombine.low %v697_v4, %v713_v21  ;;  %v1212_v38 = vrot.slane %v1198_v50, %v5180_v23 }
 0x171   : > { %v5303_v58 = vpop.permute.xlu1 %395  ;;  %v5305_v59 = vpop.permute.xlu0 %393  ;;  %v1557_v61 = vpack.c.bf16 %v1549_v37, %v1413_v44  ;;  %v1069_v62 = vrot.slane %v1061_v51, %v5180_v23  ;;  %v1076_v55 = vrot.slane %v1062_v52, %v5180_v23  ;;  %v1060_v56 = vrot.slane %v1046_v48, %v5180_v23 }
 0x172   : > { %v1245_v63 = vcombine.low %v1189_v46, %v1205_v57  ;;  %v1246_v0 = vcombine.high %v1189_v46, %v1205_v57  ;;  %v785_v1 = vcombine.low %v729_v5, %v745_v22  ;;  %v1261_v3 = vcombine.low %v1196_v53, %v1212_v38 }
 0x173   : > { %v2166_v2 = vsel %vm2161_vm1, %v1557_v61, 0  ;;  %v1262_v9 = vcombine.high %v1196_v53, %v1212_v38  ;;  %v1109_v14 = vcombine.low %v1053_v54, %v1069_v62  ;;  %v1110_v21 = vcombine.high %v1053_v54, %v1069_v62 }
 0x174   : > { %4135 = vmatpush3.bf16.xpose.msra.mxu1 %v2166_v2  ;;  %v5313_v15 = vrot.slane %v1245_v63, %v5187_v34  ;;  %v5316_v4 = vrot.slane %v1246_v0, %v5187_v34  ;;  %v5323_v26 = vrot.slane %v1261_v3, %v5187_v34  ;;  %v1125_v22 = vcombine.low %v1060_v56, %v1076_v55 }
 0x175   : > { %v5318_v24 = vpop.permute.xlu1 %401  ;;  %v5320_v25 = vpop.permute.xlu0 %399  ;;  %v5326_v5 = vrot.slane %v1262_v9, %v5187_v34  ;;  %4140 = vmatprep.subr.bf16.mxu1 %v4744_v6  ;;  %v761_v32 = vrot.slane %v753_v60, %v5187_v34  ;;  %v5331_v33 = vrot.slane %v890_v27, %v5187_v34  ;;  %v5334_v35 = vrot.slane %v922_v28, %v5187_v34 }
 0x176   : > { %v5337_v44 = vrot.slane %v754_v36, %v5187_v34  ;;  %v5340_v46 = vrot.slane %v786_v43, %v5187_v34  ;;  %v5343_v47 = vrot.slane %v1109_v14, %v5187_v34  ;;  %v1126_v48 = vcombine.high %v1060_v56, %v1076_v55 }
 0x177   : > { %v793_v49 = vrot.slane %v785_v1, %v5187_v34  ;;  %v4021_v37 = vcombine.low %v5313_v15, %v5316_v4  ;;  %v5349_v27 = vrot.slane %v1110_v21, %v5187_v34  ;;  %v889_v28 = vcombine.low %v5262_v10, %v5265_v11 }
 0x178   : > { %v921_v36 = vcombine.low %v5268_v12, %v5271_v13  ;;  %v4023_v51 = vcombine.high %v5313_v15, %v5316_v4  ;;  %v4025_v52 = vcombine.low %v5323_v26, %v5326_v5  ;;  %v5360_v53 = vrot.slane %v1125_v22, %v5187_v34 }
 0x179   : > { %v408_v43 = vpop.permute.xlu1 %407  ;;  %v406_v50 = vpop.permute.xlu0 %405  ;;  %v817_v54 = vcombine.low %v761_v32, %v793_v49  ;;  %v897_v57 = vrot.slane %v889_v28, %v5187_v34  ;;  %v1414_v10 = vcombine.high %v5242_v39, %v5245_v40  ;;  %v1550_v11 = vcombine.high %v5287_v29, %v5293_v45 }
 0x17a   : > { %v929_v60 = vrot.slane %v921_v36, %v5187_v34  ;;  %v5369_v12 = vrot.slane %v1126_v48, %v5187_v34  ;;  %v585_v13 = vcombine.low %v5303_v58, %v408_v43  ;;  %v586_v61 = vcombine.high %v5303_v58, %v408_v43 }
 0x17b   : > { %v449_v38 = vcombine.low %v5305_v59, %v406_v50  ;;  %v4013_v62 = vcombine.low %v5343_v47, %v5349_v27  ;;  %v1558_v56 = vpack.c.bf16 %v1550_v11, %v1414_v10  ;;  %v1350_v39 = vcombine.high %v5208_v16, %v5211_v18 }
 0x17c   : > { %v953_v55 = vcombine.low %v897_v57, %v929_v60  ;;  %v818_v63 = vcombine.high %v761_v32, %v793_v49  ;;  %v954_v29 = vcombine.high %v897_v57, %v929_v60  ;;  %v593_v45 = vrot.slane %v585_v13, %v5180_v23 }
 0x17d   : > { %v414_v40 = vpop.permute.xlu1 %413  ;;  %v450_v0 = vcombine.high %v5305_v59, %v406_v50  ;;  %v412_v1 = vpop.permute.xlu0 %411  ;;  %v600_v58 = vrot.slane %v586_v61, %v5180_v23  ;;  %v457_v3 = vrot.slane %v449_v38, %v5180_v23  ;;  %v5383_v9 = vrot.slane %v1350_v39, %v5187_v34 }
 0x17e   : > { %v961_v2 = vpack.c.bf16 %v953_v55, %v817_v54  ;;  %v1382_v14 = vcombine.high %v5214_v19, %v5217_v20  ;;  %v1486_v16 = vcombine.high %v5228_v30, %v5231_v31  ;;  %v1518_v18 = vcombine.high %v5248_v41, %v5251_v42 }
 0x17f   : > { %v601_v59 = vcombine.low %v5318_v24, %v414_v40  ;;  %v2213_v21 = vsel %vm2161_vm1, %v1558_v56, 0  ;;  %v602_v22 = vcombine.high %v5318_v24, %v414_v40  ;;  %v465_v32 = vcombine.low %v5320_v25, %v412_v1 }
 0x180   : > { %4137 = vmatmul.mubr.msk.bf16.vlgmr.msra.gmra.mrb[0].mxu1 %vm2161_vm1, %v961_v2  ;;  %v466_v48 = vcombine.high %v5320_v25, %v412_v1  ;;  %v1396_v19 = vrot.slane %v1382_v14, %v5187_v34  ;;  %v1500_v20 = vrot.slane %v1486_v16, %v5187_v34  ;;  %v1532_v30 = vrot.slane %v1518_v18, %v5187_v34 }
 0x181   : > { %4141 = vmatpush3.bf16.xpose.msra.mxu1 %v2213_v21  ;;  %4142 = vmatprep.mubr.msk.bf16.mxu1 %vm4749_vm0, %v4744_v6  ;;  %v609_v31 = vrot.slane %v601_v59, %v5180_v23  ;;  %v616_v41 = vrot.slane %v602_v22, %v5180_v23  ;;  %v473_v42 = vrot.slane %v465_v32, %v5180_v23 }
 0x182   : > { %4146 = vmatprep.subr.bf16.mxu1 %v4744_v6  ;;  %v480_v24 = vrot.slane %v466_v48, %v5180_v23  ;;  %v464_v25 = vrot.slane %v450_v0, %v5180_v23  ;;  %v962_v49 = vpack.c.bf16 %v954_v29, %v818_v63  ;;  %v1415_v28 = vcombine.low %v5383_v9, %v1396_v19 }
 0x183   : > { %v1551_v36 = vcombine.low %v1500_v20, %v1532_v30  ;;  %v649_v43 = vcombine.low %v593_v45, %v609_v31  ;;  %v650_v50 = vcombine.high %v593_v45, %v609_v31  ;;  %v665_v54 = vcombine.low %v600_v58, %v616_v41 }
 0x184   : > { %v666_v57 = vcombine.high %v600_v58, %v616_v41  ;;  %v513_v10 = vcombine.low %v457_v3, %v473_v42  ;;  %v514_v11 = vcombine.high %v457_v3, %v473_v42  ;;  %v529_v13 = vcombine.low %v464_v25, %v480_v24 }
 0x185   : > { %v1559_v60 = vpack.c.bf16 %v1551_v36, %v1415_v28  ;;  %v657_v61 = vrot.slane %v649_v43, %v5187_v34  ;;  %v664_v38 = vrot.slane %v650_v50, %v5187_v34  ;;  %v673_v55 = vrot.slane %v665_v54, %v5187_v34 }
 0x186   : > { %v680_v56 = vrot.slane %v666_v57, %v5187_v34  ;;  %v4015_v39 = vcombine.high %v5343_v47, %v5349_v27  ;;  %v521_v40 = vrot.slane %v513_v10, %v5187_v34  ;;  %v528_v63 = vrot.slane %v514_v11, %v5187_v34 }
 0x187   : > { %v530_v29 = vcombine.high %v464_v25, %v480_v24  ;;  %v2260_v45 = vsel %vm2161_vm1, %v1559_v60, 0  ;;  %v4005_v0 = vcombine.low %v657_v61, %v664_v38  ;;  %v4007_v1 = vcombine.high %v657_v61, %v664_v38 }
 0x188   : > { %4143 = vmatmul.mubr.msk.bf16.vlgmr.msra.gmra.mrb[4].mxu1 %vm2161_vm1, %v962_v49  ;;  %v4009_v2 = vcombine.low %v673_v55, %v680_v56  ;;  %v4011_v58 = vcombine.high %v673_v55, %v680_v56  ;;  %v537_v3 = vrot.slane %v529_v13, %v5187_v34  ;;  %v3997_v16 = vcombine.low %v521_v40, %v528_v63 }
 0x189   : > { %4147 = vmatpush3.bf16.xpose.msra.mxu1 %v2260_v45  ;;  %v544_v14 = vrot.slane %v530_v29, %v5187_v34  ;;  %v3999_v18 = vcombine.high %v521_v40, %v528_v63  ;;  %4148 = vmatprep.mubr.msk.bf16.mxu1 %vm4749_vm0, %v4744_v6  ;;  %v819_v59 = vcombine.low %v5337_v44, %v5340_v46 }
 0x18a   : > { %v955_v21 = vcombine.low %v5331_v33, %v5334_v35  ;;  %v1416_v22 = vcombine.high %v5383_v9, %v1396_v19  ;;  %v4017_v32 = vcombine.low %v5360_v53, %v5369_v12  ;;  %v4019_v48 = vcombine.high %v5360_v53, %v5369_v12  ;;  %4152 = vmatprep.subr.bf16.mxu1 %v4744_v6 }
 0x18b   : > { %v4001_v31 = vcombine.low %v537_v3, %v544_v14  ;;  %v4003_v41 = vcombine.high %v537_v3, %v544_v14  ;;  %v4027_v42 = vcombine.high %v5323_v26, %v5326_v5  ;;  %v5436_v24 = vrot.slane %v4005_v0, %v5180_v23 }
 0x18c   : > { %v5439_v25 = vrot.slane %v4007_v1, %v5180_v23  ;;  %v1552_v9 = vcombine.high %v1500_v20, %v1532_v30  ;;  %v5442_v19 = vrot.slane %v4009_v2, %v5180_v23  ;;  %v5445_v49 = vrot.slane %v4011_v58, %v5180_v23 }
 0x18d   : > { %v5448_v53 = vrot.slane %v3997_v16, %v5180_v23  ;;  %v1300_v12 = vrot.slane %v4013_v62, %v5180_v23  ;;  %v5455_v28 = vrot.slane %v3999_v18, %v5180_v23  ;;  %v963_v36 = vpack.c.bf16 %v955_v21, %v819_v59 }
 0x18e   : > { %v1560_v43 = vpack.c.bf16 %v1552_v9, %v1416_v22  ;;  %v1316_v20 = vrot.slane %v4015_v39, %v5180_v23  ;;  %v5459_v30 = vrot.slane %v4001_v31, %v5180_v23  ;;  %v5462_v50 = vrot.slane %v4003_v41, %v5180_v23 }
 0x18f   : > { %v1332_v54 = vrot.slane %v4017_v32, %v5180_v23  ;;  %v1348_v57 = vrot.slane %v4019_v48, %v5180_v23  ;;  %v1436_v62 = vrot.slane %v4021_v37, %v5180_v23  ;;  %v1452_v60 = vrot.slane %v4023_v51, %v5180_v23 }
 0x190   : > { %4149 = vmatmul.mubr.msk.bf16.vlgmr.msra.gmra.mrb[8].mxu1 %vm2161_vm1, %v963_v36  ;;  %v2307_v47 = vsel %vm2161_vm1, %v1560_v43, 0  ;;  %v1365_v27 = vcombine.low %v1300_v12, %v1316_v20  ;;  %v1468_v11 = vrot.slane %v4025_v52, %v5180_v23  ;;  %v1484_v13 = vrot.slane %v4027_v42, %v5180_v23 }
 0x191   : > { %4153 = vmatpush3.bf16.xpose.msra.mxu1 %v2307_v47  ;;  %v1397_v10 = vcombine.low %v1332_v54, %v1348_v57  ;;  %v1501_v38 = vcombine.low %v1436_v62, %v1452_v60  ;;  %4154 = vmatprep.mubr.msk.bf16.mxu1 %vm4749_vm0, %v4744_v6  ;;  %v820_v15 = vcombine.high %v5337_v44, %v5340_v46 }
 0x192   : > { %v1373_v61 = vrot.slane %v1365_v27, %v5187_v34  ;;  %4164 = vmatprep.subr.bf16.mxu1 %v4744_v6  ;;  %v1533_v37 = vcombine.low %v1468_v11, %v1484_v13  ;;  %v956_v26 = vcombine.high %v5331_v33, %v5334_v35  ;;  %v769_v5 = vcombine.low %v5448_v53, %v5455_v28 }
 0x193   : > { %v1405_v4 = vrot.slane %v1397_v10, %v5187_v34  ;;  %v1509_v51 = vrot.slane %v1501_v38, %v5187_v34  ;;  %v801_v52 = vcombine.low %v5459_v30, %v5462_v50  ;;  %v905_v55 = vcombine.low %v5436_v24, %v5439_v25 }
 0x194   : > { %v937_v44 = vcombine.low %v5442_v19, %v5445_v49  ;;  %v1541_v56 = vrot.slane %v1533_v37, %v5187_v34  ;;  %v964_v39 = vpack.c.bf16 %v956_v26, %v820_v15  ;;  %v777_v33 = vrot.slane %v769_v5, %v5187_v34  ;;  %v1570_v26 = vpop.permute.xlu0 %1569 }
 0x195   : > { %v1417_v46 = vcombine.low %v1373_v61, %v1405_v4  ;;  %v1418_v40 = vcombine.high %v1373_v61, %v1405_v4  ;;  %v809_v35 = vrot.slane %v801_v52, %v5187_v34  ;;  %v913_v63 = vrot.slane %v905_v55, %v5187_v34  ;;  %v1568_v4 = vpop.permute.xlu1 %1567 }
 0x196   : > { %v945_v29 = vrot.slane %v937_v44, %v5187_v34  ;;  %v1553_v45 = vcombine.low %v1509_v51, %v1541_v56  ;;  %v1554_v0 = vcombine.high %v1509_v51, %v1541_v56  ;;  %v1366_v1 = vcombine.high %v1300_v12, %v1316_v20 }
 0x197   : > { %v1398_v2 = vcombine.high %v1332_v54, %v1348_v57  ;;  %v770_v58 = vcombine.high %v5448_v53, %v5455_v28  ;;  %v802_v3 = vcombine.high %v5459_v30, %v5462_v50  ;;  %v821_v14 = vcombine.low %v777_v33, %v809_v35 }
 0x198   : > { %4155 = vmatmul.mubr.msk.bf16.vlgmr.msra.gmra.mrb[12].mxu1 %vm2161_vm1, %v964_v39  ;;  %v1561_v16 = vpack.c.bf16 %v1553_v45, %v1417_v46  ;;  %v1562_v18 = vpack.c.bf16 %v1554_v0, %v1418_v40  ;;  %v1380_v59 = vrot.slane %v1366_v1, %v5187_v34  ;;  %v822_v22 = vcombine.high %v777_v33, %v809_v35  ;;  %v1580_v51 = vpop.permute.xlu0 %1579 }
 0x199   : > { %4166 = vmatprep.mubr.msk.bf16.mxu1 %vm4749_vm0, %v4744_v6  ;;  %v1412_v21 = vrot.slane %v1398_v2, %v5187_v34  ;;  %v957_v32 = vcombine.low %v913_v63, %v945_v29  ;;  %v1502_v48 = vcombine.high %v1436_v62, %v1452_v60  ;;  %v1534_v31 = vcombine.high %v1468_v11, %v1484_v13  ;;  %v1574_v37 = vpop.permute.xlu1 %1573 }
 0x19a   : > { %v2354_v41 = vsel %vm2161_vm1, %v1561_v16, 0  ;;  %v2401_v42 = vsel %vm2161_vm1, %v1562_v18, 0  ;;  %v958_v9 = vcombine.high %v913_v63, %v945_v29  ;;  %v906_v43 = vcombine.high %v5436_v24, %v5439_v25 }
 0x19b   : > { %v1419_v53 = vcombine.low %v1380_v59, %v1412_v21  ;;  %4159 = vmatpush3.bf16.xpose.msra.mxu0 %v2354_v41  ;;  %4165 = vmatpush3.bf16.xpose.msra.mxu1 %v2401_v42  ;;  %v1516_v12 = vrot.slane %v1502_v48, %v5187_v34  ;;  %v1548_v28 = vrot.slane %v1534_v31, %v5187_v34 }
 0x19c   : > { %v1420_v36 = vcombine.high %v1380_v59, %v1412_v21  ;;  %v938_v20 = vcombine.high %v5442_v19, %v5445_v49  ;;  %4170 = vmatprep.subr.bf16.mxu0 %v4744_v6  ;;  %4176 = vmatprep.subr.bf16.mxu1 %v4744_v6  ;;  %v965_v54 = vpack.c.bf16 %v957_v32, %v821_v14 }
 0x19d   : > { %v1555_v30 = vcombine.low %v1516_v12, %v1548_v28  ;;  %v1556_v50 = vcombine.high %v1516_v12, %v1548_v28  ;;  %v966_v57 = vpack.c.bf16 %v958_v9, %v822_v22  ;;  %v784_v47 = vrot.slane %v770_v58, %v5187_v34  ;;  %v1576_v5 = vpop.permute.xlu1 %1575 }
 0x19e   : > { %v816_v27 = vrot.slane %v802_v3, %v5187_v34  ;;  %v920_v10 = vrot.slane %v906_v43, %v5187_v34  ;;  %v952_v24 = vrot.slane %v938_v20, %v5187_v34  ;;  %v1609_v52 = vcombine.low %v5153_v8, %v1574_v37 }
 0x19f   : > { %v1563_v62 = vpack.c.bf16 %v1555_v30, %v1419_v53  ;;  %v1564_v60 = vpack.c.bf16 %v1556_v50, %v1420_v36  ;;  %v1610_v55 = vcombine.high %v5153_v8, %v1574_v37  ;;  %v1625_v44 = vcombine.low %v1568_v4, %v1580_v51 }
 0x1a0   : > { %v823_v49 = vcombine.low %v784_v47, %v816_v27  ;;  %v959_v11 = vcombine.low %v920_v10, %v952_v24  ;;  %v824_v13 = vcombine.high %v784_v47, %v816_v27  ;;  %v960_v61 = vcombine.high %v920_v10, %v952_v24 }
 0x1a1   : > { %v2448_v25 = vsel %vm2161_vm1, %v1563_v62, 0  ;;  %v2495_v19 = vsel %vm2161_vm1, %v1564_v60, 0  ;;  %v1626_v46 = vcombine.high %v1568_v4, %v1580_v51  ;;  %v1745_v56 = vcombine.low %v5150_v7, %v1576_v5  ;;  %v1582_v40 = vpop.permute.xlu1 %1581 }
 0x1a2   : > { %4161 = vmatmul.mubr.msk.bf16.vlgmr.msra.gmra.mrb[0].mxu0 %vm2161_vm1, %v965_v54  ;;  %4167 = vmatmul.mubr.msk.bf16.vlgmr.msra.gmra.mrb[16].mxu1 %vm2161_vm1, %v966_v57  ;;  %v967_v38 = vpack.c.bf16 %v959_v11, %v823_v49  ;;  %v968_v15 = vpack.c.bf16 %v960_v61, %v824_v13  ;;  %v1746_v39 = vcombine.high %v5150_v7, %v1576_v5 }
 0x1a3   : > { %4171 = vmatpush3.bf16.xpose.msra.mxu0 %v2448_v25  ;;  %4177 = vmatpush3.bf16.xpose.msra.mxu1 %v2495_v19  ;;  %v1761_v33 = vcombine.low %v1570_v26, %v1582_v40  ;;  %v1762_v35 = vcombine.high %v1570_v26, %v1582_v40  ;;  %v1617_v63 = vrot.slane %v1609_v52, %v5180_v23 }
 0x1a4   : > { %4172 = vmatprep.mubr.msk.bf16.mxu0 %vm4749_vm0, %v4744_v6  ;;  %4178 = vmatprep.mubr.msk.bf16.mxu1 %vm4749_vm0, %v4744_v6  ;;  %v1624_v29 = vrot.slane %v1610_v55, %v5180_v23  ;;  %v1633_v45 = vrot.slane %v1625_v44, %v5180_v23  ;;  %v1640_v0 = vrot.slane %v1626_v46, %v5180_v23 }
 0x1a5   : > { %4182 = vmatprep.subr.bf16.mxu0 %v4744_v6  ;;  %4188 = vmatprep.subr.bf16.mxu1 %v4744_v6  ;;  %v1753_v1 = vrot.slane %v1745_v56, %v5180_v23  ;;  %v1760_v8 = vrot.slane %v1746_v39, %v5180_v23  ;;  %v1769_v2 = vrot.slane %v1761_v33, %v5180_v23 }
 0x1a6   : > { %v1776_v58 = vrot.slane %v1762_v35, %v5180_v23  ;;  %v1673_v7 = vcombine.low %v1617_v63, %v1633_v45  ;;  %v1674_v3 = vcombine.high %v1617_v63, %v1633_v45  ;;  %v1689_v14 = vcombine.low %v1624_v29, %v1640_v0 }
 0x1a7   : > { %v1690_v16 = vcombine.high %v1624_v29, %v1640_v0  ;;  %v1809_v18 = vcombine.low %v1753_v1, %v1769_v2  ;;  %v1810_v59 = vcombine.high %v1753_v1, %v1769_v2 }
 0x1a8   : > { %v1825_v21 = vcombine.low %v1760_v8, %v1776_v58  ;;  %v1826_v22 = vcombine.high %v1760_v8, %v1776_v58  ;;  %v1681_v32 = vrot.slane %v1673_v7, %v5187_v34  ;;  %v1688_v48 = vrot.slane %v1674_v3, %v5187_v34 }
 0x1a9   : > { %v1697_v31 = vrot.slane %v1689_v14, %v5187_v34  ;;  %v1704_v41 = vrot.slane %v1690_v16, %v5187_v34  ;;  %v1817_v42 = vrot.slane %v1809_v18, %v5187_v34  ;;  %v1824_v9 = vrot.slane %v1810_v59, %v5187_v34 }
 0x1aa   : > { %4173 = vmatmul.mubr.msk.bf16.vlgmr.msra.gmra.mrb[4].mxu0 %vm2161_vm1, %v967_v38  ;;  %4179 = vmatmul.mubr.msk.bf16.vlgmr.msra.gmra.mrb[20].mxu1 %vm2161_vm1, %v968_v15  ;;  %v1833_v53 = vrot.slane %v1825_v21, %v5187_v34  ;;  %v1840_v12 = vrot.slane %v1826_v22, %v5187_v34  ;;  %v4028_v28 = vcombine.low %v1681_v32, %v1688_v48 }
 0x1ab   : > { %4184 = vmatprep.mubr.msk.bf16.mxu0 %vm4749_vm0, %v4744_v6  ;;  %4190 = vmatprep.mubr.msk.bf16.mxu1 %vm4749_vm0, %v4744_v6  ;;  %v4030_v36 = vcombine.high %v1681_v32, %v1688_v48  ;;  %v4032_v43 = vcombine.low %v1697_v31, %v1704_v41  ;;  %v4034_v20 = vcombine.high %v1697_v31, %v1704_v41 }
 0x1ac   : > { %v4036_v30 = vcombine.low %v1817_v42, %v1824_v9  ;;  %v4038_v50 = vcombine.high %v1817_v42, %v1824_v9  ;;  %v4040_v54 = vcombine.low %v1833_v53, %v1840_v12  ;;  %v4042_v57 = vcombine.high %v1833_v53, %v1840_v12 }
 0x1ad   : > { %v1889_v47 = vrot.slane %v4028_v28, %v5180_v23  ;;  %v1905_v27 = vrot.slane %v4030_v36, %v5180_v23  ;;  %v1921_v62 = vrot.slane %v4032_v43, %v5180_v23  ;;  %v1937_v60 = vrot.slane %v4034_v20, %v5180_v23 }
 0x1ae   : > { %v2025_v10 = vrot.slane %v4036_v30, %v5180_v23  ;;  %v2041_v24 = vrot.slane %v4038_v50, %v5180_v23  ;;  %v2057_v25 = vrot.slane %v4040_v54, %v5180_v23  ;;  %v2073_v19 = vrot.slane %v4042_v57, %v5180_v23 }
 0x1af   : > { %v1945_v49 = vcombine.low %v1889_v47, %v1905_v27  ;;  %v1977_v11 = vcombine.low %v1921_v62, %v1937_v60  ;;  %v1946_v35 = vcombine.high %v1889_v47, %v1905_v27  ;;  %v1978_v63 = vcombine.high %v1921_v62, %v1937_v60 }
 0x1b0   : > { %v2081_v13 = vcombine.low %v2025_v10, %v2041_v24  ;;  %v2113_v61 = vcombine.low %v2057_v25, %v2073_v19  ;;  %v2082_v29 = vcombine.high %v2025_v10, %v2041_v24  ;;  %v2114_v45 = vcombine.high %v2057_v25, %v2073_v19 }
 0x1b1   : > { %v1953_v38 = vrot.slane %v1945_v49, %v5187_v34  ;;  %v1985_v15 = vrot.slane %v1977_v11, %v5187_v34  ;;  %v1960_v8 = vrot.slane %v1946_v35, %v5187_v34  ;;  %v1992_v2 = vrot.slane %v1978_v63, %v5187_v34  ;;  %v5657_v63 = vpop.permute.xlu0 %1587 }
 0x1b2   : > { %v2089_v4 = vrot.slane %v2081_v13, %v5187_v34  ;;  %v2121_v37 = vrot.slane %v2113_v61, %v5187_v34  ;;  %v2096_v58 = vrot.slane %v2082_v29, %v5187_v34  ;;  %v2128_v3 = vrot.slane %v2114_v45, %v5187_v34 }
 0x1b3   : > { %v2009_v26 = vcombine.low %v1953_v38, %v1985_v15  ;;  %v2010_v51 = vcombine.high %v1953_v38, %v1985_v15  ;;  %v2011_v16 = vcombine.low %v1960_v8, %v1992_v2  ;;  %v2012_v18 = vcombine.high %v1960_v8, %v1992_v2 }
 0x1b4   : > { %v2145_v5 = vcombine.low %v2089_v4, %v2121_v37  ;;  %v2146_v52 = vcombine.high %v2089_v4, %v2121_v37  ;;  %v2147_v59 = vcombine.low %v2096_v58, %v2128_v3  ;;  %v2148_v21 = vcombine.high %v2096_v58, %v2128_v3  ;;  %v5664_v58 = vpop.permute.xlu1 %1585 }
 0x1b6   : > { %v2153_v55 = vpack.c.bf16 %v2145_v5, %v2009_v26  ;;  %v2154_v44 = vpack.c.bf16 %v2146_v52, %v2010_v51  ;;  %v5591_v22 = vpack.c.bf16 %v2147_v59, %v2011_v16  ;;  %v5593_v32 = vpack.c.bf16 %v2148_v21, %v2012_v18 }
 0x1b8   : > { %4183 = vmatpush3.bf16.msra.mxu0 %v2153_v55  ;;  %4189 = vmatpush3.bf16.msra.mxu1 %v2154_v44  ;;  %v5666_v3 = vpop.permute.xlu1 %1591 }
 0x1b9   : > { %4194 = vmatprep.subr.bf16.mxu0 %v4744_v6  ;;  %4200 = vmatprep.subr.bf16.mxu1 %v4744_v6 }
 0x253   : > { %v5577_v46 = vpop.f32.mrb[0].mxu1 }
 0x254   : > { %v4138_v56 = vpop.f32.mrb[1].mxu1  ;;  %v2538_v39 = vsel %vm2161_vm1, %v5577_v46, -inf }
 0x255   : > { %2539 = vmax.xlane.f32.xlu0 %v2538_v39  ;;  %v5581_v40 = vpop.f32.mrb[2].mxu1  ;;  %v5648_v39 = vld [vmem:[%s5057_s26 + $0x28] sm:$0xff] }
 0x256   : > { %v4139_v33 = vpop.f32.mrb[3].mxu1  ;;  %v2541_v60 = vsel %vm2161_vm1, %v5581_v40, -inf }
 0x257   : > { %v4472_v33 = vld [vmem:[%s5057_s26 + $0x10] sm:$0xff] }
 0x25b   : > { %v5583_v0 = vpop.f32.mrb[4].mxu1 }
 0x25c   : > { %v4144_v1 = vpop.f32.mrb[5].mxu1  ;;  %v2544_v10 = vsel %vm2161_vm1, %v5583_v0, -inf }
 0x25d   : > { %v5588_v7 = vpop.f32.mrb[6].mxu1 }
 0x25e   : > { %v4145_v14 = vpop.f32.mrb[7].mxu1  ;;  %v2547_v4 = vsel %vm2161_vm1, %v5588_v7, -inf }
 0x25f   : > { %v5668_v14 = vpop.permute.xlu1 %1593 }
 0x263   : > { %v5595_v48 = vpop.f32.mrb[8].mxu1 }
 0x264   : > { %v4150_v31 = vpop.f32.mrb[9].mxu1  ;;  %v2550_v37 = vsel %vm2161_vm1, %v5595_v48, -inf }
 0x265   : > { %v5597_v41 = vpop.f32.mrb[10].mxu1 }
 0x266   : > { %v4151_v42 = vpop.f32.mrb[11].mxu1  ;;  %v2553_v51 = vsel %vm2161_vm1, %v5597_v41, -inf }
 0x26b   : > { %v5599_v9 = vpop.f32.mrb[12].mxu1 }
 0x26c   : > { %v4156_v53 = vpop.f32.mrb[13].mxu1  ;;  %v2556_v5 = vsel %vm2161_vm1, %v5599_v9, -inf }
 0x26d   : > { %v5601_v12 = vpop.f32.mrb[14].mxu1 }
 0x26e   : > { %v4157_v28 = vpop.f32.mrb[15].mxu1  ;;  %v2559_v55 = vsel %vm2161_vm1, %v5601_v12, -inf }
 0x275   : > { %v5603_v36 = vpop.f32.mrb[0].mxu0  ;;  %v5605_v43 = vpop.f32.mrb[16].mxu1 }
 0x276   : > { %v4162_v20 = vpop.f32.mrb[1].mxu0  ;;  %v4168_v30 = vpop.f32.mrb[17].mxu1  ;;  %v2562_v50 = vsel %vm2161_vm1, %v5603_v36, -inf  ;;  %v2568_v52 = vsel %vm2161_vm1, %v5605_v43, -inf }
 0x277   : > { %v5609_v54 = vpop.f32.mrb[18].mxu1  ;;  %2563 = vmax.xlane.f32.xlu1 %v2562_v50  ;;  %v5611_v57 = vpop.f32.mrb[2].mxu0 }
 0x278   : > { %v4163_v47 = vpop.f32.mrb[3].mxu0  ;;  %v4169_v27 = vpop.f32.mrb[19].mxu1  ;;  %v2565_v62 = vsel %vm2161_vm1, %v5611_v57, -inf  ;;  %v2571_v56 = vsel %vm2161_vm1, %v5609_v54, -inf }
 0x279   : > { %2566 = vmax.xlane.f32.xlu0 %v2565_v62 }
 0x27b   : > { %2542 = vmax.xlane.f32.xlu1 %v2541_v60 }
 0x27d   : > { %v5619_v24 = vpop.f32.mrb[20].mxu1  ;;  %2545 = vmax.xlane.f32.xlu0 %v2544_v10  ;;  %v5621_v25 = vpop.f32.mrb[4].mxu0 }
 0x27e   : > { %v4174_v19 = vpop.f32.mrb[5].mxu0  ;;  %v4180_v49 = vpop.f32.mrb[21].mxu1  ;;  %v2574_v11 = vsel %vm2161_vm1, %v5621_v25, -inf  ;;  %v2580_v44 = vsel %vm2161_vm1, %v5619_v24, -inf }
 0x27f   : > { %v5625_v13 = vpop.f32.mrb[22].mxu1  ;;  %2575 = vmax.xlane.f32.xlu1 %v2574_v11  ;;  %v5627_v61 = vpop.f32.mrb[6].mxu0 }
 0x280   : > { %v4175_v38 = vpop.f32.mrb[7].mxu0  ;;  %v4181_v15 = vpop.f32.mrb[23].mxu1  ;;  %v2577_v26 = vsel %vm2161_vm1, %v5627_v61, -inf  ;;  %v2583_v35 = vsel %vm2161_vm1, %v5625_v13, -inf }
 0x281   : > { %2548 = vmax.xlane.f32.xlu0 %v2547_v4 }
 0x283   : > { %2551 = vmax.xlane.f32.xlu1 %v2550_v37 }
 0x285   : > { %2578 = vmax.xlane.f32.xlu0 %v2577_v26 }
 0x287   : > { %2557 = vmax.xlane.f32.xlu1 %v2556_v5 }
 0x289   : > { %2554 = vmax.xlane.f32.xlu0 %v2553_v51 }
 0x28b   : > { %2569 = vmax.xlane.f32.xlu1 %v2568_v52 }
 0x28d   : > { %2560 = vmax.xlane.f32.xlu0 %v2559_v55 }
 0x28f   : > { %2581 = vmax.xlane.f32.xlu1 %v2580_v44 }
 0x291   : > { %2572 = vmax.xlane.f32.xlu0 %v2571_v56 }
 0x2a0   : > { %1599 = vrot.lane.b32.xlu1 %v5648_v39, %s4747_s2 }
 0x2a7   : > { %1597 = vrot.lane.b32.xlu0 %v4472_v33, %s4747_s2 }
 0x2c6   : > { %2584 = vmax.xlane.f32.xlu0 %v2583_v35 }
 0x2dc   : > { %1603 = vrot.lane.b32.xlu0 %v4472_v33, %s4748_s10 }
 0x2e2   : > { %v2540_v29 = vpop.xlane.xlu0 %2539 }
 0x2e3   : > { %v2586_v45 = vsub.f32 %v5577_v46, %v2540_v29 }
 0x2e5   : > { %v2602_v1 = vmul.f32 1.442695, %v2586_v45 }
 0x2e7   : > { %4407 = vpow2.f32 %v2602_v1 }
 0x2f1   : > { %v5660_v8 = vpop.eup %4407 }
 0x2f2   : > { %v2634_v2 = vsel %vm2161_vm1, %v5660_v8, 0.0 }
 0x2f3   : > { %2635 = vadd.xlane.f32.xlu1 %v2634_v2 }
 0x304   : > { %v2564_v16 = vpop.xlane.xlu1 %2563 }
 0x305   : > { %v2594_v18 = vsub.f32 %v5603_v36, %v2564_v16 }
 0x306   : > { %v2567_v59 = vpop.xlane.xlu0 %2566 }
 0x307   : > { %v2618_v21 = vmul.f32 1.442695, %v2594_v18  ;;  %v2595_v46 = vsub.f32 %v5611_v57, %v2567_v59 }
 0x308   : > { %v2543_v31 = vpop.xlane.xlu1 %2542 }
 0x309   : > { %4409 = vpow2.f32 %v2618_v21  ;;  %v2587_v42 = vsub.f32 %v5581_v40, %v2543_v31  ;;  %v2620_v53 = vmul.f32 1.442695, %v2595_v46 }
 0x30a   : > { %v2546_v28 = vpop.xlane.xlu0 %2545 }
 0x30b   : > { %v2604_v20 = vmul.f32 1.442695, %v2587_v42  ;;  %v2588_v30 = vsub.f32 %v5583_v0, %v2546_v28 }
 0x30c   : > { %v2576_v50 = vpop.xlane.xlu1 %2575 }
 0x30d   : > { %4411 = vpow2.f32 %v2604_v20  ;;  %v2606_v47 = vmul.f32 1.442695, %v2588_v30  ;;  %v2598_v44 = vsub.f32 %v5621_v25, %v2576_v50 }
 0x30e   : > { %4413 = vpow2.f32 %v2620_v53  ;;  %v2549_v27 = vpop.xlane.xlu0 %2548 }
 0x30f   : > { %4415 = vpow2.f32 %v2606_v47  ;;  %v2589_v36 = vsub.f32 %v5588_v7, %v2549_v27  ;;  %v2626_v45 = vmul.f32 1.442695, %v2598_v44 }
 0x310   : > { %v2552_v62 = vpop.xlane.xlu1 %2551 }
 0x311   : > { %v2608_v60 = vmul.f32 1.442695, %v2589_v36  ;;  %v2590_v57 = vsub.f32 %v5595_v48, %v2552_v62 }
 0x312   : > { %v5676_v10 = vpop.xlane.xlu0 %2578 }
 0x313   : > { %v5678_v40 = vpop.eup %4409  ;;  %4417 = vpow2.f32 %v2608_v60  ;;  %v2610_v19 = vmul.f32 1.442695, %v2590_v57  ;;  %v2599_v60 = vsub.f32 %v5627_v61, %v5676_v10 }
 0x314   : > { %v2558_v49 = vpop.xlane.xlu1 %2557  ;;  %v2658_v0 = vsel %vm2161_vm1, %v5678_v40, 0.0 }
 0x315   : > { %v2592_v11 = vsub.f32 %v5599_v9, %v2558_v49  ;;  %2659 = vadd.xlane.f32.xlu1 %v2658_v0  ;;  %4419 = vpow2.f32 %v2610_v19  ;;  %v2628_v57 = vmul.f32 1.442695, %v2599_v60 }
 0x316   : > { %v2555_v38 = vpop.xlane.xlu0 %2554 }
 0x317   : > { %v5683_v15 = vpop.eup %4411  ;;  %v2614_v7 = vmul.f32 1.442695, %v2592_v11  ;;  %v2591_v48 = vsub.f32 %v5597_v41, %v2555_v38 }
 0x318   : > { %v5686_v4 = vpop.eup %4413  ;;  %v2570_v37 = vpop.xlane.xlu1 %2569  ;;  %v2637_v26 = vsel %vm2161_vm1, %v5683_v15, 0.0 }
 0x319   : > { %v5690_v5 = vpop.eup %4415  ;;  %v2612_v51 = vmul.f32 1.442695, %v2591_v48  ;;  %v2596_v52 = vsub.f32 %v5605_v43, %v2570_v37  ;;  %2638 = vadd.xlane.f32.xlu0 %v2637_v26  ;;  %4421 = vpow2.f32 %v2614_v7  ;;  %v2661_v33 = vsel %vm2161_vm1, %v5686_v4, 0.0 }
 0x31a   : > { %v2561_v9 = vpop.xlane.xlu0 %2560  ;;  %v2640_v55 = vsel %vm2161_vm1, %v5690_v5, 0.0 }
 0x31b   : > { %4423 = vpow2.f32 %v2612_v51  ;;  %v2622_v41 = vmul.f32 1.442695, %v2596_v52  ;;  %v2593_v56 = vsub.f32 %v5601_v12, %v2561_v9  ;;  %2641 = vadd.xlane.f32.xlu1 %v2640_v55 }
 0x31c   : > { %v2582_v2 = vpop.xlane.xlu1 %2581 }
 0x31d   : > { %v5699_v35 = vpop.eup %4417  ;;  %4425 = vpow2.f32 %v2622_v41  ;;  %v2616_v43 = vmul.f32 1.442695, %v2593_v56  ;;  %2662 = vadd.xlane.f32.xlu0 %v2661_v33  ;;  %v2600_v12 = vsub.f32 %v5619_v24, %v2582_v2 }
 0x31e   : > { %v2573_v29 = vpop.xlane.xlu0 %2572  ;;  %v2643_v25 = vsel %vm2161_vm1, %v5699_v35, 0.0 }
 0x31f   : > { %4427 = vpow2.f32 %v2616_v43  ;;  %v2597_v1 = vsub.f32 %v5609_v54, %v2573_v29  ;;  %v5704_v16 = vpop.eup %4419  ;;  %v2630_v42 = vmul.f32 1.442695, %v2600_v12 }
 0x320   : > { %4429 = vpow2.f32 %v2626_v45  ;;  %v2646_v21 = vsel %vm2161_vm1, %v5704_v16, 0.0  ;;  %v5750_v61 = vpop.permute.xlu1 %1599 }
 0x321   : > { %2644 = vadd.xlane.f32.xlu0 %v2643_v25  ;;  %v2624_v18 = vmul.f32 1.442695, %v2597_v1 }
 0x322   : > { %v1598_v19 = vpop.permute.xlu0 %1597 }
 0x323   : > { %v5707_v59 = vpop.eup %4421  ;;  %4431 = vpow2.f32 %v2624_v18  ;;  %v1641_v44 = vcombine.low %v5664_v58, %v1598_v19  ;;  %v1642_v41 = vcombine.high %v5664_v58, %v1598_v19  ;;  %v1778_v19 = vcombine.high %v5657_v63, %v5750_v61 }
 0x324   : > { %v2652_v24 = vsel %vm2161_vm1, %v5707_v59, 0.0  ;;  %4433 = vpow2.f32 %v2630_v42 }
 0x325   : > { %v5711_v46 = vpop.eup %4423  ;;  %2647 = vadd.xlane.f32.xlu0 %v2646_v21  ;;  %4435 = vpow2.f32 %v2628_v57  ;;  %v1649_v45 = vrot.slane %v1641_v44, %v5180_v23  ;;  %v1656_v2 = vrot.slane %v1642_v41, %v5180_v23  ;;  %v1777_v57 = vcombine.low %v5657_v63, %v5750_v61 }
 0x326   : > { %v2649_v54 = vsel %vm2161_vm1, %v5711_v46, 0.0  ;;  %v1792_v61 = vrot.slane %v1778_v19, %v5180_v23 }
 0x327   : > { %v5715_v31 = vpop.eup %4425  ;;  %2650 = vadd.xlane.f32.xlu1 %v2649_v54  ;;  %v1785_v63 = vrot.slane %v1777_v57, %v5180_v23 }
 0x328   : > { %v2664_v28 = vsel %vm2161_vm1, %v5715_v31, 0.0 }
 0x329   : > { %v5719_v53 = vpop.eup %4427  ;;  %2653 = vadd.xlane.f32.xlu0 %v2652_v24 }
 0x32a   : > { %v2655_v20 = vsel %vm2161_vm1, %v5719_v53, 0.0  ;;  %v5725_v30 = vpop.eup %4429 }
 0x32b   : > { %2665 = vadd.xlane.f32.xlu1 %v2664_v28  ;;  %v2670_v50 = vsel %vm2161_vm1, %v5725_v30, 0.0 }
 0x32d   : > { %2656 = vadd.xlane.f32.xlu0 %v2655_v20  ;;  %v5729_v47 = vpop.eup %4431 }
 0x32e   : > { %v2667_v27 = vsel %vm2161_vm1, %v5729_v47, 0.0  ;;  %v5733_v36 = vpop.eup %4433 }
 0x32f   : > { %v2676_v62 = vsel %vm2161_vm1, %v5733_v36, 0.0  ;;  %v5742_v38 = vpop.eup %4435 }
 0x330   : > { %v2673_v7 = vsel %vm2161_vm1, %v5742_v38, 0.0 }
 0x331   : > { %2671 = vadd.xlane.f32.xlu0 %v2670_v50 }
 0x335   : > { %2668 = vadd.xlane.f32.xlu0 %v2667_v27 }
 0x339   : > { %2677 = vadd.xlane.f32.xlu0 %v2676_v62 }
 0x33c   : > { %1605 = vrot.lane.b32.xlu1 %v5648_v39, %s4748_s10 }
 0x353   : > { %v2585_v49 = vpop.xlane.xlu0 %2584 }
 0x354   : > { %v2601_v0 = vsub.f32 %v5625_v13, %v2585_v49 }
 0x356   : > { %v2632_v11 = vmul.f32 1.442695, %v2601_v0 }
 0x357   : > { %v1604_v10 = vpop.permute.xlu0 %1603 }
 0x358   : > { %4437 = vpow2.f32 %v2632_v11  ;;  %v1657_v51 = vcombine.low %v5666_v3, %v1604_v10  ;;  %v1658_v55 = vcombine.high %v5666_v3, %v1604_v10 }
 0x35a   : > { %v1665_v56 = vrot.slane %v1657_v51, %v5180_v23  ;;  %v1672_v29 = vrot.slane %v1658_v55, %v5180_v23 }
 0x35c   : > { %v1705_v25 = vcombine.low %v1649_v45, %v1665_v56  ;;  %v1706_v12 = vcombine.high %v1649_v45, %v1665_v56  ;;  %v1721_v21 = vcombine.low %v1656_v2, %v1672_v29  ;;  %v1722_v54 = vcombine.high %v1656_v2, %v1672_v29 }
 0x35e   : > { %v1713_v28 = vrot.slane %v1705_v25, %v5187_v34  ;;  %v1720_v20 = vrot.slane %v1706_v12, %v5187_v34  ;;  %v1729_v62 = vrot.slane %v1721_v21, %v5187_v34 }
 0x360   : > { %2674 = vadd.xlane.f32.xlu1 %v2673_v7  ;;  %v4029_v49 = vcombine.low %v1713_v28, %v1720_v20  ;;  %v4031_v0 = vcombine.high %v1713_v28, %v1720_v20 }
 0x362   : > { %v5746_v48 = vpop.eup %4437  ;;  %v1896_v44 = vrot.slane %v4029_v49, %v5180_v23 }
 0x363   : > { %v2679_v39 = vsel %vm2161_vm1, %v5746_v48, 0.0 }
 0x364   : > { %2680 = vadd.xlane.f32.xlu0 %v2679_v39 }
 0x380   : > { %v2636_v37 = vpop.xlane.xlu1 %2635 }
 0x381   : > { %4439 = vrcp.f32 %v2636_v37 }
 0x38b   : > { %v4440_v43 = vpop.eup %4439 }
 0x38c   : > { %v2698_v3 = vmul.f32 %v4440_v43, %v5660_v8  ;;  %v1736_v8 = vrot.slane %v1722_v54, %v5187_v34 }
 0x38e   : > { %v4033_v39 = vcombine.low %v1729_v62, %v1736_v8  ;;  %v4035_v10 = vcombine.high %v1729_v62, %v1736_v8 }
 0x390   : > { %v1928_v56 = vrot.slane %v4033_v39, %v5180_v23  ;;  %v1944_v43 = vrot.slane %v4035_v10, %v5180_v23 }
 0x3a2   : > { %v5752_v13 = vpop.xlane.xlu1 %2659 }
 0x3a6   : > { %v2639_v26 = vpop.xlane.xlu0 %2638 }
 0x3a7   : > { %4441 = vrcp.f32 %v2639_v26 }
 0x3a8   : > { %v2642_v52 = vpop.xlane.xlu1 %2641 }
 0x3a9   : > { %4443 = vrcp.f32 %v2642_v52 }
 0x3aa   : > { %v5755_v9 = vpop.xlane.xlu0 %2662 }
 0x3ae   : > { %v2645_v33 = vpop.xlane.xlu0 %2644 }
 0x3af   : > { %4445 = vrcp.f32 %v2645_v33 }
 0x3b1   : > { %v4442_v1 = vpop.eup %4441 }
 0x3b2   : > { %v2699_v18 = vmul.f32 %v4442_v1, %v5683_v15  ;;  %v2648_v58 = vpop.xlane.xlu0 %2647 }
 0x3b3   : > { %4447 = vrcp.f32 %v2648_v58  ;;  %v4444_v27 = vpop.eup %4443 }
 0x3b4   : > { %v2651_v42 = vpop.xlane.xlu1 %2650  ;;  %v2714_v24 = vpack.c.bf16 %v2699_v18, %v2698_v3  ;;  %v2700_v11 = vmul.f32 %v4444_v27, %v5690_v5  ;;  %v1912_v5 = vrot.slane %v4031_v0, %v5180_v23 }
 0x3b5   : > { %4449 = vrcp.f32 %v2651_v42  ;;  %v1994_v42 = vcombine.high %v1928_v56, %v1944_v43 }
 0x3b6   : > { %4185 = vmatmul.mubr.msk.bf16.vlgmr.msra.gmra.mrb[8].mxu0 %vm2161_vm1, %v2714_v24  ;;  %v2654_v50 = vpop.xlane.xlu0 %2653  ;;  %v1961_v3 = vcombine.low %v1896_v44, %v1912_v5  ;;  %v1962_v54 = vcombine.high %v1896_v44, %v1912_v5 }
 0x3b7   : > { %4195 = vmatpush3.bf16.msra.mxu0 %v5591_v22  ;;  %4196 = vmatprep.mubr.msk.bf16.mxu0 %vm4749_vm0, %v4744_v6  ;;  %4451 = vrcp.f32 %v2654_v50 }
 0x3b8   : > { %v2666_v15 = vpop.xlane.xlu1 %2665  ;;  %4206 = vmatprep.subr.bf16.mxu0 %v4744_v6 }
 0x3b9   : > { %v4446_v60 = vpop.eup %4445 }
 0x3ba   : > { %v2701_v22 = vmul.f32 %v4446_v60, %v5699_v35  ;;  %v2657_v7 = vpop.xlane.xlu0 %2656 }
 0x3bb   : > { %4453 = vrcp.f32 %v2657_v7  ;;  %v2008_v7 = vrot.slane %v1994_v42, %v5187_v34 }
 0x3bc   : > { %v1606_v37 = vpop.permute.xlu1 %1605  ;;  %v2715_v26 = vpack.c.bf16 %v2701_v22, %v2700_v11  ;;  %4455 = vrcp.f32 %v5752_v13  ;;  %v1976_v22 = vrot.slane %v1962_v54, %v5187_v34 }
 0x3bd   : > { %v4448_v51 = vpop.eup %4447  ;;  %v1793_v52 = vcombine.low %v5668_v14, %v1606_v37  ;;  %v1794_v55 = vcombine.high %v5668_v14, %v1606_v37  ;;  %4457 = vrcp.f32 %v5755_v9 }
 0x3be   : > { %4191 = vmatmul.mubr.msk.bf16.vlgmr.msra.gmra.mrb[24].mxu1 %vm2161_vm1, %v2715_v26  ;;  %v5788_v35 = vpop.xlane.xlu0 %2671  ;;  %v2702_v29 = vmul.f32 %v4448_v51, %v5704_v16  ;;  %4459 = vrcp.f32 %v2666_v15  ;;  %v1969_v15 = vrot.slane %v1961_v3, %v5187_v34 }
 0x3bf   : > { %v4450_v41 = vpop.eup %4449  ;;  %v1801_v33 = vrot.slane %v1793_v52, %v5180_v23  ;;  %v1808_v14 = vrot.slane %v1794_v55, %v5180_v23  ;;  %4201 = vmatpush3.bf16.msra.mxu1 %v5593_v32  ;;  %4202 = vmatprep.mubr.msk.bf16.mxu1 %vm4749_vm0, %v4744_v6 }
 0x3c0   : > { %v2703_v45 = vmul.f32 %v4450_v41, %v5711_v46  ;;  %4212 = vmatprep.subr.bf16.mxu1 %v4744_v6  ;;  %v1993_v46 = vcombine.low %v1928_v56, %v1944_v43  ;;  %v2015_v41 = vcombine.low %v1976_v22, %v2008_v7 }
 0x3c1   : > { %v1841_v13 = vcombine.low %v1785_v63, %v1801_v33  ;;  %v1842_v1 = vcombine.high %v1785_v63, %v1801_v33  ;;  %v1857_v2 = vcombine.low %v1792_v61, %v1808_v14  ;;  %v1858_v25 = vcombine.high %v1792_v61, %v1808_v14  ;;  %v4452_v18 = vpop.eup %4451 }
 0x3c2   : > { %v2669_v12 = vpop.xlane.xlu0 %2668  ;;  %v2716_v32 = vpack.c.bf16 %v2703_v45, %v2702_v29  ;;  %v2704_v62 = vmul.f32 %v4452_v18, %v5707_v59  ;;  %v2001_v11 = vrot.slane %v1993_v46, %v5187_v34 }
 0x3c3   : > { %v1849_v58 = vrot.slane %v1841_v13, %v5187_v34  ;;  %v1856_v21 = vrot.slane %v1842_v1, %v5187_v34  ;;  %v1865_v9 = vrot.slane %v1857_v2, %v5187_v34  ;;  %v1872_v16 = vrot.slane %v1858_v25, %v5187_v34 }
 0x3c4   : > { %4461 = vrcp.f32 %v2669_v12  ;;  %4197 = vmatmul.mubr.msk.bf16.vlgmr.msra.gmra.mrb[12].mxu0 %vm2161_vm1, %v2716_v32  ;;  %v2013_v44 = vcombine.low %v1969_v15, %v2001_v11  ;;  %v2014_v5 = vcombine.high %v1969_v15, %v2001_v11  ;;  %v2016_v13 = vcombine.high %v1976_v22, %v2008_v7 }
 0x3c5   : > { %v4454_v24 = vpop.eup %4453  ;;  %v4037_v28 = vcombine.low %v1849_v58, %v1856_v21  ;;  %v4039_v20 = vcombine.high %v1849_v58, %v1856_v21  ;;  %v4041_v50 = vcombine.low %v1865_v9, %v1872_v16  ;;  %v4043_v27 = vcombine.high %v1865_v9, %v1872_v16  ;;  %4208 = vmatprep.mubr.msk.bf16.mxu0 %vm4749_vm0, %v4744_v6 }
 0x3c6   : > { %v2705_v8 = vmul.f32 %v4454_v24, %v5719_v53  ;;  %v4456_v59 = vpop.eup %4455  ;;  %4463 = vrcp.f32 %v5788_v35 }
 0x3c7   : > { %v2032_v60 = vrot.slane %v4037_v28, %v5180_v23  ;;  %v2048_v57 = vrot.slane %v4039_v20, %v5180_v23  ;;  %v2064_v19 = vrot.slane %v4041_v50, %v5180_v23  ;;  %v2080_v49 = vrot.slane %v4043_v27, %v5180_v23  ;;  %v4458_v26 = vpop.eup %4457 }
 0x3c8   : > { %v2717_v0 = vpack.c.bf16 %v2705_v8, %v2704_v62  ;;  %v4460_v61 = vpop.eup %4459  ;;  %v2707_v45 = vmul.f32 %v4458_v26, %v5686_v4  ;;  %v2706_v32 = vmul.f32 %v4456_v59, %v5678_v40  ;;  %v2678_v40 = vpop.xlane.xlu0 %2677 }
 0x3c9   : > { %v2097_v39 = vcombine.low %v2032_v60, %v2048_v57  ;;  %v2129_v53 = vcombine.low %v2064_v19, %v2080_v49  ;;  %v2098_v10 = vcombine.high %v2032_v60, %v2048_v57  ;;  %v2130_v37 = vcombine.high %v2064_v19, %v2080_v49 }
 0x3ca   : > { %4203 = vmatmul.mubr.msk.bf16.vlgmr.msra.gmra.mrb[28].mxu1 %vm2161_vm1, %v2717_v0  ;;  %v2708_v3 = vmul.f32 %v4460_v61, %v5715_v31  ;;  %v2718_v58 = vpack.c.bf16 %v2707_v45, %v2706_v32 }
 0x3cb   : > { %v2105_v51 = vrot.slane %v2097_v39, %v5187_v34  ;;  %v2137_v52 = vrot.slane %v2129_v53, %v5187_v34  ;;  %4214 = vmatprep.mubr.msk.bf16.mxu1 %vm4749_vm0, %v4744_v6  ;;  %v2112_v55 = vrot.slane %v2098_v10, %v5187_v34  ;;  %v2144_v63 = vrot.slane %v2130_v37, %v5187_v34 }
 0x3cd   : > { %v2149_v56 = vcombine.low %v2105_v51, %v2137_v52  ;;  %v2150_v33 = vcombine.high %v2105_v51, %v2137_v52  ;;  %v2151_v14 = vcombine.low %v2112_v55, %v2144_v63  ;;  %v2152_v43 = vcombine.high %v2112_v55, %v2144_v63 }
 0x3ce   : > { %v4462_v29 = vpop.eup %4461 }
 0x3cf   : > { %v2709_v1 = vmul.f32 %v4462_v29, %v5729_v47  ;;  %v2157_v2 = vpack.c.bf16 %v2149_v56, %v2013_v44  ;;  %v2158_v25 = vpack.c.bf16 %v2150_v33, %v2014_v5  ;;  %v2159_v12 = vpack.c.bf16 %v2151_v14, %v2015_v41 }
 0x3d0   : > { %v2160_v18 = vpack.c.bf16 %v2152_v43, %v2016_v13  ;;  %v4464_v47 = vpop.eup %4463 }
 0x3d1   : > { %4207 = vmatpush3.bf16.msra.mxu0 %v2157_v2  ;;  %4213 = vmatpush3.bf16.msra.mxu1 %v2158_v25  ;;  %v2719_v21 = vpack.c.bf16 %v2709_v1, %v2708_v3  ;;  %v2710_v16 = vmul.f32 %v4464_v47, %v5725_v30 }
 0x3d2   : > { %4218 = vmatprep.subr.bf16.mxu0 %v4744_v6  ;;  %4224 = vmatprep.subr.bf16.mxu1 %v4744_v6 }
 0x3d4   : > { %4209 = vmatmul.mubr.msk.bf16.vlgmr.msra.gmra.mrb[16].mxu0 %vm2161_vm1, %v2718_v58  ;;  %4215 = vmatmul.mubr.msk.bf16.vlgmr.msra.gmra.mrb[32].mxu1 %vm2161_vm1, %v2719_v21 }
 0x3d5   : > { %4219 = vmatpush3.bf16.msra.mxu0 %v2159_v12  ;;  %4225 = vmatpush3.bf16.msra.mxu1 %v2160_v18 }
 0x3d6   : > { %4220 = vmatprep.mubr.msk.bf16.mxu0 %vm4749_vm0, %v4744_v6  ;;  %4226 = vmatprep.mubr.msk.bf16.mxu1 %vm4749_vm0, %v4744_v6 }
 0x3d7   : > { %4230 = vmatprep.subr.bf16.mxu0 %v4744_v6 }
 0x3ed   : > { %v2675_v4 = vpop.xlane.xlu1 %2674 }
 0x3ee   : > { %4465 = vrcp.f32 %v2675_v4 }
 0x3ef   : > { %4467 = vrcp.f32 %v2678_v40 }
 0x3f1   : > { %v2681_v31 = vpop.xlane.xlu0 %2680 }
 0x3f2   : > { %4469 = vrcp.f32 %v2681_v31 }
 0x3f8   : > { %v4466_v9 = vpop.eup %4465 }
 0x3f9   : > { %v2711_v46 = vmul.f32 %v4466_v9, %v5742_v38  ;;  %v4468_v54 = vpop.eup %4467 }
 0x3fa   : > { %v2712_v28 = vmul.f32 %v4468_v54, %v5733_v36 }
 0x3fb   : > { %v2720_v42 = vpack.c.bf16 %v2711_v46, %v2710_v16 }
 0x3fc   : > { %v4470_v24 = vpop.eup %4469 }
 0x3fd   : > { %v2713_v20 = vmul.f32 %v4470_v24, %v5746_v48  ;;  %4221 = vmatmul.mubr.msk.bf16.vlgmr.msra.gmra.mrb[20].mxu0 %vm2161_vm1, %v2720_v42 }
 0x3fe   : > { %4246 = vmatprep.mubr.msk.bf16.mxu0 %vm4749_vm0, %v4744_v6 }
 0x3ff   : > { %v2721_v35 = vpack.c.bf16 %v2713_v20, %v2712_v28 }
 0x401   : > { %4227 = vmatmul.mubr.msk.bf16.vlgmr.msra.gmra.mrb[36].mxu1 %vm2161_vm1, %v2721_v35 }
 0x489   : > { %v2759_v50 = vpop.f32.mrb[8].mxu0 }
 0x48a   : > { %v4186_v27 = vpop.f32.mrb[9].mxu0 }
 0x48b   : > { %v2762_v30 = vpop.f32.mrb[10].mxu0 }
 0x48c   : > { %v4187_v62 = vpop.f32.mrb[11].mxu0 }
 0x491   : > { %v2803_v38 = vpop.f32.mrb[24].mxu1 }
 0x492   : > { %v4192_v8 = vpop.f32.mrb[25].mxu1 }
 0x493   : > { %v2806_v15 = vpop.f32.mrb[26].mxu1 }
 0x494   : > { %v4193_v60 = vpop.f32.mrb[27].mxu1 }
 0x497   : > { %v2847_v57 = vpop.f32.mrb[12].mxu0 }
 0x498   : > { %v3074_v36 = vcombine.low %v2759_v50, %v2847_v57  ;;  %v3075_v19 = vcombine.high %v2759_v50, %v2847_v57  ;;  %v4198_v48 = vpop.f32.mrb[13].mxu0 }
 0x499   : > { %v2850_v49 = vpop.f32.mrb[14].mxu0 }
 0x49a   : > { %v3210_v0 = vcombine.low %v2762_v30, %v2850_v49  ;;  %v3211_v11 = vcombine.high %v2762_v30, %v2850_v49  ;;  %v4199_v22 = vpop.f32.mrb[15].mxu0  ;;  %v3082_v10 = vrot.slane %v3074_v36, %v5180_v23  ;;  %v3089_v37 = vrot.slane %v3075_v19, %v5180_v23 }
 0x49c   : > { %v3218_v33 = vrot.slane %v3210_v0, %v5180_v23  ;;  %v3225_v14 = vrot.slane %v3211_v11, %v5180_v23 }
 0x49d   : > { %v2891_v7 = vpop.f32.mrb[28].mxu1 }
 0x49e   : > { %v3090_v59 = vcombine.low %v2803_v38, %v2891_v7  ;;  %v3091_v39 = vcombine.high %v2803_v38, %v2891_v7  ;;  %v4204_v53 = vpop.f32.mrb[29].mxu1 }
 0x49f   : > { %v2894_v26 = vpop.f32.mrb[30].mxu1 }
 0x4a0   : > { %v3098_v51 = vrot.slane %v3090_v59, %v5180_v23  ;;  %v3105_v52 = vrot.slane %v3091_v39, %v5180_v23  ;;  %v3226_v55 = vcombine.low %v2806_v15, %v2894_v26  ;;  %v3227_v63 = vcombine.high %v2806_v15, %v2894_v26  ;;  %v4205_v61 = vpop.f32.mrb[31].mxu1 }
 0x4a2   : > { %v3138_v44 = vcombine.low %v3082_v10, %v3098_v51  ;;  %v3139_v5 = vcombine.high %v3082_v10, %v3098_v51  ;;  %v3154_v41 = vcombine.low %v3089_v37, %v3105_v52  ;;  %v3155_v56 = vcombine.high %v3089_v37, %v3105_v52 }
 0x4a3   : > { %v3234_v43 = vrot.slane %v3226_v55, %v5180_v23  ;;  %v3241_v29 = vrot.slane %v3227_v63, %v5180_v23 }
 0x4a4   : > { %v3146_v45 = vrot.slane %v3138_v44, %v5187_v34  ;;  %v3153_v13 = vrot.slane %v3139_v5, %v5187_v34  ;;  %v3162_v1 = vrot.slane %v3154_v41, %v5187_v34  ;;  %v3169_v2 = vrot.slane %v3155_v56, %v5187_v34  ;;  %v4399_v44 = vld [vmem:[#allocation7] sm:$0xff]  }
 0x4a5   : > { %v3274_v25 = vcombine.low %v3218_v33, %v3234_v43  ;;  %v3275_v12 = vcombine.high %v3218_v33, %v3234_v43  ;;  %v3290_v32 = vcombine.low %v3225_v14, %v3241_v29  ;;  %v3291_v3 = vcombine.high %v3225_v14, %v3241_v29  ;;  %4231 = vmatpush3.bf16.msra.mxu0 %v4399_v44  ;;  %v4400_v14 = vld [vmem:[#allocation7 + $0x8] sm:$0xff]  }
 0x4a6   : > { %v4060_v18 = vcombine.low %v3146_v45, %v3153_v13  ;;  %v4062_v58 = vcombine.high %v3146_v45, %v3153_v13  ;;  %v4064_v21 = vcombine.low %v3162_v1, %v3169_v2  ;;  %v4066_v40 = vcombine.high %v3162_v1, %v3169_v2  ;;  %4232 = vmatprep.subr.bf16.mxu0 %v4744_v6 }
 0x4a7   : > { %v3282_v4 = vrot.slane %v3274_v25, %v5187_v34  ;;  %v3289_v31 = vrot.slane %v3275_v12, %v5187_v34  ;;  %v3298_v47 = vrot.slane %v3290_v32, %v5187_v34  ;;  %v3305_v9 = vrot.slane %v3291_v3, %v5187_v34  ;;  %v5864_v16 = vpop.f32.mrb[16].mxu0  ;;  %v5866_v46 = vpop.f32.mrb[32].mxu1  ;;  %v4401_v12 = vld [vmem:[#allocation7 + $0x10] sm:$0xff]   ;;  %v4402_v32 = vld [vmem:[#allocation7 + $0x18] sm:$0xff]   ;;  %v4403_v3 = vld [vmem:[#allocation7 + $0x20] sm:$0xff]  }
 0x4a8   : > { %v3354_v54 = vrot.slane %v4060_v18, %v5180_v23  ;;  %v3370_v42 = vrot.slane %v4062_v58, %v5180_v23  ;;  %v3386_v24 = vrot.slane %v4064_v21, %v5180_v23  ;;  %v3402_v28 = vrot.slane %v4066_v40, %v5180_v23  ;;  %v4210_v20 = vpop.f32.mrb[17].mxu0  ;;  %v4216_v35 = vpop.f32.mrb[33].mxu1  ;;  %v4404_v18 = vld [vmem:[#allocation7 + $0x28] sm:$0xff]  }
 0x4a9   : > { %v4068_v50 = vcombine.low %v3282_v4, %v3289_v31  ;;  %v4070_v27 = vcombine.high %v3282_v4, %v3289_v31  ;;  %v4072_v30 = vcombine.low %v3298_v47, %v3305_v9  ;;  %v4074_v62 = vcombine.high %v3298_v47, %v3305_v9  ;;  %v5872_v38 = vpop.f32.mrb[18].mxu0  ;;  %v5874_v8 = vpop.f32.mrb[34].mxu1  ;;  %4233 = vmatpush3.bf16.msra.mxu0 %v4400_v14 }
 0x4aa   : > { %v4211_v15 = vpop.f32.mrb[19].mxu0  ;;  %v4217_v60 = vpop.f32.mrb[35].mxu1  ;;  %v3411_v57 = vcombine.high %v3354_v54, %v3370_v42  ;;  %v3443_v36 = vcombine.high %v3386_v24, %v3402_v28  ;;  %v3410_v19 = vcombine.low %v3354_v54, %v3370_v42  ;;  %v3442_v48 = vcombine.low %v3386_v24, %v3402_v28  ;;  %4234 = vmatprep.subr.bf16.mxu0 %v4744_v6 }
 0x4ab   : > { %v3490_v49 = vrot.slane %v4068_v50, %v5180_v23  ;;  %v3506_v0 = vrot.slane %v4070_v27, %v5180_v23  ;;  %v3522_v11 = vrot.slane %v4072_v30, %v5180_v23  ;;  %v3538_v22 = vrot.slane %v4074_v62, %v5180_v23 }
 0x4ac   : > { %v3425_v7 = vrot.slane %v3411_v57, %v5187_v34  ;;  %v3457_v59 = vrot.slane %v3443_v36, %v5187_v34  ;;  %v5883_v39 = vrot.slane %v3410_v19, %v5187_v34  ;;  %v5886_v53 = vrot.slane %v3442_v48, %v5187_v34 }
 0x4ad   : > { %v3547_v10 = vcombine.high %v3490_v49, %v3506_v0  ;;  %v3579_v37 = vcombine.high %v3522_v11, %v3538_v22  ;;  %v3546_v26 = vcombine.low %v3490_v49, %v3506_v0  ;;  %v3578_v51 = vcombine.low %v3522_v11, %v3538_v22  ;;  %4235 = vmatpush3.bf16.msra.mxu0 %v4401_v12 }
 0x4ae   : > { %v3476_v52 = vcombine.low %v3425_v7, %v3457_v59  ;;  %v3474_v55 = vcombine.low %v5883_v39, %v5886_v53  ;;  %v3475_v63 = vcombine.high %v5883_v39, %v5886_v53  ;;  %v3477_v61 = vcombine.high %v3425_v7, %v3457_v59  ;;  %4236 = vmatprep.subr.bf16.mxu0 %v4744_v6 }
 0x4af   : > { %v3561_v5 = vrot.slane %v3547_v10, %v5187_v34  ;;  %v3593_v41 = vrot.slane %v3579_v37, %v5187_v34  ;;  %v5895_v56 = vrot.slane %v3546_v26, %v5187_v34  ;;  %v5898_v33 = vrot.slane %v3578_v51, %v5187_v34 }
 0x4b1   : > { %v3612_v43 = vcombine.low %v3561_v5, %v3593_v41  ;;  %v3611_v29 = vcombine.high %v5895_v56, %v5898_v33  ;;  %v3610_v45 = vcombine.low %v5895_v56, %v5898_v33  ;;  %v3613_v13 = vcombine.high %v3561_v5, %v3593_v41  ;;  %4237 = vmatpush3.bf16.msra.mxu0 %v4402_v32 }
 0x4b2   : > { %4238 = vmatprep.subr.bf16.mxu0 %v4744_v6 }
 0x4b3   : > { %v4369_v1 = vpack.i.bf16 %v3612_v43, %v3476_v52  ;;  %v4364_v2 = vpack.i.bf16 %v3611_v29, %v3475_v63  ;;  %v4374_v25 = vpack.i.bf16 %v3613_v13, %v3477_v61 }
 0x4b5   : > { %4370 = vrot.lane.b32.xlu0 %v4369_v1, %s4747_s2  ;;  %4365 = vrot.lane.b32.xlu1 %v4364_v2, %s4748_s10 }
 0x4b6   : > { %4239 = vmatpush3.bf16.msra.mxu0 %v4403_v3 }
 0x4b7   : > { %4240 = vmatprep.subr.bf16.mxu0 %v4744_v6 }
 0x4b9   : > { %4375 = vrot.lane.b32.xlu1 %v4374_v25, %s4746_s30 }
 0x4ba   : > { %4241 = vmatpush3.bf16.msra.mxu0 %v4404_v18 }
 0x4bb   : > { %4242 = vmatprep.subr.bf16.mxu0 %v4744_v6 }
 0x4d0   : > { %v3023_v58 = vpop.f32.mrb[20].mxu0 }
 0x4d1   : > { %v3106_v21 = vcombine.low %v5864_v16, %v3023_v58  ;;  %v3107_v40 = vcombine.high %v5864_v16, %v3023_v58  ;;  %v4222_v4 = vpop.f32.mrb[21].mxu0 }
 0x4d2   : > { %v3026_v31 = vpop.f32.mrb[22].mxu0 }
 0x4d3   : > { %v3242_v47 = vcombine.low %v5872_v38, %v3026_v31  ;;  %v3243_v9 = vcombine.high %v5872_v38, %v3026_v31  ;;  %v4223_v54 = vpop.f32.mrb[23].mxu0  ;;  %v3114_v35 = vrot.slane %v3106_v21, %v5180_v23  ;;  %v3121_v50 = vrot.slane %v3107_v40, %v5180_v23 }
 0x4d4   : > { %v3067_v42 = vpop.f32.mrb[36].mxu1 }
 0x4d5   : > { %v3122_v24 = vcombine.low %v5866_v46, %v3067_v42  ;;  %v3123_v28 = vcombine.high %v5866_v46, %v3067_v42  ;;  %v4228_v20 = vpop.f32.mrb[37].mxu1  ;;  %v3250_v46 = vrot.slane %v3242_v47, %v5180_v23  ;;  %v3257_v48 = vrot.slane %v3243_v9, %v5180_v23  ;;  %v4405_v9 = vld [vmem:[#allocation7 + $0x30] sm:$0xff]  }
 0x4d6   : > { %v3070_v27 = vpop.f32.mrb[38].mxu1  ;;  %4243 = vmatpush3.bf16.msra.mxu0 %v4405_v9 }
 0x4d7   : > { %v3130_v16 = vrot.slane %v3122_v24, %v5180_v23  ;;  %v3137_v30 = vrot.slane %v3123_v28, %v5180_v23  ;;  %v3258_v62 = vcombine.low %v5874_v8, %v3070_v27  ;;  %v3259_v38 = vcombine.high %v5874_v8, %v3070_v27  ;;  %v4229_v15 = vpop.f32.mrb[39].mxu1  ;;  %4244 = vmatprep.subr.bf16.mxu0 %v4744_v6 }
 0x4d9   : > { %v3170_v60 = vcombine.low %v3114_v35, %v3130_v16  ;;  %v3171_v57 = vcombine.high %v3114_v35, %v3130_v16  ;;  %v3186_v36 = vcombine.low %v3121_v50, %v3137_v30  ;;  %v3187_v19 = vcombine.high %v3121_v50, %v3137_v30 }
 0x4da   : > { %v3266_v49 = vrot.slane %v3258_v62, %v5180_v23  ;;  %v3273_v0 = vrot.slane %v3259_v38, %v5180_v23 }
 0x4db   : > { %v3178_v11 = vrot.slane %v3170_v60, %v5187_v34  ;;  %v3185_v22 = vrot.slane %v3171_v57, %v5187_v34  ;;  %v3194_v7 = vrot.slane %v3186_v36, %v5187_v34  ;;  %v3201_v8 = vrot.slane %v3187_v19, %v5187_v34  ;;  %v4406_v36 = vld [vmem:[#allocation7 + $0x38] sm:$0xff]  }
 0x4dc   : > { %v3306_v59 = vcombine.low %v3250_v46, %v3266_v49  ;;  %v3307_v10 = vcombine.high %v3250_v46, %v3266_v49  ;;  %v3322_v37 = vcombine.low %v3257_v48, %v3273_v0  ;;  %v3323_v26 = vcombine.high %v3257_v48, %v3273_v0  ;;  %4245 = vmatpush3.bf16.msra.mxu0 %v4406_v36 }
 0x4dd   : > { %v4061_v51 = vcombine.low %v3178_v11, %v3185_v22  ;;  %v4063_v52 = vcombine.high %v3178_v11, %v3185_v22  ;;  %v4065_v63 = vcombine.low %v3194_v7, %v3201_v8  ;;  %v4067_v61 = vcombine.high %v3194_v7, %v3201_v8 }
 0x4de   : > { %v3314_v44 = vrot.slane %v3306_v59, %v5187_v34  ;;  %v3321_v5 = vrot.slane %v3307_v10, %v5187_v34  ;;  %v3330_v41 = vrot.slane %v3322_v37, %v5187_v34  ;;  %v3337_v14 = vrot.slane %v3323_v26, %v5187_v34 }
 0x4df   : > { %v3361_v43 = vrot.slane %v4061_v51, %v5180_v23  ;;  %v3377_v29 = vrot.slane %v4063_v52, %v5180_v23  ;;  %v3393_v13 = vrot.slane %v4065_v63, %v5180_v23  ;;  %v3409_v1 = vrot.slane %v4067_v61, %v5180_v23 }
 0x4e0   : > { %v4069_v2 = vcombine.low %v3314_v44, %v3321_v5  ;;  %v4071_v25 = vcombine.high %v3314_v44, %v3321_v5  ;;  %v4073_v12 = vcombine.low %v3330_v41, %v3337_v14  ;;  %v4075_v32 = vcombine.high %v3330_v41, %v3337_v14 }
 0x4e1   : > { %v3426_v3 = vcombine.low %v3361_v43, %v3377_v29  ;;  %v3458_v18 = vcombine.low %v3393_v13, %v3409_v1  ;;  %v3427_v58 = vcombine.high %v3361_v43, %v3377_v29  ;;  %v3459_v21 = vcombine.high %v3393_v13, %v3409_v1 }
 0x4e2   : > { %v3497_v40 = vrot.slane %v4069_v2, %v5180_v23  ;;  %v3513_v4 = vrot.slane %v4071_v25, %v5180_v23  ;;  %v3529_v31 = vrot.slane %v4073_v12, %v5180_v23  ;;  %v3545_v47 = vrot.slane %v4075_v32, %v5180_v23 }
 0x4e3   : > { %v3434_v54 = vrot.slane %v3426_v3, %v5187_v34  ;;  %v3466_v42 = vrot.slane %v3458_v18, %v5187_v34  ;;  %v3441_v24 = vrot.slane %v3427_v58, %v5187_v34  ;;  %v3473_v28 = vrot.slane %v3459_v21, %v5187_v34 }
 0x4e4   : > { %v3562_v20 = vcombine.low %v3497_v40, %v3513_v4  ;;  %v3594_v35 = vcombine.low %v3529_v31, %v3545_v47  ;;  %v3563_v50 = vcombine.high %v3497_v40, %v3513_v4  ;;  %v3595_v27 = vcombine.high %v3529_v31, %v3545_v47  ;;  %v3807_v47 = vld [vmem:[#allocation10] sm:$0x1] }
 0x4e5   : > { %v3479_v16 = vcombine.high %v3434_v54, %v3466_v42  ;;  %v3478_v30 = vcombine.low %v3434_v54, %v3466_v42  ;;  %v3481_v62 = vcombine.high %v3441_v24, %v3473_v28  ;;  %v3480_v38 = vcombine.low %v3441_v24, %v3473_v28  ;;  %v4076_v42 = vld [vmem:[#allocation8] ss:$0 sm:$0xff] }
 0x4e6   : > { %v3570_v23 = vrot.slane %v3562_v20, %v5187_v34  ;;  %v3602_v15 = vrot.slane %v3594_v35, %v5187_v34  ;;  %v3577_v60 = vrot.slane %v3563_v50, %v5187_v34  ;;  %v3609_v57 = vrot.slane %v3595_v27, %v5187_v34  ;;  %v4085_v50 = vld [vmem:[#allocation11] ss:$0 sm:$0xff] }
 0x4e7   : > { %v3808_v9 = vmul.f32 0.999995, %v3807_v47  ;;  %v3812_v54 = vsub.s32 0, %v5175_v17 }
 0x4e8   : > { %v3615_v19 = vcombine.high %v3570_v23, %v3602_v15  ;;  %v3614_v46 = vcombine.low %v3570_v23, %v3602_v15  ;;  %v3617_v48 = vcombine.high %v3577_v60, %v3609_v57  ;;  %v3616_v49 = vcombine.low %v3577_v60, %v3609_v57  ;;  %v364_v15 = vld [vmem:[%s5049_s19 + $0x8] sm:$0xff] }
 0x4e9   : > { %v3813_v24 = vrot.slane %v3808_v9, %v3812_v54 }
 0x4ea   : > { %v4384_v0 = vpack.i.bf16 %v3615_v19, %v3479_v16  ;;  %v4379_v11 = vpack.i.bf16 %v3614_v46, %v3478_v30  ;;  %v4394_v22 = vpack.i.bf16 %v3617_v48, %v3481_v62  ;;  %v4389_v7 = vpack.i.bf16 %v3616_v49, %v3480_v38  ;;  %v363_v38 = vld [vmem:[%s5049_s19] sm:$0xff]  ;;  %s4649_s19 = sshll.u32 %s4752_s25, 4  ;;  %s4650_s19 = int_to_ptr.vmem [resolvable:$false] %s4649_s19 }
 0x4eb   : > { %s4651_s29 = scalar_lea.vmem %s4650_s19, 512  ;;  %p4652_p3 = scmp.lt.s32.totalorder %s5977_s17, %s4650_s19 }
 0x4ec   : > { %4385 = vrot.lane.b32.xlu0 %v4384_v0, %s4743_s12  ;;  %4380 = vrot.lane.b32.xlu1 %v4379_v11, %s4745_s7  ;;  %p4653_p5 = scmp.lt.s32.totalorder %s4651_s29, %s4645_s3 }
 0x4ee   : > { %p4654_p9 = por %p4653_p5, %p4652_p3 }
 0x4f0   : > { %4395 = vrot.lane.b32.xlu0 %v4394_v22, %s4742_s16  ;;  %4390 = vrot.lane.b32.xlu1 %v4389_v7, %s4741_s27  ;;  %p4655_p4 = pnand %p4654_p9, %p4648_p8 }
 0x527   : > { %v4366_v6 = vpop.permute.xlu1 %4365  ;;  %v4371_v59 = vpop.permute.xlu0 %4370 }
 0x528   : > { %v4368_v34 = vunpack.i.h.bf16 %v4366_v6  ;;  %v4367_v8 = vunpack.i.l.bf16 %v4366_v6  ;;  %v4373_v37 = vunpack.i.h.bf16 %v4371_v59  ;;  %v4372_v26 = vunpack.i.l.bf16 %v4371_v59 }
 0x52a   : > { %v3674_v51 = vsel %vm2161_vm1, %v3474_v55, %v4367_v8  ;;  %v3675_v52 = vsel %vm2161_vm1, %v3610_v45, %v4368_v34 }
 0x52b   : > { %v4376_v10 = vpop.permute.xlu1 %4375  ;;  %v3678_v41 = vsel %vm3676_vm2, %v3675_v52, %v4373_v37  ;;  %v3677_v14 = vsel %vm3676_vm2, %v3674_v51, %v4372_v26 }
 0x52c   : > { %v4378_v63 = vunpack.i.h.bf16 %v4376_v10  ;;  %v4377_v61 = vunpack.i.l.bf16 %v4376_v10 }
 0x52e   : > { %v3680_v13 = vsel %vm3679_vm3, %v3677_v14, %v4377_v61  ;;  %v3681_v1 = vsel %vm3679_vm3, %v3678_v41, %v4378_v63 }
 0x55e   : > { %v4381_v44 = vpop.permute.xlu1 %4380  ;;  %v4386_v5 = vpop.permute.xlu0 %4385 }
 0x55f   : > { %v4383_v43 = vunpack.i.h.bf16 %v4381_v44  ;;  %v4382_v29 = vunpack.i.l.bf16 %v4381_v44  ;;  %v4388_v39 = vunpack.i.h.bf16 %v4386_v5  ;;  %v4387_v53 = vunpack.i.l.bf16 %v4386_v5 }
 0x561   : > { %v3683_v55 = vsel %vm3682_vm4, %v3680_v13, %v4382_v29  ;;  %v3684_v2 = vsel %vm3682_vm4, %v3681_v1, %v4383_v43 }
 0x562   : > { %v4391_v56 = vpop.permute.xlu1 %4390  ;;  %v4396_v33 = vpop.permute.xlu0 %4395  ;;  %v3686_v3 = vsel %vm3685_vm5, %v3683_v55, %v4387_v53  ;;  %v3687_v18 = vsel %vm3685_vm5, %v3684_v2, %v4388_v39 }
 0x563   : > { %v4393_v45 = vunpack.i.h.bf16 %v4391_v56  ;;  %v4392_v25 = vunpack.i.l.bf16 %v4391_v56  ;;  %v4398_v12 = vunpack.i.h.bf16 %v4396_v33  ;;  %v4397_v32 = vunpack.i.l.bf16 %v4396_v33 }
 0x565   : > { %v3689_v58 = vsel %vm3688_vm6, %v3686_v3, %v4392_v25  ;;  %v3690_v21 = vsel %vm3688_vm6, %v3687_v18, %v4393_v45 }
 0x566   : > { %v3692_v40 = vsel %vm3691_vm7, %v3689_v58, %v4397_v32  ;;  %v3693_v4 = vsel %vm3691_vm7, %v3690_v21, %v4398_v12 }
 0x567   : > { %v3694_v31 = vpack.c.bf16 %v3693_v4, %v3692_v40 }
 0x569   : > { %4247 = vmatmul.mubr.bf16.vlgmr.msra.gmra.mrb[24].mxu0 %v3694_v31 }
 0x63c   : > { %v3800_v28 = vpop.f32.mrb[24].mxu0 }
 0x63d   : > { %v3801_v20 = vadd.f32 %v4076_v42, %v3800_v28  ;;  %v4248_v35 = vpop.f32.mrb[25].mxu0 }
 0x63e   : > { %v3803_v27 = vpop.f32.mrb[26].mxu0 }
 0x63f   : > { %v3815_v16 = vmul.f32 %v3813_v24, %v3801_v20  ;;  %v3804_v30 = vadd.f32 %v4076_v42, %v3803_v27  ;;  %v4249_v62 = vpop.f32.mrb[27].mxu0 }
 0x641   : > { %v3824_v23 = vadd.f32 %v4085_v50, %v3815_v16  ;;  %v3816_v17 = vmul.f32 %v3813_v24, %v3804_v30 }
 0x643   : > { %v3826_v60 = vadd.f32 %v3824_v23, %v363_v38  ;;  %v3825_v57 = vadd.f32 %v4085_v50, %v3816_v17 }
 0x645   : > { %3828 = vst [vmem:[%s361_s15] sm:$0xff] %v3826_v60  ;;  %v3827_v36 = vadd.f32 %v3825_v57, %v364_v15 }
 0x647   : > { %3829 = vst [vmem:[%s361_s15 + $0x8] sm:$0xff] %v3827_v36 }
 0x648   : > { %4658 = shalt.err (!%p4655_p4)
}
 0x649   : > { %s4659_s26 = scalar_lea.hbm %s5975_s0, 256  ;;  %s4663_s12 = scalar_lea.hbm %s6027_s6, 512 }
 0x64a   : > { %p4660_p11 = scmp.ne.s32.totalorder %s5975_s0, %s4659_s26  ;;  %p4664_p2 = scmp.lt.u32.totalorder %s5975_s0, %s6027_s6 }
 0x64b   : > { %p4665_p1 = scmp.lt.u32.totalorder %s4663_s12, %s4659_s26  ;;  %p4667_p0 = scmp.lt.u32.totalorder %s4659_s26, %s5975_s0 }
 0x64c   : > { %p4661_p7 = pnand %p4660_p11, %p4950_p10 }
 0x64d   : > { %p4666_p13 = por %p4665_p1, %p4664_p2 }
 0x64e   : > { %p4662_p12 = pneg %p4661_p7 }
 0x64f   : > { %p4668_p6 = por %p4667_p0, %p4666_p13 }
 0x651   : > { %p4669_p8 = pnand %p4668_p6, %p4662_p12 }
 0x653   : > { %4672 = shalt.err (!%p4669_p8)
}
 0x654   : > { %s4753_s2 = smov 128   ;;  %s4754_s10 = smov 8  }
 0x655   : > { %4273 = dma.vmem_to_hbm [thread:$0]  (%p4950_p10), %s5977_s17, 256, %s5975_s0, %s3831_s20, %s4753_s2, %s4753_s2, %s4754_s10  }
 0x656 PF: > { %s3859_s15 = sand.u32 1, %s4715_s21   ;;  %p6056_p3 = scmp.ne.s32.totalorder %s6036_s28, 0 }
 0x657   : > { %p6057_p5 = scmp.ge.s32.totalorder %s4727_s24, 2  ;;  %s3860_s4 = scalar_lea.sflag [#allocation4], %s3859_s15 }
 0x659   : > { %p4296_p9 = pnand %p6057_p5, %p6056_p3 }
 0x65b   : > { %4710 = dma.done.wait (!%p4296_p9), %s3860_s4, 256  }
 0x65c   : > { %4712 = vsyncadd (!%p4296_p9), %s3860_s4, 4294967040  ;;  %p24_p4 = scmp.ge.s32.totalorder %s4940_s18, 4   ;;  %s6058_s21 = smov %s4719_s22 }
 0x65d   : > { %s6059_s22 = smov %s4723_s23  ;;  %s6060_s23 = smov %s4956_s13 }
 0x65e   : > { %s6061_s24 = smov %s4940_s18  ;;  %26 = sbr.rel (!%p24_p4) target bundleno = 14 (0xe), region = 118 }
 0x665   :  { %3865 = vsyncpa [#allocation3], 1 }
 0x666   :  { %3867 = vsyncpa [#allocation3 + $0x1], 1 }
 0x667   :  { %3868 = vsyncpa [#allocation6], 1 }
 0x668   :  { %3870 = vsyncpa [#allocation6 + $0x1], 1 }
 0x669   :  { %3871 = vsyncpa [#allocation9], 1 }
 0x66a   :  { %3872 = vsyncpa [#allocation12], 1 }
 0x66b   :  { %3873 = vsyncpa [#allocation4], 1 }
 0x66c   :  { %3875 = vsyncpa [#allocation4 + $0x1], 1 }

// kernel: custom-call.10
= control target key start
LH: loop header
LB: loop body
LE: loop exit
PB: predicated region body
PF: predicated region fallthrough
CT: control target
= control target key end

     0   :  { %s552_s6 = smov 0   ;;  %s554_s7 = smov 0   ;;  %s641_s0 = inlined_call_operand.vmem [shape: f32[2,1,16,16], index: 0, kind: input, shape index: {}]   ;;  %s642_s1 = inlined_call_operand.vmem [shape: f32[2,1,16,16], index: 1, kind: output, shape index: {}]  }
   0x1   :  { %s556_s8 = smov 0  }
   0x2 LB: > { %s468_s9 = sadd.s32 4294967295, %s538_s8   ;;  %s33_s10 = sadd.s32 1, %s534_s7  ;;  %s538_s8 = sphi %s556_s8, %s7_s8   ;;  %s534_s7 = sphi %s554_s7, %s644_s7   ;;  %s530_s6 = sphi %s552_s6, %s643_s6  }
   0x3   : > { %p35_p0 = scmp.ge.s32.totalorder %s33_s10, 2  ;;  %p470_p1 = scmp.ge.s32.totalorder %s538_s8, 2 }
   0x4   : > { %s49_s11 = sand.u32 (!%p470_p1), 1, %s538_s8   ;;  %s484_s12 = sshll.u32 (!%p470_p1), %s534_s7, 4 }
   0x5   : > { %s646_s10 = smov (%p35_p0, %s33_s10), 0  ;;  %47 = sbr.rel (%p470_p1) target bundleno = 12 (0xc), region = 16 }
   0x6   : > { %s471_s13 = sshll.u32 (!%p470_p1), %s49_s11, 4  ;;  %s58_s16 = scalar_lea.vmem (!%p470_p1), %s641_s0, %s484_s12 }
   0x7   : > { %v88_v0 = vld [vmem:[%s58_s16] sm:$0xff] (!%p470_p1)  ;;  %v90_v1 = vld [vmem:[%s58_s16 + $0x8] sm:$0xff] (!%p470_p1)  ;;  %s51_s17 = scalar_lea.vmem (!%p470_p1), [#allocation0], %s471_s13 }
   0x8   : > { %89 = vst [vmem:[%s51_s17] sm:$0xff] (!%p470_p1), %v88_v0  ;;  %91 = vst [vmem:[%s51_s17 + $0x8] sm:$0xff] (!%p470_p1), %v90_v1 }
   0xc PF: > { %p474_p2 = scmp.ge.s32.totalorder %s538_s8, 1  ;;  %p96_p3 = scmp.lt.s32.totalorder %s538_s8, 3 }
   0xe   : > { %p97_p4 = pnand %p474_p2, %p96_p3 }
  0x10   : > { %100 = sbr.rel (%p97_p4) target bundleno = 2373 (0x945), region = 54 }
  0x17   : > { %s103_s18 = sand.u32 1, %s468_s9   ;;  %v114_v2 = vlaneseq  ;;  %v540_v11 = vmov -1.0   ;;  %v541_v55 = vmov 0.0   ;;  %s485_s21 = sshll.u32 %s530_s6, 4 }
  0x18   : > { %s475_s19 = sshll.u32 %s103_s18, 4  ;;  %s368_s24 = scalar_lea.vmem %s642_s1, %s485_s21 }
  0x19   : > { %v579_v3 = vand.u32 127, %v114_v2  ;;  %v118_v4 = vshrl.u32 %v114_v2, 7  ;;  %s581_s20 = scalar_lea.vmem [#allocation0], %s475_s19 }
  0x1a   : > { %v121_v5 = vld [vmem:[%s581_s20] sm:$0xff]  ;;  %v477_v38 = vld [vmem:[%s581_s20 + $0x8] sm:$0xff] }
  0x1b   : > { %vm120_vm0 = vcmp.eq.s32.totalorder %v118_v4, %v579_v3  ;;  %vm116_vm1 = vcmp.lt.s32.totalorder %v579_v3, 16  ;;  %vm125_vm2 = vcmp.ge.s32.totalorder %v118_v4, %v579_v3  ;;  %vm155_vm4 = vcmp.eq.s32.totalorder %v579_v3, 0 }
  0x1c   : > { %v122_v6 = vsel %vm120_vm0, %v121_v5, 0.0  ;;  %vm126_vm3 = vmand %vm125_vm2, %vm116_vm1  ;;  %vm152_vm5 = vcmp.eq.s32.totalorder %v579_v3, %v118_v4  ;;  %v156_v12 = vsel %vm155_vm4, 1.0, %v540_v11  ;;  %vm170_vm6 = vcmp.eq.s32.totalorder %v579_v3, 1 }
  0x1d   : > { %123 = vadd.xlane.f32.xlu0 %v122_v6  ;;  %v127_v8 = vsel %vm126_vm3, %v121_v5, 0.0  ;;  %v157_v13 = vsel %vm152_vm5, %v156_v12, 0.0  ;;  %vm180_vm7 = vcmp.eq.s32.totalorder %v579_v3, 2  ;;  %vm190_vm8 = vcmp.eq.s32.totalorder %v579_v3, 3 }
  0x1e   : > { %vm200_vm9 = vcmp.eq.s32.totalorder %v579_v3, 4  ;;  %v135_v33 = vadd.s32 8, %v118_v4  ;;  %vm210_vm11 = vcmp.eq.s32.totalorder %v579_v3, 5  ;;  %vm220_vm14 = vcmp.eq.s32.totalorder %v579_v3, 6 }
  0x1f   : > { %vm230_vm0 = vcmp.eq.s32.totalorder %v579_v3, 7  ;;  %vm254_vm2 = vcmp.eq.s32.totalorder %v579_v3, 9  ;;  %vm268_vm3 = vcmp.eq.s32.totalorder %v579_v3, 10  ;;  %vm282_vm4 = vcmp.eq.s32.totalorder %v579_v3, 11 }
  0x20   : > { %vm136_vm10 = vcmp.eq.s32.totalorder %v135_v33, %v579_v3  ;;  %vm141_vm12 = vcmp.ge.s32.totalorder %v135_v33, %v579_v3  ;;  %vm163_vm15 = vcmp.eq.s32.totalorder %v579_v3, %v135_v33  ;;  %vm296_vm5 = vcmp.eq.s32.totalorder %v579_v3, 12 }
  0x21   : > { %v138_v39 = vsel %vm136_vm10, %v477_v38, 0.0  ;;  %vm142_vm13 = vmand %vm141_vm12, %vm116_vm1  ;;  %v164_v56 = vsel %vm163_vm15, -1.0, %v541_v55  ;;  %vm240_vm1 = vcmp.eq.s32.totalorder %v579_v3, 8 }
  0x22   : > { %v143_v46 = vsel %vm142_vm13, %v477_v38, 0.0 }
  0xaa   : > { %v585_v7 = vpop.xlane.xlu0 %123 }
  0xab   : > { %512 = vrcp.f32 %v585_v7  ;;  %vm349_vm10 = vweird.f32 %v585_v7 }
  0xb5   : > { %v592_v9 = vpop.eup %512 }
  0xb6   : > { %v129_v10 = vmul.f32 %v592_v9, %v127_v8 }
  0xb8   : > { %130 = vst [vmem:[#allocation2] sm:$0xff] %v129_v10 }
  0xbf   : > { %v166_v14 = vld [vmem:[#allocation2 + $0x1] ss:$0 sm:$0xff]  ;;  %v176_v17 = vld [vmem:[#allocation2 + $0x2] ss:$0 sm:$0xff]  ;;  %v186_v22 = vld [vmem:[#allocation2 + $0x3] ss:$0 sm:$0xff] }
  0xc0   : > { %v167_v15 = vxor.u32 2147483648, %v166_v14  ;;  %v177_v19 = vxor.u32 2147483648, %v176_v17  ;;  %v187_v24 = vxor.u32 2147483648, %v186_v22  ;;  %v196_v27 = vld [vmem:[#allocation2 + $0x4] ss:$0 sm:$0xff] }
  0xc1   : > { %v197_v29 = vxor.u32 2147483648, %v196_v27  ;;  %v206_v32 = vld [vmem:[#allocation2 + $0x5] ss:$0 sm:$0xff]  ;;  %v216_v40 = vld [vmem:[#allocation2 + $0x6] ss:$0 sm:$0xff] }
  0xc2   : > { %v171_v16 = vmul.f32 %v167_v15, %v157_v13  ;;  %v207_v35 = vxor.u32 2147483648, %v206_v32  ;;  %v217_v42 = vxor.u32 2147483648, %v216_v40  ;;  %v226_v49 = vld [vmem:[#allocation2 + $0x7] ss:$0 sm:$0xff] }
  0xc3   : > { %v227_v52 = vxor.u32 2147483648, %v226_v49 }
  0xc4   : > { %172 = vadd.xlane.f32.xlu0 %v171_v16 }
 0x151   : > { %v173_v18 = vpop.xlane.xlu0 %172 }
 0x152   : > { %v174_v20 = vsel %vm170_vm6, %v173_v18, %v157_v13  ;;  %vm310_vm6 = vcmp.eq.s32.totalorder %v579_v3, 13 }
 0x153   : > { %v181_v21 = vmul.f32 %v177_v19, %v174_v20 }
 0x155   : > { %182 = vadd.xlane.f32.xlu1 %v181_v21 }
 0x1e2   : > { %v183_v23 = vpop.xlane.xlu1 %182 }
 0x1e3   : > { %v184_v25 = vsel %vm180_vm7, %v183_v23, %v174_v20  ;;  %vm324_vm7 = vcmp.eq.s32.totalorder %v579_v3, 14 }
 0x1e4   : > { %v191_v26 = vmul.f32 %v187_v24, %v184_v25 }
 0x1e6   : > { %192 = vadd.xlane.f32.xlu1 %v191_v26 }
 0x273   : > { %v193_v28 = vpop.xlane.xlu1 %192 }
 0x274   : > { %v194_v30 = vsel %vm190_vm8, %v193_v28, %v184_v25  ;;  %vm338_vm8 = vcmp.eq.s32.totalorder %v579_v3, 15 }
 0x275   : > { %v201_v31 = vmul.f32 %v197_v29, %v194_v30 }
 0x277   : > { %202 = vadd.xlane.f32.xlu0 %v201_v31 }
 0x304   : > { %v203_v34 = vpop.xlane.xlu0 %202 }
 0x305   : > { %v204_v36 = vsel %vm200_vm9, %v203_v34, %v194_v30 }
 0x306   : > { %v211_v37 = vmul.f32 %v207_v35, %v204_v36 }
 0x308   : > { %212 = vadd.xlane.f32.xlu1 %v211_v37 }
 0x30c   : > { %139 = vadd.xlane.f32.xlu1 %v138_v39 }
 0x395   : > { %v213_v41 = vpop.xlane.xlu1 %212 }
 0x396   : > { %v214_v43 = vsel %vm210_vm11, %v213_v41, %v204_v36 }
 0x397   : > { %v221_v44 = vmul.f32 %v217_v42, %v214_v43 }
 0x399   : > { %222 = vadd.xlane.f32.xlu0 %v221_v44  ;;  %v604_v45 = vpop.xlane.xlu1 %139 }
 0x39a   : > { %514 = vrcp.f32 %v604_v45  ;;  %vm354_vm9 = vweird.f32 %v604_v45 }
 0x3a4   : > { %v610_v47 = vpop.eup %514 }
 0x3a5   : > { %v145_v48 = vmul.f32 %v610_v47, %v143_v46 }
 0x3a7   : > { %146 = vst [vmem:[#allocation2 + $0x8] sm:$0xff] %v145_v48 }
 0x3ae   : > { %v236_v50 = vld [vmem:[#allocation2 + $0x8] ss:$0 sm:$0xff]  ;;  %v250_v61 = vld [vmem:[#allocation2 + $0x9] ss:$0 sm:$0xff]  ;;  %v264_v6 = vld [vmem:[#allocation2 + $0xa] ss:$0 sm:$0xff] }
 0x3af   : > { %v237_v53 = vxor.u32 2147483648, %v236_v50  ;;  %v251_v0 = vxor.u32 2147483648, %v250_v61  ;;  %v265_v11 = vxor.u32 2147483648, %v264_v6  ;;  %v278_v16 = vld [vmem:[#allocation2 + $0xb] ss:$0 sm:$0xff] }
 0x3b0   : > { %v279_v19 = vxor.u32 2147483648, %v278_v16  ;;  %v292_v24 = vld [vmem:[#allocation2 + $0xc] ss:$0 sm:$0xff]  ;;  %v306_v32 = vld [vmem:[#allocation2 + $0xd] ss:$0 sm:$0xff] }
 0x3b1   : > { %v245_v58 = vmul.f32 %v237_v53, %v164_v56  ;;  %v293_v27 = vxor.u32 2147483648, %v292_v24  ;;  %v307_v35 = vxor.u32 2147483648, %v306_v32  ;;  %v320_v40 = vld [vmem:[#allocation2 + $0xe] ss:$0 sm:$0xff]  ;;  %v334_v50 = vld [vmem:[#allocation2 + $0xf] ss:$0 sm:$0xff] }
 0x426   : > { %v223_v51 = vpop.xlane.xlu0 %222 }
 0x427   : > { %v224_v54 = vsel %vm220_vm14, %v223_v51, %v214_v43  ;;  %v321_v43 = vxor.u32 2147483648, %v320_v40 }
 0x428   : > { %v231_v57 = vmul.f32 %v227_v52, %v224_v54 }
 0x42a   : > { %232 = vadd.xlane.f32.xlu0 %v231_v57 }
 0x42e   : > { %246 = vadd.xlane.f32.xlu0 %v245_v58 }
 0x4b7   : > { %v233_v59 = vpop.xlane.xlu0 %232 }
 0x4b8   : > { %v234_v60 = vsel %vm230_vm0, %v233_v59, %v224_v54 }
 0x4b9   : > { %v241_v62 = vmul.f32 %v237_v53, %v234_v60  ;;  %v335_v53 = vxor.u32 2147483648, %v334_v50 }
 0x4bb   : > { %v247_v63 = vpop.xlane.xlu0 %246  ;;  %242 = vadd.xlane.f32.xlu1 %v241_v62 }
 0x4bc   : > { %v248_v1 = vsel %vm240_vm1, %v247_v63, %v164_v56 }
 0x4bd   : > { %v259_v2 = vmul.f32 %v251_v0, %v248_v1 }
 0x4bf   : > { %260 = vadd.xlane.f32.xlu0 %v259_v2 }
 0x548   : > { %v243_v4 = vpop.xlane.xlu1 %242 }
 0x549   : > { %v244_v5 = vsel %vm240_vm1, %v243_v4, %v234_v60 }
 0x54a   : > { %v255_v8 = vmul.f32 %v251_v0, %v244_v5 }
 0x54c   : > { %v261_v10 = vpop.xlane.xlu0 %260  ;;  %256 = vadd.xlane.f32.xlu1 %v255_v8 }
 0x54d   : > { %v262_v12 = vsel %vm254_vm2, %v261_v10, %v248_v1 }
 0x54e   : > { %v273_v13 = vmul.f32 %v265_v11, %v262_v12 }
 0x550   : > { %274 = vadd.xlane.f32.xlu0 %v273_v13 }
 0x5d9   : > { %v257_v14 = vpop.xlane.xlu1 %256 }
 0x5da   : > { %v258_v15 = vsel %vm254_vm2, %v257_v14, %v244_v5 }
 0x5db   : > { %v269_v17 = vmul.f32 %v265_v11, %v258_v15 }
 0x5dd   : > { %v275_v18 = vpop.xlane.xlu0 %274  ;;  %270 = vadd.xlane.f32.xlu1 %v269_v17 }
 0x5de   : > { %v276_v20 = vsel %vm268_vm3, %v275_v18, %v262_v12 }
 0x5df   : > { %v287_v21 = vmul.f32 %v279_v19, %v276_v20 }
 0x5e1   : > { %288 = vadd.xlane.f32.xlu0 %v287_v21 }
 0x66a   : > { %v271_v22 = vpop.xlane.xlu1 %270 }
 0x66b   : > { %v272_v23 = vsel %vm268_vm3, %v271_v22, %v258_v15 }
 0x66c   : > { %v283_v25 = vmul.f32 %v279_v19, %v272_v23 }
 0x66e   : > { %v289_v26 = vpop.xlane.xlu0 %288  ;;  %284 = vadd.xlane.f32.xlu1 %v283_v25 }
 0x66f   : > { %v290_v28 = vsel %vm282_vm4, %v289_v26, %v276_v20 }
 0x670   : > { %v301_v29 = vmul.f32 %v293_v27, %v290_v28 }
 0x672   : > { %302 = vadd.xlane.f32.xlu0 %v301_v29 }
 0x6fb   : > { %v285_v30 = vpop.xlane.xlu1 %284 }
 0x6fc   : > { %v286_v31 = vsel %vm282_vm4, %v285_v30, %v272_v23 }
 0x6fd   : > { %v297_v33 = vmul.f32 %v293_v27, %v286_v31 }
 0x6ff   : > { %v303_v34 = vpop.xlane.xlu0 %302  ;;  %298 = vadd.xlane.f32.xlu1 %v297_v33 }
 0x700   : > { %v304_v36 = vsel %vm296_vm5, %v303_v34, %v290_v28 }
 0x701   : > { %v315_v37 = vmul.f32 %v307_v35, %v304_v36 }
 0x703   : > { %316 = vadd.xlane.f32.xlu0 %v315_v37 }
 0x78c   : > { %v299_v38 = vpop.xlane.xlu1 %298 }
 0x78d   : > { %v300_v39 = vsel %vm296_vm5, %v299_v38, %v286_v31 }
 0x78e   : > { %v311_v41 = vmul.f32 %v307_v35, %v300_v39 }
 0x790   : > { %v317_v42 = vpop.xlane.xlu0 %316  ;;  %312 = vadd.xlane.f32.xlu1 %v311_v41 }
 0x791   : > { %v318_v44 = vsel %vm310_vm6, %v317_v42, %v304_v36 }
 0x792   : > { %v329_v46 = vmul.f32 %v321_v43, %v318_v44 }
 0x794   : > { %330 = vadd.xlane.f32.xlu0 %v329_v46 }
 0x81d   : > { %v313_v48 = vpop.xlane.xlu1 %312 }
 0x81e   : > { %v314_v49 = vsel %vm310_vm6, %v313_v48, %v300_v39 }
 0x81f   : > { %v325_v51 = vmul.f32 %v321_v43, %v314_v49 }
 0x821   : > { %v331_v52 = vpop.xlane.xlu0 %330  ;;  %326 = vadd.xlane.f32.xlu1 %v325_v51 }
 0x822   : > { %v332_v54 = vsel %vm324_vm7, %v331_v52, %v318_v44 }
 0x823   : > { %v343_v55 = vmul.f32 %v335_v53, %v332_v54 }
 0x825   : > { %344 = vadd.xlane.f32.xlu0 %v343_v55 }
 0x8ae   : > { %v327_v56 = vpop.xlane.xlu1 %326 }
 0x8af   : > { %v328_v57 = vsel %vm324_vm7, %v327_v56, %v314_v49 }
 0x8b0   : > { %v339_v58 = vmul.f32 %v335_v53, %v328_v57 }
 0x8b2   : > { %v345_v59 = vpop.xlane.xlu0 %344  ;;  %340 = vadd.xlane.f32.xlu1 %v339_v58 }
 0x8b3   : > { %v346_v60 = vsel %vm338_vm8, %v345_v59, %v332_v54 }
 0x8b4   : > { %v353_v61 = vmul.f32 %v610_v47, %v346_v60 }
 0x8b6   : > { %v355_v62 = vsel %vm354_vm9, %v346_v60, %v353_v61 }
 0x8b7   : > { %401 = vst [vmem:[%s368_s24 + $0x8] sm:$0xff] %v355_v62 }
 0x93f   : > { %v341_v63 = vpop.xlane.xlu1 %340 }
 0x940   : > { %v342_v0 = vsel %vm338_vm8, %v341_v63, %v328_v57 }
 0x941   : > { %v348_v1 = vmul.f32 %v592_v9, %v342_v0 }
 0x943   : > { %v350_v3 = vsel %vm349_vm10, %v342_v0, %v348_v1 }
 0x944   : > { %399 = vst [vmem:[%s368_s24] sm:$0xff] %v350_v3 }
 0x945 PF: > { %s7_s8 = sadd.s32 1, %s538_s8   ;;  %s643_s6 = smov %s534_s7 }
 0x946   : > { %p4_p5 = scmp.ge.s32.totalorder %s7_s8, 4   ;;  %s644_s7 = smov %s646_s10 }
 0x948   :  { %6 = sbr.rel (!%p4_p5) target bundleno = 2 (0x2), region = 136 }

// kernel: custom-call.9
= control target key start
LH: loop header
LB: loop body
LE: loop exit
PB: predicated region body
PF: predicated region fallthrough
CT: control target
= control target key end

     0   :  { %s551_s6 = smov 0   ;;  %s553_s7 = smov 0   ;;  %s674_s0 = inlined_call_operand.vmem [shape: f32[2,1,16,16], index: 0, kind: input, shape index: {}]   ;;  %s675_s1 = inlined_call_operand.vmem [shape: f32[2,1,16,16], index: 1, kind: output, shape index: {}]  }
   0x1   :  { %s555_s8 = smov 0  }
   0x2 LB: > { %s467_s9 = sadd.s32 4294967295, %s537_s8   ;;  %s33_s10 = sadd.s32 1, %s533_s7  ;;  %s537_s8 = sphi %s555_s8, %s7_s8   ;;  %s533_s7 = sphi %s553_s7, %s677_s7   ;;  %s529_s6 = sphi %s551_s6, %s676_s6  }
   0x3   : > { %p35_p0 = scmp.ge.s32.totalorder %s33_s10, 2  ;;  %p469_p1 = scmp.ge.s32.totalorder %s537_s8, 2 }
   0x4   : > { %s49_s11 = sand.u32 (!%p469_p1), 1, %s537_s8   ;;  %s483_s12 = sshll.u32 (!%p469_p1), %s533_s7, 4 }
   0x5   : > { %s679_s10 = smov (%p35_p0, %s33_s10), 0  ;;  %47 = sbr.rel (%p469_p1) target bundleno = 12 (0xc), region = 16 }
   0x6   : > { %s470_s13 = sshll.u32 (!%p469_p1), %s49_s11, 4  ;;  %s58_s16 = scalar_lea.vmem (!%p469_p1), %s674_s0, %s483_s12 }
   0x7   : > { %v88_v0 = vld [vmem:[%s58_s16] sm:$0xff] (!%p469_p1)  ;;  %v90_v1 = vld [vmem:[%s58_s16 + $0x8] sm:$0xff] (!%p469_p1)  ;;  %s51_s17 = scalar_lea.vmem (!%p469_p1), [#allocation0], %s470_s13 }
   0x8   : > { %89 = vst [vmem:[%s51_s17] sm:$0xff] (!%p469_p1), %v88_v0  ;;  %91 = vst [vmem:[%s51_s17 + $0x8] sm:$0xff] (!%p469_p1), %v90_v1 }
   0xc PF: > { %p473_p2 = scmp.ge.s32.totalorder %s537_s8, 1  ;;  %p96_p3 = scmp.lt.s32.totalorder %s537_s8, 3 }
   0xe   : > { %p97_p4 = pnand %p473_p2, %p96_p3 }
  0x10   : > { %100 = sbr.rel (%p97_p4) target bundleno = 2375 (0x947), region = 54 }
  0x17   : > { %s103_s18 = sand.u32 1, %s467_s9   ;;  %v114_v2 = vlaneseq  ;;  %v539_v12 = vmov -1.0   ;;  %v540_v49 = vmov 0.0   ;;  %s484_s21 = sshll.u32 %s529_s6, 4 }
  0x18   : > { %s474_s19 = sshll.u32 %s103_s18, 4  ;;  %s367_s24 = scalar_lea.vmem %s675_s1, %s484_s21 }
  0x19   : > { %v578_v3 = vand.u32 127, %v114_v2  ;;  %v580_v4 = vshrl.u32 %v114_v2, 7  ;;  %s584_s20 = scalar_lea.vmem [#allocation0], %s474_s19 }
  0x1a   : > { %v476_v6 = vld [vmem:[%s584_s20 + $0x8] sm:$0xff]  ;;  %v121_v38 = vld [vmem:[%s584_s20] sm:$0xff] }
  0x1b   : > { %vm116_vm0 = vcmp.lt.s32.totalorder %v578_v3, 16  ;;  %v135_v5 = vadd.s32 8, %v580_v4  ;;  %vm162_vm4 = vcmp.eq.s32.totalorder %v578_v3, 15  ;;  %vm170_vm6 = vcmp.eq.s32.totalorder %v578_v3, 14 }
  0x1c   : > { %v163_v13 = vsel %vm162_vm4, 1.0, %v539_v12  ;;  %vm180_vm7 = vcmp.eq.s32.totalorder %v578_v3, 13  ;;  %vm190_vm8 = vcmp.eq.s32.totalorder %v578_v3, 12  ;;  %vm200_vm9 = vcmp.eq.s32.totalorder %v578_v3, 11 }
  0x1d   : > { %vm136_vm1 = vcmp.eq.s32.totalorder %v135_v5, %v578_v3  ;;  %vm141_vm2 = vcmp.le.s32.totalorder %v135_v5, %v578_v3  ;;  %vm159_vm5 = vcmp.eq.s32.totalorder %v578_v3, %v135_v5  ;;  %vm120_vm10 = vcmp.eq.s32.totalorder %v580_v4, %v578_v3 }
  0x1e   : > { %v138_v7 = vsel %vm136_vm1, %v476_v6, 0.0  ;;  %vm142_vm3 = vmand %vm141_vm2, %vm116_vm0  ;;  %v164_v14 = vsel %vm159_vm5, %v163_v13, 0.0  ;;  %v122_v39 = vsel %vm120_vm10, %v121_v38, 0.0  ;;  %vm210_vm11 = vcmp.eq.s32.totalorder %v578_v3, 10 }
  0x1f   : > { %v143_v8 = vsel %vm142_vm3, %v476_v6, 0.0  ;;  %139 = vadd.xlane.f32.xlu0 %v138_v7  ;;  %vm125_vm12 = vcmp.le.s32.totalorder %v580_v4, %v578_v3  ;;  %vm152_vm14 = vcmp.eq.s32.totalorder %v578_v3, %v580_v4  ;;  %vm220_vm15 = vcmp.eq.s32.totalorder %v578_v3, 9 }
  0x20   : > { %vm126_vm13 = vmand %vm125_vm12, %vm116_vm0  ;;  %v153_v50 = vsel %vm152_vm14, -1.0, %v540_v49  ;;  %vm240_vm0 = vcmp.eq.s32.totalorder %v578_v3, 7  ;;  %vm230_vm1 = vcmp.eq.s32.totalorder %v578_v3, 8  ;;  %vm254_vm2 = vcmp.eq.s32.totalorder %v578_v3, 6 }
  0x21   : > { %v127_v46 = vsel %vm126_vm13, %v121_v38, 0.0  ;;  %vm268_vm3 = vcmp.eq.s32.totalorder %v578_v3, 5  ;;  %vm282_vm4 = vcmp.eq.s32.totalorder %v578_v3, 4  ;;  %vm296_vm5 = vcmp.eq.s32.totalorder %v578_v3, 3 }
  0xac   : > { %v591_v9 = vpop.xlane.xlu0 %139 }
  0xad   : > { %511 = vrcp.f32 %v591_v9  ;;  %vm353_vm10 = vweird.f32 %v591_v9 }
  0xb7   : > { %v594_v10 = vpop.eup %511 }
  0xb8   : > { %v145_v11 = vmul.f32 %v594_v10, %v143_v8 }
  0xba   : > { %146 = vst [vmem:[#allocation2 + $0x8] sm:$0xff] %v145_v11 }
  0xc1   : > { %v166_v15 = vld [vmem:[#allocation2 + $0xe] ss:$0 sm:$0xff]  ;;  %v176_v18 = vld [vmem:[#allocation2 + $0xd] ss:$0 sm:$0xff]  ;;  %v186_v23 = vld [vmem:[#allocation2 + $0xc] ss:$0 sm:$0xff] }
  0xc2   : > { %v167_v16 = vxor.u32 2147483648, %v166_v15  ;;  %v177_v20 = vxor.u32 2147483648, %v176_v18  ;;  %v187_v25 = vxor.u32 2147483648, %v186_v23  ;;  %v196_v28 = vld [vmem:[#allocation2 + $0xb] ss:$0 sm:$0xff] }
  0xc3   : > { %v197_v30 = vxor.u32 2147483648, %v196_v28  ;;  %v206_v33 = vld [vmem:[#allocation2 + $0xa] ss:$0 sm:$0xff]  ;;  %v216_v40 = vld [vmem:[#allocation2 + $0x9] ss:$0 sm:$0xff] }
  0xc4   : > { %v171_v17 = vmul.f32 %v167_v16, %v164_v14  ;;  %v207_v35 = vxor.u32 2147483648, %v206_v33  ;;  %v217_v42 = vxor.u32 2147483648, %v216_v40  ;;  %v226_v54 = vld [vmem:[#allocation2 + $0x8] ss:$0 sm:$0xff] }
  0xc5   : > { %v227_v56 = vxor.u32 2147483648, %v226_v54 }
  0xc6   : > { %172 = vadd.xlane.f32.xlu0 %v171_v17 }
 0x153   : > { %v173_v19 = vpop.xlane.xlu0 %172 }
 0x154   : > { %v174_v21 = vsel %vm170_vm6, %v173_v19, %v164_v14  ;;  %vm310_vm6 = vcmp.eq.s32.totalorder %v578_v3, 2 }
 0x155   : > { %v181_v22 = vmul.f32 %v177_v20, %v174_v21 }
 0x157   : > { %182 = vadd.xlane.f32.xlu1 %v181_v22 }
 0x1e4   : > { %v183_v24 = vpop.xlane.xlu1 %182 }
 0x1e5   : > { %v184_v26 = vsel %vm180_vm7, %v183_v24, %v174_v21  ;;  %vm324_vm7 = vcmp.eq.s32.totalorder %v578_v3, 1 }
 0x1e6   : > { %v191_v27 = vmul.f32 %v187_v25, %v184_v26 }
 0x1e8   : > { %192 = vadd.xlane.f32.xlu1 %v191_v27 }
 0x275   : > { %v193_v29 = vpop.xlane.xlu1 %192 }
 0x276   : > { %v194_v31 = vsel %vm190_vm8, %v193_v29, %v184_v26  ;;  %vm337_vm8 = vcmp.eq.s32.totalorder %v578_v3, 0 }
 0x277   : > { %v201_v32 = vmul.f32 %v197_v30, %v194_v31 }
 0x279   : > { %202 = vadd.xlane.f32.xlu0 %v201_v32 }
 0x306   : > { %v203_v34 = vpop.xlane.xlu0 %202 }
 0x307   : > { %v204_v36 = vsel %vm200_vm9, %v203_v34, %v194_v31 }
 0x308   : > { %v211_v37 = vmul.f32 %v207_v35, %v204_v36 }
 0x30a   : > { %212 = vadd.xlane.f32.xlu1 %v211_v37 }
 0x30e   : > { %123 = vadd.xlane.f32.xlu1 %v122_v39 }
 0x397   : > { %v213_v41 = vpop.xlane.xlu1 %212 }
 0x398   : > { %v214_v43 = vsel %vm210_vm11, %v213_v41, %v204_v36 }
 0x399   : > { %v221_v44 = vmul.f32 %v217_v42, %v214_v43 }
 0x39b   : > { %222 = vadd.xlane.f32.xlu0 %v221_v44  ;;  %v607_v45 = vpop.xlane.xlu1 %123 }
 0x39c   : > { %513 = vrcp.f32 %v607_v45  ;;  %vm348_vm9 = vweird.f32 %v607_v45 }
 0x3a6   : > { %v614_v47 = vpop.eup %513 }
 0x3a7   : > { %v129_v48 = vmul.f32 %v614_v47, %v127_v46 }
 0x3a9   : > { %130 = vst [vmem:[#allocation2] sm:$0xff] %v129_v48 }
 0x3b0   : > { %v236_v51 = vld [vmem:[#allocation2 + $0x7] ss:$0 sm:$0xff]  ;;  %v250_v59 = vld [vmem:[#allocation2 + $0x6] ss:$0 sm:$0xff]  ;;  %v264_v4 = vld [vmem:[#allocation2 + $0x5] ss:$0 sm:$0xff] }
 0x3b1   : > { %v237_v52 = vxor.u32 2147483648, %v236_v51  ;;  %v251_v60 = vxor.u32 2147483648, %v250_v59  ;;  %v265_v6 = vxor.u32 2147483648, %v264_v4  ;;  %v278_v14 = vld [vmem:[#allocation2 + $0x4] ss:$0 sm:$0xff] }
 0x3b2   : > { %v279_v16 = vxor.u32 2147483648, %v278_v14  ;;  %v292_v22 = vld [vmem:[#allocation2 + $0x3] ss:$0 sm:$0xff]  ;;  %v306_v30 = vld [vmem:[#allocation2 + $0x2] ss:$0 sm:$0xff] }
 0x3b3   : > { %v241_v53 = vmul.f32 %v237_v52, %v153_v50  ;;  %v293_v24 = vxor.u32 2147483648, %v292_v22  ;;  %v307_v32 = vxor.u32 2147483648, %v306_v30  ;;  %v320_v38 = vld [vmem:[#allocation2 + $0x1] ss:$0 sm:$0xff]  ;;  %v333_v48 = vld [vmem:[#allocation2] ss:$0 sm:$0xff] }
 0x3b4   : > { %v321_v40 = vxor.u32 2147483648, %v320_v38 }
 0x3b5   : > { %242 = vadd.xlane.f32.xlu1 %v241_v53 }
 0x428   : > { %v223_v55 = vpop.xlane.xlu0 %222 }
 0x429   : > { %v224_v57 = vsel %vm220_vm15, %v223_v55, %v214_v43 }
 0x42a   : > { %v231_v58 = vmul.f32 %v227_v56, %v224_v57 }
 0x42c   : > { %232 = vadd.xlane.f32.xlu0 %v231_v58 }
 0x442   : > { %v243_v61 = vpop.xlane.xlu1 %242 }
 0x443   : > { %v244_v62 = vsel %vm240_vm0, %v243_v61, %v153_v50  ;;  %v334_v50 = vxor.u32 2147483648, %v333_v48 }
 0x444   : > { %v255_v63 = vmul.f32 %v251_v60, %v244_v62 }
 0x446   : > { %256 = vadd.xlane.f32.xlu1 %v255_v63 }
 0x4b9   : > { %v233_v0 = vpop.xlane.xlu0 %232 }
 0x4ba   : > { %v234_v1 = vsel %vm230_vm1, %v233_v0, %v224_v57 }
 0x4bb   : > { %v245_v2 = vmul.f32 %v237_v52, %v234_v1 }
 0x4bd   : > { %246 = vadd.xlane.f32.xlu0 %v245_v2 }
 0x4d3   : > { %v257_v5 = vpop.xlane.xlu1 %256 }
 0x4d4   : > { %v258_v7 = vsel %vm254_vm2, %v257_v5, %v244_v62 }
 0x4d5   : > { %v269_v8 = vmul.f32 %v265_v6, %v258_v7 }
 0x4d7   : > { %270 = vadd.xlane.f32.xlu1 %v269_v8 }
 0x54a   : > { %v247_v11 = vpop.xlane.xlu0 %246 }
 0x54b   : > { %v248_v12 = vsel %vm240_vm0, %v247_v11, %v234_v1 }
 0x54c   : > { %v259_v13 = vmul.f32 %v251_v60, %v248_v12 }
 0x54e   : > { %260 = vadd.xlane.f32.xlu0 %v259_v13 }
 0x564   : > { %v271_v15 = vpop.xlane.xlu1 %270 }
 0x565   : > { %v272_v17 = vsel %vm268_vm3, %v271_v15, %v258_v7 }
 0x566   : > { %v283_v18 = vmul.f32 %v279_v16, %v272_v17 }
 0x568   : > { %284 = vadd.xlane.f32.xlu1 %v283_v18 }
 0x5db   : > { %v261_v19 = vpop.xlane.xlu0 %260 }
 0x5dc   : > { %v262_v20 = vsel %vm254_vm2, %v261_v19, %v248_v12 }
 0x5dd   : > { %v273_v21 = vmul.f32 %v265_v6, %v262_v20 }
 0x5df   : > { %274 = vadd.xlane.f32.xlu0 %v273_v21 }
 0x5f5   : > { %v285_v23 = vpop.xlane.xlu1 %284 }
 0x5f6   : > { %v286_v25 = vsel %vm282_vm4, %v285_v23, %v272_v17 }
 0x5f7   : > { %v297_v26 = vmul.f32 %v293_v24, %v286_v25 }
 0x5f9   : > { %298 = vadd.xlane.f32.xlu1 %v297_v26 }
 0x66c   : > { %v275_v27 = vpop.xlane.xlu0 %274 }
 0x66d   : > { %v276_v28 = vsel %vm268_vm3, %v275_v27, %v262_v20 }
 0x66e   : > { %v287_v29 = vmul.f32 %v279_v16, %v276_v28 }
 0x670   : > { %288 = vadd.xlane.f32.xlu0 %v287_v29 }
 0x686   : > { %v299_v31 = vpop.xlane.xlu1 %298 }
 0x687   : > { %v300_v33 = vsel %vm296_vm5, %v299_v31, %v286_v25 }
 0x688   : > { %v311_v34 = vmul.f32 %v307_v32, %v300_v33 }
 0x68a   : > { %312 = vadd.xlane.f32.xlu1 %v311_v34 }
 0x6fd   : > { %v289_v35 = vpop.xlane.xlu0 %288 }
 0x6fe   : > { %v290_v36 = vsel %vm282_vm4, %v289_v35, %v276_v28 }
 0x6ff   : > { %v301_v37 = vmul.f32 %v293_v24, %v290_v36 }
 0x701   : > { %302 = vadd.xlane.f32.xlu0 %v301_v37 }
 0x717   : > { %v313_v39 = vpop.xlane.xlu1 %312 }
 0x718   : > { %v314_v41 = vsel %vm310_vm6, %v313_v39, %v300_v33 }
 0x719   : > { %v325_v42 = vmul.f32 %v321_v40, %v314_v41 }
 0x71b   : > { %326 = vadd.xlane.f32.xlu1 %v325_v42 }
 0x78e   : > { %v303_v43 = vpop.xlane.xlu0 %302 }
 0x78f   : > { %v304_v44 = vsel %vm296_vm5, %v303_v43, %v290_v36 }
 0x790   : > { %v315_v46 = vmul.f32 %v307_v32, %v304_v44 }
 0x792   : > { %316 = vadd.xlane.f32.xlu0 %v315_v46 }
 0x7a8   : > { %v327_v49 = vpop.xlane.xlu1 %326 }
 0x7a9   : > { %v328_v51 = vsel %vm324_vm7, %v327_v49, %v314_v41 }
 0x7aa   : > { %v338_v52 = vmul.f32 %v334_v50, %v328_v51 }
 0x7ac   : > { %339 = vadd.xlane.f32.xlu1 %v338_v52 }
 0x81f   : > { %v317_v53 = vpop.xlane.xlu0 %316 }
 0x820   : > { %v318_v54 = vsel %vm310_vm6, %v317_v53, %v304_v44 }
 0x821   : > { %v329_v55 = vmul.f32 %v321_v40, %v318_v54 }
 0x823   : > { %330 = vadd.xlane.f32.xlu0 %v329_v55 }
 0x839   : > { %v340_v56 = vpop.xlane.xlu1 %339 }
 0x83a   : > { %v341_v57 = vsel %vm337_vm8, %v340_v56, %v328_v51 }
 0x83b   : > { %v347_v58 = vmul.f32 %v614_v47, %v341_v57 }
 0x83d   : > { %v349_v59 = vsel %vm348_vm9, %v341_v57, %v347_v58 }
 0x83e   : > { %398 = vst [vmem:[%s367_s24] sm:$0xff] %v349_v59 }
 0x8b0   : > { %v331_v60 = vpop.xlane.xlu0 %330 }
 0x8b1   : > { %v332_v61 = vsel %vm324_vm7, %v331_v60, %v318_v54 }
 0x8b2   : > { %v342_v62 = vmul.f32 %v334_v50, %v332_v61 }
 0x8b4   : > { %343 = vadd.xlane.f32.xlu0 %v342_v62 }
 0x941   : > { %v344_v63 = vpop.xlane.xlu0 %343 }
 0x942   : > { %v345_v0 = vsel %vm337_vm8, %v344_v63, %v332_v61 }
 0x943   : > { %v352_v1 = vmul.f32 %v594_v10, %v345_v0 }
 0x945   : > { %v354_v2 = vsel %vm353_vm10, %v345_v0, %v352_v1 }
 0x946   : > { %400 = vst [vmem:[%s367_s24 + $0x8] sm:$0xff] %v354_v2 }
 0x947 PF: > { %s7_s8 = sadd.s32 1, %s537_s8   ;;  %s676_s6 = smov %s533_s7 }
 0x948   : > { %p4_p5 = scmp.ge.s32.totalorder %s7_s8, 4   ;;  %s677_s7 = smov %s679_s10 }
 0x94a   :  { %6 = sbr.rel (!%p4_p5) target bundleno = 2 (0x2), region = 135 }

// kernel: tfedcn_forward.11
= control target key start
LH: loop header
LB: loop body
LE: loop exit
PB: predicated region body
PF: predicated region fallthrough
CT: control target
= control target key end

     0   :  { %12 = vsyncpa [#allocation3], 0  ;;  %s2006_s0 = inlined_call_operand.hbm [shape: f32[2,10,128], index: 0, kind: input, shape index: {}]   ;;  %s2007_s1 = inlined_call_operand.hbm [shape: bf16[128,128], index: 1, kind: input, shape index: {}]   ;;  %s2008_s2 = inlined_call_operand.hbm [shape: bf16[128,128], index: 2, kind: input, shape index: {}]   ;;  %s2009_s3 = inlined_call_operand.hbm [shape: bf16[128,128], index: 3, kind: input, shape index: {}]   ;;  %s2010_s4 = inlined_call_operand.hbm [shape: f32[1,128], index: 4, kind: input, shape index: {}]   ;;  %s2011_s5 = inlined_call_operand.hbm [shape: bf16[128,128], index: 5, kind: input, shape index: {}]   ;;  %s2012_s6 = inlined_call_operand.hbm [shape: f32[1,128], index: 6, kind: input, shape index: {}]   ;;  %s2013_s7 = inlined_call_operand.hbm [shape: f32[2,8,128], index: 7, kind: output, shape index: {}]  }
   0x1   :  { %14 = vsyncpa [#allocation3 + $0x1], 0 }
   0x2   :  { %15 = vsyncpa [#allocation6], 0 }
   0x3   :  { %16 = vsyncpa [#allocation9], 0 }
   0x4   :  { %17 = vsyncpa [#allocation12], 0 }
   0x5   :  { %18 = vsyncpa [#allocation4], 0 }
   0x6   :  { %20 = vsyncpa [#allocation4 + $0x1], 0  ;;  %s1626_s24 = smov 0   ;;  %s1628_s25 = smov 0  }
   0x7   :  { %s1630_s26 = smov 0   ;;  %s1632_s27 = smov 0  }
   0x8 LB: > { %s1572_s28 = smov [#allocation5]   ;;  %s1647_s30 = sadd.s32 4294967295, %s1570_s27   ;;  %s1570_s27 = sphi %s1632_s27, %s2039_s27   ;;  %s1566_s26 = sphi %s1630_s26, %s2038_s26   ;;  %s1562_s25 = sphi %s1628_s25, %s2037_s25   ;;  %s1558_s24 = sphi %s1626_s24, %s2036_s24  }
   0x9   : > { %s221_s29 = sshll.u32 %s1572_s28, 4  ;;  %p974_p0 = scmp.ge.s32.totalorder %s1570_s27, 1  ;;  %s1652_s29 = int_to_ptr.vmem [resolvable:$true] %s221_s29 }
   0xa   : > { %p2014_p1 = scmp.eq.s32.totalorder %s1647_s30, 0  ;;  %p209_p2 = scmp.lt.s32.totalorder %s1570_s27, 3 }
   0xb   : > { %s1573_s9 = smov [#allocation8]   ;;  %s1574_s12 = smov [#allocation11]  }
   0xc   : > { %p1654_p3 = pnand %p974_p0, %p209_p2  ;;  %s247_s10 = sshll.u32 %s1573_s9, 4  ;;  %s1667_s10 = int_to_ptr.vmem [resolvable:$true] %s247_s10 }
   0xd   : > { %s271_s13 = sshll.u32 %s1574_s12, 4  ;;  %s1294_s16 = scalar_lea.hbm %s2007_s1, 1024  ;;  %s1669_s13 = int_to_ptr.vmem [resolvable:$true] %s271_s13 }
   0xe   : > { %s2017_s8 = scalar_select %p1654_p3, 1, 0 }
   0xf   : > { %p1177_p5 = pneg %p1654_p3  ;;  %p1295_p7 = scmp.ne.s32.totalorder %s2007_s1, %s1294_s16 }
  0x10   : > { %p1301_p11 = scmp.lt.u32.totalorder %s1294_s16, %s2007_s1 }
  0x11   : > { %p1663_p6 = pnand %p1177_p5, %p2014_p1 }
  0x13   : > { %p1679_p8 = pneg %p1663_p6 }
  0x15   : > { %p1297_p9 = pnand %p1679_p8, %p1295_p7 }
  0x17   : > { %p1298_p10 = pneg %p1297_p9 }
  0x19   : > { %p1303_p12 = pnand %p1301_p11, %p1298_p10 }
  0x1b   : > { %1306 = shalt.err (!%p1303_p12)
}
  0x1c   : > { %s1307_s22 = scalar_lea.vmem %s1652_s29, 1024  ;;  %p1315_p5 = scmp.lt.s32.totalorder %s1652_s29, %s1652_s29 }
  0x1d   : > { %p1308_p13 = scmp.ne.s32.totalorder %s1652_s29, %s1307_s22  ;;  %p1316_p4 = scmp.lt.s32.totalorder %s1307_s22, %s1307_s22 }
  0x1f   : > { %p1310_p0 = pnand %p1308_p13, %p1679_p8  ;;  %p1317_p7 = por %p1316_p4, %p1315_p5 }
  0x21   : > { %p1311_p2 = pneg %p1310_p0 }
  0x23   : > { %p1318_p9 = pnand %p1317_p7, %p1311_p2 }
  0x25   : > { %1321 = shalt.err (!%p1318_p9)
}
  0x26   : > { %s1575_s23 = smov 64   ;;  %s1576_s28 = smov 4  }
  0x27   : > { %1180 = dma.hbm_to_vmem [thread:$0]  (!%p1663_p6), %s2007_s1, 1024, %s1652_s29, [#allocation6], %s1575_s23, %s1575_s23, %s1576_s28  }
  0x28   : > { %s1322_s16 = scalar_lea.hbm %s2009_s3, 1024 }
  0x29   : > { %p1323_p4 = scmp.ne.s32.totalorder %s2009_s3, %s1322_s16  ;;  %p1329_p12 = scmp.lt.u32.totalorder %s1322_s16, %s2009_s3 }
  0x2b   : > { %p1325_p10 = pnand %p1323_p4, %p1679_p8 }
  0x2d   : > { %p1326_p11 = pneg %p1325_p10 }
  0x2f   : > { %p1331_p13 = pnand %p1329_p12, %p1326_p11 }
  0x31   : > { %1334 = shalt.err (!%p1331_p13)
}
  0x32   : > { %s1335_s29 = scalar_lea.vmem %s1667_s10, 1024  ;;  %p1343_p7 = scmp.lt.s32.totalorder %s1667_s10, %s1667_s10 }
  0x33   : > { %p1336_p0 = scmp.ne.s32.totalorder %s1667_s10, %s1335_s29  ;;  %p1344_p9 = scmp.lt.s32.totalorder %s1335_s29, %s1335_s29 }
  0x35   : > { %p1338_p2 = pnand %p1336_p0, %p1679_p8  ;;  %p1345_p4 = por %p1344_p9, %p1343_p7 }
  0x37   : > { %p1339_p5 = pneg %p1338_p2 }
  0x39   : > { %p1346_p10 = pnand %p1345_p4, %p1339_p5 }
  0x3b   : > { %1349 = shalt.err (!%p1346_p10)
}
  0x3c   : > { %1186 = dma.hbm_to_vmem [thread:$0]  (!%p1663_p6), %s2009_s3, 1024, %s1667_s10, [#allocation9], %s1575_s23, %s1575_s23, %s1576_s28  }
  0x3d   : > { %s1350_s15 = scalar_lea.hbm %s2011_s5, 1024 }
  0x3e   : > { %p1351_p11 = scmp.ne.s32.totalorder %s2011_s5, %s1350_s15  ;;  %p1357_p0 = scmp.lt.u32.totalorder %s1350_s15, %s2011_s5 }
  0x40   : > { %p1353_p12 = pnand %p1351_p11, %p1679_p8 }
  0x42   : > { %p1354_p13 = pneg %p1353_p12 }
  0x44   : > { %p1359_p2 = pnand %p1357_p0, %p1354_p13 }
  0x46   : > { %1362 = shalt.err (!%p1359_p2)
}
  0x47   : > { %s1363_s10 = scalar_lea.vmem %s1669_s13, 1024  ;;  %p1371_p4 = scmp.lt.s32.totalorder %s1669_s13, %s1669_s13 }
  0x48   : > { %p1364_p5 = scmp.ne.s32.totalorder %s1669_s13, %s1363_s10  ;;  %p1372_p10 = scmp.lt.s32.totalorder %s1363_s10, %s1363_s10 }
  0x4a   : > { %p1366_p7 = pnand %p1364_p5, %p1679_p8  ;;  %p1373_p11 = por %p1372_p10, %p1371_p4 }
  0x4c   : > { %p1367_p9 = pneg %p1366_p7 }
  0x4e   : > { %p1374_p12 = pnand %p1373_p11, %p1367_p9 }
  0x50   : > { %1377 = shalt.err (!%p1374_p12)
}
  0x51   : > { %1192 = dma.hbm_to_vmem [thread:$0]  (!%p1663_p6), %s2011_s5, 1024, %s1669_s13, [#allocation12], %s1575_s23, %s1575_s23, %s1576_s28  }
  0x52   : > { %s1577_s22 = smov [#allocation7]   ;;  %s1578_s12 = smov [#allocation10]  }
  0x53   : > { %s234_s9 = sshll.u32 %s1577_s22, 4  ;;  %s261_s14 = sshll.u32 %s1578_s12, 4  ;;  %s235_s9 = int_to_ptr.vmem [resolvable:$true] %s234_s9  ;;  %s262_s14 = int_to_ptr.vmem [resolvable:$true] %s261_s14 }
  0x54   : > { %s1378_s17 = scalar_lea.hbm %s2008_s2, 1024 }
  0x55   : > { %p1379_p13 = scmp.ne.s32.totalorder %s2008_s2, %s1378_s17  ;;  %p1385_p5 = scmp.lt.u32.totalorder %s1378_s17, %s2008_s2 }
  0x57   : > { %p1381_p0 = pnand %p1379_p13, %p1679_p8 }
  0x59   : > { %p1382_p2 = pneg %p1381_p0 }
  0x5b   : > { %p1387_p7 = pnand %p1385_p5, %p1382_p2 }
  0x5d   : > { %1390 = shalt.err (!%p1387_p7)
}
  0x5e   : > { %s1391_s13 = scalar_lea.vmem %s235_s9, 1024  ;;  %p1399_p11 = scmp.lt.s32.totalorder %s235_s9, %s235_s9 }
  0x5f   : > { %p1392_p9 = scmp.ne.s32.totalorder %s235_s9, %s1391_s13  ;;  %p1400_p12 = scmp.lt.s32.totalorder %s1391_s13, %s1391_s13 }
  0x61   : > { %p1394_p4 = pnand %p1392_p9, %p1679_p8  ;;  %p1401_p1 = por %p1400_p12, %p1399_p11 }
  0x63   : > { %p1395_p10 = pneg %p1394_p4 }
  0x65   : > { %p1402_p3 = pnand %p1401_p1, %p1395_p10 }
  0x67   : > { %1405 = shalt.err (!%p1402_p3)
}
  0x68   : > { %1183 = dma.hbm_to_vmem [thread:$0]  (!%p1663_p6), %s2008_s2, 1024, %s235_s9, [#allocation6], %s1575_s23, %s1575_s23, %s1576_s28  }
  0x69   : > { %s1406_s16 = scalar_lea.hbm %s2010_s4, 16 }
  0x6a   : > { %p1407_p1 = scmp.ne.s32.totalorder %s2010_s4, %s1406_s16  ;;  %p1413_p0 = scmp.lt.u32.totalorder %s1406_s16, %s2010_s4 }
  0x6c   : > { %p1409_p3 = pnand %p1407_p1, %p1679_p8 }
  0x6e   : > { %p1410_p13 = pneg %p1409_p3 }
  0x70   : > { %p1415_p2 = pnand %p1413_p0, %p1410_p13 }
  0x72   : > { %1418 = shalt.err (!%p1415_p2)
}
  0x73   : > { %s1419_s21 = scalar_lea.vmem %s262_s14, 16  ;;  %s1426_s23 = scalar_lea.vmem %s262_s14, 32 }
  0x74   : > { %p1420_p5 = scmp.ne.s32.totalorder %s262_s14, %s1419_s21  ;;  %p1427_p4 = scmp.lt.s32.totalorder %s262_s14, %s262_s14 }
  0x75   : > { %p1428_p10 = scmp.lt.s32.totalorder %s1426_s23, %s1419_s21 }
  0x76   : > { %p1422_p7 = pnand %p1420_p5, %p1679_p8 }
  0x77   : > { %p1429_p11 = por %p1428_p10, %p1427_p4 }
  0x78   : > { %p1423_p9 = pneg %p1422_p7 }
  0x7a   : > { %p1430_p12 = pnand %p1429_p11, %p1423_p9 }
  0x7c   : > { %1433 = shalt.err (!%p1430_p12)
}
  0x7d   : > { %1189 = dma.hbm_to_vmem [thread:$0]  (!%p1663_p6), %s2010_s4, 16, %s262_s14, [#allocation9]  }
  0x7e   : > { %s1579_s13 = smov [#allocation13]   ;;  %s1434_s15 = scalar_lea.hbm %s2012_s6, 16 }
  0x7f   : > { %s285_s29 = sshll.u32 %s1579_s13, 4  ;;  %p1435_p1 = scmp.ne.s32.totalorder %s2012_s6, %s1434_s15  ;;  %s286_s29 = int_to_ptr.vmem [resolvable:$true] %s285_s29 }
  0x80   : > { %p1441_p0 = scmp.lt.u32.totalorder %s1434_s15, %s2012_s6 }
  0x81   : > { %p1437_p3 = pnand %p1435_p1, %p1679_p8 }
  0x83   : > { %p1438_p13 = pneg %p1437_p3 }
  0x85   : > { %p1443_p2 = pnand %p1441_p0, %p1438_p13 }
  0x87   : > { %1446 = shalt.err (!%p1443_p2)
}
  0x88   : > { %s1447_s14 = scalar_lea.vmem %s286_s29, 16  ;;  %s1454_s10 = scalar_lea.vmem %s286_s29, 32 }
  0x89   : > { %p1448_p5 = scmp.ne.s32.totalorder %s286_s29, %s1447_s14  ;;  %p1455_p4 = scmp.lt.s32.totalorder %s286_s29, %s286_s29 }
  0x8a   : > { %p1456_p10 = scmp.lt.s32.totalorder %s1454_s10, %s1447_s14 }
  0x8b   : > { %p1450_p7 = pnand %p1448_p5, %p1679_p8 }
  0x8c   : > { %p1457_p11 = por %p1456_p10, %p1455_p4 }
  0x8d   : > { %p1451_p9 = pneg %p1450_p7 }
  0x8f   : > { %p1458_p12 = pnand %p1457_p11, %p1451_p9 }
  0x91   : > { %1461 = shalt.err (!%p1458_p12)
}
  0x92   : > { %1195 = dma.hbm_to_vmem [thread:$0]  (!%p1663_p6), %s2012_s6, 16, %s286_s29, [#allocation12]  }
  0x93   : > { %s973_s19 = sadd.s32 4294967294, %s1570_s27   ;;  %s1814_s11 = sadd.s32 1, %s1570_s27  }
  0x94   : > { %s30_s28 = ssub.s32 %s1570_s27, %s1814_s11  ;;  %s33_s9 = sadd.s32 1, %s1566_s26 }
  0x95   : > { %p31_p8 = scmp.eq.s32.totalorder %s30_s28, 0  ;;  %p40_p1 = scmp.ne.s32.totalorder %s1566_s26, %s1562_s25 }
  0x96   : > { %p41_p3 = scmp.eq.s32.totalorder %s1570_s27, 0  ;;  %p46_p13 = scmp.ne.s32.totalorder %s1562_s25, %s1558_s24 }
  0x97   : > { %s1825_s13 = scalar_select %p31_p8, %s1566_s26, %s33_s9  }
  0x98   : > { %p1827_p0 = por %p41_p3, %p40_p1  ;;  %p2021_p2 = scmp.eq.s32.totalorder %s1647_s30, 0 }
  0x99   : > { %p196_p5 = scmp.eq.s32.totalorder %s1647_s30, 1  ;;  %p202_p7 = scmp.eq.s32.totalorder %s973_s19, 1 }
  0x9a   : > { %p1833_p6 = por %p2021_p2, %p46_p13  ;;  %p1210_p9 = scmp.lt.s32.totalorder %s1570_s27, 2 }
  0x9b   : > { %s296_s12 = sand.u32 1, %s1566_s26   ;;  %p1840_p4 = por %p196_p5, %p40_p1 }
  0x9c   : > { %p1844_p10 = por %p202_p7, %p46_p13  ;;  %s982_s17 = sshll.u32 %s296_s12, 4 }
  0x9d   : > { %s2023_s15 = scalar_select %p1840_p4, 1, 0 }
  0x9e   : > { %s2024_s16 = scalar_select %p1844_p10, 1, 0 }
  0x9f   : > { %s1032_s18 = sshll.u32 %s1570_s27, 8  ;;  %s300_s21 = scalar_lea.vmem [#allocation2], %s982_s17 }
  0xa0   : > { %s1852_s10 = scalar_lea.hbm %s2006_s0, %s1032_s18  ;;  %s307_s23 = sshll.u32 %s300_s21, 4  ;;  %s1854_s23 = int_to_ptr.vmem [resolvable:$true] %s307_s23 }
  0xa1   : > { %p1858_p11 = pnand %p1210_p9, %p1827_p0  ;;  %s1862_s28 = scalar_lea.sflag [#allocation3], %s296_s12 }
  0xa2   : > { %s1462_s9 = scalar_lea.hbm %s1852_s10, 256  ;;  %s1467_s22 = scalar_lea.hbm %s2006_s0, 512 }
  0xa3   : > { %p1463_p12 = scmp.ne.s32.totalorder %s1852_s10, %s1462_s9  ;;  %p1464_p8 = pneg %p1858_p11 }
  0xa4   : > { %p1468_p13 = scmp.lt.u32.totalorder %s1852_s10, %s2006_s0  ;;  %p1469_p0 = scmp.lt.u32.totalorder %s1467_s22, %s1462_s9 }
  0xa5   : > { %p1465_p1 = pnand %p1464_p8, %p1463_p12  ;;  %p1471_p5 = scmp.lt.u32.totalorder %s1462_s9, %s1852_s10 }
  0xa6   : > { %p1470_p2 = por %p1469_p0, %p1468_p13 }
  0xa7   : > { %p1466_p3 = pneg %p1465_p1 }
  0xa8   : > { %p1472_p7 = por %p1471_p5, %p1470_p2 }
  0xaa   : > { %p1473_p9 = pnand %p1472_p7, %p1466_p3 }
  0xac   : > { %1476 = shalt.err (!%p1473_p9)
}
  0xad   : > { %s1477_s12 = scalar_lea.vmem %s1854_s23, 256  ;;  %s1580_s21 = smov [#allocation2]  }
  0xae   : > { %p1478_p12 = scmp.ne.s32.totalorder %s1854_s23, %s1477_s12  ;;  %s1482_s17 = sshll.u32 %s1580_s21, 4  ;;  %s1483_s17 = int_to_ptr.vmem [resolvable:$false] %s1482_s17 }
  0xaf   : > { %s1484_s18 = scalar_lea.vmem %s1483_s17, 512  ;;  %p1485_p4 = scmp.lt.s32.totalorder %s1854_s23, %s1483_s17 }
  0xb0   : > { %p1480_p1 = pnand %p1478_p12, %p1464_p8  ;;  %p1486_p13 = scmp.lt.s32.totalorder %s1484_s18, %s1477_s12 }
  0xb2   : > { %p1481_p10 = pneg %p1480_p1  ;;  %p1487_p0 = por %p1486_p13, %p1485_p4 }
  0xb4   : > { %p1488_p2 = pnand %p1487_p0, %p1481_p10 }
  0xb6   : > { %1491 = shalt.err (!%p1488_p2)
}
  0xb7   : > { %s1581_s9 = smov 128   ;;  %s1582_s22 = smov 8  }
  0xb8   : > { %1199 = dma.hbm_to_vmem [thread:$0]  (!%p1858_p11), %s1852_s10, 256, %s1854_s23, %s1862_s28, %s1581_s9, %s1581_s9, %s1582_s22  }
  0xb9   : > { %p2026_p8 = scmp.ne.s32.totalorder %s2017_s8, 0 }
  0xba   : > { %s1893_s20 = sand.u32 (!%p2026_p8), 1, %s1562_s25  }
  0xbb   : > { %319 = sbr.rel (%p2026_p8) target bundleno = 720 (0x2d0), region = 48  ;;  %s986_s14 = sshll.u32 (!%p2026_p8), %s1893_s20, 4 }
  0xbc   : > { %s322_s12 = scalar_lea.sflag (!%p2026_p8), [#allocation3], %s1893_s20  ;;  %s1897_s21 = scalar_lea.vmem (!%p2026_p8), [#allocation2], %s986_s14 }
  0xc2   : > { %1537 = dma.done.wait (%p1833_p6), %s322_s12, 256  }
  0xc3   : > { %1539 = vsyncadd (%p1833_p6), %s322_s12, 4294967040  ;;  %p2027_p4 = scmp.eq.s32.totalorder %s1647_s30, 0 }
  0xc5   : > { %1541 = dma.done.wait (%p2027_p4), [#allocation6], 2048   ;;  %p2028_p10 = pmov %p2027_p4 }
  0xc6   : > { %p2029_p11 = pmov %p2027_p4 }
  0xc7   : > { %1543 = vsyncadd (%p2028_p10), [#allocation6], 4294965248 }
  0xc8   : > { %1545 = dma.done.wait (%p2029_p11), [#allocation9], 1040   ;;  %p2030_p3 = pmov %p2027_p4 }
  0xca   : > { %1547 = vsyncadd (%p2030_p3), [#allocation9], 4294966256  ;;  %p2031_p5 = pmov %p2030_p3 }
  0xcb   : > { %p2032_p7 = pmov %p2030_p3 }
  0xcc   : > { %1549 = dma.done.wait (%p2031_p5), [#allocation12], 1040  }
  0xcd   : > { %1551 = vsyncadd (%p2032_p7), [#allocation12], 4294966256  ;;  %v1583_v0 = vmov 0.0   ;;  %vm1584_vm0 = vmmov 0   ;;  %v1262_v1 = vld [vmem:[#allocation7] sm:$0xff]   ;;  %v1264_v3 = vld [vmem:[#allocation7 + $0x8] sm:$0xff]  }
  0xce   : > { %1069 = vmatprep.subr.bf16.mxu0 %v1583_v0  ;;  %1089 = vmatprep.subr.bf16.mxu1 %v1583_v0  ;;  %v1263_v2 = vld [vmem:[#allocation5] sm:$0xff]   ;;  %v1265_v4 = vld [vmem:[#allocation5 + $0x8] sm:$0xff]   ;;  %v1266_v5 = vld [vmem:[#allocation7 + $0x10] sm:$0xff]   ;;  %s993_s8 = sshll.u32 %s1893_s20, 3  ;;  %s1029_s29 = sshll.u32 %s1647_s30, 7 }
  0xcf   : > { %1085 = vmatprep.mubr.msk.bf16.mxu0 %vm1584_vm0, %v1583_v0  ;;  %1105 = vmatprep.mubr.msk.bf16.mxu1 %vm1584_vm0, %v1583_v0  ;;  %v1267_v6 = vld [vmem:[#allocation5 + $0x10] sm:$0xff]   ;;  %v1268_v7 = vld [vmem:[#allocation7 + $0x18] sm:$0xff]   ;;  %v1270_v9 = vld [vmem:[#allocation7 + $0x20] sm:$0xff]   ;;  %s379_s10 = scalar_lea.vmem [#allocation14], %s993_s8  ;;  %s1962_s17 = scalar_lea.hbm %s2013_s7, %s1029_s29 }
  0xd0   : > { %1070 = vmatpush3.bf16.msra.mxu0 %v1262_v1  ;;  %1090 = vmatpush3.bf16.msra.mxu1 %v1263_v2  ;;  %v1269_v8 = vld [vmem:[#allocation5 + $0x18] sm:$0xff]   ;;  %v1271_v10 = vld [vmem:[#allocation5 + $0x20] sm:$0xff]   ;;  %v1272_v14 = vld [vmem:[#allocation7 + $0x28] sm:$0xff]   ;;  %s846_s23 = sshll.u32 %s379_s10, 4  ;;  %s833_s18 = scalar_lea.sflag [#allocation4], %s1893_s20  ;;  %s1964_s23 = int_to_ptr.vmem [resolvable:$true] %s846_s23 }
  0xd1   : > { %1071 = vmatprep.subr.bf16.mxu0 %v1583_v0  ;;  %1091 = vmatprep.subr.bf16.mxu1 %v1583_v0  ;;  %v381_v11 = vld [vmem:[%s1897_s21] sm:$0xff]  ;;  %v382_v12 = vld [vmem:[%s1897_s21 + $0x8] sm:$0x3]  ;;  %s1492_s30 = scalar_lea.vmem %s1964_s23, 128  ;;  %p2033_p9 = scmp.ne.s32.totalorder %s2023_s15, 0 }
  0xd2   : > { %v383_v13 = vpack.c.bf16 %v382_v12, %v381_v11  ;;  %v1273_v15 = vld [vmem:[#allocation5 + $0x28] sm:$0xff]   ;;  %v1274_v17 = vld [vmem:[#allocation7 + $0x30] sm:$0xff]   ;;  %v1276_v19 = vld [vmem:[#allocation7 + $0x38] sm:$0xff]   ;;  %p1493_p6 = scmp.ne.s32.totalorder %s1964_s23, %s1492_s30  ;;  %s1585_s9 = smov [#allocation14]  }
  0xd3   : > { %v1275_v18 = vld [vmem:[#allocation5 + $0x30] sm:$0xff]   ;;  %v1277_v22 = vld [vmem:[#allocation5 + $0x38] sm:$0xff]   ;;  %v1278_v24 = vld [vmem:[#allocation8] sm:$0xff]   ;;  %s1496_s22 = sshll.u32 %s1585_s9, 4  ;;  %s1497_s22 = int_to_ptr.vmem [resolvable:$false] %s1496_s22 }
  0xd4   : > { %1072 = vmatpush3.bf16.msra.mxu0 %v1264_v3  ;;  %1092 = vmatpush3.bf16.msra.mxu1 %v1265_v4  ;;  %v419_v16 = vshll.u32 %v383_v13, 16  ;;  %v417_v20 = vshrl.u32 %v383_v13, 16  ;;  %v1279_v25 = vld [vmem:[#allocation8 + $0x8] sm:$0xff]   ;;  %v1280_v26 = vld [vmem:[#allocation8 + $0x10] sm:$0xff]   ;;  %v1281_v27 = vld [vmem:[#allocation8 + $0x18] sm:$0xff]   ;;  %v617_v32 = vrot.slane %v383_v13, 1  ;;  %p1494_p12 = pnand %p1493_p6, %p2033_p9  ;;  %p1499_p13 = scmp.lt.s32.totalorder %s1964_s23, %s1497_s22 }
  0xd5   : > { %1073 = vmatprep.subr.bf16.mxu0 %v1583_v0  ;;  %1093 = vmatprep.subr.bf16.mxu1 %v1583_v0  ;;  %v1282_v28 = vld [vmem:[#allocation8 + $0x20] sm:$0xff]   ;;  %v1283_v29 = vld [vmem:[#allocation8 + $0x28] sm:$0xff]   ;;  %v1284_v30 = vld [vmem:[#allocation8 + $0x30] sm:$0xff]   ;;  %s1498_s14 = scalar_lea.vmem %s1497_s22, 256 }
  0xd6   : > { %v421_v21 = vrot.slane %v419_v16, 1  ;;  %v1285_v31 = vld [vmem:[#allocation8 + $0x38] sm:$0xff]   ;;  %v1286_v33 = vld [vmem:[#allocation11] sm:$0xff]   ;;  %v1287_v34 = vld [vmem:[#allocation11 + $0x8] sm:$0xff]   ;;  %p1495_p1 = pneg %p1494_p12  ;;  %p1500_p0 = scmp.lt.s32.totalorder %s1498_s14, %s1492_s30 }
  0xd7   : > { %v1288_v35 = vld [vmem:[#allocation11 + $0x10] sm:$0xff]   ;;  %v1289_v36 = vld [vmem:[#allocation11 + $0x18] sm:$0xff]   ;;  %v1290_v37 = vld [vmem:[#allocation11 + $0x20] sm:$0xff]  }
  0xd8   : > { %1074 = vmatpush3.bf16.msra.mxu0 %v1266_v5  ;;  %1094 = vmatpush3.bf16.msra.mxu1 %v1267_v6  ;;  %v422_v23 = vor.u32 %v421_v21, %v417_v20  ;;  %v1291_v38 = vld [vmem:[#allocation11 + $0x28] sm:$0xff]   ;;  %v1292_v39 = vld [vmem:[#allocation11 + $0x30] sm:$0xff]   ;;  %v1293_v40 = vld [vmem:[#allocation11 + $0x38] sm:$0xff]   ;;  %p1501_p2 = por %p1500_p0, %p1499_p13 }
  0xd9   : > { %1075 = vmatprep.subr.bf16.mxu0 %v1583_v0  ;;  %1095 = vmatprep.subr.bf16.mxu1 %v1583_v0  ;;  %v1018_v51 = vld [vmem:[#allocation10] ss:$0 sm:$0xff]  ;;  %v1019_v60 = vld [vmem:[#allocation13] ss:$0 sm:$0xff] }
  0xda   : > { %p1502_p8 = pnand %p1501_p2, %p1495_p1 }
  0xdc   : > { %1076 = vmatpush3.bf16.msra.mxu0 %v1268_v7  ;;  %1096 = vmatpush3.bf16.msra.mxu1 %v1269_v8 }
  0xdd   : > { %1077 = vmatprep.subr.bf16.mxu0 %v1583_v0  ;;  %1097 = vmatprep.subr.bf16.mxu1 %v1583_v0 }
  0xe0   : > { %1078 = vmatpush3.bf16.msra.mxu0 %v1270_v9  ;;  %1098 = vmatpush3.bf16.msra.mxu1 %v1271_v10 }
  0xe1   : > { %1079 = vmatprep.subr.bf16.mxu0 %v1583_v0  ;;  %1099 = vmatprep.subr.bf16.mxu1 %v1583_v0 }
  0xe4   : > { %1080 = vmatpush3.bf16.msra.mxu0 %v1272_v14  ;;  %1100 = vmatpush3.bf16.msra.mxu1 %v1273_v15 }
  0xe5   : > { %1081 = vmatprep.subr.bf16.mxu0 %v1583_v0  ;;  %1101 = vmatprep.subr.bf16.mxu1 %v1583_v0 }
  0xe8   : > { %1082 = vmatpush3.bf16.msra.mxu0 %v1274_v17  ;;  %1102 = vmatpush3.bf16.msra.mxu1 %v1275_v18 }
  0xe9   : > { %1083 = vmatprep.subr.bf16.mxu0 %v1583_v0  ;;  %1103 = vmatprep.subr.bf16.mxu1 %v1583_v0 }
  0xec   : > { %1084 = vmatpush3.bf16.msra.mxu0 %v1276_v19  ;;  %1104 = vmatpush3.bf16.msra.mxu1 %v1277_v22 }
  0xed   : > { %1109 = vmatprep.subr.bf16.mxu0 %v1583_v0  ;;  %1129 = vmatprep.subr.bf16.mxu1 %v1583_v0 }
  0xef   : > { %1086 = vmatmul.mubr.bf16.vlgmr.msra.gmra.mrb[0].mxu0 %v422_v23  ;;  %1106 = vmatmul.mubr.bf16.vlgmr.msra.gmra.mrb[0].mxu1 %v383_v13 }
  0xf0   : > { %1110 = vmatpush3.bf16.msra.mxu0 %v1278_v24  ;;  %1125 = vmatprep.mubr.msk.bf16.mxu0 %vm1584_vm0, %v1583_v0 }
  0xf1   : > { %1111 = vmatprep.subr.bf16.mxu0 %v1583_v0  ;;  %1145 = vmatprep.mubr.msk.bf16.mxu1 %vm1584_vm0, %v1583_v0 }
  0xf2   : > { %1130 = vmatpush3.bf16.msra.mxu1 %v1286_v33 }
  0xf3   : > { %1131 = vmatprep.subr.bf16.mxu1 %v1583_v0 }
  0xf4   : > { %1112 = vmatpush3.bf16.msra.mxu0 %v1279_v25 }
  0xf5   : > { %1113 = vmatprep.subr.bf16.mxu0 %v1583_v0 }
  0xf6   : > { %1132 = vmatpush3.bf16.msra.mxu1 %v1287_v34 }
  0xf7   : > { %1133 = vmatprep.subr.bf16.mxu1 %v1583_v0 }
  0xf8   : > { %1114 = vmatpush3.bf16.msra.mxu0 %v1280_v26 }
  0xf9   : > { %1115 = vmatprep.subr.bf16.mxu0 %v1583_v0 }
  0xfa   : > { %1134 = vmatpush3.bf16.msra.mxu1 %v1288_v35 }
  0xfb   : > { %1135 = vmatprep.subr.bf16.mxu1 %v1583_v0 }
  0xfc   : > { %1116 = vmatpush3.bf16.msra.mxu0 %v1281_v27 }
  0xfd   : > { %1117 = vmatprep.subr.bf16.mxu0 %v1583_v0 }
  0xfe   : > { %1136 = vmatpush3.bf16.msra.mxu1 %v1289_v36 }
  0xff   : > { %1137 = vmatprep.subr.bf16.mxu1 %v1583_v0 }
 0x100   : > { %1118 = vmatpush3.bf16.msra.mxu0 %v1282_v28 }
 0x101   : > { %1119 = vmatprep.subr.bf16.mxu0 %v1583_v0 }
 0x102   : > { %1138 = vmatpush3.bf16.msra.mxu1 %v1290_v37 }
 0x103   : > { %1139 = vmatprep.subr.bf16.mxu1 %v1583_v0 }
 0x104   : > { %1120 = vmatpush3.bf16.msra.mxu0 %v1283_v29 }
 0x105   : > { %1121 = vmatprep.subr.bf16.mxu0 %v1583_v0 }
 0x106   : > { %1140 = vmatpush3.bf16.msra.mxu1 %v1291_v38 }
 0x107   : > { %1141 = vmatprep.subr.bf16.mxu1 %v1583_v0 }
 0x108   : > { %1122 = vmatpush3.bf16.msra.mxu0 %v1284_v30 }
 0x109   : > { %1123 = vmatprep.subr.bf16.mxu0 %v1583_v0 }
 0x10a   : > { %1142 = vmatpush3.bf16.msra.mxu1 %v1292_v39 }
 0x10b   : > { %1143 = vmatprep.subr.bf16.mxu1 %v1583_v0 }
 0x10c   : > { %1124 = vmatpush3.bf16.msra.mxu0 %v1285_v31 }
 0x10e   : > { %1144 = vmatpush3.bf16.msra.mxu1 %v1293_v40 }
 0x10f   : > { %1126 = vmatmul.mubr.bf16.vlgmr.msra.gmra.mrb[4].mxu0 %v617_v32 }
 0x1c2   : > { %v506_v41 = vpop.f32.mrb[0].mxu0  ;;  %v594_v43 = vpop.f32.mrb[0].mxu1 }
 0x1c3   : > { %v1087_v42 = vpop.f32.mrb[1].mxu0  ;;  %v595_v44 = vadd.f32 %v594_v43, %v506_v41  ;;  %v1107_v46 = vpop.f32.mrb[1].mxu1 }
 0x1c4   : > { %v509_v45 = vpop.f32.mrb[2].mxu0  ;;  %v597_v48 = vpop.f32.mrb[2].mxu1 }
 0x1c5   : > { %v1088_v47 = vpop.f32.mrb[3].mxu0  ;;  %v1108_v49 = vpop.f32.mrb[3].mxu1 }
 0x1e2   : > { %v701_v50 = vpop.f32.mrb[4].mxu0 }
 0x1e3   : > { %v707_v52 = vadd.f32 %v701_v50, %v595_v44  ;;  %v1127_v53 = vpop.f32.mrb[5].mxu0 }
 0x1e4   : > { %v704_v54 = vpop.f32.mrb[6].mxu0 }
 0x1e5   : > { %v715_v55 = vadd.f32 %v1018_v51, %v707_v52  ;;  %v1128_v56 = vpop.f32.mrb[7].mxu0 }
 0x1e7   : > { %vm716_vm1 = vcmp.ge.f32.partialorder %v715_v55, 0.0  ;;  %v717_v57 = vmul.f32 0.2, %v715_v55 }
 0x1e9   : > { %v718_v58 = vsel %vm716_vm1, %v715_v55, %v717_v57 }
 0x1ea   : > { %v719_v59 = vpack.c.bf16 %v718_v58, %v718_v58 }
 0x1ec   : > { %1146 = vmatmul.mubr.bf16.vlgmr.msra.gmra.mrb[4].mxu1 %v719_v59 }
 0x2bf   : > { %v825_v61 = vpop.f32.mrb[4].mxu1 }
 0x2c0   : > { %v826_v62 = vadd.f32 %v1019_v60, %v825_v61  ;;  %v1147_v63 = vpop.f32.mrb[5].mxu1 }
 0x2c1   : > { %v828_v0 = vpop.f32.mrb[6].mxu1 }
 0x2c2   : > { %831 = vst [vmem:[%s379_s10] sm:$0xff] %v826_v62  ;;  %v1148_v1 = vpop.f32.mrb[7].mxu1 }
 0x2c3   : > { %1505 = shalt.err (!%p1502_p8)
}
 0x2c4   : > { %s1506_s20 = scalar_lea.hbm %s1962_s17, 128  ;;  %s1510_s8 = scalar_lea.hbm %s2013_s7, 256 }
 0x2c5   : > { %p1507_p4 = scmp.ne.s32.totalorder %s1962_s17, %s1506_s20  ;;  %p1511_p3 = scmp.lt.u32.totalorder %s1962_s17, %s2013_s7 }
 0x2c6   : > { %p1512_p5 = scmp.lt.u32.totalorder %s1510_s8, %s1506_s20  ;;  %p1514_p6 = scmp.lt.u32.totalorder %s1506_s20, %s1962_s17 }
 0x2c7   : > { %p1508_p10 = pnand %p1507_p4, %p2033_p9 }
 0x2c8   : > { %p1513_p7 = por %p1512_p5, %p1511_p3 }
 0x2c9   : > { %p1509_p11 = pneg %p1508_p10 }
 0x2ca   : > { %p1515_p12 = por %p1514_p6, %p1513_p7 }
 0x2cc   : > { %p1516_p1 = pnand %p1515_p12, %p1509_p11 }
 0x2ce   : > { %1519 = shalt.err (!%p1516_p1)
}
 0x2cf   : > { %1175 = dma.vmem_to_hbm [thread:$0]  (%p2033_p9), %s1964_s23, 128, %s1962_s17, %s833_s18  }
 0x2d0 PF: > { %s858_s19 = sand.u32 1, %s1558_s24   ;;  %p2034_p13 = scmp.ne.s32.totalorder %s2024_s16, 0 }
 0x2d1   : > { %p2035_p0 = scmp.ge.s32.totalorder %s1570_s27, 2  ;;  %s859_s28 = scalar_lea.sflag [#allocation4], %s858_s19 }
 0x2d3   : > { %p1201_p2 = pnand %p2035_p0, %p2034_p13 }
 0x2d5   : > { %1553 = dma.done.wait (!%p1201_p2), %s859_s28, 128  }
 0x2d6   : > { %1555 = vsyncadd (!%p1201_p2), %s859_s28, 4294967168  ;;  %p23_p8 = scmp.ge.s32.totalorder %s1814_s11, 4   ;;  %s2036_s24 = smov %s1562_s25 }
 0x2d7   : > { %s2037_s25 = smov %s1566_s26  ;;  %s2038_s26 = smov %s1825_s13 }
 0x2d8   : > { %s2039_s27 = smov %s1814_s11  ;;  %25 = sbr.rel (!%p23_p8) target bundleno = 8 (0x8), region = 117 }
 0x2df   :  { %864 = vsyncpa [#allocation3], 1 }
 0x2e0   :  { %866 = vsyncpa [#allocation3 + $0x1], 1 }
 0x2e1   :  { %867 = vsyncpa [#allocation6], 1 }
 0x2e2   :  { %868 = vsyncpa [#allocation9], 1 }
 0x2e3   :  { %869 = vsyncpa [#allocation12], 1 }
 0x2e4   :  { %870 = vsyncpa [#allocation4], 1 }
 0x2e5   :  { %872 = vsyncpa [#allocation4 + $0x1], 1 }

// kernel: tfedcn_forward.10
= control target key start
LH: loop header
LB: loop body
LE: loop exit
PB: predicated region body
PF: predicated region fallthrough
CT: control target
= control target key end

     0   :  { %s2042_s0 = inlined_call_operand.hbm [shape: f32[4,18,128], index: 0, kind: input, shape index: {}]   ;;  %s2043_s1 = inlined_call_operand.hbm [shape: bf16[128,128], index: 1, kind: input, shape index: {}]   ;;  %s2044_s2 = inlined_call_operand.hbm [shape: bf16[128,128], index: 2, kind: input, shape index: {}]   ;;  %s2045_s3 = inlined_call_operand.hbm [shape: bf16[128,128], index: 3, kind: input, shape index: {}]   ;;  %s2046_s4 = inlined_call_operand.hbm [shape: f32[1,128], index: 4, kind: input, shape index: {}]   ;;  %s2047_s5 = inlined_call_operand.hbm [shape: bf16[128,128], index: 5, kind: input, shape index: {}]   ;;  %s2048_s6 = inlined_call_operand.hbm [shape: f32[1,128], index: 6, kind: input, shape index: {}]   ;;  %s2049_s7 = inlined_call_operand.hbm [shape: f32[4,16,128], index: 7, kind: output, shape index: {}]  }
   0x1   :  { %2053 = sst [smem:[#allocation20_spill]] %s2043_s1 }
   0x2   :  { %12 = vsyncpa [#allocation3], 0 }
   0x3   :  { %14 = vsyncpa [#allocation3 + $0x1], 0 }
   0x4   :  { %15 = vsyncpa [#allocation6], 0 }
   0x5   :  { %16 = vsyncpa [#allocation9], 0 }
   0x6   :  { %17 = vsyncpa [#allocation12], 0 }
   0x7   :  { %18 = vsyncpa [#allocation4], 0 }
   0x8   :  { %20 = vsyncpa [#allocation4 + $0x1], 0  ;;  %s1656_s24 = smov 0   ;;  %s1658_s25 = smov 0  }
   0x9   :  { %s1660_s26 = smov 0   ;;  %s1662_s27 = smov 0  }
   0xa LB: > { %s1600_s28 = smov [#allocation5]   ;;  %s1677_s30 = sadd.s32 4294967295, %s1598_s27   ;;  %s1598_s27 = sphi %s1662_s27, %s2075_s27   ;;  %s1594_s26 = sphi %s1660_s26, %s2074_s26   ;;  %s1590_s25 = sphi %s1658_s25, %s2073_s25   ;;  %s1586_s24 = sphi %s1656_s24, %s2072_s24  }
   0xb   : > { %s221_s29 = sshll.u32 %s1600_s28, 4  ;;  %p999_p0 = scmp.ge.s32.totalorder %s1598_s27, 1  ;;  %s1682_s29 = int_to_ptr.vmem [resolvable:$true] %s221_s29 }
   0xc   : > { %p2050_p1 = scmp.eq.s32.totalorder %s1677_s30, 0  ;;  %p209_p2 = scmp.lt.s32.totalorder %s1598_s27, 5 }
   0xd   : > { %s1601_s9 = smov [#allocation8]   ;;  %s1602_s12 = smov [#allocation11]  }
   0xe   : > { %p1684_p3 = pnand %p999_p0, %p209_p2  ;;  %s247_s10 = sshll.u32 %s1601_s9, 4  ;;  %s1696_s10 = int_to_ptr.vmem [resolvable:$true] %s247_s10 }
   0xf   : > { %s271_s13 = sshll.u32 %s1602_s12, 4  ;;  %s2056_s1 = sld [smem:[#allocation20_spill]]  ;;  %s1698_s13 = int_to_ptr.vmem [resolvable:$true] %s271_s13 }
  0x10   : > { %s2054_s8 = scalar_select %p1684_p3, 1, 0 }
  0x11   : > { %p1203_p4 = pneg %p1684_p3 }
  0x13   : > { %p1692_p5 = pnand %p1203_p4, %p2050_p1 }
  0x15   : > { %s1322_s16 = scalar_lea.hbm %s2056_s1, 1024  ;;  %p1708_p7 = pneg %p1692_p5 }
  0x16   : > { %p1323_p6 = scmp.ne.s32.totalorder %s2056_s1, %s1322_s16  ;;  %p1329_p10 = scmp.lt.u32.totalorder %s1322_s16, %s2056_s1 }
  0x18   : > { %p1325_p8 = pnand %p1708_p7, %p1323_p6 }
  0x1a   : > { %p1326_p9 = pneg %p1325_p8 }
  0x1c   : > { %p1331_p11 = pnand %p1329_p10, %p1326_p9 }
  0x1e   : > { %1334 = shalt.err (!%p1331_p11)
}
  0x1f   : > { %s1335_s22 = scalar_lea.vmem %s1682_s29, 1024  ;;  %p1343_p2 = scmp.lt.s32.totalorder %s1682_s29, %s1682_s29 }
  0x20   : > { %p1336_p12 = scmp.ne.s32.totalorder %s1682_s29, %s1335_s22  ;;  %p1344_p4 = scmp.lt.s32.totalorder %s1335_s22, %s1335_s22 }
  0x22   : > { %p1338_p13 = pnand %p1336_p12, %p1708_p7  ;;  %p1345_p6 = por %p1344_p4, %p1343_p2 }
  0x24   : > { %p1339_p0 = pneg %p1338_p13 }
  0x26   : > { %p1346_p8 = pnand %p1345_p6, %p1339_p0 }
  0x28   : > { %1349 = shalt.err (!%p1346_p8)
}
  0x29   : > { %s1603_s23 = smov 64   ;;  %s1604_s28 = smov 4  }
  0x2a   : > { %1206 = dma.hbm_to_vmem [thread:$0]  (!%p1692_p5), %s2056_s1, 1024, %s1682_s29, [#allocation6], %s1603_s23, %s1603_s23, %s1604_s28  }
  0x2b   : > { %s1350_s16 = scalar_lea.hbm %s2045_s3, 1024 }
  0x2c   : > { %p1351_p9 = scmp.ne.s32.totalorder %s2045_s3, %s1350_s16  ;;  %p1357_p12 = scmp.lt.u32.totalorder %s1350_s16, %s2045_s3 }
  0x2e   : > { %p1353_p10 = pnand %p1351_p9, %p1708_p7 }
  0x30   : > { %p1354_p11 = pneg %p1353_p10 }
  0x32   : > { %p1359_p13 = pnand %p1357_p12, %p1354_p11 }
  0x34   : > { %1362 = shalt.err (!%p1359_p13)
}
  0x35   : > { %s1363_s29 = scalar_lea.vmem %s1696_s10, 1024  ;;  %p1371_p6 = scmp.lt.s32.totalorder %s1696_s10, %s1696_s10 }
  0x36   : > { %p1364_p0 = scmp.ne.s32.totalorder %s1696_s10, %s1363_s29  ;;  %p1372_p8 = scmp.lt.s32.totalorder %s1363_s29, %s1363_s29 }
  0x38   : > { %p1366_p2 = pnand %p1364_p0, %p1708_p7  ;;  %p1373_p9 = por %p1372_p8, %p1371_p6 }
  0x3a   : > { %p1367_p4 = pneg %p1366_p2 }
  0x3c   : > { %p1374_p10 = pnand %p1373_p9, %p1367_p4 }
  0x3e   : > { %1377 = shalt.err (!%p1374_p10)
}
  0x3f   : > { %1212 = dma.hbm_to_vmem [thread:$0]  (!%p1692_p5), %s2045_s3, 1024, %s1696_s10, [#allocation9], %s1603_s23, %s1603_s23, %s1604_s28  }
  0x40   : > { %s1378_s15 = scalar_lea.hbm %s2047_s5, 1024 }
  0x41   : > { %p1379_p11 = scmp.ne.s32.totalorder %s2047_s5, %s1378_s15  ;;  %p1385_p0 = scmp.lt.u32.totalorder %s1378_s15, %s2047_s5 }
  0x43   : > { %p1381_p12 = pnand %p1379_p11, %p1708_p7 }
  0x45   : > { %p1382_p13 = pneg %p1381_p12 }
  0x47   : > { %p1387_p2 = pnand %p1385_p0, %p1382_p13 }
  0x49   : > { %1390 = shalt.err (!%p1387_p2)
}
  0x4a   : > { %s1391_s10 = scalar_lea.vmem %s1698_s13, 1024  ;;  %p1399_p9 = scmp.lt.s32.totalorder %s1698_s13, %s1698_s13 }
  0x4b   : > { %p1392_p4 = scmp.ne.s32.totalorder %s1698_s13, %s1391_s10  ;;  %p1400_p10 = scmp.lt.s32.totalorder %s1391_s10, %s1391_s10 }
  0x4d   : > { %p1394_p6 = pnand %p1392_p4, %p1708_p7  ;;  %p1401_p11 = por %p1400_p10, %p1399_p9 }
  0x4f   : > { %p1395_p8 = pneg %p1394_p6 }
  0x51   : > { %p1402_p12 = pnand %p1401_p11, %p1395_p8 }
  0x53   : > { %1405 = shalt.err (!%p1402_p12)
}
  0x54   : > { %1218 = dma.hbm_to_vmem [thread:$0]  (!%p1692_p5), %s2047_s5, 1024, %s1698_s13, [#allocation12], %s1603_s23, %s1603_s23, %s1604_s28  }
  0x55   : > { %s1605_s22 = smov [#allocation7]   ;;  %s1606_s12 = smov [#allocation10]  }
  0x56   : > { %s234_s9 = sshll.u32 %s1605_s22, 4  ;;  %s261_s14 = sshll.u32 %s1606_s12, 4  ;;  %s235_s9 = int_to_ptr.vmem [resolvable:$true] %s234_s9  ;;  %s262_s14 = int_to_ptr.vmem [resolvable:$true] %s261_s14 }
  0x57   : > { %s1406_s17 = scalar_lea.hbm %s2044_s2, 1024 }
  0x58   : > { %p1407_p13 = scmp.ne.s32.totalorder %s2044_s2, %s1406_s17  ;;  %p1413_p4 = scmp.lt.u32.totalorder %s1406_s17, %s2044_s2 }
  0x5a   : > { %p1409_p0 = pnand %p1407_p13, %p1708_p7 }
  0x5c   : > { %p1410_p2 = pneg %p1409_p0 }
  0x5e   : > { %p1415_p6 = pnand %p1413_p4, %p1410_p2 }
  0x60   : > { %1418 = shalt.err (!%p1415_p6)
}
  0x61   : > { %s1419_s13 = scalar_lea.vmem %s235_s9, 1024  ;;  %p1427_p11 = scmp.lt.s32.totalorder %s235_s9, %s235_s9 }
  0x62   : > { %p1420_p8 = scmp.ne.s32.totalorder %s235_s9, %s1419_s13  ;;  %p1428_p12 = scmp.lt.s32.totalorder %s1419_s13, %s1419_s13 }
  0x64   : > { %p1422_p9 = pnand %p1420_p8, %p1708_p7  ;;  %p1429_p1 = por %p1428_p12, %p1427_p11 }
  0x66   : > { %p1423_p10 = pneg %p1422_p9 }
  0x68   : > { %p1430_p3 = pnand %p1429_p1, %p1423_p10 }
  0x6a   : > { %1433 = shalt.err (!%p1430_p3)
}
  0x6b   : > { %1209 = dma.hbm_to_vmem [thread:$0]  (!%p1692_p5), %s2044_s2, 1024, %s235_s9, [#allocation6], %s1603_s23, %s1603_s23, %s1604_s28  }
  0x6c   : > { %s1434_s16 = scalar_lea.hbm %s2046_s4, 16 }
  0x6d   : > { %p1435_p1 = scmp.ne.s32.totalorder %s2046_s4, %s1434_s16  ;;  %p1441_p0 = scmp.lt.u32.totalorder %s1434_s16, %s2046_s4 }
  0x6f   : > { %p1437_p3 = pnand %p1435_p1, %p1708_p7 }
  0x71   : > { %p1438_p13 = pneg %p1437_p3 }
  0x73   : > { %p1443_p2 = pnand %p1441_p0, %p1438_p13 }
  0x75   : > { %1446 = shalt.err (!%p1443_p2)
}
  0x76   : > { %s1447_s21 = scalar_lea.vmem %s262_s14, 16  ;;  %s1454_s23 = scalar_lea.vmem %s262_s14, 32 }
  0x77   : > { %p1448_p4 = scmp.ne.s32.totalorder %s262_s14, %s1447_s21  ;;  %p1455_p9 = scmp.lt.s32.totalorder %s262_s14, %s262_s14 }
  0x78   : > { %p1456_p10 = scmp.lt.s32.totalorder %s1454_s23, %s1447_s21 }
  0x79   : > { %p1450_p6 = pnand %p1448_p4, %p1708_p7 }
  0x7a   : > { %p1457_p11 = por %p1456_p10, %p1455_p9 }
  0x7b   : > { %p1451_p8 = pneg %p1450_p6 }
  0x7d   : > { %p1458_p12 = pnand %p1457_p11, %p1451_p8 }
  0x7f   : > { %1461 = shalt.err (!%p1458_p12)
}
  0x80   : > { %1215 = dma.hbm_to_vmem [thread:$0]  (!%p1692_p5), %s2046_s4, 16, %s262_s14, [#allocation9]  }
  0x81   : > { %s1607_s13 = smov [#allocation13]   ;;  %s1462_s15 = scalar_lea.hbm %s2048_s6, 16 }
  0x82   : > { %s285_s29 = sshll.u32 %s1607_s13, 4  ;;  %p1463_p1 = scmp.ne.s32.totalorder %s2048_s6, %s1462_s15  ;;  %s286_s29 = int_to_ptr.vmem [resolvable:$true] %s285_s29 }
  0x83   : > { %p1469_p0 = scmp.lt.u32.totalorder %s1462_s15, %s2048_s6 }
  0x84   : > { %p1465_p3 = pnand %p1463_p1, %p1708_p7 }
  0x86   : > { %p1466_p13 = pneg %p1465_p3 }
  0x88   : > { %p1471_p2 = pnand %p1469_p0, %p1466_p13 }
  0x8a   : > { %1474 = shalt.err (!%p1471_p2)
}
  0x8b   : > { %s1475_s14 = scalar_lea.vmem %s286_s29, 16  ;;  %s1482_s10 = scalar_lea.vmem %s286_s29, 32 }
  0x8c   : > { %p1476_p4 = scmp.ne.s32.totalorder %s286_s29, %s1475_s14  ;;  %p1483_p9 = scmp.lt.s32.totalorder %s286_s29, %s286_s29 }
  0x8d   : > { %p1484_p10 = scmp.lt.s32.totalorder %s1482_s10, %s1475_s14 }
  0x8e   : > { %p1478_p6 = pnand %p1476_p4, %p1708_p7 }
  0x8f   : > { %p1485_p11 = por %p1484_p10, %p1483_p9 }
  0x90   : > { %p1479_p8 = pneg %p1478_p6 }
  0x92   : > { %p1486_p12 = pnand %p1485_p11, %p1479_p8 }
  0x94   : > { %1489 = shalt.err (!%p1486_p12)
}
  0x95   : > { %1221 = dma.hbm_to_vmem [thread:$0]  (!%p1692_p5), %s2048_s6, 16, %s286_s29, [#allocation12]  }
  0x96   : > { %s998_s19 = sadd.s32 4294967294, %s1598_s27   ;;  %s1843_s11 = sadd.s32 1, %s1598_s27  }
  0x97   : > { %s30_s28 = ssub.s32 %s1598_s27, %s1843_s11  ;;  %s33_s9 = sadd.s32 1, %s1594_s26 }
  0x98   : > { %p31_p7 = scmp.eq.s32.totalorder %s30_s28, 0  ;;  %p40_p1 = scmp.ne.s32.totalorder %s1594_s26, %s1590_s25 }
  0x99   : > { %p41_p3 = scmp.eq.s32.totalorder %s1598_s27, 0  ;;  %p46_p13 = scmp.ne.s32.totalorder %s1590_s25, %s1586_s24 }
  0x9a   : > { %s1854_s13 = scalar_select %p31_p7, %s1594_s26, %s33_s9  }
  0x9b   : > { %p42_p0 = por %p41_p3, %p40_p1  ;;  %p2058_p2 = scmp.eq.s32.totalorder %s1677_s30, 0 }
  0x9c   : > { %p196_p5 = scmp.eq.s32.totalorder %s1677_s30, 3  ;;  %p202_p6 = scmp.eq.s32.totalorder %s998_s19, 3 }
  0x9d   : > { %p1858_p4 = por %p2058_p2, %p46_p13  ;;  %p1236_p8 = scmp.lt.s32.totalorder %s1598_s27, 4 }
  0x9e   : > { %s296_s29 = sand.u32 1, %s1594_s26   ;;  %p1865_p9 = por %p196_p5, %p40_p1 }
  0x9f   : > { %p1869_p10 = por %p202_p6, %p46_p13  ;;  %s1172_s16 = smul.u32 24, %s296_s29 }
  0xa0   : > { %s2060_s12 = scalar_select %p1865_p9, 1, 0 }
  0xa1   : > { %s2061_s15 = scalar_select %p1869_p10, 1, 0 }
  0xa2   : > { %s1173_s17 = smul.u32 384, %s1598_s27  ;;  %p1874_p11 = pnand %p1236_p8, %p42_p0 }
  0xa3   : > { %s300_s21 = scalar_lea.vmem [#allocation2], %s1172_s16  ;;  %s1885_s19 = scalar_lea.sflag [#allocation3], %s296_s29 }
  0xa4   : > { %s1881_s10 = scalar_lea.hbm %s2042_s0, %s1173_s17  ;;  %s307_s23 = sshll.u32 %s300_s21, 4  ;;  %s1883_s23 = int_to_ptr.vmem [resolvable:$true] %s307_s23 }
  0xa5   : > { %s1490_s28 = scalar_lea.hbm %s1881_s10, 384  ;;  %p1492_p7 = pneg %p1874_p11 }
  0xa6   : > { %p1491_p12 = scmp.ne.s32.totalorder %s1881_s10, %s1490_s28  ;;  %s1495_s20 = scalar_lea.hbm %s2042_s0, 1536 }
  0xa7   : > { %p1496_p13 = scmp.lt.u32.totalorder %s1881_s10, %s2042_s0  ;;  %p1497_p0 = scmp.lt.u32.totalorder %s1495_s20, %s1490_s28 }
  0xa8   : > { %p1493_p1 = pnand %p1492_p7, %p1491_p12  ;;  %p1499_p5 = scmp.lt.u32.totalorder %s1490_s28, %s1881_s10 }
  0xa9   : > { %p1498_p2 = por %p1497_p0, %p1496_p13 }
  0xaa   : > { %p1494_p3 = pneg %p1493_p1 }
  0xab   : > { %p1500_p6 = por %p1499_p5, %p1498_p2 }
  0xad   : > { %p1501_p8 = pnand %p1500_p6, %p1494_p3 }
  0xaf   : > { %1504 = shalt.err (!%p1501_p8)
}
  0xb0   : > { %s1505_s29 = scalar_lea.vmem %s1883_s23, 384  ;;  %s1608_s16 = smov [#allocation2]  }
  0xb1   : > { %p1506_p12 = scmp.ne.s32.totalorder %s1883_s23, %s1505_s29  ;;  %s1510_s21 = sshll.u32 %s1608_s16, 4  ;;  %s1511_s21 = int_to_ptr.vmem [resolvable:$false] %s1510_s21 }
  0xb2   : > { %s1512_s1 = scalar_lea.vmem %s1511_s21, 768  ;;  %p1513_p9 = scmp.lt.s32.totalorder %s1883_s23, %s1511_s21 }
  0xb3   : > { %p1508_p1 = pnand %p1506_p12, %p1492_p7  ;;  %p1514_p13 = scmp.lt.s32.totalorder %s1512_s1, %s1505_s29 }
  0xb5   : > { %p1509_p10 = pneg %p1508_p1  ;;  %p1515_p0 = por %p1514_p13, %p1513_p9 }
  0xb7   : > { %p1516_p2 = pnand %p1515_p0, %p1509_p10 }
  0xb9   : > { %1519 = shalt.err (!%p1516_p2)
}
  0xba   : > { %s1609_s28 = smov 128   ;;  %s1610_s9 = smov 8  }
  0xbb   : > { %1225 = dma.hbm_to_vmem [thread:$0]  (!%p1874_p11), %s1881_s10, 384, %s1883_s23, %s1885_s19, %s1609_s28, %s1609_s28, %s1610_s9  }
  0xbc   : > { %p2063_p7 = scmp.ne.s32.totalorder %s2054_s8, 0 }
  0xbd   : > { %s1916_s17 = sand.u32 (!%p2063_p7), 1, %s1590_s25  }
  0xbe   : > { %319 = sbr.rel (%p2063_p7) target bundleno = 728 (0x2d8), region = 48  ;;  %s322_s14 = scalar_lea.sflag (!%p2063_p7), [#allocation3], %s1916_s17 }
  0xbf   : > { %s1174_s20 = smul.u32 (!%p2063_p7), 24, %s1916_s17 }
  0xc1   : > { %s1920_s29 = scalar_lea.vmem (!%p2063_p7), [#allocation2], %s1174_s20 }
  0xc5   : > { %1565 = dma.done.wait (%p1858_p4), %s322_s14, 384  }
  0xc6   : > { %1567 = vsyncadd (%p1858_p4), %s322_s14, 4294966912  ;;  %p2064_p9 = scmp.eq.s32.totalorder %s1677_s30, 0 }
  0xc8   : > { %1569 = dma.done.wait (%p2064_p9), [#allocation6], 2048   ;;  %p2065_p10 = pmov %p2064_p9 }
  0xc9   : > { %p2066_p11 = pmov %p2064_p9 }
  0xca   : > { %1571 = vsyncadd (%p2065_p10), [#allocation6], 4294965248 }
  0xcb   : > { %1573 = dma.done.wait (%p2066_p11), [#allocation9], 1040   ;;  %p2067_p3 = pmov %p2064_p9 }
  0xcd   : > { %1575 = vsyncadd (%p2067_p3), [#allocation9], 4294966256  ;;  %p2068_p5 = pmov %p2067_p3 }
  0xce   : > { %p2069_p6 = pmov %p2067_p3 }
  0xcf   : > { %1577 = dma.done.wait (%p2068_p5), [#allocation12], 1040  }
  0xd0   : > { %1579 = vsyncadd (%p2069_p6), [#allocation12], 4294966256  ;;  %v1611_v0 = vmov 0.0   ;;  %vm1612_vm0 = vmmov 0   ;;  %v1290_v1 = vld [vmem:[#allocation7] sm:$0xff]   ;;  %v1292_v3 = vld [vmem:[#allocation7 + $0x8] sm:$0xff]  }
  0xd1   : > { %1092 = vmatprep.subr.bf16.mxu0 %v1611_v0  ;;  %1112 = vmatprep.subr.bf16.mxu1 %v1611_v0  ;;  %v1291_v2 = vld [vmem:[#allocation5] sm:$0xff]   ;;  %v1293_v4 = vld [vmem:[#allocation5 + $0x8] sm:$0xff]   ;;  %v1294_v5 = vld [vmem:[#allocation7 + $0x10] sm:$0xff]   ;;  %vm418_vm1 = vsmask.f32 7424  ;;  %vm628_vm2 = vcmask 1046528  }
  0xd2   : > { %1108 = vmatprep.mubr.msk.bf16.mxu0 %vm1612_vm0, %v1611_v0  ;;  %1128 = vmatprep.mubr.msk.bf16.mxu1 %vm1612_vm0, %v1611_v0  ;;  %v1295_v6 = vld [vmem:[#allocation5 + $0x10] sm:$0xff]   ;;  %v1296_v7 = vld [vmem:[#allocation7 + $0x18] sm:$0xff]   ;;  %v1298_v9 = vld [vmem:[#allocation7 + $0x20] sm:$0xff]   ;;  %s1015_s8 = sshll.u32 %s1916_s17, 4  ;;  %s1055_s10 = sshll.u32 %s1677_s30, 8 }
  0xd3   : > { %1093 = vmatpush3.bf16.msra.mxu0 %v1290_v1  ;;  %1113 = vmatpush3.bf16.msra.mxu1 %v1291_v2  ;;  %v1297_v8 = vld [vmem:[#allocation5 + $0x18] sm:$0xff]   ;;  %v1299_v10 = vld [vmem:[#allocation5 + $0x20] sm:$0xff]   ;;  %v381_v11 = vld [vmem:[%s1920_s29] sm:$0xff]  ;;  %s379_s22 = scalar_lea.vmem [#allocation14], %s1015_s8  ;;  %s1999_s16 = scalar_lea.hbm %s2049_s7, %s1055_s10 }
  0xd4   : > { %1094 = vmatprep.subr.bf16.mxu0 %v1611_v0  ;;  %1114 = vmatprep.subr.bf16.mxu1 %v1611_v0  ;;  %v382_v12 = vld [vmem:[%s1920_s29 + $0x8] sm:$0xff]  ;;  %v383_v13 = vld [vmem:[%s1920_s29 + $0x10] sm:$0x3]  ;;  %v1300_v16 = vld [vmem:[#allocation7 + $0x28] sm:$0xff]   ;;  %s868_s18 = sshll.u32 %s379_s22, 4  ;;  %s855_s21 = scalar_lea.sflag [#allocation4], %s1916_s17  ;;  %s1994_s18 = int_to_ptr.vmem [resolvable:$true] %s868_s18 }
  0xd5   : > { %v1955_v14 = vpack.c.bf16 %v382_v12, %v381_v11  ;;  %v1957_v15 = vpack.c.bf16 %v383_v13, %v383_v13  ;;  %v1301_v17 = vld [vmem:[#allocation5 + $0x28] sm:$0xff]   ;;  %v1302_v19 = vld [vmem:[#allocation7 + $0x30] sm:$0xff]   ;;  %v1304_v24 = vld [vmem:[#allocation7 + $0x38] sm:$0xff]   ;;  %s1520_s30 = scalar_lea.vmem %s1994_s18, 256  ;;  %p2070_p8 = scmp.ne.s32.totalorder %s2060_s12, 0 }
  0xd6   : > { %v1303_v23 = vld [vmem:[#allocation5 + $0x30] sm:$0xff]   ;;  %v1305_v25 = vld [vmem:[#allocation5 + $0x38] sm:$0xff]   ;;  %v1306_v29 = vld [vmem:[#allocation8] sm:$0xff]   ;;  %p1521_p4 = scmp.ne.s32.totalorder %s1994_s18, %s1520_s30  ;;  %s1613_s1 = smov [#allocation14]  }
  0xd7   : > { %1095 = vmatpush3.bf16.msra.mxu0 %v1292_v3  ;;  %1115 = vmatpush3.bf16.msra.mxu1 %v1293_v4  ;;  %v422_v18 = vshll.u32 %v1955_v14, 16  ;;  %v420_v20 = vshrl.u32 %v1955_v14, 16  ;;  %v427_v22 = vshll.u32 %v1957_v15, 16  ;;  %v1307_v30 = vld [vmem:[#allocation8 + $0x8] sm:$0xff]   ;;  %v1308_v31 = vld [vmem:[#allocation8 + $0x10] sm:$0xff]   ;;  %v1309_v32 = vld [vmem:[#allocation8 + $0x18] sm:$0xff]  }
  0xd8   : > { %1096 = vmatprep.subr.bf16.mxu0 %v1611_v0  ;;  %1116 = vmatprep.subr.bf16.mxu1 %v1611_v0  ;;  %v1310_v33 = vld [vmem:[#allocation8 + $0x20] sm:$0xff]   ;;  %v1311_v34 = vld [vmem:[#allocation8 + $0x28] sm:$0xff]   ;;  %v1312_v35 = vld [vmem:[#allocation8 + $0x30] sm:$0xff]   ;;  %v629_v37 = vrot.slane %v1955_v14, 1  ;;  %v630_v38 = vrot.slane %v1957_v15, 1  ;;  %p1522_p12 = pnand %p1521_p4, %p2070_p8  ;;  %s1524_s28 = sshll.u32 %s1613_s1, 4  ;;  %s1525_s28 = int_to_ptr.vmem [resolvable:$false] %s1524_s28 }
  0xd9   : > { %v424_v21 = vrot.slane %v422_v18, 1  ;;  %v429_v26 = vrot.slane %v427_v22, 1  ;;  %v1313_v36 = vld [vmem:[#allocation8 + $0x38] sm:$0xff]   ;;  %v1314_v40 = vld [vmem:[#allocation11] sm:$0xff]   ;;  %v1315_v41 = vld [vmem:[#allocation11 + $0x8] sm:$0xff]   ;;  %s1526_s9 = scalar_lea.vmem %s1525_s28, 512  ;;  %p1527_p13 = scmp.lt.s32.totalorder %s1994_s18, %s1525_s28 }
  0xda   : > { %v631_v39 = vsel %vm628_vm2, %v629_v37, %v630_v38  ;;  %v1316_v42 = vld [vmem:[#allocation11 + $0x10] sm:$0xff]   ;;  %v1317_v43 = vld [vmem:[#allocation11 + $0x18] sm:$0xff]   ;;  %v1318_v44 = vld [vmem:[#allocation11 + $0x20] sm:$0xff]   ;;  %p1523_p1 = pneg %p1522_p12  ;;  %p1528_p0 = scmp.lt.s32.totalorder %s1526_s9, %s1520_s30 }
  0xdb   : > { %1097 = vmatpush3.bf16.msra.mxu0 %v1294_v5  ;;  %1117 = vmatpush3.bf16.msra.mxu1 %v1295_v6  ;;  %v425_v27 = vor.u32 %v424_v21, %v420_v20  ;;  %v1319_v45 = vld [vmem:[#allocation11 + $0x28] sm:$0xff]   ;;  %v1320_v46 = vld [vmem:[#allocation11 + $0x30] sm:$0xff]   ;;  %v1321_v47 = vld [vmem:[#allocation11 + $0x38] sm:$0xff]  }
  0xdc   : > { %1098 = vmatprep.subr.bf16.mxu0 %v1611_v0  ;;  %1118 = vmatprep.subr.bf16.mxu1 %v1611_v0  ;;  %v1040_v59 = vld [vmem:[#allocation10] ss:$0 sm:$0xff]  ;;  %p1529_p2 = por %p1528_p0, %p1527_p13 }
  0xdd   : > { %v430_v28 = vsel %vm418_vm1, %v425_v27, %v429_v26 }
  0xde   : > { %p1530_p7 = pnand %p1529_p2, %p1523_p1 }
  0xdf   : > { %1099 = vmatpush3.bf16.msra.mxu0 %v1296_v7  ;;  %1119 = vmatpush3.bf16.msra.mxu1 %v1297_v8  ;;  %v1041_v8 = vld [vmem:[#allocation13] ss:$0 sm:$0xff] }
  0xe0   : > { %1100 = vmatprep.subr.bf16.mxu0 %v1611_v0  ;;  %1120 = vmatprep.subr.bf16.mxu1 %v1611_v0 }
  0xe3   : > { %1101 = vmatpush3.bf16.msra.mxu0 %v1298_v9  ;;  %1121 = vmatpush3.bf16.msra.mxu1 %v1299_v10 }
  0xe4   : > { %1102 = vmatprep.subr.bf16.mxu0 %v1611_v0  ;;  %1122 = vmatprep.subr.bf16.mxu1 %v1611_v0 }
  0xe7   : > { %1103 = vmatpush3.bf16.msra.mxu0 %v1300_v16  ;;  %1123 = vmatpush3.bf16.msra.mxu1 %v1301_v17 }
  0xe8   : > { %1104 = vmatprep.subr.bf16.mxu0 %v1611_v0  ;;  %1124 = vmatprep.subr.bf16.mxu1 %v1611_v0 }
  0xeb   : > { %1105 = vmatpush3.bf16.msra.mxu0 %v1302_v19  ;;  %1125 = vmatpush3.bf16.msra.mxu1 %v1303_v23 }
  0xec   : > { %1106 = vmatprep.subr.bf16.mxu0 %v1611_v0  ;;  %1126 = vmatprep.subr.bf16.mxu1 %v1611_v0 }
  0xef   : > { %1107 = vmatpush3.bf16.msra.mxu0 %v1304_v24  ;;  %1127 = vmatpush3.bf16.msra.mxu1 %v1305_v25 }
  0xf0   : > { %1132 = vmatprep.subr.bf16.mxu0 %v1611_v0  ;;  %1152 = vmatprep.subr.bf16.mxu1 %v1611_v0 }
  0xf2   : > { %1109 = vmatmul.mubr.bf16.vlgmr.msra.gmra.mrb[0].mxu0 %v430_v28  ;;  %1129 = vmatmul.mubr.bf16.vlgmr.msra.gmra.mrb[0].mxu1 %v1955_v14 }
  0xf3   : > { %1133 = vmatpush3.bf16.msra.mxu0 %v1306_v29  ;;  %1148 = vmatprep.mubr.msk.bf16.mxu0 %vm1612_vm0, %v1611_v0 }
  0xf4   : > { %1134 = vmatprep.subr.bf16.mxu0 %v1611_v0  ;;  %1168 = vmatprep.mubr.msk.bf16.mxu1 %vm1612_vm0, %v1611_v0 }
  0xf5   : > { %1153 = vmatpush3.bf16.msra.mxu1 %v1314_v40 }
  0xf6   : > { %1154 = vmatprep.subr.bf16.mxu1 %v1611_v0 }
  0xf7   : > { %1135 = vmatpush3.bf16.msra.mxu0 %v1307_v30 }
  0xf8   : > { %1136 = vmatprep.subr.bf16.mxu0 %v1611_v0 }
  0xf9   : > { %1155 = vmatpush3.bf16.msra.mxu1 %v1315_v41 }
  0xfa   : > { %1156 = vmatprep.subr.bf16.mxu1 %v1611_v0 }
  0xfb   : > { %1137 = vmatpush3.bf16.msra.mxu0 %v1308_v31 }
  0xfc   : > { %1138 = vmatprep.subr.bf16.mxu0 %v1611_v0 }
  0xfd   : > { %1157 = vmatpush3.bf16.msra.mxu1 %v1316_v42 }
  0xfe   : > { %1158 = vmatprep.subr.bf16.mxu1 %v1611_v0 }
  0xff   : > { %1139 = vmatpush3.bf16.msra.mxu0 %v1309_v32 }
 0x100   : > { %1140 = vmatprep.subr.bf16.mxu0 %v1611_v0 }
 0x101   : > { %1159 = vmatpush3.bf16.msra.mxu1 %v1317_v43 }
 0x102   : > { %1160 = vmatprep.subr.bf16.mxu1 %v1611_v0 }
 0x103   : > { %1141 = vmatpush3.bf16.msra.mxu0 %v1310_v33 }
 0x104   : > { %1142 = vmatprep.subr.bf16.mxu0 %v1611_v0 }
 0x105   : > { %1161 = vmatpush3.bf16.msra.mxu1 %v1318_v44 }
 0x106   : > { %1162 = vmatprep.subr.bf16.mxu1 %v1611_v0 }
 0x107   : > { %1143 = vmatpush3.bf16.msra.mxu0 %v1311_v34 }
 0x108   : > { %1144 = vmatprep.subr.bf16.mxu0 %v1611_v0 }
 0x109   : > { %1163 = vmatpush3.bf16.msra.mxu1 %v1319_v45 }
 0x10a   : > { %1164 = vmatprep.subr.bf16.mxu1 %v1611_v0 }
 0x10b   : > { %1145 = vmatpush3.bf16.msra.mxu0 %v1312_v35 }
 0x10c   : > { %1146 = vmatprep.subr.bf16.mxu0 %v1611_v0 }
 0x10d   : > { %1165 = vmatpush3.bf16.msra.mxu1 %v1320_v46 }
 0x10e   : > { %1166 = vmatprep.subr.bf16.mxu1 %v1611_v0 }
 0x10f   : > { %1147 = vmatpush3.bf16.msra.mxu0 %v1313_v36 }
 0x111   : > { %1167 = vmatpush3.bf16.msra.mxu1 %v1321_v47 }
 0x112   : > { %1149 = vmatmul.mubr.bf16.vlgmr.msra.gmra.mrb[4].mxu0 %v631_v39 }
 0x1c5   : > { %v514_v48 = vpop.f32.mrb[0].mxu0  ;;  %v603_v49 = vpop.f32.mrb[0].mxu1 }
 0x1c6   : > { %v1110_v50 = vpop.f32.mrb[1].mxu0  ;;  %v604_v51 = vadd.f32 %v603_v49, %v514_v48  ;;  %v1130_v52 = vpop.f32.mrb[1].mxu1 }
 0x1c7   : > { %v517_v53 = vpop.f32.mrb[2].mxu0  ;;  %v606_v54 = vpop.f32.mrb[2].mxu1 }
 0x1c8   : > { %v1111_v55 = vpop.f32.mrb[3].mxu0  ;;  %v607_v56 = vadd.f32 %v606_v54, %v517_v53  ;;  %v1131_v57 = vpop.f32.mrb[3].mxu1 }
 0x1e5   : > { %v715_v58 = vpop.f32.mrb[4].mxu0 }
 0x1e6   : > { %v722_v60 = vadd.f32 %v715_v58, %v604_v51  ;;  %v1150_v61 = vpop.f32.mrb[5].mxu0 }
 0x1e7   : > { %v718_v62 = vpop.f32.mrb[6].mxu0 }
 0x1e8   : > { %v731_v63 = vadd.f32 %v1040_v59, %v722_v60  ;;  %v723_v0 = vadd.f32 %v718_v62, %v607_v56  ;;  %v1151_v1 = vpop.f32.mrb[7].mxu0 }
 0x1ea   : > { %v735_v2 = vmul.f32 0.2, %v731_v63  ;;  %v732_v3 = vadd.f32 %v1040_v59, %v723_v0  ;;  %vm733_vm3 = vcmp.ge.f32.partialorder %v731_v63, 0.0 }
 0x1ec   : > { %vm734_vm4 = vcmp.ge.f32.partialorder %v732_v3, 0.0  ;;  %v736_v4 = vmul.f32 0.2, %v732_v3  ;;  %v737_v5 = vsel %vm733_vm3, %v731_v63, %v735_v2 }
 0x1ee   : > { %v738_v6 = vsel %vm734_vm4, %v732_v3, %v736_v4 }
 0x1ef   : > { %v739_v7 = vpack.c.bf16 %v738_v6, %v737_v5 }
 0x1f1   : > { %1169 = vmatmul.mubr.bf16.vlgmr.msra.gmra.mrb[4].mxu1 %v739_v7 }
 0x2c4   : > { %v845_v9 = vpop.f32.mrb[4].mxu1 }
 0x2c5   : > { %v846_v10 = vadd.f32 %v1041_v8, %v845_v9  ;;  %v1170_v11 = vpop.f32.mrb[5].mxu1 }
 0x2c6   : > { %v848_v12 = vpop.f32.mrb[6].mxu1 }
 0x2c7   : > { %852 = vst [vmem:[%s379_s22] sm:$0xff] %v846_v10  ;;  %v849_v13 = vadd.f32 %v1041_v8, %v848_v12  ;;  %v1171_v14 = vpop.f32.mrb[7].mxu1 }
 0x2c9   : > { %853 = vst [vmem:[%s379_s22 + $0x8] sm:$0xff] %v849_v13 }
 0x2ca   : > { %1533 = shalt.err (!%p1530_p7)
}
 0x2cb   : > { %s1534_s20 = scalar_lea.hbm %s1999_s16, 256  ;;  %s1538_s8 = scalar_lea.hbm %s2049_s7, 1024 }
 0x2cc   : > { %p1535_p9 = scmp.ne.s32.totalorder %s1999_s16, %s1534_s20  ;;  %p1539_p3 = scmp.lt.u32.totalorder %s1999_s16, %s2049_s7 }
 0x2cd   : > { %p1540_p5 = scmp.lt.u32.totalorder %s1538_s8, %s1534_s20  ;;  %p1542_p4 = scmp.lt.u32.totalorder %s1534_s20, %s1999_s16 }
 0x2ce   : > { %p1536_p10 = pnand %p1535_p9, %p2070_p8 }
 0x2cf   : > { %p1541_p6 = por %p1540_p5, %p1539_p3 }
 0x2d0   : > { %p1537_p11 = pneg %p1536_p10 }
 0x2d1   : > { %p1543_p12 = por %p1542_p4, %p1541_p6 }
 0x2d3   : > { %p1544_p1 = pnand %p1543_p12, %p1537_p11 }
 0x2d5   : > { %1547 = shalt.err (!%p1544_p1)
}
 0x2d6   : > { %s1614_s23 = smov 128   ;;  %s1615_s19 = smov 8  }
 0x2d7   : > { %1201 = dma.vmem_to_hbm [thread:$0]  (%p2070_p8), %s1994_s18, 256, %s1999_s16, %s855_s21, %s1614_s23, %s1614_s23, %s1615_s19  }
 0x2d8 PF: > { %p1243_p13 = scmp.ge.s32.totalorder %s1598_s27, 2  ;;  %s883_s30 = sand.u32 1, %s1586_s24  }
 0x2d9   : > { %p2071_p0 = scmp.ne.s32.totalorder %s2061_s15, 0  ;;  %s884_s1 = scalar_lea.sflag [#allocation4], %s883_s30 }
 0x2db   : > { %p1227_p2 = pnand %p1243_p13, %p2071_p0 }
 0x2dd   : > { %1581 = dma.done.wait (!%p1227_p2), %s884_s1, 256  }
 0x2de   : > { %1583 = vsyncadd (!%p1227_p2), %s884_s1, 4294967040  ;;  %p23_p7 = scmp.ge.s32.totalorder %s1843_s11, 6   ;;  %s2072_s24 = smov %s1590_s25 }
 0x2df   : > { %s2073_s25 = smov %s1594_s26  ;;  %s2074_s26 = smov %s1854_s13 }
 0x2e0   : > { %s2075_s27 = smov %s1843_s11  ;;  %25 = sbr.rel (!%p23_p7) target bundleno = 10 (0xa), region = 117 }
 0x2e7   :  { %889 = vsyncpa [#allocation3], 1 }
 0x2e8   :  { %891 = vsyncpa [#allocation3 + $0x1], 1 }
 0x2e9   :  { %892 = vsyncpa [#allocation6], 1 }
 0x2ea   :  { %893 = vsyncpa [#allocation9], 1 }
 0x2eb   :  { %894 = vsyncpa [#allocation12], 1 }
 0x2ec   :  { %895 = vsyncpa [#allocation4], 1 }
 0x2ed   :  { %897 = vsyncpa [#allocation4 + $0x1], 1 }

</bundles_post_ra>
